<compile_context>
chip_gen: v6e
topology: v6e:2x2x1
jax: 0.10.0
libtpu: 0.0.40
codegen_flags: <defaults>
</compile_context>

<pallas_src>
import functools

import jax
import jax.numpy as jnp
from jax.experimental import pallas as pl
from jax.experimental.pallas import tpu as pltpu

# ----------------------------------------------------------------------------
# synthetic "t5-small-like" config (small shapes)
# ----------------------------------------------------------------------------
CFG = dict(
    vocab_size=64,
    d_model=64,
    d_kv=16,
    num_heads=4,
    d_ff=128,
    num_layers=2,
    rel_buckets=32,
    rel_max_dist=128,
    eos_token_id=1,
    pad_token_id=0,
    decoder_start_token_id=0,
    num_classes=3,
    layer_norm_eps=1e-6,
    cls_pad=128,  # lane-dense classification-head output width
)

_VMEM = pl.BlockSpec(memory_space=pltpu.MemorySpace.VMEM)


# ----------------------------------------------------------------------------
# in-kernel helpers
# ----------------------------------------------------------------------------
def _rms(x, w, eps):
    # T5LayerNorm: no mean subtraction, rms over last axis, scale by weight.
    var = jnp.mean(x * x, axis=-1, keepdims=True)
    return x * jax.lax.rsqrt(var + eps) * w


def _mha(q_all, k_all, v_all, bias, s_ref, c_ref, *, B, Lq, Lk, H, Dk):
    """Multi-head attention with batched softmax and a single fused context buf.

    q_all : (B*Lq, H*Dk) f32, k_all/v_all : (B*Lk, H*Dk) f32
    bias  : (B*H*Lq, Lk) f32 (rel-pos + causal + padding, precomputed)
    s_ref : VMEM scratch (B*H*Lq, Lk) f32 (scores)
    c_ref : VMEM scratch (B*Lq, H*Dk) f32 (context, heads concatenated on lanes)
    Returns the (B*Lq, H*Dk) context (caller applies the single o-projection).
    """
    for b in range(B):
        for h in range(H):
            q = q_all[b * Lq:(b + 1) * Lq, h * Dk:(h + 1) * Dk].astype(jnp.bfloat16)
            k = k_all[b * Lk:(b + 1) * Lk, h * Dk:(h + 1) * Dk].astype(jnp.bfloat16)
            # T5 convention: no 1/sqrt(d_kv) scaling.
            s_ref[pl.ds((b * H + h) * Lq, Lq), :] = jax.lax.dot_general(
                q, k, (((1,), (1,)), ((), ())),
                preferred_element_type=jnp.float32)
    # one batched softmax over all (b, h, q) rows
    s = s_ref[...] + bias
    m = jnp.max(s, axis=-1, keepdims=True)
    p = jnp.exp(s - m)
    p = p * pl.reciprocal(jnp.sum(p, axis=-1, keepdims=True), approx=True)
    p = p.astype(jnp.bfloat16)
    for b in range(B):
        for h in range(H):
            ph = p[(b * H + h) * Lq:(b * H + h + 1) * Lq, :]
            vh = v_all[b * Lk:(b + 1) * Lk, h * Dk:(h + 1) * Dk].astype(jnp.bfloat16)
            c_ref[pl.ds(b * Lq, Lq), pl.ds(h * Dk, Dk)] = jnp.dot(
                ph, vh, preferred_element_type=jnp.float32)
    return c_ref[...]


# ----------------------------------------------------------------------------
# single fused forward kernel
# ----------------------------------------------------------------------------
def _t5_fused_kernel(
    enc_emb_ref, dec_emb_ref, enc_bias_ref, dec_bias_ref, cross_bias_ref, eos_ref,
    e_ln0_ref, e_wqkv_ref, e_wo_ref, e_ln1_ref, e_wi_ref, e_wff_ref,
    d_ln0_ref, d_wqkv_ref, d_wos_ref, d_ln1_ref, d_wq_ref, d_wkv_ref, d_woc_ref,
    d_ln2_ref, d_wi_ref, d_wff_ref,
    enc_fln_ref, dec_fln_ref,
    cls_w1_ref, cls_b1_ref, cls_w2_ref, cls_b2_ref,
    logits_ref, dec_out_ref,
    s_scr, c_scr,
    *, B, L, H, Dk, NL, eps,
):
    inner = H * Dk

    def proj(x, w):  # bf16 MXU operands, f32 accumulation (weights already bf16)
        return jnp.dot(x.astype(jnp.bfloat16), w, preferred_element_type=jnp.float32)

    # ------------------------- encoder stack -------------------------
    x = enc_emb_ref[...]                         # (B*L, D) f32, VMEM-resident
    enc_bias = enc_bias_ref[...]
    for l in range(NL):
        # self-attention block
        xn = _rms(x, e_ln0_ref[l], eps)
        qkv = proj(xn, e_wqkv_ref[l])            # (B*L, 3*inner)
        ctx = _mha(qkv[:, :inner], qkv[:, inner:2 * inner], qkv[:, 2 * inner:],
                   enc_bias, s_scr, c_scr, B=B, Lq=L, Lk=L, H=H, Dk=Dk)
        x = x + proj(ctx, e_wo_ref[l])
        # FFN block (DenseReluDense)
        xn = _rms(x, e_ln1_ref[l], eps)
        x = x + proj(jnp.maximum(proj(xn, e_wi_ref[l]), 0.0), e_wff_ref[l])
    enc_h = _rms(x, enc_fln_ref[...], eps)       # final encoder LayerNorm (fused)

    # -------- classification head on last-eos rows of encoder output --------
    # dropout(p=0.1) is identity in eval mode; eos gather done as a one-hot matmul
    sent = jnp.dot(eos_ref[...], enc_h, preferred_element_type=jnp.float32)  # (B, D)
    hcls = jnp.tanh(proj(sent, cls_w1_ref[...]) + cls_b1_ref[...])
    logits_ref[...] = proj(hcls, cls_w2_ref[...]) + cls_b2_ref[...]          # (B, 128)

    # ------------------------- decoder stack -------------------------
    dec_bias = dec_bias_ref[...]
    cross_bias = cross_bias_ref[...]
    y = dec_emb_ref[...]
    for l in range(NL):
        # self-attention (causal + rel-pos bias)
        yn = _rms(y, d_ln0_ref[l], eps)
        qkv = proj(yn, d_wqkv_ref[l])
        ctx = _mha(qkv[:, :inner], qkv[:, inner:2 * inner], qkv[:, 2 * inner:],
                   dec_bias, s_scr, c_scr, B=B, Lq=L, Lk=L, H=H, Dk=Dk)
        y = y + proj(ctx, d_wos_ref[l])
        # cross-attention over encoder output
        yn = _rms(y, d_ln1_ref[l], eps)
        q_all = proj(yn, d_wq_ref[l])
        kv = proj(enc_h, d_wkv_ref[l])
        ctx = _mha(q_all, kv[:, :inner], kv[:, inner:],
                   cross_bias, s_scr, c_scr, B=B, Lq=L, Lk=L, H=H, Dk=Dk)
        y = y + proj(ctx, d_woc_ref[l])
        # FFN block
        yn = _rms(y, d_ln2_ref[l], eps)
        y = y + proj(jnp.maximum(proj(yn, d_wi_ref[l]), 0.0), d_wff_ref[l])
    dec_out_ref[...] = _rms(y, dec_fln_ref[...], eps)   # final decoder LayerNorm


def t5_fused_forward(params, enc_emb, dec_emb, enc_bias, dec_bias, cross_bias,
                     eos_onehot, B, L, cfg):
    D, H, Dk, NL = cfg["d_model"], cfg["num_heads"], cfg["d_kv"], cfg["num_layers"]
    CP = cfg["cls_pad"]
    enc, dec, cls = params["enc"], params["dec"], params["cls"]
    kernel = functools.partial(_t5_fused_kernel, B=B, L=L, H=H, Dk=Dk, NL=NL,
                               eps=cfg["layer_norm_eps"])
    return pl.pallas_call(
        kernel,
        out_shape=(jax.ShapeDtypeStruct((B, CP), jnp.float32),
                   jax.ShapeDtypeStruct((B * L, D), jnp.float32)),
        in_specs=[_VMEM] * 28,
        out_specs=(_VMEM, _VMEM),
        scratch_shapes=[pltpu.VMEM((B * H * L, L), jnp.float32),   # scores
                        pltpu.VMEM((B * L, H * Dk), jnp.float32)],  # context
    )(enc_emb, dec_emb, enc_bias, dec_bias, cross_bias, eos_onehot,
      enc["ln0"], enc["wqkv"], enc["wo"], enc["ln1"], enc["wi"], enc["wff"],
      dec["ln0"], dec["wqkv"], dec["wo_s"], dec["ln1"], dec["wq"], dec["wkv"],
      dec["wo_c"], dec["ln2"], dec["wi"], dec["wff"],
      params["enc_fln"], params["dec_fln"],
      cls["w1"], cls["b1"], cls["w2"], cls["b2"])


# ----------------------------------------------------------------------------
# T5 glue (plain JAX)
# ----------------------------------------------------------------------------
def _relative_position_bucket(rel_pos, bidirectional, num_buckets, max_distance):
    relative_buckets = jnp.zeros_like(rel_pos)
    if bidirectional:
        num_buckets = num_buckets // 2
        relative_buckets = relative_buckets + (rel_pos > 0).astype(jnp.int32) * num_buckets
        rel_pos = jnp.abs(rel_pos)
    else:
        rel_pos = -jnp.minimum(rel_pos, jnp.zeros_like(rel_pos))
    max_exact = num_buckets // 2
    is_small = rel_pos < max_exact
    rp_f = jnp.maximum(rel_pos, 1).astype(jnp.float32)
    rel_if_large = max_exact + (
        jnp.log(rp_f / max_exact)
        / jnp.log(max_distance / max_exact)
        * (num_buckets - max_exact)
    ).astype(jnp.int32)
    rel_if_large = jnp.minimum(rel_if_large, num_buckets - 1)
    return relative_buckets + jnp.where(is_small, rel_pos, rel_if_large)


def compute_bias(qlen, klen, rel_emb, bidirectional, cfg):
    ctx = jnp.arange(qlen)[:, None]
    mem = jnp.arange(klen)[None, :]
    rel_pos = mem - ctx
    buckets = _relative_position_bucket(
        rel_pos, bidirectional, cfg["rel_buckets"], cfg["rel_max_dist"])
    values = rel_emb[buckets]                      # (q, k, H)
    return jnp.transpose(values, (2, 0, 1))        # (H, q, k)


def shift_right(input_ids, cfg):
    shifted = jnp.zeros_like(input_ids)
    shifted = shifted.at[:, 1:].set(input_ids[:, :-1])
    shifted = shifted.at[:, 0].set(cfg["decoder_start_token_id"])
    return jnp.where(shifted == -100, cfg["pad_token_id"], shifted)


def t5_forward(params, input_ids, attention_mask, cfg):
    B, L = input_ids.shape
    D, H = cfg["d_model"], cfg["num_heads"]

    enc_emb = params["shared"][input_ids].reshape(B * L, D)
    dec_ids = shift_right(input_ids, cfg)
    dec_emb = params["shared"][dec_ids].reshape(B * L, D)

    # attention biases, precomputed flat as (B*H*L, L) — rel-pos bias is computed
    # once (layer 0) and shared across layers, like HF T5
    mask_bias = (1.0 - attention_mask.astype(jnp.float32)) * -1e9        # (B, L)
    enc_rel = compute_bias(L, L, params["enc_rel_emb"], True, cfg)        # (H, L, L)
    enc_bias = (enc_rel[None] + mask_bias[:, None, None, :]).reshape(B * H * L, L)

    causal = (1.0 - jnp.tril(jnp.ones((L, L), jnp.float32))) * -1e9
    dec_rel = compute_bias(L, L, params["dec_rel_emb"], False, cfg)
    # default HF decoder attention mask is all ones -> only causal + rel bias
    dec_bias = jnp.broadcast_to((dec_rel + causal[None])[None],
                                (B, H, L, L)).reshape(B * H * L, L)
    cross_bias = jnp.broadcast_to(mask_bias[:, None, None, :],
                                  (B, H, L, L)).reshape(B * H * L, L)

    # eos pooling: one-hot row selector for the LAST eos position per example
    # (reference pools from encoder_outputs[0]).
    # TODO(synk): the reference's uniform-eos-count ValueError check is a host-side
    # data validation with no in-kernel equivalent; inputs are built to satisfy it.
    eos_mask = (input_ids == cfg["eos_token_id"]).astype(jnp.int32)
    last_eos = (L - 1) - jnp.argmax(jnp.flip(eos_mask, axis=1), axis=1)
    eos_onehot = jax.nn.one_hot(jnp.arange(B) * L + last_eos, B * L,
                                dtype=jnp.float32)                        # (B, B*L)

    logits_pad, dec_flat = t5_fused_forward(
        params, enc_emb, dec_emb, enc_bias, dec_bias, cross_bias, eos_onehot,
        B, L, cfg)
    # tie_word_embeddings=False here, so no model_dim**-0.5 rescale of decoder output.
    return logits_pad[:, :cfg["num_classes"]], dec_flat.reshape(B, L, D)


# ----------------------------------------------------------------------------
# deterministic parameter init (weights stacked over layers, bf16 at rest)
# ----------------------------------------------------------------------------
def init_params(key, cfg):
    D, H, Dk, F = cfg["d_model"], cfg["num_heads"], cfg["d_kv"], cfg["d_ff"]
    NL = cfg["num_layers"]
    inner = H * Dk
    keys = iter(jax.random.split(key, 512))

    def nrm(shape, scale):
        return (scale * jax.random.normal(next(keys), shape)).astype(jnp.float32)

    def nrm_bf(shape, scale):
        return nrm(shape, scale).astype(jnp.bfloat16)

    def stack(fn):
        return jnp.stack([fn() for _ in range(NL)], axis=0)

    def wqkv():
        q = nrm((D, inner), (D * Dk) ** -0.5)
        k = nrm((D, inner), D ** -0.5)
        v = nrm((D, inner), D ** -0.5)
        return jnp.concatenate([q, k, v], axis=1).astype(jnp.bfloat16)   # (D, 3*inner)

    def wkv():
        k = nrm((D, inner), D ** -0.5)
        v = nrm((D, inner), D ** -0.5)
        return jnp.concatenate([k, v], axis=1).astype(jnp.bfloat16)      # (D, 2*inner)

    ones_ln = jnp.ones((NL, 1, D), jnp.float32)

    enc = dict(
        ln0=ones_ln,
        wqkv=stack(wqkv),
        wo=stack(lambda: nrm_bf((inner, D), inner ** -0.5)),
        ln1=ones_ln,
        wi=stack(lambda: nrm_bf((D, F), D ** -0.5)),
        wff=stack(lambda: nrm_bf((F, D), F ** -0.5)),
    )
    dec = dict(
        ln0=ones_ln,
        wqkv=stack(wqkv),
        wo_s=stack(lambda: nrm_bf((inner, D), inner ** -0.5)),
        ln1=ones_ln,
        wq=stack(lambda: nrm_bf((D, inner), (D * Dk) ** -0.5)),
        wkv=stack(wkv),
        wo_c=stack(lambda: nrm_bf((inner, D), inner ** -0.5)),
        ln2=ones_ln,
        wi=stack(lambda: nrm_bf((D, F), D ** -0.5)),
        wff=stack(lambda: nrm_bf((F, D), F ** -0.5)),
    )

    # classification head: out_proj padded to a lane-dense 128-wide output
    C, CP = cfg["num_classes"], cfg["cls_pad"]
    assert C <= CP
    w2 = jnp.zeros((D, CP), jnp.float32).at[:, :C].set(nrm((D, C), D ** -0.5))
    return dict(
        shared=nrm((cfg["vocab_size"], D), 1.0),
        enc_rel_emb=nrm((cfg["rel_buckets"], H), 1.0),
        dec_rel_emb=nrm((cfg["rel_buckets"], H), 1.0),
        enc=enc,
        dec=dec,
        enc_fln=jnp.ones((1, D), jnp.float32),
        dec_fln=jnp.ones((1, D), jnp.float32),
        cls=dict(
            w1=nrm_bf((D, D), D ** -0.5),
            b1=jnp.zeros((1, D), jnp.float32),
            w2=w2.astype(jnp.bfloat16),
            b2=jnp.zeros((1, CP), jnp.float32),
        ),
    )


# ----------------------------------------------------------------------------
# main
# ----------------------------------------------------------------------------
if __name__ == "__main__":
    key = jax.random.PRNGKey(0)
    k_params, k_ids = jax.random.split(key)

    B, L = 2, 8
    params = init_params(k_params, CFG)

    # token ids in [2, vocab), eos token at the final position of each example
    input_ids = jax.random.randint(k_ids, (B, L), 2, CFG["vocab_size"], dtype=jnp.int32)
    input_ids = input_ids.at[:, -1].set(CFG["eos_token_id"])
    attention_mask = jnp.ones((B, L), dtype=jnp.int32)

    fwd = jax.jit(functools.partial(t5_forward, cfg=CFG))
    logits, dec_hidden = fwd(params, input_ids, attention_mask)
    jax.block_until_ready((logits, dec_hidden))

    assert logits.shape == (B, CFG["num_classes"])
    assert dec_hidden.shape == (B, L, CFG["d_model"])
    assert bool(jnp.all(jnp.isfinite(logits)))
    assert bool(jnp.all(jnp.isfinite(dec_hidden)))
    print("KERNEL_OK")
</pallas_src>

<mosaic_0001>
module attributes {stable_mosaic.version = 11 : i64} {
  func.func @_t5_fused_kernel(%arg0: memref<16x64xf32, #tpu.memory_space<vmem>>, %arg1: memref<16x64xf32, #tpu.memory_space<vmem>>, %arg2: memref<64x8xf32, #tpu.memory_space<vmem>>, %arg3: memref<64x8xf32, #tpu.memory_space<vmem>>, %arg4: memref<64x8xf32, #tpu.memory_space<vmem>>, %arg5: memref<2x16xf32, #tpu.memory_space<vmem>>, %arg6: memref<2x1x64xf32, #tpu.memory_space<vmem>>, %arg7: memref<2x64x192xbf16, #tpu.memory_space<vmem>>, %arg8: memref<2x64x64xbf16, #tpu.memory_space<vmem>>, %arg9: memref<2x1x64xf32, #tpu.memory_space<vmem>>, %arg10: memref<2x64x128xbf16, #tpu.memory_space<vmem>>, %arg11: memref<2x128x64xbf16, #tpu.memory_space<vmem>>, %arg12: memref<2x1x64xf32, #tpu.memory_space<vmem>>, %arg13: memref<2x64x192xbf16, #tpu.memory_space<vmem>>, %arg14: memref<2x64x64xbf16, #tpu.memory_space<vmem>>, %arg15: memref<2x1x64xf32, #tpu.memory_space<vmem>>, %arg16: memref<2x64x64xbf16, #tpu.memory_space<vmem>>, %arg17: memref<2x64x128xbf16, #tpu.memory_space<vmem>>, %arg18: memref<2x64x64xbf16, #tpu.memory_space<vmem>>, %arg19: memref<2x1x64xf32, #tpu.memory_space<vmem>>, %arg20: memref<2x64x128xbf16, #tpu.memory_space<vmem>>, %arg21: memref<2x128x64xbf16, #tpu.memory_space<vmem>>, %arg22: memref<1x64xf32, #tpu.memory_space<vmem>>, %arg23: memref<1x64xf32, #tpu.memory_space<vmem>>, %arg24: memref<64x64xbf16, #tpu.memory_space<vmem>>, %arg25: memref<1x64xf32, #tpu.memory_space<vmem>>, %arg26: memref<64x128xbf16, #tpu.memory_space<vmem>>, %arg27: memref<1x128xf32, #tpu.memory_space<vmem>>, %arg28: memref<2x128xf32, #tpu.memory_space<vmem>>, %arg29: memref<16x64xf32, #tpu.memory_space<vmem>>, %arg30: memref<64x8xf32, #tpu.memory_space<vmem>>, %arg31: memref<16x64xf32, #tpu.memory_space<vmem>>) attributes {dimension_semantics = [], scalar_prefetch = 0 : i64, scratch_operands = 2 : i64, tpu.core_type = #tpu.core_type<tc>} {
    %c0 = arith.constant 0 : index
    %c0_0 = arith.constant 0 : index
    %0 = vector.load %arg0[%c0, %c0_0] : memref<16x64xf32, #tpu.memory_space<vmem>>, vector<16x64xf32>
    %c0_1 = arith.constant 0 : index
    %c0_2 = arith.constant 0 : index
    %1 = vector.load %arg2[%c0_1, %c0_2] : memref<64x8xf32, #tpu.memory_space<vmem>>, vector<64x8xf32>
    %c0_3 = arith.constant 0 : index
    %c0_4 = arith.constant 0 : index
    %c0_5 = arith.constant 0 : index
    %2 = vector.load %arg6[%c0_3, %c0_4, %c0_5] : memref<2x1x64xf32, #tpu.memory_space<vmem>>, vector<1x1x64xf32>
    %3 = vector.shape_cast %2 : vector<1x1x64xf32> to vector<1x64xf32>
    %4 = arith.mulf %0, %0 : vector<16x64xf32>
    %cst = arith.constant dense<0.000000e+00> : vector<16xf32>
    %5 = vector.multi_reduction <add>, %4, %cst [1] : vector<16x64xf32> to vector<16xf32>
    %6 = vector.shape_cast %5 : vector<16xf32> to vector<16x1xf32>
    %cst_6 = arith.constant 6.400000e+01 : f32
    %7 = vector.broadcast %cst_6 : f32 to vector<16x1xf32>
    %8 = arith.divf %6, %7 : vector<16x1xf32>
    %cst_7 = arith.constant 9.99999997E-7 : f32
    %9 = vector.broadcast %cst_7 : f32 to vector<16x1xf32>
    %10 = arith.addf %8, %9 : vector<16x1xf32>
    %11 = math.rsqrt %10 : vector<16x1xf32>
    %12 = vector.broadcast %11 : vector<16x1xf32> to vector<16x64xf32>
    %13 = arith.mulf %0, %12 : vector<16x64xf32>
    %14 = vector.broadcast %3 : vector<1x64xf32> to vector<16x64xf32>
    %15 = arith.mulf %13, %14 : vector<16x64xf32>
    %c0_8 = arith.constant 0 : index
    %c0_9 = arith.constant 0 : index
    %c0_10 = arith.constant 0 : index
    %16 = vector.load %arg7[%c0_8, %c0_9, %c0_10] : memref<2x64x192xbf16, #tpu.memory_space<vmem>>, vector<1x64x192xbf16>
    %17 = vector.shape_cast %16 : vector<1x64x192xbf16> to vector<64x192xbf16>
    %18 = arith.truncf %15 : vector<16x64xf32> to vector<16x64xbf16>
    %cst_11 = arith.constant dense<0.000000e+00> : vector<16x192xf32>
    %19 = tpu.matmul %18, %17, %cst_11 {dimension_numbers = #tpu.dot_dimension_numbers<[1], [0], [0], [1], [0, 0, 1, 1], [], []>} : vector<16x64xbf16>, vector<64x192xbf16>, vector<16x192xf32> -> vector<16x192xf32>
    %20 = vector.extract_strided_slice %19 {offsets = [0, 0], sizes = [16, 64], strides = [1, 1]} : vector<16x192xf32> to vector<16x64xf32>
    %21 = vector.extract_strided_slice %19 {offsets = [0, 64], sizes = [16, 64], strides = [1, 1]} : vector<16x192xf32> to vector<16x64xf32>
    %22 = vector.extract_strided_slice %19 {offsets = [0, 128], sizes = [16, 64], strides = [1, 1]} : vector<16x192xf32> to vector<16x64xf32>
    %23 = vector.extract_strided_slice %20 {offsets = [0, 0], sizes = [8, 16], strides = [1, 1]} : vector<16x64xf32> to vector<8x16xf32>
    %24 = arith.truncf %23 : vector<8x16xf32> to vector<8x16xbf16>
    %25 = vector.extract_strided_slice %21 {offsets = [0, 0], sizes = [8, 16], strides = [1, 1]} : vector<16x64xf32> to vector<8x16xf32>
    %26 = arith.truncf %25 : vector<8x16xf32> to vector<8x16xbf16>
    %cst_12 = arith.constant dense<0.000000e+00> : vector<8x8xf32>
    %27 = tpu.matmul %24, %26, %cst_12 {dimension_numbers = #tpu.dot_dimension_numbers<[1], [1], [0], [0], [0, 0, 1, 0], [], []>} : vector<8x16xbf16>, vector<8x16xbf16>, vector<8x8xf32> -> vector<8x8xf32>
    %c0_13 = arith.constant 0 : index
    %c0_14 = arith.constant 0 : index
    %28 = vector.load %arg30[%c0_13, %c0_14] : memref<64x8xf32, #tpu.memory_space<vmem>>, vector<8x8xf32>
    tpu.vector_store %arg30[%c0_13, %c0_14], %27 {strides = array<i32>} : memref<64x8xf32, #tpu.memory_space<vmem>>, vector<8x8xf32>,
    %29 = vector.extract_strided_slice %20 {offsets = [0, 16], sizes = [8, 16], strides = [1, 1]} : vector<16x64xf32> to vector<8x16xf32>
    %30 = arith.truncf %29 : vector<8x16xf32> to vector<8x16xbf16>
    %31 = vector.extract_strided_slice %21 {offsets = [0, 16], sizes = [8, 16], strides = [1, 1]} : vector<16x64xf32> to vector<8x16xf32>
    %32 = arith.truncf %31 : vector<8x16xf32> to vector<8x16xbf16>
    %cst_15 = arith.constant dense<0.000000e+00> : vector<8x8xf32>
    %33 = tpu.matmul %30, %32, %cst_15 {dimension_numbers = #tpu.dot_dimension_numbers<[1], [1], [0], [0], [0, 0, 1, 0], [], []>} : vector<8x16xbf16>, vector<8x16xbf16>, vector<8x8xf32> -> vector<8x8xf32>
    %c8 = arith.constant 8 : index
    %c0_16 = arith.constant 0 : index
    %34 = vector.load %arg30[%c8, %c0_16] : memref<64x8xf32, #tpu.memory_space<vmem>>, vector<8x8xf32>
    tpu.vector_store %arg30[%c8, %c0_16], %33 {strides = array<i32>} : memref<64x8xf32, #tpu.memory_space<vmem>>, vector<8x8xf32>,
    %35 = vector.extract_strided_slice %20 {offsets = [0, 32], sizes = [8, 16], strides = [1, 1]} : vector<16x64xf32> to vector<8x16xf32>
    %36 = arith.truncf %35 : vector<8x16xf32> to vector<8x16xbf16>
    %37 = vector.extract_strided_slice %21 {offsets = [0, 32], sizes = [8, 16], strides = [1, 1]} : vector<16x64xf32> to vector<8x16xf32>
    %38 = arith.truncf %37 : vector<8x16xf32> to vector<8x16xbf16>
    %cst_17 = arith.constant dense<0.000000e+00> : vector<8x8xf32>
    %39 = tpu.matmul %36, %38, %cst_17 {dimension_numbers = #tpu.dot_dimension_numbers<[1], [1], [0], [0], [0, 0, 1, 0], [], []>} : vector<8x16xbf16>, vector<8x16xbf16>, vector<8x8xf32> -> vector<8x8xf32>
    %c16 = arith.constant 16 : index
    %c0_18 = arith.constant 0 : index
    %40 = vector.load %arg30[%c16, %c0_18] : memref<64x8xf32, #tpu.memory_space<vmem>>, vector<8x8xf32>
    tpu.vector_store %arg30[%c16, %c0_18], %39 {strides = array<i32>} : memref<64x8xf32, #tpu.memory_space<vmem>>, vector<8x8xf32>,
    %41 = vector.extract_strided_slice %20 {offsets = [0, 48], sizes = [8, 16], strides = [1, 1]} : vector<16x64xf32> to vector<8x16xf32>
    %42 = arith.truncf %41 : vector<8x16xf32> to vector<8x16xbf16>
    %43 = vector.extract_strided_slice %21 {offsets = [0, 48], sizes = [8, 16], strides = [1, 1]} : vector<16x64xf32> to vector<8x16xf32>
    %44 = arith.truncf %43 : vector<8x16xf32> to vector<8x16xbf16>
    %cst_19 = arith.constant dense<0.000000e+00> : vector<8x8xf32>
    %45 = tpu.matmul %42, %44, %cst_19 {dimension_numbers = #tpu.dot_dimension_numbers<[1], [1], [0], [0], [0, 0, 1, 0], [], []>} : vector<8x16xbf16>, vector<8x16xbf16>, vector<8x8xf32> -> vector<8x8xf32>
    %c24 = arith.constant 24 : index
    %c0_20 = arith.constant 0 : index
    %46 = vector.load %arg30[%c24, %c0_20] : memref<64x8xf32, #tpu.memory_space<vmem>>, vector<8x8xf32>
    tpu.vector_store %arg30[%c24, %c0_20], %45 {strides = array<i32>} : memref<64x8xf32, #tpu.memory_space<vmem>>, vector<8x8xf32>,
    %47 = vector.extract_strided_slice %20 {offsets = [8, 0], sizes = [8, 16], strides = [1, 1]} : vector<16x64xf32> to vector<8x16xf32>
    %48 = arith.truncf %47 : vector<8x16xf32> to vector<8x16xbf16>
    %49 = vector.extract_strided_slice %21 {offsets = [8, 0], sizes = [8, 16], strides = [1, 1]} : vector<16x64xf32> to vector<8x16xf32>
    %50 = arith.truncf %49 : vector<8x16xf32> to vector<8x16xbf16>
    %cst_21 = arith.constant dense<0.000000e+00> : vector<8x8xf32>
    %51 = tpu.matmul %48, %50, %cst_21 {dimension_numbers = #tpu.dot_dimension_numbers<[1], [1], [0], [0], [0, 0, 1, 0], [], []>} : vector<8x16xbf16>, vector<8x16xbf16>, vector<8x8xf32> -> vector<8x8xf32>
    %c32 = arith.constant 32 : index
    %c0_22 = arith.constant 0 : index
    %52 = vector.load %arg30[%c32, %c0_22] : memref<64x8xf32, #tpu.memory_space<vmem>>, vector<8x8xf32>
    tpu.vector_store %arg30[%c32, %c0_22], %51 {strides = array<i32>} : memref<64x8xf32, #tpu.memory_space<vmem>>, vector<8x8xf32>,
    %53 = vector.extract_strided_slice %20 {offsets = [8, 16], sizes = [8, 16], strides = [1, 1]} : vector<16x64xf32> to vector<8x16xf32>
    %54 = arith.truncf %53 : vector<8x16xf32> to vector<8x16xbf16>
    %55 = vector.extract_strided_slice %21 {offsets = [8, 16], sizes = [8, 16], strides = [1, 1]} : vector<16x64xf32> to vector<8x16xf32>
    %56 = arith.truncf %55 : vector<8x16xf32> to vector<8x16xbf16>
    %cst_23 = arith.constant dense<0.000000e+00> : vector<8x8xf32>
    %57 = tpu.matmul %54, %56, %cst_23 {dimension_numbers = #tpu.dot_dimension_numbers<[1], [1], [0], [0], [0, 0, 1, 0], [], []>} : vector<8x16xbf16>, vector<8x16xbf16>, vector<8x8xf32> -> vector<8x8xf32>
    %c40 = arith.constant 40 : index
    %c0_24 = arith.constant 0 : index
    %58 = vector.load %arg30[%c40, %c0_24] : memref<64x8xf32, #tpu.memory_space<vmem>>, vector<8x8xf32>
    tpu.vector_store %arg30[%c40, %c0_24], %57 {strides = array<i32>} : memref<64x8xf32, #tpu.memory_space<vmem>>, vector<8x8xf32>,
    %59 = vector.extract_strided_slice %20 {offsets = [8, 32], sizes = [8, 16], strides = [1, 1]} : vector<16x64xf32> to vector<8x16xf32>
    %60 = arith.truncf %59 : vector<8x16xf32> to vector<8x16xbf16>
    %61 = vector.extract_strided_slice %21 {offsets = [8, 32], sizes = [8, 16], strides = [1, 1]} : vector<16x64xf32> to vector<8x16xf32>
    %62 = arith.truncf %61 : vector<8x16xf32> to vector<8x16xbf16>
    %cst_25 = arith.constant dense<0.000000e+00> : vector<8x8xf32>
    %63 = tpu.matmul %60, %62, %cst_25 {dimension_numbers = #tpu.dot_dimension_numbers<[1], [1], [0], [0], [0, 0, 1, 0], [], []>} : vector<8x16xbf16>, vector<8x16xbf16>, vector<8x8xf32> -> vector<8x8xf32>
    %c48 = arith.constant 48 : index
    %c0_26 = arith.constant 0 : index
    %64 = vector.load %arg30[%c48, %c0_26] : memref<64x8xf32, #tpu.memory_space<vmem>>, vector<8x8xf32>
    tpu.vector_store %arg30[%c48, %c0_26], %63 {strides = array<i32>} : memref<64x8xf32, #tpu.memory_space<vmem>>, vector<8x8xf32>,
    %65 = vector.extract_strided_slice %20 {offsets = [8, 48], sizes = [8, 16], strides = [1, 1]} : vector<16x64xf32> to vector<8x16xf32>
    %66 = arith.truncf %65 : vector<8x16xf32> to vector<8x16xbf16>
    %67 = vector.extract_strided_slice %21 {offsets = [8, 48], sizes = [8, 16], strides = [1, 1]} : vector<16x64xf32> to vector<8x16xf32>
    %68 = arith.truncf %67 : vector<8x16xf32> to vector<8x16xbf16>
    %cst_27 = arith.constant dense<0.000000e+00> : vector<8x8xf32>
    %69 = tpu.matmul %66, %68, %cst_27 {dimension_numbers = #tpu.dot_dimension_numbers<[1], [1], [0], [0], [0, 0, 1, 0], [], []>} : vector<8x16xbf16>, vector<8x16xbf16>, vector<8x8xf32> -> vector<8x8xf32>
    %c56 = arith.constant 56 : index
    %c0_28 = arith.constant 0 : index
    %70 = vector.load %arg30[%c56, %c0_28] : memref<64x8xf32, #tpu.memory_space<vmem>>, vector<8x8xf32>
    tpu.vector_store %arg30[%c56, %c0_28], %69 {strides = array<i32>} : memref<64x8xf32, #tpu.memory_space<vmem>>, vector<8x8xf32>,
    %c0_29 = arith.constant 0 : index
    %c0_30 = arith.constant 0 : index
    %71 = vector.load %arg30[%c0_29, %c0_30] : memref<64x8xf32, #tpu.memory_space<vmem>>, vector<64x8xf32>
    %72 = arith.addf %71, %1 : vector<64x8xf32>
    %cst_31 = arith.constant dense<0xFF800000> : vector<64xf32>
    %73 = vector.multi_reduction <maximumf>, %72, %cst_31 [1] : vector<64x8xf32> to vector<64xf32>
    %74 = vector.shape_cast %73 : vector<64xf32> to vector<64x1xf32>
    %75 = vector.broadcast %74 : vector<64x1xf32> to vector<64x8xf32>
    %76 = arith.subf %72, %75 : vector<64x8xf32>
    %77 = math.exp %76 : vector<64x8xf32>
    %cst_32 = arith.constant dense<0.000000e+00> : vector<64xf32>
    %78 = vector.multi_reduction <add>, %77, %cst_32 [1] : vector<64x8xf32> to vector<64xf32>
    %79 = vector.shape_cast %78 : vector<64xf32> to vector<64x1xf32>
    %80 = tpu.reciprocal %79 {approx = true} : vector<64x1xf32> -> vector<64x1xf32>
    %81 = vector.broadcast %80 : vector<64x1xf32> to vector<64x8xf32>
    %82 = arith.mulf %77, %81 : vector<64x8xf32>
    %83 = arith.truncf %82 : vector<64x8xf32> to vector<64x8xbf16>
    %84 = vector.extract_strided_slice %83 {offsets = [0, 0], sizes = [8, 8], strides = [1, 1]} : vector<64x8xbf16> to vector<8x8xbf16>
    %85 = vector.extract_strided_slice %22 {offsets = [0, 0], sizes = [8, 16], strides = [1, 1]} : vector<16x64xf32> to vector<8x16xf32>
    %86 = arith.truncf %85 : vector<8x16xf32> to vector<8x16xbf16>
    %cst_33 = arith.constant dense<0.000000e+00> : vector<8x16xf32>
    %87 = tpu.matmul %84, %86, %cst_33 {dimension_numbers = #tpu.dot_dimension_numbers<[1], [0], [0], [1], [0, 0, 1, 1], [], []>} : vector<8x8xbf16>, vector<8x16xbf16>, vector<8x16xf32> -> vector<8x16xf32>
    %c0_34 = arith.constant 0 : index
    %c0_35 = arith.constant 0 : index
    %88 = vector.load %arg31[%c0_34, %c0_35] : memref<16x64xf32, #tpu.memory_space<vmem>>, vector<8x16xf32>
    tpu.vector_store %arg31[%c0_34, %c0_35], %87 {strides = array<i32>} : memref<16x64xf32, #tpu.memory_space<vmem>>, vector<8x16xf32>,
    %89 = vector.extract_strided_slice %83 {offsets = [8, 0], sizes = [8, 8], strides = [1, 1]} : vector<64x8xbf16> to vector<8x8xbf16>
    %90 = vector.extract_strided_slice %22 {offsets = [0, 16], sizes = [8, 16], strides = [1, 1]} : vector<16x64xf32> to vector<8x16xf32>
    %91 = arith.truncf %90 : vector<8x16xf32> to vector<8x16xbf16>
    %cst_36 = arith.constant dense<0.000000e+00> : vector<8x16xf32>
    %92 = tpu.matmul %89, %91, %cst_36 {dimension_numbers = #tpu.dot_dimension_numbers<[1], [0], [0], [1], [0, 0, 1, 1], [], []>} : vector<8x8xbf16>, vector<8x16xbf16>, vector<8x16xf32> -> vector<8x16xf32>
    %c0_37 = arith.constant 0 : index
    %c16_38 = arith.constant 16 : index
    %93 = vector.load %arg31[%c0_37, %c16_38] : memref<16x64xf32, #tpu.memory_space<vmem>>, vector<8x16xf32>
    tpu.vector_store %arg31[%c0_37, %c16_38], %92 {strides = array<i32>} : memref<16x64xf32, #tpu.memory_space<vmem>>, vector<8x16xf32>,
    %94 = vector.extract_strided_slice %83 {offsets = [16, 0], sizes = [8, 8], strides = [1, 1]} : vector<64x8xbf16> to vector<8x8xbf16>
    %95 = vector.extract_strided_slice %22 {offsets = [0, 32], sizes = [8, 16], strides = [1, 1]} : vector<16x64xf32> to vector<8x16xf32>
    %96 = arith.truncf %95 : vector<8x16xf32> to vector<8x16xbf16>
    %cst_39 = arith.constant dense<0.000000e+00> : vector<8x16xf32>
    %97 = tpu.matmul %94, %96, %cst_39 {dimension_numbers = #tpu.dot_dimension_numbers<[1], [0], [0], [1], [0, 0, 1, 1], [], []>} : vector<8x8xbf16>, vector<8x16xbf16>, vector<8x16xf32> -> vector<8x16xf32>
    %c0_40 = arith.constant 0 : index
    %c32_41 = arith.constant 32 : index
    %98 = vector.load %arg31[%c0_40, %c32_41] : memref<16x64xf32, #tpu.memory_space<vmem>>, vector<8x16xf32>
    tpu.vector_store %arg31[%c0_40, %c32_41], %97 {strides = array<i32>} : memref<16x64xf32, #tpu.memory_space<vmem>>, vector<8x16xf32>,
    %99 = vector.extract_strided_slice %83 {offsets = [24, 0], sizes = [8, 8], strides = [1, 1]} : vector<64x8xbf16> to vector<8x8xbf16>
    %100 = vector.extract_strided_slice %22 {offsets = [0, 48], sizes = [8, 16], strides = [1, 1]} : vector<16x64xf32> to vector<8x16xf32>
    %101 = arith.truncf %100 : vector<8x16xf32> to vector<8x16xbf16>
    %cst_42 = arith.constant dense<0.000000e+00> : vector<8x16xf32>
    %102 = tpu.matmul %99, %101, %cst_42 {dimension_numbers = #tpu.dot_dimension_numbers<[1], [0], [0], [1], [0, 0, 1, 1], [], []>} : vector<8x8xbf16>, vector<8x16xbf16>, vector<8x16xf32> -> vector<8x16xf32>
    %c0_43 = arith.constant 0 : index
    %c48_44 = arith.constant 48 : index
    %103 = vector.load %arg31[%c0_43, %c48_44] : memref<16x64xf32, #tpu.memory_space<vmem>>, vector<8x16xf32>
    tpu.vector_store %arg31[%c0_43, %c48_44], %102 {strides = array<i32>} : memref<16x64xf32, #tpu.memory_space<vmem>>, vector<8x16xf32>,
    %104 = vector.extract_strided_slice %83 {offsets = [32, 0], sizes = [8, 8], strides = [1, 1]} : vector<64x8xbf16> to vector<8x8xbf16>
    %105 = vector.extract_strided_slice %22 {offsets = [8, 0], sizes = [8, 16], strides = [1, 1]} : vector<16x64xf32> to vector<8x16xf32>
    %106 = arith.truncf %105 : vector<8x16xf32> to vector<8x16xbf16>
    %cst_45 = arith.constant dense<0.000000e+00> : vector<8x16xf32>
    %107 = tpu.matmul %104, %106, %cst_45 {dimension_numbers = #tpu.dot_dimension_numbers<[1], [0], [0], [1], [0, 0, 1, 1], [], []>} : vector<8x8xbf16>, vector<8x16xbf16>, vector<8x16xf32> -> vector<8x16xf32>
    %c8_46 = arith.constant 8 : index
    %c0_47 = arith.constant 0 : index
    %108 = vector.load %arg31[%c8_46, %c0_47] : memref<16x64xf32, #tpu.memory_space<vmem>>, vector<8x16xf32>
    tpu.vector_store %arg31[%c8_46, %c0_47], %107 {strides = array<i32>} : memref<16x64xf32, #tpu.memory_space<vmem>>, vector<8x16xf32>,
    %109 = vector.extract_strided_slice %83 {offsets = [40, 0], sizes = [8, 8], strides = [1, 1]} : vector<64x8xbf16> to vector<8x8xbf16>
    %110 = vector.extract_strided_slice %22 {offsets = [8, 16], sizes = [8, 16], strides = [1, 1]} : vector<16x64xf32> to vector<8x16xf32>
    %111 = arith.truncf %110 : vector<8x16xf32> to vector<8x16xbf16>
    %cst_48 = arith.constant dense<0.000000e+00> : vector<8x16xf32>
    %112 = tpu.matmul %109, %111, %cst_48 {dimension_numbers = #tpu.dot_dimension_numbers<[1], [0], [0], [1], [0, 0, 1, 1], [], []>} : vector<8x8xbf16>, vector<8x16xbf16>, vector<8x16xf32> -> vector<8x16xf32>
    %c8_49 = arith.constant 8 : index
    %c16_50 = arith.constant 16 : index
    %113 = vector.load %arg31[%c8_49, %c16_50] : memref<16x64xf32, #tpu.memory_space<vmem>>, vector<8x16xf32>
    tpu.vector_store %arg31[%c8_49, %c16_50], %112 {strides = array<i32>} : memref<16x64xf32, #tpu.memory_space<vmem>>, vector<8x16xf32>,
    %114 = vector.extract_strided_slice %83 {offsets = [48, 0], sizes = [8, 8], strides = [1, 1]} : vector<64x8xbf16> to vector<8x8xbf16>
    %115 = vector.extract_strided_slice %22 {offsets = [8, 32], sizes = [8, 16], strides = [1, 1]} : vector<16x64xf32> to vector<8x16xf32>
    %116 = arith.truncf %115 : vector<8x16xf32> to vector<8x16xbf16>
    %cst_51 = arith.constant dense<0.000000e+00> : vector<8x16xf32>
    %117 = tpu.matmul %114, %116, %cst_51 {dimension_numbers = #tpu.dot_dimension_numbers<[1], [0], [0], [1], [0, 0, 1, 1], [], []>} : vector<8x8xbf16>, vector<8x16xbf16>, vector<8x16xf32> -> vector<8x16xf32>
    %c8_52 = arith.constant 8 : index
    %c32_53 = arith.constant 32 : index
    %118 = vector.load %arg31[%c8_52, %c32_53] : memref<16x64xf32, #tpu.memory_space<vmem>>, vector<8x16xf32>
    tpu.vector_store %arg31[%c8_52, %c32_53], %117 {strides = array<i32>} : memref<16x64xf32, #tpu.memory_space<vmem>>, vector<8x16xf32>,
    %119 = vector.extract_strided_slice %83 {offsets = [56, 0], sizes = [8, 8], strides = [1, 1]} : vector<64x8xbf16> to vector<8x8xbf16>
    %120 = vector.extract_strided_slice %22 {offsets = [8, 48], sizes = [8, 16], strides = [1, 1]} : vector<16x64xf32> to vector<8x16xf32>
    %121 = arith.truncf %120 : vector<8x16xf32> to vector<8x16xbf16>
    %cst_54 = arith.constant dense<0.000000e+00> : vector<8x16xf32>
    %122 = tpu.matmul %119, %121, %cst_54 {dimension_numbers = #tpu.dot_dimension_numbers<[1], [0], [0], [1], [0, 0, 1, 1], [], []>} : vector<8x8xbf16>, vector<8x16xbf16>, vector<8x16xf32> -> vector<8x16xf32>
    %c8_55 = arith.constant 8 : index
    %c48_56 = arith.constant 48 : index
    %123 = vector.load %arg31[%c8_55, %c48_56] : memref<16x64xf32, #tpu.memory_space<vmem>>, vector<8x16xf32>
    tpu.vector_store %arg31[%c8_55, %c48_56], %122 {strides = array<i32>} : memref<16x64xf32, #tpu.memory_space<vmem>>, vector<8x16xf32>,
    %c0_57 = arith.constant 0 : index
    %c0_58 = arith.constant 0 : index
    %124 = vector.load %arg31[%c0_57, %c0_58] : memref<16x64xf32, #tpu.memory_space<vmem>>, vector<16x64xf32>
    %c0_59 = arith.constant 0 : index
    %c0_60 = arith.constant 0 : index
    %c0_61 = arith.constant 0 : index
    %125 = vector.load %arg8[%c0_59, %c0_60, %c0_61] : memref<2x64x64xbf16, #tpu.memory_space<vmem>>, vector<1x64x64xbf16>
    %126 = vector.shape_cast %125 : vector<1x64x64xbf16> to vector<64x64xbf16>
    %127 = arith.truncf %124 : vector<16x64xf32> to vector<16x64xbf16>
    %cst_62 = arith.constant dense<0.000000e+00> : vector<16x64xf32>
    %128 = tpu.matmul %127, %126, %cst_62 {dimension_numbers = #tpu.dot_dimension_numbers<[1], [0], [0], [1], [0, 0, 1, 1], [], []>} : vector<16x64xbf16>, vector<64x64xbf16>, vector<16x64xf32> -> vector<16x64xf32>
    %129 = arith.addf %0, %128 : vector<16x64xf32>
    %c0_63 = arith.constant 0 : index
    %c0_64 = arith.constant 0 : index
    %c0_65 = arith.constant 0 : index
    %130 = vector.load %arg9[%c0_63, %c0_64, %c0_65] : memref<2x1x64xf32, #tpu.memory_space<vmem>>, vector<1x1x64xf32>
    %131 = vector.shape_cast %130 : vector<1x1x64xf32> to vector<1x64xf32>
    %132 = arith.mulf %129, %129 : vector<16x64xf32>
    %cst_66 = arith.constant dense<0.000000e+00> : vector<16xf32>
    %133 = vector.multi_reduction <add>, %132, %cst_66 [1] : vector<16x64xf32> to vector<16xf32>
    %134 = vector.shape_cast %133 : vector<16xf32> to vector<16x1xf32>
    %cst_67 = arith.constant 6.400000e+01 : f32
    %135 = vector.broadcast %cst_67 : f32 to vector<16x1xf32>
    %136 = arith.divf %134, %135 : vector<16x1xf32>
    %cst_68 = arith.constant 9.99999997E-7 : f32
    %137 = vector.broadcast %cst_68 : f32 to vector<16x1xf32>
    %138 = arith.addf %136, %137 : vector<16x1xf32>
    %139 = math.rsqrt %138 : vector<16x1xf32>
    %140 = vector.broadcast %139 : vector<16x1xf32> to vector<16x64xf32>
    %141 = arith.mulf %129, %140 : vector<16x64xf32>
    %142 = vector.broadcast %131 : vector<1x64xf32> to vector<16x64xf32>
    %143 = arith.mulf %141, %142 : vector<16x64xf32>
    %c0_69 = arith.constant 0 : index
    %c0_70 = arith.constant 0 : index
    %c0_71 = arith.constant 0 : index
    %144 = vector.load %arg10[%c0_69, %c0_70, %c0_71] : memref<2x64x128xbf16, #tpu.memory_space<vmem>>, vector<1x64x128xbf16>
    %145 = vector.shape_cast %144 : vector<1x64x128xbf16> to vector<64x128xbf16>
    %146 = arith.truncf %143 : vector<16x64xf32> to vector<16x64xbf16>
    %cst_72 = arith.constant dense<0.000000e+00> : vector<16x128xf32>
    %147 = tpu.matmul %146, %145, %cst_72 {dimension_numbers = #tpu.dot_dimension_numbers<[1], [0], [0], [1], [0, 0, 1, 1], [], []>} : vector<16x64xbf16>, vector<64x128xbf16>, vector<16x128xf32> -> vector<16x128xf32>
    %cst_73 = arith.constant 0.000000e+00 : f32
    %148 = vector.broadcast %cst_73 : f32 to vector<16x128xf32>
    %149 = arith.maximumf %147, %148 : vector<16x128xf32>
    %c0_74 = arith.constant 0 : index
    %c0_75 = arith.constant 0 : index
    %c0_76 = arith.constant 0 : index
    %150 = vector.load %arg11[%c0_74, %c0_75, %c0_76] : memref<2x128x64xbf16, #tpu.memory_space<vmem>>, vector<1x128x64xbf16>
    %151 = vector.shape_cast %150 : vector<1x128x64xbf16> to vector<128x64xbf16>
    %152 = arith.truncf %149 : vector<16x128xf32> to vector<16x128xbf16>
    %cst_77 = arith.constant dense<0.000000e+00> : vector<16x64xf32>
    %153 = tpu.matmul %152, %151, %cst_77 {dimension_numbers = #tpu.dot_dimension_numbers<[1], [0], [0], [1], [0, 0, 1, 1], [], []>} : vector<16x128xbf16>, vector<128x64xbf16>, vector<16x64xf32> -> vector<16x64xf32>
    %154 = arith.addf %129, %153 : vector<16x64xf32>
    %c1 = arith.constant 1 : index
    %c0_78 = arith.constant 0 : index
    %c0_79 = arith.constant 0 : index
    %155 = vector.load %arg6[%c1, %c0_78, %c0_79] : memref<2x1x64xf32, #tpu.memory_space<vmem>>, vector<1x1x64xf32>
    %156 = vector.shape_cast %155 : vector<1x1x64xf32> to vector<1x64xf32>
    %157 = arith.mulf %154, %154 : vector<16x64xf32>
    %cst_80 = arith.constant dense<0.000000e+00> : vector<16xf32>
    %158 = vector.multi_reduction <add>, %157, %cst_80 [1] : vector<16x64xf32> to vector<16xf32>
    %159 = vector.shape_cast %158 : vector<16xf32> to vector<16x1xf32>
    %cst_81 = arith.constant 6.400000e+01 : f32
    %160 = vector.broadcast %cst_81 : f32 to vector<16x1xf32>
    %161 = arith.divf %159, %160 : vector<16x1xf32>
    %cst_82 = arith.constant 9.99999997E-7 : f32
    %162 = vector.broadcast %cst_82 : f32 to vector<16x1xf32>
    %163 = arith.addf %161, %162 : vector<16x1xf32>
    %164 = math.rsqrt %163 : vector<16x1xf32>
    %165 = vector.broadcast %164 : vector<16x1xf32> to vector<16x64xf32>
    %166 = arith.mulf %154, %165 : vector<16x64xf32>
    %167 = vector.broadcast %156 : vector<1x64xf32> to vector<16x64xf32>
    %168 = arith.mulf %166, %167 : vector<16x64xf32>
    %c1_83 = arith.constant 1 : index
    %c0_84 = arith.constant 0 : index
    %c0_85 = arith.constant 0 : index
    %169 = vector.load %arg7[%c1_83, %c0_84, %c0_85] : memref<2x64x192xbf16, #tpu.memory_space<vmem>>, vector<1x64x192xbf16>
    %170 = vector.shape_cast %169 : vector<1x64x192xbf16> to vector<64x192xbf16>
    %171 = arith.truncf %168 : vector<16x64xf32> to vector<16x64xbf16>
    %cst_86 = arith.constant dense<0.000000e+00> : vector<16x192xf32>
    %172 = tpu.matmul %171, %170, %cst_86 {dimension_numbers = #tpu.dot_dimension_numbers<[1], [0], [0], [1], [0, 0, 1, 1], [], []>} : vector<16x64xbf16>, vector<64x192xbf16>, vector<16x192xf32> -> vector<16x192xf32>
    %173 = vector.extract_strided_slice %172 {offsets = [0, 0], sizes = [16, 64], strides = [1, 1]} : vector<16x192xf32> to vector<16x64xf32>
    %174 = vector.extract_strided_slice %172 {offsets = [0, 64], sizes = [16, 64], strides = [1, 1]} : vector<16x192xf32> to vector<16x64xf32>
    %175 = vector.extract_strided_slice %172 {offsets = [0, 128], sizes = [16, 64], strides = [1, 1]} : vector<16x192xf32> to vector<16x64xf32>
    %176 = vector.extract_strided_slice %173 {offsets = [0, 0], sizes = [8, 16], strides = [1, 1]} : vector<16x64xf32> to vector<8x16xf32>
    %177 = arith.truncf %176 : vector<8x16xf32> to vector<8x16xbf16>
    %178 = vector.extract_strided_slice %174 {offsets = [0, 0], sizes = [8, 16], strides = [1, 1]} : vector<16x64xf32> to vector<8x16xf32>
    %179 = arith.truncf %178 : vector<8x16xf32> to vector<8x16xbf16>
    %cst_87 = arith.constant dense<0.000000e+00> : vector<8x8xf32>
    %180 = tpu.matmul %177, %179, %cst_87 {dimension_numbers = #tpu.dot_dimension_numbers<[1], [1], [0], [0], [0, 0, 1, 0], [], []>} : vector<8x16xbf16>, vector<8x16xbf16>, vector<8x8xf32> -> vector<8x8xf32>
    %c0_88 = arith.constant 0 : index
    %c0_89 = arith.constant 0 : index
    %181 = vector.load %arg30[%c0_88, %c0_89] : memref<64x8xf32, #tpu.memory_space<vmem>>, vector<8x8xf32>
    tpu.vector_store %arg30[%c0_88, %c0_89], %180 {strides = array<i32>} : memref<64x8xf32, #tpu.memory_space<vmem>>, vector<8x8xf32>,
    %182 = vector.extract_strided_slice %173 {offsets = [0, 16], sizes = [8, 16], strides = [1, 1]} : vector<16x64xf32> to vector<8x16xf32>
    %183 = arith.truncf %182 : vector<8x16xf32> to vector<8x16xbf16>
    %184 = vector.extract_strided_slice %174 {offsets = [0, 16], sizes = [8, 16], strides = [1, 1]} : vector<16x64xf32> to vector<8x16xf32>
    %185 = arith.truncf %184 : vector<8x16xf32> to vector<8x16xbf16>
    %cst_90 = arith.constant dense<0.000000e+00> : vector<8x8xf32>
    %186 = tpu.matmul %183, %185, %cst_90 {dimension_numbers = #tpu.dot_dimension_numbers<[1], [1], [0], [0], [0, 0, 1, 0], [], []>} : vector<8x16xbf16>, vector<8x16xbf16>, vector<8x8xf32> -> vector<8x8xf32>
    %c8_91 = arith.constant 8 : index
    %c0_92 = arith.constant 0 : index
    %187 = vector.load %arg30[%c8_91, %c0_92] : memref<64x8xf32, #tpu.memory_space<vmem>>, vector<8x8xf32>
    tpu.vector_store %arg30[%c8_91, %c0_92], %186 {strides = array<i32>} : memref<64x8xf32, #tpu.memory_space<vmem>>, vector<8x8xf32>,
    %188 = vector.extract_strided_slice %173 {offsets = [0, 32], sizes = [8, 16], strides = [1, 1]} : vector<16x64xf32> to vector<8x16xf32>
    %189 = arith.truncf %188 : vector<8x16xf32> to vector<8x16xbf16>
    %190 = vector.extract_strided_slice %174 {offsets = [0, 32], sizes = [8, 16], strides = [1, 1]} : vector<16x64xf32> to vector<8x16xf32>
    %191 = arith.truncf %190 : vector<8x16xf32> to vector<8x16xbf16>
    %cst_93 = arith.constant dense<0.000000e+00> : vector<8x8xf32>
    %192 = tpu.matmul %189, %191, %cst_93 {dimension_numbers = #tpu.dot_dimension_numbers<[1], [1], [0], [0], [0, 0, 1, 0], [], []>} : vector<8x16xbf16>, vector<8x16xbf16>, vector<8x8xf32> -> vector<8x8xf32>
    %c16_94 = arith.constant 16 : index
    %c0_95 = arith.constant 0 : index
    %193 = vector.load %arg30[%c16_94, %c0_95] : memref<64x8xf32, #tpu.memory_space<vmem>>, vector<8x8xf32>
    tpu.vector_store %arg30[%c16_94, %c0_95], %192 {strides = array<i32>} : memref<64x8xf32, #tpu.memory_space<vmem>>, vector<8x8xf32>,
    %194 = vector.extract_strided_slice %173 {offsets = [0, 48], sizes = [8, 16], strides = [1, 1]} : vector<16x64xf32> to vector<8x16xf32>
    %195 = arith.truncf %194 : vector<8x16xf32> to vector<8x16xbf16>
    %196 = vector.extract_strided_slice %174 {offsets = [0, 48], sizes = [8, 16], strides = [1, 1]} : vector<16x64xf32> to vector<8x16xf32>
    %197 = arith.truncf %196 : vector<8x16xf32> to vector<8x16xbf16>
    %cst_96 = arith.constant dense<0.000000e+00> : vector<8x8xf32>
    %198 = tpu.matmul %195, %197, %cst_96 {dimension_numbers = #tpu.dot_dimension_numbers<[1], [1], [0], [0], [0, 0, 1, 0], [], []>} : vector<8x16xbf16>, vector<8x16xbf16>, vector<8x8xf32> -> vector<8x8xf32>
    %c24_97 = arith.constant 24 : index
    %c0_98 = arith.constant 0 : index
    %199 = vector.load %arg30[%c24_97, %c0_98] : memref<64x8xf32, #tpu.memory_space<vmem>>, vector<8x8xf32>
    tpu.vector_store %arg30[%c24_97, %c0_98], %198 {strides = array<i32>} : memref<64x8xf32, #tpu.memory_space<vmem>>, vector<8x8xf32>,
    %200 = vector.extract_strided_slice %173 {offsets = [8, 0], sizes = [8, 16], strides = [1, 1]} : vector<16x64xf32> to vector<8x16xf32>
    %201 = arith.truncf %200 : vector<8x16xf32> to vector<8x16xbf16>
    %202 = vector.extract_strided_slice %174 {offsets = [8, 0], sizes = [8, 16], strides = [1, 1]} : vector<16x64xf32> to vector<8x16xf32>
    %203 = arith.truncf %202 : vector<8x16xf32> to vector<8x16xbf16>
    %cst_99 = arith.constant dense<0.000000e+00> : vector<8x8xf32>
    %204 = tpu.matmul %201, %203, %cst_99 {dimension_numbers = #tpu.dot_dimension_numbers<[1], [1], [0], [0], [0, 0, 1, 0], [], []>} : vector<8x16xbf16>, vector<8x16xbf16>, vector<8x8xf32> -> vector<8x8xf32>
    %c32_100 = arith.constant 32 : index
    %c0_101 = arith.constant 0 : index
    %205 = vector.load %arg30[%c32_100, %c0_101] : memref<64x8xf32, #tpu.memory_space<vmem>>, vector<8x8xf32>
    tpu.vector_store %arg30[%c32_100, %c0_101], %204 {strides = array<i32>} : memref<64x8xf32, #tpu.memory_space<vmem>>, vector<8x8xf32>,
    %206 = vector.extract_strided_slice %173 {offsets = [8, 16], sizes = [8, 16], strides = [1, 1]} : vector<16x64xf32> to vector<8x16xf32>
    %207 = arith.truncf %206 : vector<8x16xf32> to vector<8x16xbf16>
    %208 = vector.extract_strided_slice %174 {offsets = [8, 16], sizes = [8, 16], strides = [1, 1]} : vector<16x64xf32> to vector<8x16xf32>
    %209 = arith.truncf %208 : vector<8x16xf32> to vector<8x16xbf16>
    %cst_102 = arith.constant dense<0.000000e+00> : vector<8x8xf32>
    %210 = tpu.matmul %207, %209, %cst_102 {dimension_numbers = #tpu.dot_dimension_numbers<[1], [1], [0], [0], [0, 0, 1, 0], [], []>} : vector<8x16xbf16>, vector<8x16xbf16>, vector<8x8xf32> -> vector<8x8xf32>
    %c40_103 = arith.constant 40 : index
    %c0_104 = arith.constant 0 : index
    %211 = vector.load %arg30[%c40_103, %c0_104] : memref<64x8xf32, #tpu.memory_space<vmem>>, vector<8x8xf32>
    tpu.vector_store %arg30[%c40_103, %c0_104], %210 {strides = array<i32>} : memref<64x8xf32, #tpu.memory_space<vmem>>, vector<8x8xf32>,
    %212 = vector.extract_strided_slice %173 {offsets = [8, 32], sizes = [8, 16], strides = [1, 1]} : vector<16x64xf32> to vector<8x16xf32>
    %213 = arith.truncf %212 : vector<8x16xf32> to vector<8x16xbf16>
    %214 = vector.extract_strided_slice %174 {offsets = [8, 32], sizes = [8, 16], strides = [1, 1]} : vector<16x64xf32> to vector<8x16xf32>
    %215 = arith.truncf %214 : vector<8x16xf32> to vector<8x16xbf16>
    %cst_105 = arith.constant dense<0.000000e+00> : vector<8x8xf32>
    %216 = tpu.matmul %213, %215, %cst_105 {dimension_numbers = #tpu.dot_dimension_numbers<[1], [1], [0], [0], [0, 0, 1, 0], [], []>} : vector<8x16xbf16>, vector<8x16xbf16>, vector<8x8xf32> -> vector<8x8xf32>
    %c48_106 = arith.constant 48 : index
    %c0_107 = arith.constant 0 : index
    %217 = vector.load %arg30[%c48_106, %c0_107] : memref<64x8xf32, #tpu.memory_space<vmem>>, vector<8x8xf32>
    tpu.vector_store %arg30[%c48_106, %c0_107], %216 {strides = array<i32>} : memref<64x8xf32, #tpu.memory_space<vmem>>, vector<8x8xf32>,
    %218 = vector.extract_strided_slice %173 {offsets = [8, 48], sizes = [8, 16], strides = [1, 1]} : vector<16x64xf32> to vector<8x16xf32>
    %219 = arith.truncf %218 : vector<8x16xf32> to vector<8x16xbf16>
    %220 = vector.extract_strided_slice %174 {offsets = [8, 48], sizes = [8, 16], strides = [1, 1]} : vector<16x64xf32> to vector<8x16xf32>
    %221 = arith.truncf %220 : vector<8x16xf32> to vector<8x16xbf16>
    %cst_108 = arith.constant dense<0.000000e+00> : vector<8x8xf32>
    %222 = tpu.matmul %219, %221, %cst_108 {dimension_numbers = #tpu.dot_dimension_numbers<[1], [1], [0], [0], [0, 0, 1, 0], [], []>} : vector<8x16xbf16>, vector<8x16xbf16>, vector<8x8xf32> -> vector<8x8xf32>
    %c56_109 = arith.constant 56 : index
    %c0_110 = arith.constant 0 : index
    %223 = vector.load %arg30[%c56_109, %c0_110] : memref<64x8xf32, #tpu.memory_space<vmem>>, vector<8x8xf32>
    tpu.vector_store %arg30[%c56_109, %c0_110], %222 {strides = array<i32>} : memref<64x8xf32, #tpu.memory_space<vmem>>, vector<8x8xf32>,
    %c0_111 = arith.constant 0 : index
    %c0_112 = arith.constant 0 : index
    %224 = vector.load %arg30[%c0_111, %c0_112] : memref<64x8xf32, #tpu.memory_space<vmem>>, vector<64x8xf32>
    %225 = arith.addf %224, %1 : vector<64x8xf32>
    %cst_113 = arith.constant dense<0xFF800000> : vector<64xf32>
    %226 = vector.multi_reduction <maximumf>, %225, %cst_113 [1] : vector<64x8xf32> to vector<64xf32>
    %227 = vector.shape_cast %226 : vector<64xf32> to vector<64x1xf32>
    %228 = vector.broadcast %227 : vector<64x1xf32> to vector<64x8xf32>
    %229 = arith.subf %225, %228 : vector<64x8xf32>
    %230 = math.exp %229 : vector<64x8xf32>
    %cst_114 = arith.constant dense<0.000000e+00> : vector<64xf32>
    %231 = vector.multi_reduction <add>, %230, %cst_114 [1] : vector<64x8xf32> to vector<64xf32>
    %232 = vector.shape_cast %231 : vector<64xf32> to vector<64x1xf32>
    %233 = tpu.reciprocal %232 {approx = true} : vector<64x1xf32> -> vector<64x1xf32>
    %234 = vector.broadcast %233 : vector<64x1xf32> to vector<64x8xf32>
    %235 = arith.mulf %230, %234 : vector<64x8xf32>
    %236 = arith.truncf %235 : vector<64x8xf32> to vector<64x8xbf16>
    %237 = vector.extract_strided_slice %236 {offsets = [0, 0], sizes = [8, 8], strides = [1, 1]} : vector<64x8xbf16> to vector<8x8xbf16>
    %238 = vector.extract_strided_slice %175 {offsets = [0, 0], sizes = [8, 16], strides = [1, 1]} : vector<16x64xf32> to vector<8x16xf32>
    %239 = arith.truncf %238 : vector<8x16xf32> to vector<8x16xbf16>
    %cst_115 = arith.constant dense<0.000000e+00> : vector<8x16xf32>
    %240 = tpu.matmul %237, %239, %cst_115 {dimension_numbers = #tpu.dot_dimension_numbers<[1], [0], [0], [1], [0, 0, 1, 1], [], []>} : vector<8x8xbf16>, vector<8x16xbf16>, vector<8x16xf32> -> vector<8x16xf32>
    %c0_116 = arith.constant 0 : index
    %c0_117 = arith.constant 0 : index
    %241 = vector.load %arg31[%c0_116, %c0_117] : memref<16x64xf32, #tpu.memory_space<vmem>>, vector<8x16xf32>
    tpu.vector_store %arg31[%c0_116, %c0_117], %240 {strides = array<i32>} : memref<16x64xf32, #tpu.memory_space<vmem>>, vector<8x16xf32>,
    %242 = vector.extract_strided_slice %236 {offsets = [8, 0], sizes = [8, 8], strides = [1, 1]} : vector<64x8xbf16> to vector<8x8xbf16>
    %243 = vector.extract_strided_slice %175 {offsets = [0, 16], sizes = [8, 16], strides = [1, 1]} : vector<16x64xf32> to vector<8x16xf32>
    %244 = arith.truncf %243 : vector<8x16xf32> to vector<8x16xbf16>
    %cst_118 = arith.constant dense<0.000000e+00> : vector<8x16xf32>
    %245 = tpu.matmul %242, %244, %cst_118 {dimension_numbers = #tpu.dot_dimension_numbers<[1], [0], [0], [1], [0, 0, 1, 1], [], []>} : vector<8x8xbf16>, vector<8x16xbf16>, vector<8x16xf32> -> vector<8x16xf32>
    %c0_119 = arith.constant 0 : index
    %c16_120 = arith.constant 16 : index
    %246 = vector.load %arg31[%c0_119, %c16_120] : memref<16x64xf32, #tpu.memory_space<vmem>>, vector<8x16xf32>
    tpu.vector_store %arg31[%c0_119, %c16_120], %245 {strides = array<i32>} : memref<16x64xf32, #tpu.memory_space<vmem>>, vector<8x16xf32>,
    %247 = vector.extract_strided_slice %236 {offsets = [16, 0], sizes = [8, 8], strides = [1, 1]} : vector<64x8xbf16> to vector<8x8xbf16>
    %248 = vector.extract_strided_slice %175 {offsets = [0, 32], sizes = [8, 16], strides = [1, 1]} : vector<16x64xf32> to vector<8x16xf32>
    %249 = arith.truncf %248 : vector<8x16xf32> to vector<8x16xbf16>
    %cst_121 = arith.constant dense<0.000000e+00> : vector<8x16xf32>
    %250 = tpu.matmul %247, %249, %cst_121 {dimension_numbers = #tpu.dot_dimension_numbers<[1], [0], [0], [1], [0, 0, 1, 1], [], []>} : vector<8x8xbf16>, vector<8x16xbf16>, vector<8x16xf32> -> vector<8x16xf32>
    %c0_122 = arith.constant 0 : index
    %c32_123 = arith.constant 32 : index
    %251 = vector.load %arg31[%c0_122, %c32_123] : memref<16x64xf32, #tpu.memory_space<vmem>>, vector<8x16xf32>
    tpu.vector_store %arg31[%c0_122, %c32_123], %250 {strides = array<i32>} : memref<16x64xf32, #tpu.memory_space<vmem>>, vector<8x16xf32>,
    %252 = vector.extract_strided_slice %236 {offsets = [24, 0], sizes = [8, 8], strides = [1, 1]} : vector<64x8xbf16> to vector<8x8xbf16>
    %253 = vector.extract_strided_slice %175 {offsets = [0, 48], sizes = [8, 16], strides = [1, 1]} : vector<16x64xf32> to vector<8x16xf32>
    %254 = arith.truncf %253 : vector<8x16xf32> to vector<8x16xbf16>
    %cst_124 = arith.constant dense<0.000000e+00> : vector<8x16xf32>
    %255 = tpu.matmul %252, %254, %cst_124 {dimension_numbers = #tpu.dot_dimension_numbers<[1], [0], [0], [1], [0, 0, 1, 1], [], []>} : vector<8x8xbf16>, vector<8x16xbf16>, vector<8x16xf32> -> vector<8x16xf32>
    %c0_125 = arith.constant 0 : index
    %c48_126 = arith.constant 48 : index
    %256 = vector.load %arg31[%c0_125, %c48_126] : memref<16x64xf32, #tpu.memory_space<vmem>>, vector<8x16xf32>
    tpu.vector_store %arg31[%c0_125, %c48_126], %255 {strides = array<i32>} : memref<16x64xf32, #tpu.memory_space<vmem>>, vector<8x16xf32>,
    %257 = vector.extract_strided_slice %236 {offsets = [32, 0], sizes = [8, 8], strides = [1, 1]} : vector<64x8xbf16> to vector<8x8xbf16>
    %258 = vector.extract_strided_slice %175 {offsets = [8, 0], sizes = [8, 16], strides = [1, 1]} : vector<16x64xf32> to vector<8x16xf32>
    %259 = arith.truncf %258 : vector<8x16xf32> to vector<8x16xbf16>
    %cst_127 = arith.constant dense<0.000000e+00> : vector<8x16xf32>
    %260 = tpu.matmul %257, %259, %cst_127 {dimension_numbers = #tpu.dot_dimension_numbers<[1], [0], [0], [1], [0, 0, 1, 1], [], []>} : vector<8x8xbf16>, vector<8x16xbf16>, vector<8x16xf32> -> vector<8x16xf32>
    %c8_128 = arith.constant 8 : index
    %c0_129 = arith.constant 0 : index
    %261 = vector.load %arg31[%c8_128, %c0_129] : memref<16x64xf32, #tpu.memory_space<vmem>>, vector<8x16xf32>
    tpu.vector_store %arg31[%c8_128, %c0_129], %260 {strides = array<i32>} : memref<16x64xf32, #tpu.memory_space<vmem>>, vector<8x16xf32>,
    %262 = vector.extract_strided_slice %236 {offsets = [40, 0], sizes = [8, 8], strides = [1, 1]} : vector<64x8xbf16> to vector<8x8xbf16>
    %263 = vector.extract_strided_slice %175 {offsets = [8, 16], sizes = [8, 16], strides = [1, 1]} : vector<16x64xf32> to vector<8x16xf32>
    %264 = arith.truncf %263 : vector<8x16xf32> to vector<8x16xbf16>
    %cst_130 = arith.constant dense<0.000000e+00> : vector<8x16xf32>
    %265 = tpu.matmul %262, %264, %cst_130 {dimension_numbers = #tpu.dot_dimension_numbers<[1], [0], [0], [1], [0, 0, 1, 1], [], []>} : vector<8x8xbf16>, vector<8x16xbf16>, vector<8x16xf32> -> vector<8x16xf32>
    %c8_131 = arith.constant 8 : index
    %c16_132 = arith.constant 16 : index
    %266 = vector.load %arg31[%c8_131, %c16_132] : memref<16x64xf32, #tpu.memory_space<vmem>>, vector<8x16xf32>
    tpu.vector_store %arg31[%c8_131, %c16_132], %265 {strides = array<i32>} : memref<16x64xf32, #tpu.memory_space<vmem>>, vector<8x16xf32>,
    %267 = vector.extract_strided_slice %236 {offsets = [48, 0], sizes = [8, 8], strides = [1, 1]} : vector<64x8xbf16> to vector<8x8xbf16>
    %268 = vector.extract_strided_slice %175 {offsets = [8, 32], sizes = [8, 16], strides = [1, 1]} : vector<16x64xf32> to vector<8x16xf32>
    %269 = arith.truncf %268 : vector<8x16xf32> to vector<8x16xbf16>
    %cst_133 = arith.constant dense<0.000000e+00> : vector<8x16xf32>
    %270 = tpu.matmul %267, %269, %cst_133 {dimension_numbers = #tpu.dot_dimension_numbers<[1], [0], [0], [1], [0, 0, 1, 1], [], []>} : vector<8x8xbf16>, vector<8x16xbf16>, vector<8x16xf32> -> vector<8x16xf32>
    %c8_134 = arith.constant 8 : index
    %c32_135 = arith.constant 32 : index
    %271 = vector.load %arg31[%c8_134, %c32_135] : memref<16x64xf32, #tpu.memory_space<vmem>>, vector<8x16xf32>
    tpu.vector_store %arg31[%c8_134, %c32_135], %270 {strides = array<i32>} : memref<16x64xf32, #tpu.memory_space<vmem>>, vector<8x16xf32>,
    %272 = vector.extract_strided_slice %236 {offsets = [56, 0], sizes = [8, 8], strides = [1, 1]} : vector<64x8xbf16> to vector<8x8xbf16>
    %273 = vector.extract_strided_slice %175 {offsets = [8, 48], sizes = [8, 16], strides = [1, 1]} : vector<16x64xf32> to vector<8x16xf32>
    %274 = arith.truncf %273 : vector<8x16xf32> to vector<8x16xbf16>
    %cst_136 = arith.constant dense<0.000000e+00> : vector<8x16xf32>
    %275 = tpu.matmul %272, %274, %cst_136 {dimension_numbers = #tpu.dot_dimension_numbers<[1], [0], [0], [1], [0, 0, 1, 1], [], []>} : vector<8x8xbf16>, vector<8x16xbf16>, vector<8x16xf32> -> vector<8x16xf32>
    %c8_137 = arith.constant 8 : index
    %c48_138 = arith.constant 48 : index
    %276 = vector.load %arg31[%c8_137, %c48_138] : memref<16x64xf32, #tpu.memory_space<vmem>>, vector<8x16xf32>
    tpu.vector_store %arg31[%c8_137, %c48_138], %275 {strides = array<i32>} : memref<16x64xf32, #tpu.memory_space<vmem>>, vector<8x16xf32>,
    %c0_139 = arith.constant 0 : index
    %c0_140 = arith.constant 0 : index
    %277 = vector.load %arg31[%c0_139, %c0_140] : memref<16x64xf32, #tpu.memory_space<vmem>>, vector<16x64xf32>
    %c1_141 = arith.constant 1 : index
    %c0_142 = arith.constant 0 : index
    %c0_143 = arith.constant 0 : index
    %278 = vector.load %arg8[%c1_141, %c0_142, %c0_143] : memref<2x64x64xbf16, #tpu.memory_space<vmem>>, vector<1x64x64xbf16>
    %279 = vector.shape_cast %278 : vector<1x64x64xbf16> to vector<64x64xbf16>
    %280 = arith.truncf %277 : vector<16x64xf32> to vector<16x64xbf16>
    %cst_144 = arith.constant dense<0.000000e+00> : vector<16x64xf32>
    %281 = tpu.matmul %280, %279, %cst_144 {dimension_numbers = #tpu.dot_dimension_numbers<[1], [0], [0], [1], [0, 0, 1, 1], [], []>} : vector<16x64xbf16>, vector<64x64xbf16>, vector<16x64xf32> -> vector<16x64xf32>
    %282 = arith.addf %154, %281 : vector<16x64xf32>
    %c1_145 = arith.constant 1 : index
    %c0_146 = arith.constant 0 : index
    %c0_147 = arith.constant 0 : index
    %283 = vector.load %arg9[%c1_145, %c0_146, %c0_147] : memref<2x1x64xf32, #tpu.memory_space<vmem>>, vector<1x1x64xf32>
    %284 = vector.shape_cast %283 : vector<1x1x64xf32> to vector<1x64xf32>
    %285 = arith.mulf %282, %282 : vector<16x64xf32>
    %cst_148 = arith.constant dense<0.000000e+00> : vector<16xf32>
    %286 = vector.multi_reduction <add>, %285, %cst_148 [1] : vector<16x64xf32> to vector<16xf32>
    %287 = vector.shape_cast %286 : vector<16xf32> to vector<16x1xf32>
    %cst_149 = arith.constant 6.400000e+01 : f32
    %288 = vector.broadcast %cst_149 : f32 to vector<16x1xf32>
    %289 = arith.divf %287, %288 : vector<16x1xf32>
    %cst_150 = arith.constant 9.99999997E-7 : f32
    %290 = vector.broadcast %cst_150 : f32 to vector<16x1xf32>
    %291 = arith.addf %289, %290 : vector<16x1xf32>
    %292 = math.rsqrt %291 : vector<16x1xf32>
    %293 = vector.broadcast %292 : vector<16x1xf32> to vector<16x64xf32>
    %294 = arith.mulf %282, %293 : vector<16x64xf32>
    %295 = vector.broadcast %284 : vector<1x64xf32> to vector<16x64xf32>
    %296 = arith.mulf %294, %295 : vector<16x64xf32>
    %c1_151 = arith.constant 1 : index
    %c0_152 = arith.constant 0 : index
    %c0_153 = arith.constant 0 : index
    %297 = vector.load %arg10[%c1_151, %c0_152, %c0_153] : memref<2x64x128xbf16, #tpu.memory_space<vmem>>, vector<1x64x128xbf16>
    %298 = vector.shape_cast %297 : vector<1x64x128xbf16> to vector<64x128xbf16>
    %299 = arith.truncf %296 : vector<16x64xf32> to vector<16x64xbf16>
    %cst_154 = arith.constant dense<0.000000e+00> : vector<16x128xf32>
    %300 = tpu.matmul %299, %298, %cst_154 {dimension_numbers = #tpu.dot_dimension_numbers<[1], [0], [0], [1], [0, 0, 1, 1], [], []>} : vector<16x64xbf16>, vector<64x128xbf16>, vector<16x128xf32> -> vector<16x128xf32>
    %cst_155 = arith.constant 0.000000e+00 : f32
    %301 = vector.broadcast %cst_155 : f32 to vector<16x128xf32>
    %302 = arith.maximumf %300, %301 : vector<16x128xf32>
    %c1_156 = arith.constant 1 : index
    %c0_157 = arith.constant 0 : index
    %c0_158 = arith.constant 0 : index
    %303 = vector.load %arg11[%c1_156, %c0_157, %c0_158] : memref<2x128x64xbf16, #tpu.memory_space<vmem>>, vector<1x128x64xbf16>
    %304 = vector.shape_cast %303 : vector<1x128x64xbf16> to vector<128x64xbf16>
    %305 = arith.truncf %302 : vector<16x128xf32> to vector<16x128xbf16>
    %cst_159 = arith.constant dense<0.000000e+00> : vector<16x64xf32>
    %306 = tpu.matmul %305, %304, %cst_159 {dimension_numbers = #tpu.dot_dimension_numbers<[1], [0], [0], [1], [0, 0, 1, 1], [], []>} : vector<16x128xbf16>, vector<128x64xbf16>, vector<16x64xf32> -> vector<16x64xf32>
    %307 = arith.addf %282, %306 : vector<16x64xf32>
    %c0_160 = arith.constant 0 : index
    %c0_161 = arith.constant 0 : index
    %308 = vector.load %arg22[%c0_160, %c0_161] : memref<1x64xf32, #tpu.memory_space<vmem>>, vector<1x64xf32>
    %309 = arith.mulf %307, %307 : vector<16x64xf32>
    %cst_162 = arith.constant dense<0.000000e+00> : vector<16xf32>
    %310 = vector.multi_reduction <add>, %309, %cst_162 [1] : vector<16x64xf32> to vector<16xf32>
    %311 = vector.shape_cast %310 : vector<16xf32> to vector<16x1xf32>
    %cst_163 = arith.constant 6.400000e+01 : f32
    %312 = vector.broadcast %cst_163 : f32 to vector<16x1xf32>
    %313 = arith.divf %311, %312 : vector<16x1xf32>
    %cst_164 = arith.constant 9.99999997E-7 : f32
    %314 = vector.broadcast %cst_164 : f32 to vector<16x1xf32>
    %315 = arith.addf %313, %314 : vector<16x1xf32>
    %316 = math.rsqrt %315 : vector<16x1xf32>
    %317 = vector.broadcast %316 : vector<16x1xf32> to vector<16x64xf32>
    %318 = arith.mulf %307, %317 : vector<16x64xf32>
    %319 = vector.broadcast %308 : vector<1x64xf32> to vector<16x64xf32>
    %320 = arith.mulf %318, %319 : vector<16x64xf32>
    %c0_165 = arith.constant 0 : index
    %c0_166 = arith.constant 0 : index
    %321 = vector.load %arg5[%c0_165, %c0_166] : memref<2x16xf32, #tpu.memory_space<vmem>>, vector<2x16xf32>
    %cst_167 = arith.constant dense<0.000000e+00> : vector<2x64xf32>
    %322 = tpu.matmul %321, %320, %cst_167 {dimension_numbers = #tpu.dot_dimension_numbers<[1], [0], [0], [1], [0, 0, 1, 1], [], []>} : vector<2x16xf32>, vector<16x64xf32>, vector<2x64xf32> -> vector<2x64xf32>
    %c0_168 = arith.constant 0 : index
    %c0_169 = arith.constant 0 : index
    %323 = vector.load %arg24[%c0_168, %c0_169] : memref<64x64xbf16, #tpu.memory_space<vmem>>, vector<64x64xbf16>
    %324 = arith.truncf %322 : vector<2x64xf32> to vector<2x64xbf16>
    %cst_170 = arith.constant dense<0.000000e+00> : vector<2x64xf32>
    %325 = tpu.matmul %324, %323, %cst_170 {dimension_numbers = #tpu.dot_dimension_numbers<[1], [0], [0], [1], [0, 0, 1, 1], [], []>} : vector<2x64xbf16>, vector<64x64xbf16>, vector<2x64xf32> -> vector<2x64xf32>
    %c0_171 = arith.constant 0 : index
    %c0_172 = arith.constant 0 : index
    %326 = vector.load %arg25[%c0_171, %c0_172] : memref<1x64xf32, #tpu.memory_space<vmem>>, vector<1x64xf32>
    %327 = vector.broadcast %326 : vector<1x64xf32> to vector<2x64xf32>
    %328 = arith.addf %325, %327 : vector<2x64xf32>
    %329 = math.tanh %328 : vector<2x64xf32>
    %c0_173 = arith.constant 0 : index
    %c0_174 = arith.constant 0 : index
    %330 = vector.load %arg26[%c0_173, %c0_174] : memref<64x128xbf16, #tpu.memory_space<vmem>>, vector<64x128xbf16>
    %331 = arith.truncf %329 : vector<2x64xf32> to vector<2x64xbf16>
    %cst_175 = arith.constant dense<0.000000e+00> : vector<2x128xf32>
    %332 = tpu.matmul %331, %330, %cst_175 {dimension_numbers = #tpu.dot_dimension_numbers<[1], [0], [0], [1], [0, 0, 1, 1], [], []>} : vector<2x64xbf16>, vector<64x128xbf16>, vector<2x128xf32> -> vector<2x128xf32>
    %c0_176 = arith.constant 0 : index
    %c0_177 = arith.constant 0 : index
    %333 = vector.load %arg27[%c0_176, %c0_177] : memref<1x128xf32, #tpu.memory_space<vmem>>, vector<1x128xf32>
    %334 = vector.broadcast %333 : vector<1x128xf32> to vector<2x128xf32>
    %335 = arith.addf %332, %334 : vector<2x128xf32>
    %c0_178 = arith.constant 0 : index
    %c0_179 = arith.constant 0 : index
    %336 = vector.load %arg28[%c0_178, %c0_179] : memref<2x128xf32, #tpu.memory_space<vmem>>, vector<2x128xf32>
    tpu.vector_store %arg28[%c0_178, %c0_179], %335 {strides = array<i32>} : memref<2x128xf32, #tpu.memory_space<vmem>>, vector<2x128xf32>,
    %c0_180 = arith.constant 0 : index
    %c0_181 = arith.constant 0 : index
    %337 = vector.load %arg3[%c0_180, %c0_181] : memref<64x8xf32, #tpu.memory_space<vmem>>, vector<64x8xf32>
    %c0_182 = arith.constant 0 : index
    %c0_183 = arith.constant 0 : index
    %338 = vector.load %arg4[%c0_182, %c0_183] : memref<64x8xf32, #tpu.memory_space<vmem>>, vector<64x8xf32>
    %c0_184 = arith.constant 0 : index
    %c0_185 = arith.constant 0 : index
    %339 = vector.load %arg1[%c0_184, %c0_185] : memref<16x64xf32, #tpu.memory_space<vmem>>, vector<16x64xf32>
    %c0_186 = arith.constant 0 : index
    %c0_187 = arith.constant 0 : index
    %c0_188 = arith.constant 0 : index
    %340 = vector.load %arg12[%c0_186, %c0_187, %c0_188] : memref<2x1x64xf32, #tpu.memory_space<vmem>>, vector<1x1x64xf32>
    %341 = vector.shape_cast %340 : vector<1x1x64xf32> to vector<1x64xf32>
    %342 = arith.mulf %339, %339 : vector<16x64xf32>
    %cst_189 = arith.constant dense<0.000000e+00> : vector<16xf32>
    %343 = vector.multi_reduction <add>, %342, %cst_189 [1] : vector<16x64xf32> to vector<16xf32>
    %344 = vector.shape_cast %343 : vector<16xf32> to vector<16x1xf32>
    %cst_190 = arith.constant 6.400000e+01 : f32
    %345 = vector.broadcast %cst_190 : f32 to vector<16x1xf32>
    %346 = arith.divf %344, %345 : vector<16x1xf32>
    %cst_191 = arith.constant 9.99999997E-7 : f32
    %347 = vector.broadcast %cst_191 : f32 to vector<16x1xf32>
    %348 = arith.addf %346, %347 : vector<16x1xf32>
    %349 = math.rsqrt %348 : vector<16x1xf32>
    %350 = vector.broadcast %349 : vector<16x1xf32> to vector<16x64xf32>
    %351 = arith.mulf %339, %350 : vector<16x64xf32>
    %352 = vector.broadcast %341 : vector<1x64xf32> to vector<16x64xf32>
    %353 = arith.mulf %351, %352 : vector<16x64xf32>
    %c0_192 = arith.constant 0 : index
    %c0_193 = arith.constant 0 : index
    %c0_194 = arith.constant 0 : index
    %354 = vector.load %arg13[%c0_192, %c0_193, %c0_194] : memref<2x64x192xbf16, #tpu.memory_space<vmem>>, vector<1x64x192xbf16>
    %355 = vector.shape_cast %354 : vector<1x64x192xbf16> to vector<64x192xbf16>
    %356 = arith.truncf %353 : vector<16x64xf32> to vector<16x64xbf16>
    %cst_195 = arith.constant dense<0.000000e+00> : vector<16x192xf32>
    %357 = tpu.matmul %356, %355, %cst_195 {dimension_numbers = #tpu.dot_dimension_numbers<[1], [0], [0], [1], [0, 0, 1, 1], [], []>} : vector<16x64xbf16>, vector<64x192xbf16>, vector<16x192xf32> -> vector<16x192xf32>
    %358 = vector.extract_strided_slice %357 {offsets = [0, 0], sizes = [16, 64], strides = [1, 1]} : vector<16x192xf32> to vector<16x64xf32>
    %359 = vector.extract_strided_slice %357 {offsets = [0, 64], sizes = [16, 64], strides = [1, 1]} : vector<16x192xf32> to vector<16x64xf32>
    %360 = vector.extract_strided_slice %357 {offsets = [0, 128], sizes = [16, 64], strides = [1, 1]} : vector<16x192xf32> to vector<16x64xf32>
    %361 = vector.extract_strided_slice %358 {offsets = [0, 0], sizes = [8, 16], strides = [1, 1]} : vector<16x64xf32> to vector<8x16xf32>
    %362 = arith.truncf %361 : vector<8x16xf32> to vector<8x16xbf16>
    %363 = vector.extract_strided_slice %359 {offsets = [0, 0], sizes = [8, 16], strides = [1, 1]} : vector<16x64xf32> to vector<8x16xf32>
    %364 = arith.truncf %363 : vector<8x16xf32> to vector<8x16xbf16>
    %cst_196 = arith.constant dense<0.000000e+00> : vector<8x8xf32>
    %365 = tpu.matmul %362, %364, %cst_196 {dimension_numbers = #tpu.dot_dimension_numbers<[1], [1], [0], [0], [0, 0, 1, 0], [], []>} : vector<8x16xbf16>, vector<8x16xbf16>, vector<8x8xf32> -> vector<8x8xf32>
    %c0_197 = arith.constant 0 : index
    %c0_198 = arith.constant 0 : index
    %366 = vector.load %arg30[%c0_197, %c0_198] : memref<64x8xf32, #tpu.memory_space<vmem>>, vector<8x8xf32>
    tpu.vector_store %arg30[%c0_197, %c0_198], %365 {strides = array<i32>} : memref<64x8xf32, #tpu.memory_space<vmem>>, vector<8x8xf32>,
    %367 = vector.extract_strided_slice %358 {offsets = [0, 16], sizes = [8, 16], strides = [1, 1]} : vector<16x64xf32> to vector<8x16xf32>
    %368 = arith.truncf %367 : vector<8x16xf32> to vector<8x16xbf16>
    %369 = vector.extract_strided_slice %359 {offsets = [0, 16], sizes = [8, 16], strides = [1, 1]} : vector<16x64xf32> to vector<8x16xf32>
    %370 = arith.truncf %369 : vector<8x16xf32> to vector<8x16xbf16>
    %cst_199 = arith.constant dense<0.000000e+00> : vector<8x8xf32>
    %371 = tpu.matmul %368, %370, %cst_199 {dimension_numbers = #tpu.dot_dimension_numbers<[1], [1], [0], [0], [0, 0, 1, 0], [], []>} : vector<8x16xbf16>, vector<8x16xbf16>, vector<8x8xf32> -> vector<8x8xf32>
    %c8_200 = arith.constant 8 : index
    %c0_201 = arith.constant 0 : index
    %372 = vector.load %arg30[%c8_200, %c0_201] : memref<64x8xf32, #tpu.memory_space<vmem>>, vector<8x8xf32>
    tpu.vector_store %arg30[%c8_200, %c0_201], %371 {strides = array<i32>} : memref<64x8xf32, #tpu.memory_space<vmem>>, vector<8x8xf32>,
    %373 = vector.extract_strided_slice %358 {offsets = [0, 32], sizes = [8, 16], strides = [1, 1]} : vector<16x64xf32> to vector<8x16xf32>
    %374 = arith.truncf %373 : vector<8x16xf32> to vector<8x16xbf16>
    %375 = vector.extract_strided_slice %359 {offsets = [0, 32], sizes = [8, 16], strides = [1, 1]} : vector<16x64xf32> to vector<8x16xf32>
    %376 = arith.truncf %375 : vector<8x16xf32> to vector<8x16xbf16>
    %cst_202 = arith.constant dense<0.000000e+00> : vector<8x8xf32>
    %377 = tpu.matmul %374, %376, %cst_202 {dimension_numbers = #tpu.dot_dimension_numbers<[1], [1], [0], [0], [0, 0, 1, 0], [], []>} : vector<8x16xbf16>, vector<8x16xbf16>, vector<8x8xf32> -> vector<8x8xf32>
    %c16_203 = arith.constant 16 : index
    %c0_204 = arith.constant 0 : index
    %378 = vector.load %arg30[%c16_203, %c0_204] : memref<64x8xf32, #tpu.memory_space<vmem>>, vector<8x8xf32>
    tpu.vector_store %arg30[%c16_203, %c0_204], %377 {strides = array<i32>} : memref<64x8xf32, #tpu.memory_space<vmem>>, vector<8x8xf32>,
    %379 = vector.extract_strided_slice %358 {offsets = [0, 48], sizes = [8, 16], strides = [1, 1]} : vector<16x64xf32> to vector<8x16xf32>
    %380 = arith.truncf %379 : vector<8x16xf32> to vector<8x16xbf16>
    %381 = vector.extract_strided_slice %359 {offsets = [0, 48], sizes = [8, 16], strides = [1, 1]} : vector<16x64xf32> to vector<8x16xf32>
    %382 = arith.truncf %381 : vector<8x16xf32> to vector<8x16xbf16>
    %cst_205 = arith.constant dense<0.000000e+00> : vector<8x8xf32>
    %383 = tpu.matmul %380, %382, %cst_205 {dimension_numbers = #tpu.dot_dimension_numbers<[1], [1], [0], [0], [0, 0, 1, 0], [], []>} : vector<8x16xbf16>, vector<8x16xbf16>, vector<8x8xf32> -> vector<8x8xf32>
    %c24_206 = arith.constant 24 : index
    %c0_207 = arith.constant 0 : index
    %384 = vector.load %arg30[%c24_206, %c0_207] : memref<64x8xf32, #tpu.memory_space<vmem>>, vector<8x8xf32>
    tpu.vector_store %arg30[%c24_206, %c0_207], %383 {strides = array<i32>} : memref<64x8xf32, #tpu.memory_space<vmem>>, vector<8x8xf32>,
    %385 = vector.extract_strided_slice %358 {offsets = [8, 0], sizes = [8, 16], strides = [1, 1]} : vector<16x64xf32> to vector<8x16xf32>
    %386 = arith.truncf %385 : vector<8x16xf32> to vector<8x16xbf16>
    %387 = vector.extract_strided_slice %359 {offsets = [8, 0], sizes = [8, 16], strides = [1, 1]} : vector<16x64xf32> to vector<8x16xf32>
    %388 = arith.truncf %387 : vector<8x16xf32> to vector<8x16xbf16>
    %cst_208 = arith.constant dense<0.000000e+00> : vector<8x8xf32>
    %389 = tpu.matmul %386, %388, %cst_208 {dimension_numbers = #tpu.dot_dimension_numbers<[1], [1], [0], [0], [0, 0, 1, 0], [], []>} : vector<8x16xbf16>, vector<8x16xbf16>, vector<8x8xf32> -> vector<8x8xf32>
    %c32_209 = arith.constant 32 : index
    %c0_210 = arith.constant 0 : index
    %390 = vector.load %arg30[%c32_209, %c0_210] : memref<64x8xf32, #tpu.memory_space<vmem>>, vector<8x8xf32>
    tpu.vector_store %arg30[%c32_209, %c0_210], %389 {strides = array<i32>} : memref<64x8xf32, #tpu.memory_space<vmem>>, vector<8x8xf32>,
    %391 = vector.extract_strided_slice %358 {offsets = [8, 16], sizes = [8, 16], strides = [1, 1]} : vector<16x64xf32> to vector<8x16xf32>
    %392 = arith.truncf %391 : vector<8x16xf32> to vector<8x16xbf16>
    %393 = vector.extract_strided_slice %359 {offsets = [8, 16], sizes = [8, 16], strides = [1, 1]} : vector<16x64xf32> to vector<8x16xf32>
    %394 = arith.truncf %393 : vector<8x16xf32> to vector<8x16xbf16>
    %cst_211 = arith.constant dense<0.000000e+00> : vector<8x8xf32>
    %395 = tpu.matmul %392, %394, %cst_211 {dimension_numbers = #tpu.dot_dimension_numbers<[1], [1], [0], [0], [0, 0, 1, 0], [], []>} : vector<8x16xbf16>, vector<8x16xbf16>, vector<8x8xf32> -> vector<8x8xf32>
    %c40_212 = arith.constant 40 : index
    %c0_213 = arith.constant 0 : index
    %396 = vector.load %arg30[%c40_212, %c0_213] : memref<64x8xf32, #tpu.memory_space<vmem>>, vector<8x8xf32>
    tpu.vector_store %arg30[%c40_212, %c0_213], %395 {strides = array<i32>} : memref<64x8xf32, #tpu.memory_space<vmem>>, vector<8x8xf32>,
    %397 = vector.extract_strided_slice %358 {offsets = [8, 32], sizes = [8, 16], strides = [1, 1]} : vector<16x64xf32> to vector<8x16xf32>
    %398 = arith.truncf %397 : vector<8x16xf32> to vector<8x16xbf16>
    %399 = vector.extract_strided_slice %359 {offsets = [8, 32], sizes = [8, 16], strides = [1, 1]} : vector<16x64xf32> to vector<8x16xf32>
    %400 = arith.truncf %399 : vector<8x16xf32> to vector<8x16xbf16>
    %cst_214 = arith.constant dense<0.000000e+00> : vector<8x8xf32>
    %401 = tpu.matmul %398, %400, %cst_214 {dimension_numbers = #tpu.dot_dimension_numbers<[1], [1], [0], [0], [0, 0, 1, 0], [], []>} : vector<8x16xbf16>, vector<8x16xbf16>, vector<8x8xf32> -> vector<8x8xf32>
    %c48_215 = arith.constant 48 : index
    %c0_216 = arith.constant 0 : index
    %402 = vector.load %arg30[%c48_215, %c0_216] : memref<64x8xf32, #tpu.memory_space<vmem>>, vector<8x8xf32>
    tpu.vector_store %arg30[%c48_215, %c0_216], %401 {strides = array<i32>} : memref<64x8xf32, #tpu.memory_space<vmem>>, vector<8x8xf32>,
    %403 = vector.extract_strided_slice %358 {offsets = [8, 48], sizes = [8, 16], strides = [1, 1]} : vector<16x64xf32> to vector<8x16xf32>
    %404 = arith.truncf %403 : vector<8x16xf32> to vector<8x16xbf16>
    %405 = vector.extract_strided_slice %359 {offsets = [8, 48], sizes = [8, 16], strides = [1, 1]} : vector<16x64xf32> to vector<8x16xf32>
    %406 = arith.truncf %405 : vector<8x16xf32> to vector<8x16xbf16>
    %cst_217 = arith.constant dense<0.000000e+00> : vector<8x8xf32>
    %407 = tpu.matmul %404, %406, %cst_217 {dimension_numbers = #tpu.dot_dimension_numbers<[1], [1], [0], [0], [0, 0, 1, 0], [], []>} : vector<8x16xbf16>, vector<8x16xbf16>, vector<8x8xf32> -> vector<8x8xf32>
    %c56_218 = arith.constant 56 : index
    %c0_219 = arith.constant 0 : index
    %408 = vector.load %arg30[%c56_218, %c0_219] : memref<64x8xf32, #tpu.memory_space<vmem>>, vector<8x8xf32>
    tpu.vector_store %arg30[%c56_218, %c0_219], %407 {strides = array<i32>} : memref<64x8xf32, #tpu.memory_space<vmem>>, vector<8x8xf32>,
    %c0_220 = arith.constant 0 : index
    %c0_221 = arith.constant 0 : index
    %409 = vector.load %arg30[%c0_220, %c0_221] : memref<64x8xf32, #tpu.memory_space<vmem>>, vector<64x8xf32>
    %410 = arith.addf %409, %337 : vector<64x8xf32>
    %cst_222 = arith.constant dense<0xFF800000> : vector<64xf32>
    %411 = vector.multi_reduction <maximumf>, %410, %cst_222 [1] : vector<64x8xf32> to vector<64xf32>
    %412 = vector.shape_cast %411 : vector<64xf32> to vector<64x1xf32>
    %413 = vector.broadcast %412 : vector<64x1xf32> to vector<64x8xf32>
    %414 = arith.subf %410, %413 : vector<64x8xf32>
    %415 = math.exp %414 : vector<64x8xf32>
    %cst_223 = arith.constant dense<0.000000e+00> : vector<64xf32>
    %416 = vector.multi_reduction <add>, %415, %cst_223 [1] : vector<64x8xf32> to vector<64xf32>
    %417 = vector.shape_cast %416 : vector<64xf32> to vector<64x1xf32>
    %418 = tpu.reciprocal %417 {approx = true} : vector<64x1xf32> -> vector<64x1xf32>
    %419 = vector.broadcast %418 : vector<64x1xf32> to vector<64x8xf32>
    %420 = arith.mulf %415, %419 : vector<64x8xf32>
    %421 = arith.truncf %420 : vector<64x8xf32> to vector<64x8xbf16>
    %422 = vector.extract_strided_slice %421 {offsets = [0, 0], sizes = [8, 8], strides = [1, 1]} : vector<64x8xbf16> to vector<8x8xbf16>
    %423 = vector.extract_strided_slice %360 {offsets = [0, 0], sizes = [8, 16], strides = [1, 1]} : vector<16x64xf32> to vector<8x16xf32>
    %424 = arith.truncf %423 : vector<8x16xf32> to vector<8x16xbf16>
    %cst_224 = arith.constant dense<0.000000e+00> : vector<8x16xf32>
    %425 = tpu.matmul %422, %424, %cst_224 {dimension_numbers = #tpu.dot_dimension_numbers<[1], [0], [0], [1], [0, 0, 1, 1], [], []>} : vector<8x8xbf16>, vector<8x16xbf16>, vector<8x16xf32> -> vector<8x16xf32>
    %c0_225 = arith.constant 0 : index
    %c0_226 = arith.constant 0 : index
    %426 = vector.load %arg31[%c0_225, %c0_226] : memref<16x64xf32, #tpu.memory_space<vmem>>, vector<8x16xf32>
    tpu.vector_store %arg31[%c0_225, %c0_226], %425 {strides = array<i32>} : memref<16x64xf32, #tpu.memory_space<vmem>>, vector<8x16xf32>,
    %427 = vector.extract_strided_slice %421 {offsets = [8, 0], sizes = [8, 8], strides = [1, 1]} : vector<64x8xbf16> to vector<8x8xbf16>
    %428 = vector.extract_strided_slice %360 {offsets = [0, 16], sizes = [8, 16], strides = [1, 1]} : vector<16x64xf32> to vector<8x16xf32>
    %429 = arith.truncf %428 : vector<8x16xf32> to vector<8x16xbf16>
    %cst_227 = arith.constant dense<0.000000e+00> : vector<8x16xf32>
    %430 = tpu.matmul %427, %429, %cst_227 {dimension_numbers = #tpu.dot_dimension_numbers<[1], [0], [0], [1], [0, 0, 1, 1], [], []>} : vector<8x8xbf16>, vector<8x16xbf16>, vector<8x16xf32> -> vector<8x16xf32>
    %c0_228 = arith.constant 0 : index
    %c16_229 = arith.constant 16 : index
    %431 = vector.load %arg31[%c0_228, %c16_229] : memref<16x64xf32, #tpu.memory_space<vmem>>, vector<8x16xf32>
    tpu.vector_store %arg31[%c0_228, %c16_229], %430 {strides = array<i32>} : memref<16x64xf32, #tpu.memory_space<vmem>>, vector<8x16xf32>,
    %432 = vector.extract_strided_slice %421 {offsets = [16, 0], sizes = [8, 8], strides = [1, 1]} : vector<64x8xbf16> to vector<8x8xbf16>
    %433 = vector.extract_strided_slice %360 {offsets = [0, 32], sizes = [8, 16], strides = [1, 1]} : vector<16x64xf32> to vector<8x16xf32>
    %434 = arith.truncf %433 : vector<8x16xf32> to vector<8x16xbf16>
    %cst_230 = arith.constant dense<0.000000e+00> : vector<8x16xf32>
    %435 = tpu.matmul %432, %434, %cst_230 {dimension_numbers = #tpu.dot_dimension_numbers<[1], [0], [0], [1], [0, 0, 1, 1], [], []>} : vector<8x8xbf16>, vector<8x16xbf16>, vector<8x16xf32> -> vector<8x16xf32>
    %c0_231 = arith.constant 0 : index
    %c32_232 = arith.constant 32 : index
    %436 = vector.load %arg31[%c0_231, %c32_232] : memref<16x64xf32, #tpu.memory_space<vmem>>, vector<8x16xf32>
    tpu.vector_store %arg31[%c0_231, %c32_232], %435 {strides = array<i32>} : memref<16x64xf32, #tpu.memory_space<vmem>>, vector<8x16xf32>,
    %437 = vector.extract_strided_slice %421 {offsets = [24, 0], sizes = [8, 8], strides = [1, 1]} : vector<64x8xbf16> to vector<8x8xbf16>
    %438 = vector.extract_strided_slice %360 {offsets = [0, 48], sizes = [8, 16], strides = [1, 1]} : vector<16x64xf32> to vector<8x16xf32>
    %439 = arith.truncf %438 : vector<8x16xf32> to vector<8x16xbf16>
    %cst_233 = arith.constant dense<0.000000e+00> : vector<8x16xf32>
    %440 = tpu.matmul %437, %439, %cst_233 {dimension_numbers = #tpu.dot_dimension_numbers<[1], [0], [0], [1], [0, 0, 1, 1], [], []>} : vector<8x8xbf16>, vector<8x16xbf16>, vector<8x16xf32> -> vector<8x16xf32>
    %c0_234 = arith.constant 0 : index
    %c48_235 = arith.constant 48 : index
    %441 = vector.load %arg31[%c0_234, %c48_235] : memref<16x64xf32, #tpu.memory_space<vmem>>, vector<8x16xf32>
    tpu.vector_store %arg31[%c0_234, %c48_235], %440 {strides = array<i32>} : memref<16x64xf32, #tpu.memory_space<vmem>>, vector<8x16xf32>,
    %442 = vector.extract_strided_slice %421 {offsets = [32, 0], sizes = [8, 8], strides = [1, 1]} : vector<64x8xbf16> to vector<8x8xbf16>
    %443 = vector.extract_strided_slice %360 {offsets = [8, 0], sizes = [8, 16], strides = [1, 1]} : vector<16x64xf32> to vector<8x16xf32>
    %444 = arith.truncf %443 : vector<8x16xf32> to vector<8x16xbf16>
    %cst_236 = arith.constant dense<0.000000e+00> : vector<8x16xf32>
    %445 = tpu.matmul %442, %444, %cst_236 {dimension_numbers = #tpu.dot_dimension_numbers<[1], [0], [0], [1], [0, 0, 1, 1], [], []>} : vector<8x8xbf16>, vector<8x16xbf16>, vector<8x16xf32> -> vector<8x16xf32>
    %c8_237 = arith.constant 8 : index
    %c0_238 = arith.constant 0 : index
    %446 = vector.load %arg31[%c8_237, %c0_238] : memref<16x64xf32, #tpu.memory_space<vmem>>, vector<8x16xf32>
    tpu.vector_store %arg31[%c8_237, %c0_238], %445 {strides = array<i32>} : memref<16x64xf32, #tpu.memory_space<vmem>>, vector<8x16xf32>,
    %447 = vector.extract_strided_slice %421 {offsets = [40, 0], sizes = [8, 8], strides = [1, 1]} : vector<64x8xbf16> to vector<8x8xbf16>
    %448 = vector.extract_strided_slice %360 {offsets = [8, 16], sizes = [8, 16], strides = [1, 1]} : vector<16x64xf32> to vector<8x16xf32>
    %449 = arith.truncf %448 : vector<8x16xf32> to vector<8x16xbf16>
    %cst_239 = arith.constant dense<0.000000e+00> : vector<8x16xf32>
    %450 = tpu.matmul %447, %449, %cst_239 {dimension_numbers = #tpu.dot_dimension_numbers<[1], [0], [0], [1], [0, 0, 1, 1], [], []>} : vector<8x8xbf16>, vector<8x16xbf16>, vector<8x16xf32> -> vector<8x16xf32>
    %c8_240 = arith.constant 8 : index
    %c16_241 = arith.constant 16 : index
    %451 = vector.load %arg31[%c8_240, %c16_241] : memref<16x64xf32, #tpu.memory_space<vmem>>, vector<8x16xf32>
    tpu.vector_store %arg31[%c8_240, %c16_241], %450 {strides = array<i32>} : memref<16x64xf32, #tpu.memory_space<vmem>>, vector<8x16xf32>,
    %452 = vector.extract_strided_slice %421 {offsets = [48, 0], sizes = [8, 8], strides = [1, 1]} : vector<64x8xbf16> to vector<8x8xbf16>
    %453 = vector.extract_strided_slice %360 {offsets = [8, 32], sizes = [8, 16], strides = [1, 1]} : vector<16x64xf32> to vector<8x16xf32>
    %454 = arith.truncf %453 : vector<8x16xf32> to vector<8x16xbf16>
    %cst_242 = arith.constant dense<0.000000e+00> : vector<8x16xf32>
    %455 = tpu.matmul %452, %454, %cst_242 {dimension_numbers = #tpu.dot_dimension_numbers<[1], [0], [0], [1], [0, 0, 1, 1], [], []>} : vector<8x8xbf16>, vector<8x16xbf16>, vector<8x16xf32> -> vector<8x16xf32>
    %c8_243 = arith.constant 8 : index
    %c32_244 = arith.constant 32 : index
    %456 = vector.load %arg31[%c8_243, %c32_244] : memref<16x64xf32, #tpu.memory_space<vmem>>, vector<8x16xf32>
    tpu.vector_store %arg31[%c8_243, %c32_244], %455 {strides = array<i32>} : memref<16x64xf32, #tpu.memory_space<vmem>>, vector<8x16xf32>,
    %457 = vector.extract_strided_slice %421 {offsets = [56, 0], sizes = [8, 8], strides = [1, 1]} : vector<64x8xbf16> to vector<8x8xbf16>
    %458 = vector.extract_strided_slice %360 {offsets = [8, 48], sizes = [8, 16], strides = [1, 1]} : vector<16x64xf32> to vector<8x16xf32>
    %459 = arith.truncf %458 : vector<8x16xf32> to vector<8x16xbf16>
    %cst_245 = arith.constant dense<0.000000e+00> : vector<8x16xf32>
    %460 = tpu.matmul %457, %459, %cst_245 {dimension_numbers = #tpu.dot_dimension_numbers<[1], [0], [0], [1], [0, 0, 1, 1], [], []>} : vector<8x8xbf16>, vector<8x16xbf16>, vector<8x16xf32> -> vector<8x16xf32>
    %c8_246 = arith.constant 8 : index
    %c48_247 = arith.constant 48 : index
    %461 = vector.load %arg31[%c8_246, %c48_247] : memref<16x64xf32, #tpu.memory_space<vmem>>, vector<8x16xf32>
    tpu.vector_store %arg31[%c8_246, %c48_247], %460 {strides = array<i32>} : memref<16x64xf32, #tpu.memory_space<vmem>>, vector<8x16xf32>,
    %c0_248 = arith.constant 0 : index
    %c0_249 = arith.constant 0 : index
    %462 = vector.load %arg31[%c0_248, %c0_249] : memref<16x64xf32, #tpu.memory_space<vmem>>, vector<16x64xf32>
    %c0_250 = arith.constant 0 : index
    %c0_251 = arith.constant 0 : index
    %c0_252 = arith.constant 0 : index
    %463 = vector.load %arg14[%c0_250, %c0_251, %c0_252] : memref<2x64x64xbf16, #tpu.memory_space<vmem>>, vector<1x64x64xbf16>
    %464 = vector.shape_cast %463 : vector<1x64x64xbf16> to vector<64x64xbf16>
    %465 = arith.truncf %462 : vector<16x64xf32> to vector<16x64xbf16>
    %cst_253 = arith.constant dense<0.000000e+00> : vector<16x64xf32>
    %466 = tpu.matmul %465, %464, %cst_253 {dimension_numbers = #tpu.dot_dimension_numbers<[1], [0], [0], [1], [0, 0, 1, 1], [], []>} : vector<16x64xbf16>, vector<64x64xbf16>, vector<16x64xf32> -> vector<16x64xf32>
    %467 = arith.addf %339, %466 : vector<16x64xf32>
    %c0_254 = arith.constant 0 : index
    %c0_255 = arith.constant 0 : index
    %c0_256 = arith.constant 0 : index
    %468 = vector.load %arg15[%c0_254, %c0_255, %c0_256] : memref<2x1x64xf32, #tpu.memory_space<vmem>>, vector<1x1x64xf32>
    %469 = vector.shape_cast %468 : vector<1x1x64xf32> to vector<1x64xf32>
    %470 = arith.mulf %467, %467 : vector<16x64xf32>
    %cst_257 = arith.constant dense<0.000000e+00> : vector<16xf32>
    %471 = vector.multi_reduction <add>, %470, %cst_257 [1] : vector<16x64xf32> to vector<16xf32>
    %472 = vector.shape_cast %471 : vector<16xf32> to vector<16x1xf32>
    %cst_258 = arith.constant 6.400000e+01 : f32
    %473 = vector.broadcast %cst_258 : f32 to vector<16x1xf32>
    %474 = arith.divf %472, %473 : vector<16x1xf32>
    %cst_259 = arith.constant 9.99999997E-7 : f32
    %475 = vector.broadcast %cst_259 : f32 to vector<16x1xf32>
    %476 = arith.addf %474, %475 : vector<16x1xf32>
    %477 = math.rsqrt %476 : vector<16x1xf32>
    %478 = vector.broadcast %477 : vector<16x1xf32> to vector<16x64xf32>
    %479 = arith.mulf %467, %478 : vector<16x64xf32>
    %480 = vector.broadcast %469 : vector<1x64xf32> to vector<16x64xf32>
    %481 = arith.mulf %479, %480 : vector<16x64xf32>
    %c0_260 = arith.constant 0 : index
    %c0_261 = arith.constant 0 : index
    %c0_262 = arith.constant 0 : index
    %482 = vector.load %arg16[%c0_260, %c0_261, %c0_262] : memref<2x64x64xbf16, #tpu.memory_space<vmem>>, vector<1x64x64xbf16>
    %483 = vector.shape_cast %482 : vector<1x64x64xbf16> to vector<64x64xbf16>
    %484 = arith.truncf %481 : vector<16x64xf32> to vector<16x64xbf16>
    %cst_263 = arith.constant dense<0.000000e+00> : vector<16x64xf32>
    %485 = tpu.matmul %484, %483, %cst_263 {dimension_numbers = #tpu.dot_dimension_numbers<[1], [0], [0], [1], [0, 0, 1, 1], [], []>} : vector<16x64xbf16>, vector<64x64xbf16>, vector<16x64xf32> -> vector<16x64xf32>
    %c0_264 = arith.constant 0 : index
    %c0_265 = arith.constant 0 : index
    %c0_266 = arith.constant 0 : index
    %486 = vector.load %arg17[%c0_264, %c0_265, %c0_266] : memref<2x64x128xbf16, #tpu.memory_space<vmem>>, vector<1x64x128xbf16>
    %487 = vector.shape_cast %486 : vector<1x64x128xbf16> to vector<64x128xbf16>
    %488 = arith.truncf %320 : vector<16x64xf32> to vector<16x64xbf16>
    %cst_267 = arith.constant dense<0.000000e+00> : vector<16x128xf32>
    %489 = tpu.matmul %488, %487, %cst_267 {dimension_numbers = #tpu.dot_dimension_numbers<[1], [0], [0], [1], [0, 0, 1, 1], [], []>} : vector<16x64xbf16>, vector<64x128xbf16>, vector<16x128xf32> -> vector<16x128xf32>
    %490 = vector.extract_strided_slice %489 {offsets = [0, 0], sizes = [16, 64], strides = [1, 1]} : vector<16x128xf32> to vector<16x64xf32>
    %491 = vector.extract_strided_slice %489 {offsets = [0, 64], sizes = [16, 64], strides = [1, 1]} : vector<16x128xf32> to vector<16x64xf32>
    %492 = vector.extract_strided_slice %485 {offsets = [0, 0], sizes = [8, 16], strides = [1, 1]} : vector<16x64xf32> to vector<8x16xf32>
    %493 = arith.truncf %492 : vector<8x16xf32> to vector<8x16xbf16>
    %494 = vector.extract_strided_slice %490 {offsets = [0, 0], sizes = [8, 16], strides = [1, 1]} : vector<16x64xf32> to vector<8x16xf32>
    %495 = arith.truncf %494 : vector<8x16xf32> to vector<8x16xbf16>
    %cst_268 = arith.constant dense<0.000000e+00> : vector<8x8xf32>
    %496 = tpu.matmul %493, %495, %cst_268 {dimension_numbers = #tpu.dot_dimension_numbers<[1], [1], [0], [0], [0, 0, 1, 0], [], []>} : vector<8x16xbf16>, vector<8x16xbf16>, vector<8x8xf32> -> vector<8x8xf32>
    %c0_269 = arith.constant 0 : index
    %c0_270 = arith.constant 0 : index
    %497 = vector.load %arg30[%c0_269, %c0_270] : memref<64x8xf32, #tpu.memory_space<vmem>>, vector<8x8xf32>
    tpu.vector_store %arg30[%c0_269, %c0_270], %496 {strides = array<i32>} : memref<64x8xf32, #tpu.memory_space<vmem>>, vector<8x8xf32>,
    %498 = vector.extract_strided_slice %485 {offsets = [0, 16], sizes = [8, 16], strides = [1, 1]} : vector<16x64xf32> to vector<8x16xf32>
    %499 = arith.truncf %498 : vector<8x16xf32> to vector<8x16xbf16>
    %500 = vector.extract_strided_slice %490 {offsets = [0, 16], sizes = [8, 16], strides = [1, 1]} : vector<16x64xf32> to vector<8x16xf32>
    %501 = arith.truncf %500 : vector<8x16xf32> to vector<8x16xbf16>
    %cst_271 = arith.constant dense<0.000000e+00> : vector<8x8xf32>
    %502 = tpu.matmul %499, %501, %cst_271 {dimension_numbers = #tpu.dot_dimension_numbers<[1], [1], [0], [0], [0, 0, 1, 0], [], []>} : vector<8x16xbf16>, vector<8x16xbf16>, vector<8x8xf32> -> vector<8x8xf32>
    %c8_272 = arith.constant 8 : index
    %c0_273 = arith.constant 0 : index
    %503 = vector.load %arg30[%c8_272, %c0_273] : memref<64x8xf32, #tpu.memory_space<vmem>>, vector<8x8xf32>
    tpu.vector_store %arg30[%c8_272, %c0_273], %502 {strides = array<i32>} : memref<64x8xf32, #tpu.memory_space<vmem>>, vector<8x8xf32>,
    %504 = vector.extract_strided_slice %485 {offsets = [0, 32], sizes = [8, 16], strides = [1, 1]} : vector<16x64xf32> to vector<8x16xf32>
    %505 = arith.truncf %504 : vector<8x16xf32> to vector<8x16xbf16>
    %506 = vector.extract_strided_slice %490 {offsets = [0, 32], sizes = [8, 16], strides = [1, 1]} : vector<16x64xf32> to vector<8x16xf32>
    %507 = arith.truncf %506 : vector<8x16xf32> to vector<8x16xbf16>
    %cst_274 = arith.constant dense<0.000000e+00> : vector<8x8xf32>
    %508 = tpu.matmul %505, %507, %cst_274 {dimension_numbers = #tpu.dot_dimension_numbers<[1], [1], [0], [0], [0, 0, 1, 0], [], []>} : vector<8x16xbf16>, vector<8x16xbf16>, vector<8x8xf32> -> vector<8x8xf32>
    %c16_275 = arith.constant 16 : index
    %c0_276 = arith.constant 0 : index
    %509 = vector.load %arg30[%c16_275, %c0_276] : memref<64x8xf32, #tpu.memory_space<vmem>>, vector<8x8xf32>
    tpu.vector_store %arg30[%c16_275, %c0_276], %508 {strides = array<i32>} : memref<64x8xf32, #tpu.memory_space<vmem>>, vector<8x8xf32>,
    %510 = vector.extract_strided_slice %485 {offsets = [0, 48], sizes = [8, 16], strides = [1, 1]} : vector<16x64xf32> to vector<8x16xf32>
    %511 = arith.truncf %510 : vector<8x16xf32> to vector<8x16xbf16>
    %512 = vector.extract_strided_slice %490 {offsets = [0, 48], sizes = [8, 16], strides = [1, 1]} : vector<16x64xf32> to vector<8x16xf32>
    %513 = arith.truncf %512 : vector<8x16xf32> to vector<8x16xbf16>
    %cst_277 = arith.constant dense<0.000000e+00> : vector<8x8xf32>
    %514 = tpu.matmul %511, %513, %cst_277 {dimension_numbers = #tpu.dot_dimension_numbers<[1], [1], [0], [0], [0, 0, 1, 0], [], []>} : vector<8x16xbf16>, vector<8x16xbf16>, vector<8x8xf32> -> vector<8x8xf32>
    %c24_278 = arith.constant 24 : index
    %c0_279 = arith.constant 0 : index
    %515 = vector.load %arg30[%c24_278, %c0_279] : memref<64x8xf32, #tpu.memory_space<vmem>>, vector<8x8xf32>
    tpu.vector_store %arg30[%c24_278, %c0_279], %514 {strides = array<i32>} : memref<64x8xf32, #tpu.memory_space<vmem>>, vector<8x8xf32>,
    %516 = vector.extract_strided_slice %485 {offsets = [8, 0], sizes = [8, 16], strides = [1, 1]} : vector<16x64xf32> to vector<8x16xf32>
    %517 = arith.truncf %516 : vector<8x16xf32> to vector<8x16xbf16>
    %518 = vector.extract_strided_slice %490 {offsets = [8, 0], sizes = [8, 16], strides = [1, 1]} : vector<16x64xf32> to vector<8x16xf32>
    %519 = arith.truncf %518 : vector<8x16xf32> to vector<8x16xbf16>
    %cst_280 = arith.constant dense<0.000000e+00> : vector<8x8xf32>
    %520 = tpu.matmul %517, %519, %cst_280 {dimension_numbers = #tpu.dot_dimension_numbers<[1], [1], [0], [0], [0, 0, 1, 0], [], []>} : vector<8x16xbf16>, vector<8x16xbf16>, vector<8x8xf32> -> vector<8x8xf32>
    %c32_281 = arith.constant 32 : index
    %c0_282 = arith.constant 0 : index
    %521 = vector.load %arg30[%c32_281, %c0_282] : memref<64x8xf32, #tpu.memory_space<vmem>>, vector<8x8xf32>
    tpu.vector_store %arg30[%c32_281, %c0_282], %520 {strides = array<i32>} : memref<64x8xf32, #tpu.memory_space<vmem>>, vector<8x8xf32>,
    %522 = vector.extract_strided_slice %485 {offsets = [8, 16], sizes = [8, 16], strides = [1, 1]} : vector<16x64xf32> to vector<8x16xf32>
    %523 = arith.truncf %522 : vector<8x16xf32> to vector<8x16xbf16>
    %524 = vector.extract_strided_slice %490 {offsets = [8, 16], sizes = [8, 16], strides = [1, 1]} : vector<16x64xf32> to vector<8x16xf32>
    %525 = arith.truncf %524 : vector<8x16xf32> to vector<8x16xbf16>
    %cst_283 = arith.constant dense<0.000000e+00> : vector<8x8xf32>
    %526 = tpu.matmul %523, %525, %cst_283 {dimension_numbers = #tpu.dot_dimension_numbers<[1], [1], [0], [0], [0, 0, 1, 0], [], []>} : vector<8x16xbf16>, vector<8x16xbf16>, vector<8x8xf32> -> vector<8x8xf32>
    %c40_284 = arith.constant 40 : index
    %c0_285 = arith.constant 0 : index
    %527 = vector.load %arg30[%c40_284, %c0_285] : memref<64x8xf32, #tpu.memory_space<vmem>>, vector<8x8xf32>
    tpu.vector_store %arg30[%c40_284, %c0_285], %526 {strides = array<i32>} : memref<64x8xf32, #tpu.memory_space<vmem>>, vector<8x8xf32>,
    %528 = vector.extract_strided_slice %485 {offsets = [8, 32], sizes = [8, 16], strides = [1, 1]} : vector<16x64xf32> to vector<8x16xf32>
    %529 = arith.truncf %528 : vector<8x16xf32> to vector<8x16xbf16>
    %530 = vector.extract_strided_slice %490 {offsets = [8, 32], sizes = [8, 16], strides = [1, 1]} : vector<16x64xf32> to vector<8x16xf32>
    %531 = arith.truncf %530 : vector<8x16xf32> to vector<8x16xbf16>
    %cst_286 = arith.constant dense<0.000000e+00> : vector<8x8xf32>
    %532 = tpu.matmul %529, %531, %cst_286 {dimension_numbers = #tpu.dot_dimension_numbers<[1], [1], [0], [0], [0, 0, 1, 0], [], []>} : vector<8x16xbf16>, vector<8x16xbf16>, vector<8x8xf32> -> vector<8x8xf32>
    %c48_287 = arith.constant 48 : index
    %c0_288 = arith.constant 0 : index
    %533 = vector.load %arg30[%c48_287, %c0_288] : memref<64x8xf32, #tpu.memory_space<vmem>>, vector<8x8xf32>
    tpu.vector_store %arg30[%c48_287, %c0_288], %532 {strides = array<i32>} : memref<64x8xf32, #tpu.memory_space<vmem>>, vector<8x8xf32>,
    %534 = vector.extract_strided_slice %485 {offsets = [8, 48], sizes = [8, 16], strides = [1, 1]} : vector<16x64xf32> to vector<8x16xf32>
    %535 = arith.truncf %534 : vector<8x16xf32> to vector<8x16xbf16>
    %536 = vector.extract_strided_slice %490 {offsets = [8, 48], sizes = [8, 16], strides = [1, 1]} : vector<16x64xf32> to vector<8x16xf32>
    %537 = arith.truncf %536 : vector<8x16xf32> to vector<8x16xbf16>
    %cst_289 = arith.constant dense<0.000000e+00> : vector<8x8xf32>
    %538 = tpu.matmul %535, %537, %cst_289 {dimension_numbers = #tpu.dot_dimension_numbers<[1], [1], [0], [0], [0, 0, 1, 0], [], []>} : vector<8x16xbf16>, vector<8x16xbf16>, vector<8x8xf32> -> vector<8x8xf32>
    %c56_290 = arith.constant 56 : index
    %c0_291 = arith.constant 0 : index
    %539 = vector.load %arg30[%c56_290, %c0_291] : memref<64x8xf32, #tpu.memory_space<vmem>>, vector<8x8xf32>
    tpu.vector_store %arg30[%c56_290, %c0_291], %538 {strides = array<i32>} : memref<64x8xf32, #tpu.memory_space<vmem>>, vector<8x8xf32>,
    %c0_292 = arith.constant 0 : index
    %c0_293 = arith.constant 0 : index
    %540 = vector.load %arg30[%c0_292, %c0_293] : memref<64x8xf32, #tpu.memory_space<vmem>>, vector<64x8xf32>
    %541 = arith.addf %540, %338 : vector<64x8xf32>
    %cst_294 = arith.constant dense<0xFF800000> : vector<64xf32>
    %542 = vector.multi_reduction <maximumf>, %541, %cst_294 [1] : vector<64x8xf32> to vector<64xf32>
    %543 = vector.shape_cast %542 : vector<64xf32> to vector<64x1xf32>
    %544 = vector.broadcast %543 : vector<64x1xf32> to vector<64x8xf32>
    %545 = arith.subf %541, %544 : vector<64x8xf32>
    %546 = math.exp %545 : vector<64x8xf32>
    %cst_295 = arith.constant dense<0.000000e+00> : vector<64xf32>
    %547 = vector.multi_reduction <add>, %546, %cst_295 [1] : vector<64x8xf32> to vector<64xf32>
    %548 = vector.shape_cast %547 : vector<64xf32> to vector<64x1xf32>
    %549 = tpu.reciprocal %548 {approx = true} : vector<64x1xf32> -> vector<64x1xf32>
    %550 = vector.broadcast %549 : vector<64x1xf32> to vector<64x8xf32>
    %551 = arith.mulf %546, %550 : vector<64x8xf32>
    %552 = arith.truncf %551 : vector<64x8xf32> to vector<64x8xbf16>
    %553 = vector.extract_strided_slice %552 {offsets = [0, 0], sizes = [8, 8], strides = [1, 1]} : vector<64x8xbf16> to vector<8x8xbf16>
    %554 = vector.extract_strided_slice %491 {offsets = [0, 0], sizes = [8, 16], strides = [1, 1]} : vector<16x64xf32> to vector<8x16xf32>
    %555 = arith.truncf %554 : vector<8x16xf32> to vector<8x16xbf16>
    %cst_296 = arith.constant dense<0.000000e+00> : vector<8x16xf32>
    %556 = tpu.matmul %553, %555, %cst_296 {dimension_numbers = #tpu.dot_dimension_numbers<[1], [0], [0], [1], [0, 0, 1, 1], [], []>} : vector<8x8xbf16>, vector<8x16xbf16>, vector<8x16xf32> -> vector<8x16xf32>
    %c0_297 = arith.constant 0 : index
    %c0_298 = arith.constant 0 : index
    %557 = vector.load %arg31[%c0_297, %c0_298] : memref<16x64xf32, #tpu.memory_space<vmem>>, vector<8x16xf32>
    tpu.vector_store %arg31[%c0_297, %c0_298], %556 {strides = array<i32>} : memref<16x64xf32, #tpu.memory_space<vmem>>, vector<8x16xf32>,
    %558 = vector.extract_strided_slice %552 {offsets = [8, 0], sizes = [8, 8], strides = [1, 1]} : vector<64x8xbf16> to vector<8x8xbf16>
    %559 = vector.extract_strided_slice %491 {offsets = [0, 16], sizes = [8, 16], strides = [1, 1]} : vector<16x64xf32> to vector<8x16xf32>
    %560 = arith.truncf %559 : vector<8x16xf32> to vector<8x16xbf16>
    %cst_299 = arith.constant dense<0.000000e+00> : vector<8x16xf32>
    %561 = tpu.matmul %558, %560, %cst_299 {dimension_numbers = #tpu.dot_dimension_numbers<[1], [0], [0], [1], [0, 0, 1, 1], [], []>} : vector<8x8xbf16>, vector<8x16xbf16>, vector<8x16xf32> -> vector<8x16xf32>
    %c0_300 = arith.constant 0 : index
    %c16_301 = arith.constant 16 : index
    %562 = vector.load %arg31[%c0_300, %c16_301] : memref<16x64xf32, #tpu.memory_space<vmem>>, vector<8x16xf32>
    tpu.vector_store %arg31[%c0_300, %c16_301], %561 {strides = array<i32>} : memref<16x64xf32, #tpu.memory_space<vmem>>, vector<8x16xf32>,
    %563 = vector.extract_strided_slice %552 {offsets = [16, 0], sizes = [8, 8], strides = [1, 1]} : vector<64x8xbf16> to vector<8x8xbf16>
    %564 = vector.extract_strided_slice %491 {offsets = [0, 32], sizes = [8, 16], strides = [1, 1]} : vector<16x64xf32> to vector<8x16xf32>
    %565 = arith.truncf %564 : vector<8x16xf32> to vector<8x16xbf16>
    %cst_302 = arith.constant dense<0.000000e+00> : vector<8x16xf32>
    %566 = tpu.matmul %563, %565, %cst_302 {dimension_numbers = #tpu.dot_dimension_numbers<[1], [0], [0], [1], [0, 0, 1, 1], [], []>} : vector<8x8xbf16>, vector<8x16xbf16>, vector<8x16xf32> -> vector<8x16xf32>
    %c0_303 = arith.constant 0 : index
    %c32_304 = arith.constant 32 : index
    %567 = vector.load %arg31[%c0_303, %c32_304] : memref<16x64xf32, #tpu.memory_space<vmem>>, vector<8x16xf32>
    tpu.vector_store %arg31[%c0_303, %c32_304], %566 {strides = array<i32>} : memref<16x64xf32, #tpu.memory_space<vmem>>, vector<8x16xf32>,
    %568 = vector.extract_strided_slice %552 {offsets = [24, 0], sizes = [8, 8], strides = [1, 1]} : vector<64x8xbf16> to vector<8x8xbf16>
    %569 = vector.extract_strided_slice %491 {offsets = [0, 48], sizes = [8, 16], strides = [1, 1]} : vector<16x64xf32> to vector<8x16xf32>
    %570 = arith.truncf %569 : vector<8x16xf32> to vector<8x16xbf16>
    %cst_305 = arith.constant dense<0.000000e+00> : vector<8x16xf32>
    %571 = tpu.matmul %568, %570, %cst_305 {dimension_numbers = #tpu.dot_dimension_numbers<[1], [0], [0], [1], [0, 0, 1, 1], [], []>} : vector<8x8xbf16>, vector<8x16xbf16>, vector<8x16xf32> -> vector<8x16xf32>
    %c0_306 = arith.constant 0 : index
    %c48_307 = arith.constant 48 : index
    %572 = vector.load %arg31[%c0_306, %c48_307] : memref<16x64xf32, #tpu.memory_space<vmem>>, vector<8x16xf32>
    tpu.vector_store %arg31[%c0_306, %c48_307], %571 {strides = array<i32>} : memref<16x64xf32, #tpu.memory_space<vmem>>, vector<8x16xf32>,
    %573 = vector.extract_strided_slice %552 {offsets = [32, 0], sizes = [8, 8], strides = [1, 1]} : vector<64x8xbf16> to vector<8x8xbf16>
    %574 = vector.extract_strided_slice %491 {offsets = [8, 0], sizes = [8, 16], strides = [1, 1]} : vector<16x64xf32> to vector<8x16xf32>
    %575 = arith.truncf %574 : vector<8x16xf32> to vector<8x16xbf16>
    %cst_308 = arith.constant dense<0.000000e+00> : vector<8x16xf32>
    %576 = tpu.matmul %573, %575, %cst_308 {dimension_numbers = #tpu.dot_dimension_numbers<[1], [0], [0], [1], [0, 0, 1, 1], [], []>} : vector<8x8xbf16>, vector<8x16xbf16>, vector<8x16xf32> -> vector<8x16xf32>
    %c8_309 = arith.constant 8 : index
    %c0_310 = arith.constant 0 : index
    %577 = vector.load %arg31[%c8_309, %c0_310] : memref<16x64xf32, #tpu.memory_space<vmem>>, vector<8x16xf32>
    tpu.vector_store %arg31[%c8_309, %c0_310], %576 {strides = array<i32>} : memref<16x64xf32, #tpu.memory_space<vmem>>, vector<8x16xf32>,
    %578 = vector.extract_strided_slice %552 {offsets = [40, 0], sizes = [8, 8], strides = [1, 1]} : vector<64x8xbf16> to vector<8x8xbf16>
    %579 = vector.extract_strided_slice %491 {offsets = [8, 16], sizes = [8, 16], strides = [1, 1]} : vector<16x64xf32> to vector<8x16xf32>
    %580 = arith.truncf %579 : vector<8x16xf32> to vector<8x16xbf16>
    %cst_311 = arith.constant dense<0.000000e+00> : vector<8x16xf32>
    %581 = tpu.matmul %578, %580, %cst_311 {dimension_numbers = #tpu.dot_dimension_numbers<[1], [0], [0], [1], [0, 0, 1, 1], [], []>} : vector<8x8xbf16>, vector<8x16xbf16>, vector<8x16xf32> -> vector<8x16xf32>
    %c8_312 = arith.constant 8 : index
    %c16_313 = arith.constant 16 : index
    %582 = vector.load %arg31[%c8_312, %c16_313] : memref<16x64xf32, #tpu.memory_space<vmem>>, vector<8x16xf32>
    tpu.vector_store %arg31[%c8_312, %c16_313], %581 {strides = array<i32>} : memref<16x64xf32, #tpu.memory_space<vmem>>, vector<8x16xf32>,
    %583 = vector.extract_strided_slice %552 {offsets = [48, 0], sizes = [8, 8], strides = [1, 1]} : vector<64x8xbf16> to vector<8x8xbf16>
    %584 = vector.extract_strided_slice %491 {offsets = [8, 32], sizes = [8, 16], strides = [1, 1]} : vector<16x64xf32> to vector<8x16xf32>
    %585 = arith.truncf %584 : vector<8x16xf32> to vector<8x16xbf16>
    %cst_314 = arith.constant dense<0.000000e+00> : vector<8x16xf32>
    %586 = tpu.matmul %583, %585, %cst_314 {dimension_numbers = #tpu.dot_dimension_numbers<[1], [0], [0], [1], [0, 0, 1, 1], [], []>} : vector<8x8xbf16>, vector<8x16xbf16>, vector<8x16xf32> -> vector<8x16xf32>
    %c8_315 = arith.constant 8 : index
    %c32_316 = arith.constant 32 : index
    %587 = vector.load %arg31[%c8_315, %c32_316] : memref<16x64xf32, #tpu.memory_space<vmem>>, vector<8x16xf32>
    tpu.vector_store %arg31[%c8_315, %c32_316], %586 {strides = array<i32>} : memref<16x64xf32, #tpu.memory_space<vmem>>, vector<8x16xf32>,
    %588 = vector.extract_strided_slice %552 {offsets = [56, 0], sizes = [8, 8], strides = [1, 1]} : vector<64x8xbf16> to vector<8x8xbf16>
    %589 = vector.extract_strided_slice %491 {offsets = [8, 48], sizes = [8, 16], strides = [1, 1]} : vector<16x64xf32> to vector<8x16xf32>
    %590 = arith.truncf %589 : vector<8x16xf32> to vector<8x16xbf16>
    %cst_317 = arith.constant dense<0.000000e+00> : vector<8x16xf32>
    %591 = tpu.matmul %588, %590, %cst_317 {dimension_numbers = #tpu.dot_dimension_numbers<[1], [0], [0], [1], [0, 0, 1, 1], [], []>} : vector<8x8xbf16>, vector<8x16xbf16>, vector<8x16xf32> -> vector<8x16xf32>
    %c8_318 = arith.constant 8 : index
    %c48_319 = arith.constant 48 : index
    %592 = vector.load %arg31[%c8_318, %c48_319] : memref<16x64xf32, #tpu.memory_space<vmem>>, vector<8x16xf32>
    tpu.vector_store %arg31[%c8_318, %c48_319], %591 {strides = array<i32>} : memref<16x64xf32, #tpu.memory_space<vmem>>, vector<8x16xf32>,
    %c0_320 = arith.constant 0 : index
    %c0_321 = arith.constant 0 : index
    %593 = vector.load %arg31[%c0_320, %c0_321] : memref<16x64xf32, #tpu.memory_space<vmem>>, vector<16x64xf32>
    %c0_322 = arith.constant 0 : index
    %c0_323 = arith.constant 0 : index
    %c0_324 = arith.constant 0 : index
    %594 = vector.load %arg18[%c0_322, %c0_323, %c0_324] : memref<2x64x64xbf16, #tpu.memory_space<vmem>>, vector<1x64x64xbf16>
    %595 = vector.shape_cast %594 : vector<1x64x64xbf16> to vector<64x64xbf16>
    %596 = arith.truncf %593 : vector<16x64xf32> to vector<16x64xbf16>
    %cst_325 = arith.constant dense<0.000000e+00> : vector<16x64xf32>
    %597 = tpu.matmul %596, %595, %cst_325 {dimension_numbers = #tpu.dot_dimension_numbers<[1], [0], [0], [1], [0, 0, 1, 1], [], []>} : vector<16x64xbf16>, vector<64x64xbf16>, vector<16x64xf32> -> vector<16x64xf32>
    %598 = arith.addf %467, %597 : vector<16x64xf32>
    %c0_326 = arith.constant 0 : index
    %c0_327 = arith.constant 0 : index
    %c0_328 = arith.constant 0 : index
    %599 = vector.load %arg19[%c0_326, %c0_327, %c0_328] : memref<2x1x64xf32, #tpu.memory_space<vmem>>, vector<1x1x64xf32>
    %600 = vector.shape_cast %599 : vector<1x1x64xf32> to vector<1x64xf32>
    %601 = arith.mulf %598, %598 : vector<16x64xf32>
    %cst_329 = arith.constant dense<0.000000e+00> : vector<16xf32>
    %602 = vector.multi_reduction <add>, %601, %cst_329 [1] : vector<16x64xf32> to vector<16xf32>
    %603 = vector.shape_cast %602 : vector<16xf32> to vector<16x1xf32>
    %cst_330 = arith.constant 6.400000e+01 : f32
    %604 = vector.broadcast %cst_330 : f32 to vector<16x1xf32>
    %605 = arith.divf %603, %604 : vector<16x1xf32>
    %cst_331 = arith.constant 9.99999997E-7 : f32
    %606 = vector.broadcast %cst_331 : f32 to vector<16x1xf32>
    %607 = arith.addf %605, %606 : vector<16x1xf32>
    %608 = math.rsqrt %607 : vector<16x1xf32>
    %609 = vector.broadcast %608 : vector<16x1xf32> to vector<16x64xf32>
    %610 = arith.mulf %598, %609 : vector<16x64xf32>
    %611 = vector.broadcast %600 : vector<1x64xf32> to vector<16x64xf32>
    %612 = arith.mulf %610, %611 : vector<16x64xf32>
    %c0_332 = arith.constant 0 : index
    %c0_333 = arith.constant 0 : index
    %c0_334 = arith.constant 0 : index
    %613 = vector.load %arg20[%c0_332, %c0_333, %c0_334] : memref<2x64x128xbf16, #tpu.memory_space<vmem>>, vector<1x64x128xbf16>
    %614 = vector.shape_cast %613 : vector<1x64x128xbf16> to vector<64x128xbf16>
    %615 = arith.truncf %612 : vector<16x64xf32> to vector<16x64xbf16>
    %cst_335 = arith.constant dense<0.000000e+00> : vector<16x128xf32>
    %616 = tpu.matmul %615, %614, %cst_335 {dimension_numbers = #tpu.dot_dimension_numbers<[1], [0], [0], [1], [0, 0, 1, 1], [], []>} : vector<16x64xbf16>, vector<64x128xbf16>, vector<16x128xf32> -> vector<16x128xf32>
    %cst_336 = arith.constant 0.000000e+00 : f32
    %617 = vector.broadcast %cst_336 : f32 to vector<16x128xf32>
    %618 = arith.maximumf %616, %617 : vector<16x128xf32>
    %c0_337 = arith.constant 0 : index
    %c0_338 = arith.constant 0 : index
    %c0_339 = arith.constant 0 : index
    %619 = vector.load %arg21[%c0_337, %c0_338, %c0_339] : memref<2x128x64xbf16, #tpu.memory_space<vmem>>, vector<1x128x64xbf16>
    %620 = vector.shape_cast %619 : vector<1x128x64xbf16> to vector<128x64xbf16>
    %621 = arith.truncf %618 : vector<16x128xf32> to vector<16x128xbf16>
    %cst_340 = arith.constant dense<0.000000e+00> : vector<16x64xf32>
    %622 = tpu.matmul %621, %620, %cst_340 {dimension_numbers = #tpu.dot_dimension_numbers<[1], [0], [0], [1], [0, 0, 1, 1], [], []>} : vector<16x128xbf16>, vector<128x64xbf16>, vector<16x64xf32> -> vector<16x64xf32>
    %623 = arith.addf %598, %622 : vector<16x64xf32>
    %c1_341 = arith.constant 1 : index
    %c0_342 = arith.constant 0 : index
    %c0_343 = arith.constant 0 : index
    %624 = vector.load %arg12[%c1_341, %c0_342, %c0_343] : memref<2x1x64xf32, #tpu.memory_space<vmem>>, vector<1x1x64xf32>
    %625 = vector.shape_cast %624 : vector<1x1x64xf32> to vector<1x64xf32>
    %626 = arith.mulf %623, %623 : vector<16x64xf32>
    %cst_344 = arith.constant dense<0.000000e+00> : vector<16xf32>
    %627 = vector.multi_reduction <add>, %626, %cst_344 [1] : vector<16x64xf32> to vector<16xf32>
    %628 = vector.shape_cast %627 : vector<16xf32> to vector<16x1xf32>
    %cst_345 = arith.constant 6.400000e+01 : f32
    %629 = vector.broadcast %cst_345 : f32 to vector<16x1xf32>
    %630 = arith.divf %628, %629 : vector<16x1xf32>
    %cst_346 = arith.constant 9.99999997E-7 : f32
    %631 = vector.broadcast %cst_346 : f32 to vector<16x1xf32>
    %632 = arith.addf %630, %631 : vector<16x1xf32>
    %633 = math.rsqrt %632 : vector<16x1xf32>
    %634 = vector.broadcast %633 : vector<16x1xf32> to vector<16x64xf32>
    %635 = arith.mulf %623, %634 : vector<16x64xf32>
    %636 = vector.broadcast %625 : vector<1x64xf32> to vector<16x64xf32>
    %637 = arith.mulf %635, %636 : vector<16x64xf32>
    %c1_347 = arith.constant 1 : index
    %c0_348 = arith.constant 0 : index
    %c0_349 = arith.constant 0 : index
    %638 = vector.load %arg13[%c1_347, %c0_348, %c0_349] : memref<2x64x192xbf16, #tpu.memory_space<vmem>>, vector<1x64x192xbf16>
    %639 = vector.shape_cast %638 : vector<1x64x192xbf16> to vector<64x192xbf16>
    %640 = arith.truncf %637 : vector<16x64xf32> to vector<16x64xbf16>
    %cst_350 = arith.constant dense<0.000000e+00> : vector<16x192xf32>
    %641 = tpu.matmul %640, %639, %cst_350 {dimension_numbers = #tpu.dot_dimension_numbers<[1], [0], [0], [1], [0, 0, 1, 1], [], []>} : vector<16x64xbf16>, vector<64x192xbf16>, vector<16x192xf32> -> vector<16x192xf32>
    %642 = vector.extract_strided_slice %641 {offsets = [0, 0], sizes = [16, 64], strides = [1, 1]} : vector<16x192xf32> to vector<16x64xf32>
    %643 = vector.extract_strided_slice %641 {offsets = [0, 64], sizes = [16, 64], strides = [1, 1]} : vector<16x192xf32> to vector<16x64xf32>
    %644 = vector.extract_strided_slice %641 {offsets = [0, 128], sizes = [16, 64], strides = [1, 1]} : vector<16x192xf32> to vector<16x64xf32>
    %645 = vector.extract_strided_slice %642 {offsets = [0, 0], sizes = [8, 16], strides = [1, 1]} : vector<16x64xf32> to vector<8x16xf32>
    %646 = arith.truncf %645 : vector<8x16xf32> to vector<8x16xbf16>
    %647 = vector.extract_strided_slice %643 {offsets = [0, 0], sizes = [8, 16], strides = [1, 1]} : vector<16x64xf32> to vector<8x16xf32>
    %648 = arith.truncf %647 : vector<8x16xf32> to vector<8x16xbf16>
    %cst_351 = arith.constant dense<0.000000e+00> : vector<8x8xf32>
    %649 = tpu.matmul %646, %648, %cst_351 {dimension_numbers = #tpu.dot_dimension_numbers<[1], [1], [0], [0], [0, 0, 1, 0], [], []>} : vector<8x16xbf16>, vector<8x16xbf16>, vector<8x8xf32> -> vector<8x8xf32>
    %c0_352 = arith.constant 0 : index
    %c0_353 = arith.constant 0 : index
    %650 = vector.load %arg30[%c0_352, %c0_353] : memref<64x8xf32, #tpu.memory_space<vmem>>, vector<8x8xf32>
    tpu.vector_store %arg30[%c0_352, %c0_353], %649 {strides = array<i32>} : memref<64x8xf32, #tpu.memory_space<vmem>>, vector<8x8xf32>,
    %651 = vector.extract_strided_slice %642 {offsets = [0, 16], sizes = [8, 16], strides = [1, 1]} : vector<16x64xf32> to vector<8x16xf32>
    %652 = arith.truncf %651 : vector<8x16xf32> to vector<8x16xbf16>
    %653 = vector.extract_strided_slice %643 {offsets = [0, 16], sizes = [8, 16], strides = [1, 1]} : vector<16x64xf32> to vector<8x16xf32>
    %654 = arith.truncf %653 : vector<8x16xf32> to vector<8x16xbf16>
    %cst_354 = arith.constant dense<0.000000e+00> : vector<8x8xf32>
    %655 = tpu.matmul %652, %654, %cst_354 {dimension_numbers = #tpu.dot_dimension_numbers<[1], [1], [0], [0], [0, 0, 1, 0], [], []>} : vector<8x16xbf16>, vector<8x16xbf16>, vector<8x8xf32> -> vector<8x8xf32>
    %c8_355 = arith.constant 8 : index
    %c0_356 = arith.constant 0 : index
    %656 = vector.load %arg30[%c8_355, %c0_356] : memref<64x8xf32, #tpu.memory_space<vmem>>, vector<8x8xf32>
    tpu.vector_store %arg30[%c8_355, %c0_356], %655 {strides = array<i32>} : memref<64x8xf32, #tpu.memory_space<vmem>>, vector<8x8xf32>,
    %657 = vector.extract_strided_slice %642 {offsets = [0, 32], sizes = [8, 16], strides = [1, 1]} : vector<16x64xf32> to vector<8x16xf32>
    %658 = arith.truncf %657 : vector<8x16xf32> to vector<8x16xbf16>
    %659 = vector.extract_strided_slice %643 {offsets = [0, 32], sizes = [8, 16], strides = [1, 1]} : vector<16x64xf32> to vector<8x16xf32>
    %660 = arith.truncf %659 : vector<8x16xf32> to vector<8x16xbf16>
    %cst_357 = arith.constant dense<0.000000e+00> : vector<8x8xf32>
    %661 = tpu.matmul %658, %660, %cst_357 {dimension_numbers = #tpu.dot_dimension_numbers<[1], [1], [0], [0], [0, 0, 1, 0], [], []>} : vector<8x16xbf16>, vector<8x16xbf16>, vector<8x8xf32> -> vector<8x8xf32>
    %c16_358 = arith.constant 16 : index
    %c0_359 = arith.constant 0 : index
    %662 = vector.load %arg30[%c16_358, %c0_359] : memref<64x8xf32, #tpu.memory_space<vmem>>, vector<8x8xf32>
    tpu.vector_store %arg30[%c16_358, %c0_359], %661 {strides = array<i32>} : memref<64x8xf32, #tpu.memory_space<vmem>>, vector<8x8xf32>,
    %663 = vector.extract_strided_slice %642 {offsets = [0, 48], sizes = [8, 16], strides = [1, 1]} : vector<16x64xf32> to vector<8x16xf32>
    %664 = arith.truncf %663 : vector<8x16xf32> to vector<8x16xbf16>
    %665 = vector.extract_strided_slice %643 {offsets = [0, 48], sizes = [8, 16], strides = [1, 1]} : vector<16x64xf32> to vector<8x16xf32>
    %666 = arith.truncf %665 : vector<8x16xf32> to vector<8x16xbf16>
    %cst_360 = arith.constant dense<0.000000e+00> : vector<8x8xf32>
    %667 = tpu.matmul %664, %666, %cst_360 {dimension_numbers = #tpu.dot_dimension_numbers<[1], [1], [0], [0], [0, 0, 1, 0], [], []>} : vector<8x16xbf16>, vector<8x16xbf16>, vector<8x8xf32> -> vector<8x8xf32>
    %c24_361 = arith.constant 24 : index
    %c0_362 = arith.constant 0 : index
    %668 = vector.load %arg30[%c24_361, %c0_362] : memref<64x8xf32, #tpu.memory_space<vmem>>, vector<8x8xf32>
    tpu.vector_store %arg30[%c24_361, %c0_362], %667 {strides = array<i32>} : memref<64x8xf32, #tpu.memory_space<vmem>>, vector<8x8xf32>,
    %669 = vector.extract_strided_slice %642 {offsets = [8, 0], sizes = [8, 16], strides = [1, 1]} : vector<16x64xf32> to vector<8x16xf32>
    %670 = arith.truncf %669 : vector<8x16xf32> to vector<8x16xbf16>
    %671 = vector.extract_strided_slice %643 {offsets = [8, 0], sizes = [8, 16], strides = [1, 1]} : vector<16x64xf32> to vector<8x16xf32>
    %672 = arith.truncf %671 : vector<8x16xf32> to vector<8x16xbf16>
    %cst_363 = arith.constant dense<0.000000e+00> : vector<8x8xf32>
    %673 = tpu.matmul %670, %672, %cst_363 {dimension_numbers = #tpu.dot_dimension_numbers<[1], [1], [0], [0], [0, 0, 1, 0], [], []>} : vector<8x16xbf16>, vector<8x16xbf16>, vector<8x8xf32> -> vector<8x8xf32>
    %c32_364 = arith.constant 32 : index
    %c0_365 = arith.constant 0 : index
    %674 = vector.load %arg30[%c32_364, %c0_365] : memref<64x8xf32, #tpu.memory_space<vmem>>, vector<8x8xf32>
    tpu.vector_store %arg30[%c32_364, %c0_365], %673 {strides = array<i32>} : memref<64x8xf32, #tpu.memory_space<vmem>>, vector<8x8xf32>,
    %675 = vector.extract_strided_slice %642 {offsets = [8, 16], sizes = [8, 16], strides = [1, 1]} : vector<16x64xf32> to vector<8x16xf32>
    %676 = arith.truncf %675 : vector<8x16xf32> to vector<8x16xbf16>
    %677 = vector.extract_strided_slice %643 {offsets = [8, 16], sizes = [8, 16], strides = [1, 1]} : vector<16x64xf32> to vector<8x16xf32>
    %678 = arith.truncf %677 : vector<8x16xf32> to vector<8x16xbf16>
    %cst_366 = arith.constant dense<0.000000e+00> : vector<8x8xf32>
    %679 = tpu.matmul %676, %678, %cst_366 {dimension_numbers = #tpu.dot_dimension_numbers<[1], [1], [0], [0], [0, 0, 1, 0], [], []>} : vector<8x16xbf16>, vector<8x16xbf16>, vector<8x8xf32> -> vector<8x8xf32>
    %c40_367 = arith.constant 40 : index
    %c0_368 = arith.constant 0 : index
    %680 = vector.load %arg30[%c40_367, %c0_368] : memref<64x8xf32, #tpu.memory_space<vmem>>, vector<8x8xf32>
    tpu.vector_store %arg30[%c40_367, %c0_368], %679 {strides = array<i32>} : memref<64x8xf32, #tpu.memory_space<vmem>>, vector<8x8xf32>,
    %681 = vector.extract_strided_slice %642 {offsets = [8, 32], sizes = [8, 16], strides = [1, 1]} : vector<16x64xf32> to vector<8x16xf32>
    %682 = arith.truncf %681 : vector<8x16xf32> to vector<8x16xbf16>
    %683 = vector.extract_strided_slice %643 {offsets = [8, 32], sizes = [8, 16], strides = [1, 1]} : vector<16x64xf32> to vector<8x16xf32>
    %684 = arith.truncf %683 : vector<8x16xf32> to vector<8x16xbf16>
    %cst_369 = arith.constant dense<0.000000e+00> : vector<8x8xf32>
    %685 = tpu.matmul %682, %684, %cst_369 {dimension_numbers = #tpu.dot_dimension_numbers<[1], [1], [0], [0], [0, 0, 1, 0], [], []>} : vector<8x16xbf16>, vector<8x16xbf16>, vector<8x8xf32> -> vector<8x8xf32>
    %c48_370 = arith.constant 48 : index
    %c0_371 = arith.constant 0 : index
    %686 = vector.load %arg30[%c48_370, %c0_371] : memref<64x8xf32, #tpu.memory_space<vmem>>, vector<8x8xf32>
    tpu.vector_store %arg30[%c48_370, %c0_371], %685 {strides = array<i32>} : memref<64x8xf32, #tpu.memory_space<vmem>>, vector<8x8xf32>,
    %687 = vector.extract_strided_slice %642 {offsets = [8, 48], sizes = [8, 16], strides = [1, 1]} : vector<16x64xf32> to vector<8x16xf32>
    %688 = arith.truncf %687 : vector<8x16xf32> to vector<8x16xbf16>
    %689 = vector.extract_strided_slice %643 {offsets = [8, 48], sizes = [8, 16], strides = [1, 1]} : vector<16x64xf32> to vector<8x16xf32>
    %690 = arith.truncf %689 : vector<8x16xf32> to vector<8x16xbf16>
    %cst_372 = arith.constant dense<0.000000e+00> : vector<8x8xf32>
    %691 = tpu.matmul %688, %690, %cst_372 {dimension_numbers = #tpu.dot_dimension_numbers<[1], [1], [0], [0], [0, 0, 1, 0], [], []>} : vector<8x16xbf16>, vector<8x16xbf16>, vector<8x8xf32> -> vector<8x8xf32>
    %c56_373 = arith.constant 56 : index
    %c0_374 = arith.constant 0 : index
    %692 = vector.load %arg30[%c56_373, %c0_374] : memref<64x8xf32, #tpu.memory_space<vmem>>, vector<8x8xf32>
    tpu.vector_store %arg30[%c56_373, %c0_374], %691 {strides = array<i32>} : memref<64x8xf32, #tpu.memory_space<vmem>>, vector<8x8xf32>,
    %c0_375 = arith.constant 0 : index
    %c0_376 = arith.constant 0 : index
    %693 = vector.load %arg30[%c0_375, %c0_376] : memref<64x8xf32, #tpu.memory_space<vmem>>, vector<64x8xf32>
    %694 = arith.addf %693, %337 : vector<64x8xf32>
    %cst_377 = arith.constant dense<0xFF800000> : vector<64xf32>
    %695 = vector.multi_reduction <maximumf>, %694, %cst_377 [1] : vector<64x8xf32> to vector<64xf32>
    %696 = vector.shape_cast %695 : vector<64xf32> to vector<64x1xf32>
    %697 = vector.broadcast %696 : vector<64x1xf32> to vector<64x8xf32>
    %698 = arith.subf %694, %697 : vector<64x8xf32>
    %699 = math.exp %698 : vector<64x8xf32>
    %cst_378 = arith.constant dense<0.000000e+00> : vector<64xf32>
    %700 = vector.multi_reduction <add>, %699, %cst_378 [1] : vector<64x8xf32> to vector<64xf32>
    %701 = vector.shape_cast %700 : vector<64xf32> to vector<64x1xf32>
    %702 = tpu.reciprocal %701 {approx = true} : vector<64x1xf32> -> vector<64x1xf32>
    %703 = vector.broadcast %702 : vector<64x1xf32> to vector<64x8xf32>
    %704 = arith.mulf %699, %703 : vector<64x8xf32>
    %705 = arith.truncf %704 : vector<64x8xf32> to vector<64x8xbf16>
    %706 = vector.extract_strided_slice %705 {offsets = [0, 0], sizes = [8, 8], strides = [1, 1]} : vector<64x8xbf16> to vector<8x8xbf16>
    %707 = vector.extract_strided_slice %644 {offsets = [0, 0], sizes = [8, 16], strides = [1, 1]} : vector<16x64xf32> to vector<8x16xf32>
    %708 = arith.truncf %707 : vector<8x16xf32> to vector<8x16xbf16>
    %cst_379 = arith.constant dense<0.000000e+00> : vector<8x16xf32>
    %709 = tpu.matmul %706, %708, %cst_379 {dimension_numbers = #tpu.dot_dimension_numbers<[1], [0], [0], [1], [0, 0, 1, 1], [], []>} : vector<8x8xbf16>, vector<8x16xbf16>, vector<8x16xf32> -> vector<8x16xf32>
    %c0_380 = arith.constant 0 : index
    %c0_381 = arith.constant 0 : index
    %710 = vector.load %arg31[%c0_380, %c0_381] : memref<16x64xf32, #tpu.memory_space<vmem>>, vector<8x16xf32>
    tpu.vector_store %arg31[%c0_380, %c0_381], %709 {strides = array<i32>} : memref<16x64xf32, #tpu.memory_space<vmem>>, vector<8x16xf32>,
    %711 = vector.extract_strided_slice %705 {offsets = [8, 0], sizes = [8, 8], strides = [1, 1]} : vector<64x8xbf16> to vector<8x8xbf16>
    %712 = vector.extract_strided_slice %644 {offsets = [0, 16], sizes = [8, 16], strides = [1, 1]} : vector<16x64xf32> to vector<8x16xf32>
    %713 = arith.truncf %712 : vector<8x16xf32> to vector<8x16xbf16>
    %cst_382 = arith.constant dense<0.000000e+00> : vector<8x16xf32>
    %714 = tpu.matmul %711, %713, %cst_382 {dimension_numbers = #tpu.dot_dimension_numbers<[1], [0], [0], [1], [0, 0, 1, 1], [], []>} : vector<8x8xbf16>, vector<8x16xbf16>, vector<8x16xf32> -> vector<8x16xf32>
    %c0_383 = arith.constant 0 : index
    %c16_384 = arith.constant 16 : index
    %715 = vector.load %arg31[%c0_383, %c16_384] : memref<16x64xf32, #tpu.memory_space<vmem>>, vector<8x16xf32>
    tpu.vector_store %arg31[%c0_383, %c16_384], %714 {strides = array<i32>} : memref<16x64xf32, #tpu.memory_space<vmem>>, vector<8x16xf32>,
    %716 = vector.extract_strided_slice %705 {offsets = [16, 0], sizes = [8, 8], strides = [1, 1]} : vector<64x8xbf16> to vector<8x8xbf16>
    %717 = vector.extract_strided_slice %644 {offsets = [0, 32], sizes = [8, 16], strides = [1, 1]} : vector<16x64xf32> to vector<8x16xf32>
    %718 = arith.truncf %717 : vector<8x16xf32> to vector<8x16xbf16>
    %cst_385 = arith.constant dense<0.000000e+00> : vector<8x16xf32>
    %719 = tpu.matmul %716, %718, %cst_385 {dimension_numbers = #tpu.dot_dimension_numbers<[1], [0], [0], [1], [0, 0, 1, 1], [], []>} : vector<8x8xbf16>, vector<8x16xbf16>, vector<8x16xf32> -> vector<8x16xf32>
    %c0_386 = arith.constant 0 : index
    %c32_387 = arith.constant 32 : index
    %720 = vector.load %arg31[%c0_386, %c32_387] : memref<16x64xf32, #tpu.memory_space<vmem>>, vector<8x16xf32>
    tpu.vector_store %arg31[%c0_386, %c32_387], %719 {strides = array<i32>} : memref<16x64xf32, #tpu.memory_space<vmem>>, vector<8x16xf32>,
    %721 = vector.extract_strided_slice %705 {offsets = [24, 0], sizes = [8, 8], strides = [1, 1]} : vector<64x8xbf16> to vector<8x8xbf16>
    %722 = vector.extract_strided_slice %644 {offsets = [0, 48], sizes = [8, 16], strides = [1, 1]} : vector<16x64xf32> to vector<8x16xf32>
    %723 = arith.truncf %722 : vector<8x16xf32> to vector<8x16xbf16>
    %cst_388 = arith.constant dense<0.000000e+00> : vector<8x16xf32>
    %724 = tpu.matmul %721, %723, %cst_388 {dimension_numbers = #tpu.dot_dimension_numbers<[1], [0], [0], [1], [0, 0, 1, 1], [], []>} : vector<8x8xbf16>, vector<8x16xbf16>, vector<8x16xf32> -> vector<8x16xf32>
    %c0_389 = arith.constant 0 : index
    %c48_390 = arith.constant 48 : index
    %725 = vector.load %arg31[%c0_389, %c48_390] : memref<16x64xf32, #tpu.memory_space<vmem>>, vector<8x16xf32>
    tpu.vector_store %arg31[%c0_389, %c48_390], %724 {strides = array<i32>} : memref<16x64xf32, #tpu.memory_space<vmem>>, vector<8x16xf32>,
    %726 = vector.extract_strided_slice %705 {offsets = [32, 0], sizes = [8, 8], strides = [1, 1]} : vector<64x8xbf16> to vector<8x8xbf16>
    %727 = vector.extract_strided_slice %644 {offsets = [8, 0], sizes = [8, 16], strides = [1, 1]} : vector<16x64xf32> to vector<8x16xf32>
    %728 = arith.truncf %727 : vector<8x16xf32> to vector<8x16xbf16>
    %cst_391 = arith.constant dense<0.000000e+00> : vector<8x16xf32>
    %729 = tpu.matmul %726, %728, %cst_391 {dimension_numbers = #tpu.dot_dimension_numbers<[1], [0], [0], [1], [0, 0, 1, 1], [], []>} : vector<8x8xbf16>, vector<8x16xbf16>, vector<8x16xf32> -> vector<8x16xf32>
    %c8_392 = arith.constant 8 : index
    %c0_393 = arith.constant 0 : index
    %730 = vector.load %arg31[%c8_392, %c0_393] : memref<16x64xf32, #tpu.memory_space<vmem>>, vector<8x16xf32>
    tpu.vector_store %arg31[%c8_392, %c0_393], %729 {strides = array<i32>} : memref<16x64xf32, #tpu.memory_space<vmem>>, vector<8x16xf32>,
    %731 = vector.extract_strided_slice %705 {offsets = [40, 0], sizes = [8, 8], strides = [1, 1]} : vector<64x8xbf16> to vector<8x8xbf16>
    %732 = vector.extract_strided_slice %644 {offsets = [8, 16], sizes = [8, 16], strides = [1, 1]} : vector<16x64xf32> to vector<8x16xf32>
    %733 = arith.truncf %732 : vector<8x16xf32> to vector<8x16xbf16>
    %cst_394 = arith.constant dense<0.000000e+00> : vector<8x16xf32>
    %734 = tpu.matmul %731, %733, %cst_394 {dimension_numbers = #tpu.dot_dimension_numbers<[1], [0], [0], [1], [0, 0, 1, 1], [], []>} : vector<8x8xbf16>, vector<8x16xbf16>, vector<8x16xf32> -> vector<8x16xf32>
    %c8_395 = arith.constant 8 : index
    %c16_396 = arith.constant 16 : index
    %735 = vector.load %arg31[%c8_395, %c16_396] : memref<16x64xf32, #tpu.memory_space<vmem>>, vector<8x16xf32>
    tpu.vector_store %arg31[%c8_395, %c16_396], %734 {strides = array<i32>} : memref<16x64xf32, #tpu.memory_space<vmem>>, vector<8x16xf32>,
    %736 = vector.extract_strided_slice %705 {offsets = [48, 0], sizes = [8, 8], strides = [1, 1]} : vector<64x8xbf16> to vector<8x8xbf16>
    %737 = vector.extract_strided_slice %644 {offsets = [8, 32], sizes = [8, 16], strides = [1, 1]} : vector<16x64xf32> to vector<8x16xf32>
    %738 = arith.truncf %737 : vector<8x16xf32> to vector<8x16xbf16>
    %cst_397 = arith.constant dense<0.000000e+00> : vector<8x16xf32>
    %739 = tpu.matmul %736, %738, %cst_397 {dimension_numbers = #tpu.dot_dimension_numbers<[1], [0], [0], [1], [0, 0, 1, 1], [], []>} : vector<8x8xbf16>, vector<8x16xbf16>, vector<8x16xf32> -> vector<8x16xf32>
    %c8_398 = arith.constant 8 : index
    %c32_399 = arith.constant 32 : index
    %740 = vector.load %arg31[%c8_398, %c32_399] : memref<16x64xf32, #tpu.memory_space<vmem>>, vector<8x16xf32>
    tpu.vector_store %arg31[%c8_398, %c32_399], %739 {strides = array<i32>} : memref<16x64xf32, #tpu.memory_space<vmem>>, vector<8x16xf32>,
    %741 = vector.extract_strided_slice %705 {offsets = [56, 0], sizes = [8, 8], strides = [1, 1]} : vector<64x8xbf16> to vector<8x8xbf16>
    %742 = vector.extract_strided_slice %644 {offsets = [8, 48], sizes = [8, 16], strides = [1, 1]} : vector<16x64xf32> to vector<8x16xf32>
    %743 = arith.truncf %742 : vector<8x16xf32> to vector<8x16xbf16>
    %cst_400 = arith.constant dense<0.000000e+00> : vector<8x16xf32>
    %744 = tpu.matmul %741, %743, %cst_400 {dimension_numbers = #tpu.dot_dimension_numbers<[1], [0], [0], [1], [0, 0, 1, 1], [], []>} : vector<8x8xbf16>, vector<8x16xbf16>, vector<8x16xf32> -> vector<8x16xf32>
    %c8_401 = arith.constant 8 : index
    %c48_402 = arith.constant 48 : index
    %745 = vector.load %arg31[%c8_401, %c48_402] : memref<16x64xf32, #tpu.memory_space<vmem>>, vector<8x16xf32>
    tpu.vector_store %arg31[%c8_401, %c48_402], %744 {strides = array<i32>} : memref<16x64xf32, #tpu.memory_space<vmem>>, vector<8x16xf32>,
    %c0_403 = arith.constant 0 : index
    %c0_404 = arith.constant 0 : index
    %746 = vector.load %arg31[%c0_403, %c0_404] : memref<16x64xf32, #tpu.memory_space<vmem>>, vector<16x64xf32>
    %c1_405 = arith.constant 1 : index
    %c0_406 = arith.constant 0 : index
    %c0_407 = arith.constant 0 : index
    %747 = vector.load %arg14[%c1_405, %c0_406, %c0_407] : memref<2x64x64xbf16, #tpu.memory_space<vmem>>, vector<1x64x64xbf16>
    %748 = vector.shape_cast %747 : vector<1x64x64xbf16> to vector<64x64xbf16>
    %749 = arith.truncf %746 : vector<16x64xf32> to vector<16x64xbf16>
    %cst_408 = arith.constant dense<0.000000e+00> : vector<16x64xf32>
    %750 = tpu.matmul %749, %748, %cst_408 {dimension_numbers = #tpu.dot_dimension_numbers<[1], [0], [0], [1], [0, 0, 1, 1], [], []>} : vector<16x64xbf16>, vector<64x64xbf16>, vector<16x64xf32> -> vector<16x64xf32>
    %751 = arith.addf %623, %750 : vector<16x64xf32>
    %c1_409 = arith.constant 1 : index
    %c0_410 = arith.constant 0 : index
    %c0_411 = arith.constant 0 : index
    %752 = vector.load %arg15[%c1_409, %c0_410, %c0_411] : memref<2x1x64xf32, #tpu.memory_space<vmem>>, vector<1x1x64xf32>
    %753 = vector.shape_cast %752 : vector<1x1x64xf32> to vector<1x64xf32>
    %754 = arith.mulf %751, %751 : vector<16x64xf32>
    %cst_412 = arith.constant dense<0.000000e+00> : vector<16xf32>
    %755 = vector.multi_reduction <add>, %754, %cst_412 [1] : vector<16x64xf32> to vector<16xf32>
    %756 = vector.shape_cast %755 : vector<16xf32> to vector<16x1xf32>
    %cst_413 = arith.constant 6.400000e+01 : f32
    %757 = vector.broadcast %cst_413 : f32 to vector<16x1xf32>
    %758 = arith.divf %756, %757 : vector<16x1xf32>
    %cst_414 = arith.constant 9.99999997E-7 : f32
    %759 = vector.broadcast %cst_414 : f32 to vector<16x1xf32>
    %760 = arith.addf %758, %759 : vector<16x1xf32>
    %761 = math.rsqrt %760 : vector<16x1xf32>
    %762 = vector.broadcast %761 : vector<16x1xf32> to vector<16x64xf32>
    %763 = arith.mulf %751, %762 : vector<16x64xf32>
    %764 = vector.broadcast %753 : vector<1x64xf32> to vector<16x64xf32>
    %765 = arith.mulf %763, %764 : vector<16x64xf32>
    %c1_415 = arith.constant 1 : index
    %c0_416 = arith.constant 0 : index
    %c0_417 = arith.constant 0 : index
    %766 = vector.load %arg16[%c1_415, %c0_416, %c0_417] : memref<2x64x64xbf16, #tpu.memory_space<vmem>>, vector<1x64x64xbf16>
    %767 = vector.shape_cast %766 : vector<1x64x64xbf16> to vector<64x64xbf16>
    %768 = arith.truncf %765 : vector<16x64xf32> to vector<16x64xbf16>
    %cst_418 = arith.constant dense<0.000000e+00> : vector<16x64xf32>
    %769 = tpu.matmul %768, %767, %cst_418 {dimension_numbers = #tpu.dot_dimension_numbers<[1], [0], [0], [1], [0, 0, 1, 1], [], []>} : vector<16x64xbf16>, vector<64x64xbf16>, vector<16x64xf32> -> vector<16x64xf32>
    %c1_419 = arith.constant 1 : index
    %c0_420 = arith.constant 0 : index
    %c0_421 = arith.constant 0 : index
    %770 = vector.load %arg17[%c1_419, %c0_420, %c0_421] : memref<2x64x128xbf16, #tpu.memory_space<vmem>>, vector<1x64x128xbf16>
    %771 = vector.shape_cast %770 : vector<1x64x128xbf16> to vector<64x128xbf16>
    %772 = arith.truncf %320 : vector<16x64xf32> to vector<16x64xbf16>
    %cst_422 = arith.constant dense<0.000000e+00> : vector<16x128xf32>
    %773 = tpu.matmul %772, %771, %cst_422 {dimension_numbers = #tpu.dot_dimension_numbers<[1], [0], [0], [1], [0, 0, 1, 1], [], []>} : vector<16x64xbf16>, vector<64x128xbf16>, vector<16x128xf32> -> vector<16x128xf32>
    %774 = vector.extract_strided_slice %773 {offsets = [0, 0], sizes = [16, 64], strides = [1, 1]} : vector<16x128xf32> to vector<16x64xf32>
    %775 = vector.extract_strided_slice %773 {offsets = [0, 64], sizes = [16, 64], strides = [1, 1]} : vector<16x128xf32> to vector<16x64xf32>
    %776 = vector.extract_strided_slice %769 {offsets = [0, 0], sizes = [8, 16], strides = [1, 1]} : vector<16x64xf32> to vector<8x16xf32>
    %777 = arith.truncf %776 : vector<8x16xf32> to vector<8x16xbf16>
    %778 = vector.extract_strided_slice %774 {offsets = [0, 0], sizes = [8, 16], strides = [1, 1]} : vector<16x64xf32> to vector<8x16xf32>
    %779 = arith.truncf %778 : vector<8x16xf32> to vector<8x16xbf16>
    %cst_423 = arith.constant dense<0.000000e+00> : vector<8x8xf32>
    %780 = tpu.matmul %777, %779, %cst_423 {dimension_numbers = #tpu.dot_dimension_numbers<[1], [1], [0], [0], [0, 0, 1, 0], [], []>} : vector<8x16xbf16>, vector<8x16xbf16>, vector<8x8xf32> -> vector<8x8xf32>
    %c0_424 = arith.constant 0 : index
    %c0_425 = arith.constant 0 : index
    %781 = vector.load %arg30[%c0_424, %c0_425] : memref<64x8xf32, #tpu.memory_space<vmem>>, vector<8x8xf32>
    tpu.vector_store %arg30[%c0_424, %c0_425], %780 {strides = array<i32>} : memref<64x8xf32, #tpu.memory_space<vmem>>, vector<8x8xf32>,
    %782 = vector.extract_strided_slice %769 {offsets = [0, 16], sizes = [8, 16], strides = [1, 1]} : vector<16x64xf32> to vector<8x16xf32>
    %783 = arith.truncf %782 : vector<8x16xf32> to vector<8x16xbf16>
    %784 = vector.extract_strided_slice %774 {offsets = [0, 16], sizes = [8, 16], strides = [1, 1]} : vector<16x64xf32> to vector<8x16xf32>
    %785 = arith.truncf %784 : vector<8x16xf32> to vector<8x16xbf16>
    %cst_426 = arith.constant dense<0.000000e+00> : vector<8x8xf32>
    %786 = tpu.matmul %783, %785, %cst_426 {dimension_numbers = #tpu.dot_dimension_numbers<[1], [1], [0], [0], [0, 0, 1, 0], [], []>} : vector<8x16xbf16>, vector<8x16xbf16>, vector<8x8xf32> -> vector<8x8xf32>
    %c8_427 = arith.constant 8 : index
    %c0_428 = arith.constant 0 : index
    %787 = vector.load %arg30[%c8_427, %c0_428] : memref<64x8xf32, #tpu.memory_space<vmem>>, vector<8x8xf32>
    tpu.vector_store %arg30[%c8_427, %c0_428], %786 {strides = array<i32>} : memref<64x8xf32, #tpu.memory_space<vmem>>, vector<8x8xf32>,
    %788 = vector.extract_strided_slice %769 {offsets = [0, 32], sizes = [8, 16], strides = [1, 1]} : vector<16x64xf32> to vector<8x16xf32>
    %789 = arith.truncf %788 : vector<8x16xf32> to vector<8x16xbf16>
    %790 = vector.extract_strided_slice %774 {offsets = [0, 32], sizes = [8, 16], strides = [1, 1]} : vector<16x64xf32> to vector<8x16xf32>
    %791 = arith.truncf %790 : vector<8x16xf32> to vector<8x16xbf16>
    %cst_429 = arith.constant dense<0.000000e+00> : vector<8x8xf32>
    %792 = tpu.matmul %789, %791, %cst_429 {dimension_numbers = #tpu.dot_dimension_numbers<[1], [1], [0], [0], [0, 0, 1, 0], [], []>} : vector<8x16xbf16>, vector<8x16xbf16>, vector<8x8xf32> -> vector<8x8xf32>
    %c16_430 = arith.constant 16 : index
    %c0_431 = arith.constant 0 : index
    %793 = vector.load %arg30[%c16_430, %c0_431] : memref<64x8xf32, #tpu.memory_space<vmem>>, vector<8x8xf32>
    tpu.vector_store %arg30[%c16_430, %c0_431], %792 {strides = array<i32>} : memref<64x8xf32, #tpu.memory_space<vmem>>, vector<8x8xf32>,
    %794 = vector.extract_strided_slice %769 {offsets = [0, 48], sizes = [8, 16], strides = [1, 1]} : vector<16x64xf32> to vector<8x16xf32>
    %795 = arith.truncf %794 : vector<8x16xf32> to vector<8x16xbf16>
    %796 = vector.extract_strided_slice %774 {offsets = [0, 48], sizes = [8, 16], strides = [1, 1]} : vector<16x64xf32> to vector<8x16xf32>
    %797 = arith.truncf %796 : vector<8x16xf32> to vector<8x16xbf16>
    %cst_432 = arith.constant dense<0.000000e+00> : vector<8x8xf32>
    %798 = tpu.matmul %795, %797, %cst_432 {dimension_numbers = #tpu.dot_dimension_numbers<[1], [1], [0], [0], [0, 0, 1, 0], [], []>} : vector<8x16xbf16>, vector<8x16xbf16>, vector<8x8xf32> -> vector<8x8xf32>
    %c24_433 = arith.constant 24 : index
    %c0_434 = arith.constant 0 : index
    %799 = vector.load %arg30[%c24_433, %c0_434] : memref<64x8xf32, #tpu.memory_space<vmem>>, vector<8x8xf32>
    tpu.vector_store %arg30[%c24_433, %c0_434], %798 {strides = array<i32>} : memref<64x8xf32, #tpu.memory_space<vmem>>, vector<8x8xf32>,
    %800 = vector.extract_strided_slice %769 {offsets = [8, 0], sizes = [8, 16], strides = [1, 1]} : vector<16x64xf32> to vector<8x16xf32>
    %801 = arith.truncf %800 : vector<8x16xf32> to vector<8x16xbf16>
    %802 = vector.extract_strided_slice %774 {offsets = [8, 0], sizes = [8, 16], strides = [1, 1]} : vector<16x64xf32> to vector<8x16xf32>
    %803 = arith.truncf %802 : vector<8x16xf32> to vector<8x16xbf16>
    %cst_435 = arith.constant dense<0.000000e+00> : vector<8x8xf32>
    %804 = tpu.matmul %801, %803, %cst_435 {dimension_numbers = #tpu.dot_dimension_numbers<[1], [1], [0], [0], [0, 0, 1, 0], [], []>} : vector<8x16xbf16>, vector<8x16xbf16>, vector<8x8xf32> -> vector<8x8xf32>
    %c32_436 = arith.constant 32 : index
    %c0_437 = arith.constant 0 : index
    %805 = vector.load %arg30[%c32_436, %c0_437] : memref<64x8xf32, #tpu.memory_space<vmem>>, vector<8x8xf32>
    tpu.vector_store %arg30[%c32_436, %c0_437], %804 {strides = array<i32>} : memref<64x8xf32, #tpu.memory_space<vmem>>, vector<8x8xf32>,
    %806 = vector.extract_strided_slice %769 {offsets = [8, 16], sizes = [8, 16], strides = [1, 1]} : vector<16x64xf32> to vector<8x16xf32>
    %807 = arith.truncf %806 : vector<8x16xf32> to vector<8x16xbf16>
    %808 = vector.extract_strided_slice %774 {offsets = [8, 16], sizes = [8, 16], strides = [1, 1]} : vector<16x64xf32> to vector<8x16xf32>
    %809 = arith.truncf %808 : vector<8x16xf32> to vector<8x16xbf16>
    %cst_438 = arith.constant dense<0.000000e+00> : vector<8x8xf32>
    %810 = tpu.matmul %807, %809, %cst_438 {dimension_numbers = #tpu.dot_dimension_numbers<[1], [1], [0], [0], [0, 0, 1, 0], [], []>} : vector<8x16xbf16>, vector<8x16xbf16>, vector<8x8xf32> -> vector<8x8xf32>
    %c40_439 = arith.constant 40 : index
    %c0_440 = arith.constant 0 : index
    %811 = vector.load %arg30[%c40_439, %c0_440] : memref<64x8xf32, #tpu.memory_space<vmem>>, vector<8x8xf32>
    tpu.vector_store %arg30[%c40_439, %c0_440], %810 {strides = array<i32>} : memref<64x8xf32, #tpu.memory_space<vmem>>, vector<8x8xf32>,
    %812 = vector.extract_strided_slice %769 {offsets = [8, 32], sizes = [8, 16], strides = [1, 1]} : vector<16x64xf32> to vector<8x16xf32>
    %813 = arith.truncf %812 : vector<8x16xf32> to vector<8x16xbf16>
    %814 = vector.extract_strided_slice %774 {offsets = [8, 32], sizes = [8, 16], strides = [1, 1]} : vector<16x64xf32> to vector<8x16xf32>
    %815 = arith.truncf %814 : vector<8x16xf32> to vector<8x16xbf16>
    %cst_441 = arith.constant dense<0.000000e+00> : vector<8x8xf32>
    %816 = tpu.matmul %813, %815, %cst_441 {dimension_numbers = #tpu.dot_dimension_numbers<[1], [1], [0], [0], [0, 0, 1, 0], [], []>} : vector<8x16xbf16>, vector<8x16xbf16>, vector<8x8xf32> -> vector<8x8xf32>
    %c48_442 = arith.constant 48 : index
    %c0_443 = arith.constant 0 : index
    %817 = vector.load %arg30[%c48_442, %c0_443] : memref<64x8xf32, #tpu.memory_space<vmem>>, vector<8x8xf32>
    tpu.vector_store %arg30[%c48_442, %c0_443], %816 {strides = array<i32>} : memref<64x8xf32, #tpu.memory_space<vmem>>, vector<8x8xf32>,
    %818 = vector.extract_strided_slice %769 {offsets = [8, 48], sizes = [8, 16], strides = [1, 1]} : vector<16x64xf32> to vector<8x16xf32>
    %819 = arith.truncf %818 : vector<8x16xf32> to vector<8x16xbf16>
    %820 = vector.extract_strided_slice %774 {offsets = [8, 48], sizes = [8, 16], strides = [1, 1]} : vector<16x64xf32> to vector<8x16xf32>
    %821 = arith.truncf %820 : vector<8x16xf32> to vector<8x16xbf16>
    %cst_444 = arith.constant dense<0.000000e+00> : vector<8x8xf32>
    %822 = tpu.matmul %819, %821, %cst_444 {dimension_numbers = #tpu.dot_dimension_numbers<[1], [1], [0], [0], [0, 0, 1, 0], [], []>} : vector<8x16xbf16>, vector<8x16xbf16>, vector<8x8xf32> -> vector<8x8xf32>
    %c56_445 = arith.constant 56 : index
    %c0_446 = arith.constant 0 : index
    %823 = vector.load %arg30[%c56_445, %c0_446] : memref<64x8xf32, #tpu.memory_space<vmem>>, vector<8x8xf32>
    tpu.vector_store %arg30[%c56_445, %c0_446], %822 {strides = array<i32>} : memref<64x8xf32, #tpu.memory_space<vmem>>, vector<8x8xf32>,
    %c0_447 = arith.constant 0 : index
    %c0_448 = arith.constant 0 : index
    %824 = vector.load %arg30[%c0_447, %c0_448] : memref<64x8xf32, #tpu.memory_space<vmem>>, vector<64x8xf32>
    %825 = arith.addf %824, %338 : vector<64x8xf32>
    %cst_449 = arith.constant dense<0xFF800000> : vector<64xf32>
    %826 = vector.multi_reduction <maximumf>, %825, %cst_449 [1] : vector<64x8xf32> to vector<64xf32>
    %827 = vector.shape_cast %826 : vector<64xf32> to vector<64x1xf32>
    %828 = vector.broadcast %827 : vector<64x1xf32> to vector<64x8xf32>
    %829 = arith.subf %825, %828 : vector<64x8xf32>
    %830 = math.exp %829 : vector<64x8xf32>
    %cst_450 = arith.constant dense<0.000000e+00> : vector<64xf32>
    %831 = vector.multi_reduction <add>, %830, %cst_450 [1] : vector<64x8xf32> to vector<64xf32>
    %832 = vector.shape_cast %831 : vector<64xf32> to vector<64x1xf32>
    %833 = tpu.reciprocal %832 {approx = true} : vector<64x1xf32> -> vector<64x1xf32>
    %834 = vector.broadcast %833 : vector<64x1xf32> to vector<64x8xf32>
    %835 = arith.mulf %830, %834 : vector<64x8xf32>
    %836 = arith.truncf %835 : vector<64x8xf32> to vector<64x8xbf16>
    %837 = vector.extract_strided_slice %836 {offsets = [0, 0], sizes = [8, 8], strides = [1, 1]} : vector<64x8xbf16> to vector<8x8xbf16>
    %838 = vector.extract_strided_slice %775 {offsets = [0, 0], sizes = [8, 16], strides = [1, 1]} : vector<16x64xf32> to vector<8x16xf32>
    %839 = arith.truncf %838 : vector<8x16xf32> to vector<8x16xbf16>
    %cst_451 = arith.constant dense<0.000000e+00> : vector<8x16xf32>
    %840 = tpu.matmul %837, %839, %cst_451 {dimension_numbers = #tpu.dot_dimension_numbers<[1], [0], [0], [1], [0, 0, 1, 1], [], []>} : vector<8x8xbf16>, vector<8x16xbf16>, vector<8x16xf32> -> vector<8x16xf32>
    %c0_452 = arith.constant 0 : index
    %c0_453 = arith.constant 0 : index
    %841 = vector.load %arg31[%c0_452, %c0_453] : memref<16x64xf32, #tpu.memory_space<vmem>>, vector<8x16xf32>
    tpu.vector_store %arg31[%c0_452, %c0_453], %840 {strides = array<i32>} : memref<16x64xf32, #tpu.memory_space<vmem>>, vector<8x16xf32>,
    %842 = vector.extract_strided_slice %836 {offsets = [8, 0], sizes = [8, 8], strides = [1, 1]} : vector<64x8xbf16> to vector<8x8xbf16>
    %843 = vector.extract_strided_slice %775 {offsets = [0, 16], sizes = [8, 16], strides = [1, 1]} : vector<16x64xf32> to vector<8x16xf32>
    %844 = arith.truncf %843 : vector<8x16xf32> to vector<8x16xbf16>
    %cst_454 = arith.constant dense<0.000000e+00> : vector<8x16xf32>
    %845 = tpu.matmul %842, %844, %cst_454 {dimension_numbers = #tpu.dot_dimension_numbers<[1], [0], [0], [1], [0, 0, 1, 1], [], []>} : vector<8x8xbf16>, vector<8x16xbf16>, vector<8x16xf32> -> vector<8x16xf32>
    %c0_455 = arith.constant 0 : index
    %c16_456 = arith.constant 16 : index
    %846 = vector.load %arg31[%c0_455, %c16_456] : memref<16x64xf32, #tpu.memory_space<vmem>>, vector<8x16xf32>
    tpu.vector_store %arg31[%c0_455, %c16_456], %845 {strides = array<i32>} : memref<16x64xf32, #tpu.memory_space<vmem>>, vector<8x16xf32>,
    %847 = vector.extract_strided_slice %836 {offsets = [16, 0], sizes = [8, 8], strides = [1, 1]} : vector<64x8xbf16> to vector<8x8xbf16>
    %848 = vector.extract_strided_slice %775 {offsets = [0, 32], sizes = [8, 16], strides = [1, 1]} : vector<16x64xf32> to vector<8x16xf32>
    %849 = arith.truncf %848 : vector<8x16xf32> to vector<8x16xbf16>
    %cst_457 = arith.constant dense<0.000000e+00> : vector<8x16xf32>
    %850 = tpu.matmul %847, %849, %cst_457 {dimension_numbers = #tpu.dot_dimension_numbers<[1], [0], [0], [1], [0, 0, 1, 1], [], []>} : vector<8x8xbf16>, vector<8x16xbf16>, vector<8x16xf32> -> vector<8x16xf32>
    %c0_458 = arith.constant 0 : index
    %c32_459 = arith.constant 32 : index
    %851 = vector.load %arg31[%c0_458, %c32_459] : memref<16x64xf32, #tpu.memory_space<vmem>>, vector<8x16xf32>
    tpu.vector_store %arg31[%c0_458, %c32_459], %850 {strides = array<i32>} : memref<16x64xf32, #tpu.memory_space<vmem>>, vector<8x16xf32>,
    %852 = vector.extract_strided_slice %836 {offsets = [24, 0], sizes = [8, 8], strides = [1, 1]} : vector<64x8xbf16> to vector<8x8xbf16>
    %853 = vector.extract_strided_slice %775 {offsets = [0, 48], sizes = [8, 16], strides = [1, 1]} : vector<16x64xf32> to vector<8x16xf32>
    %854 = arith.truncf %853 : vector<8x16xf32> to vector<8x16xbf16>
    %cst_460 = arith.constant dense<0.000000e+00> : vector<8x16xf32>
    %855 = tpu.matmul %852, %854, %cst_460 {dimension_numbers = #tpu.dot_dimension_numbers<[1], [0], [0], [1], [0, 0, 1, 1], [], []>} : vector<8x8xbf16>, vector<8x16xbf16>, vector<8x16xf32> -> vector<8x16xf32>
    %c0_461 = arith.constant 0 : index
    %c48_462 = arith.constant 48 : index
    %856 = vector.load %arg31[%c0_461, %c48_462] : memref<16x64xf32, #tpu.memory_space<vmem>>, vector<8x16xf32>
    tpu.vector_store %arg31[%c0_461, %c48_462], %855 {strides = array<i32>} : memref<16x64xf32, #tpu.memory_space<vmem>>, vector<8x16xf32>,
    %857 = vector.extract_strided_slice %836 {offsets = [32, 0], sizes = [8, 8], strides = [1, 1]} : vector<64x8xbf16> to vector<8x8xbf16>
    %858 = vector.extract_strided_slice %775 {offsets = [8, 0], sizes = [8, 16], strides = [1, 1]} : vector<16x64xf32> to vector<8x16xf32>
    %859 = arith.truncf %858 : vector<8x16xf32> to vector<8x16xbf16>
    %cst_463 = arith.constant dense<0.000000e+00> : vector<8x16xf32>
    %860 = tpu.matmul %857, %859, %cst_463 {dimension_numbers = #tpu.dot_dimension_numbers<[1], [0], [0], [1], [0, 0, 1, 1], [], []>} : vector<8x8xbf16>, vector<8x16xbf16>, vector<8x16xf32> -> vector<8x16xf32>
    %c8_464 = arith.constant 8 : index
    %c0_465 = arith.constant 0 : index
    %861 = vector.load %arg31[%c8_464, %c0_465] : memref<16x64xf32, #tpu.memory_space<vmem>>, vector<8x16xf32>
    tpu.vector_store %arg31[%c8_464, %c0_465], %860 {strides = array<i32>} : memref<16x64xf32, #tpu.memory_space<vmem>>, vector<8x16xf32>,
    %862 = vector.extract_strided_slice %836 {offsets = [40, 0], sizes = [8, 8], strides = [1, 1]} : vector<64x8xbf16> to vector<8x8xbf16>
    %863 = vector.extract_strided_slice %775 {offsets = [8, 16], sizes = [8, 16], strides = [1, 1]} : vector<16x64xf32> to vector<8x16xf32>
    %864 = arith.truncf %863 : vector<8x16xf32> to vector<8x16xbf16>
    %cst_466 = arith.constant dense<0.000000e+00> : vector<8x16xf32>
    %865 = tpu.matmul %862, %864, %cst_466 {dimension_numbers = #tpu.dot_dimension_numbers<[1], [0], [0], [1], [0, 0, 1, 1], [], []>} : vector<8x8xbf16>, vector<8x16xbf16>, vector<8x16xf32> -> vector<8x16xf32>
    %c8_467 = arith.constant 8 : index
    %c16_468 = arith.constant 16 : index
    %866 = vector.load %arg31[%c8_467, %c16_468] : memref<16x64xf32, #tpu.memory_space<vmem>>, vector<8x16xf32>
    tpu.vector_store %arg31[%c8_467, %c16_468], %865 {strides = array<i32>} : memref<16x64xf32, #tpu.memory_space<vmem>>, vector<8x16xf32>,
    %867 = vector.extract_strided_slice %836 {offsets = [48, 0], sizes = [8, 8], strides = [1, 1]} : vector<64x8xbf16> to vector<8x8xbf16>
    %868 = vector.extract_strided_slice %775 {offsets = [8, 32], sizes = [8, 16], strides = [1, 1]} : vector<16x64xf32> to vector<8x16xf32>
    %869 = arith.truncf %868 : vector<8x16xf32> to vector<8x16xbf16>
    %cst_469 = arith.constant dense<0.000000e+00> : vector<8x16xf32>
    %870 = tpu.matmul %867, %869, %cst_469 {dimension_numbers = #tpu.dot_dimension_numbers<[1], [0], [0], [1], [0, 0, 1, 1], [], []>} : vector<8x8xbf16>, vector<8x16xbf16>, vector<8x16xf32> -> vector<8x16xf32>
    %c8_470 = arith.constant 8 : index
    %c32_471 = arith.constant 32 : index
    %871 = vector.load %arg31[%c8_470, %c32_471] : memref<16x64xf32, #tpu.memory_space<vmem>>, vector<8x16xf32>
    tpu.vector_store %arg31[%c8_470, %c32_471], %870 {strides = array<i32>} : memref<16x64xf32, #tpu.memory_space<vmem>>, vector<8x16xf32>,
    %872 = vector.extract_strided_slice %836 {offsets = [56, 0], sizes = [8, 8], strides = [1, 1]} : vector<64x8xbf16> to vector<8x8xbf16>
    %873 = vector.extract_strided_slice %775 {offsets = [8, 48], sizes = [8, 16], strides = [1, 1]} : vector<16x64xf32> to vector<8x16xf32>
    %874 = arith.truncf %873 : vector<8x16xf32> to vector<8x16xbf16>
    %cst_472 = arith.constant dense<0.000000e+00> : vector<8x16xf32>
    %875 = tpu.matmul %872, %874, %cst_472 {dimension_numbers = #tpu.dot_dimension_numbers<[1], [0], [0], [1], [0, 0, 1, 1], [], []>} : vector<8x8xbf16>, vector<8x16xbf16>, vector<8x16xf32> -> vector<8x16xf32>
    %c8_473 = arith.constant 8 : index
    %c48_474 = arith.constant 48 : index
    %876 = vector.load %arg31[%c8_473, %c48_474] : memref<16x64xf32, #tpu.memory_space<vmem>>, vector<8x16xf32>
    tpu.vector_store %arg31[%c8_473, %c48_474], %875 {strides = array<i32>} : memref<16x64xf32, #tpu.memory_space<vmem>>, vector<8x16xf32>,
    %c0_475 = arith.constant 0 : index
    %c0_476 = arith.constant 0 : index
    %877 = vector.load %arg31[%c0_475, %c0_476] : memref<16x64xf32, #tpu.memory_space<vmem>>, vector<16x64xf32>
    %c1_477 = arith.constant 1 : index
    %c0_478 = arith.constant 0 : index
    %c0_479 = arith.constant 0 : index
    %878 = vector.load %arg18[%c1_477, %c0_478, %c0_479] : memref<2x64x64xbf16, #tpu.memory_space<vmem>>, vector<1x64x64xbf16>
    %879 = vector.shape_cast %878 : vector<1x64x64xbf16> to vector<64x64xbf16>
    %880 = arith.truncf %877 : vector<16x64xf32> to vector<16x64xbf16>
    %cst_480 = arith.constant dense<0.000000e+00> : vector<16x64xf32>
    %881 = tpu.matmul %880, %879, %cst_480 {dimension_numbers = #tpu.dot_dimension_numbers<[1], [0], [0], [1], [0, 0, 1, 1], [], []>} : vector<16x64xbf16>, vector<64x64xbf16>, vector<16x64xf32> -> vector<16x64xf32>
    %882 = arith.addf %751, %881 : vector<16x64xf32>
    %c1_481 = arith.constant 1 : index
    %c0_482 = arith.constant 0 : index
    %c0_483 = arith.constant 0 : index
    %883 = vector.load %arg19[%c1_481, %c0_482, %c0_483] : memref<2x1x64xf32, #tpu.memory_space<vmem>>, vector<1x1x64xf32>
    %884 = vector.shape_cast %883 : vector<1x1x64xf32> to vector<1x64xf32>
    %885 = arith.mulf %882, %882 : vector<16x64xf32>
    %cst_484 = arith.constant dense<0.000000e+00> : vector<16xf32>
    %886 = vector.multi_reduction <add>, %885, %cst_484 [1] : vector<16x64xf32> to vector<16xf32>
    %887 = vector.shape_cast %886 : vector<16xf32> to vector<16x1xf32>
    %cst_485 = arith.constant 6.400000e+01 : f32
    %888 = vector.broadcast %cst_485 : f32 to vector<16x1xf32>
    %889 = arith.divf %887, %888 : vector<16x1xf32>
    %cst_486 = arith.constant 9.99999997E-7 : f32
    %890 = vector.broadcast %cst_486 : f32 to vector<16x1xf32>
    %891 = arith.addf %889, %890 : vector<16x1xf32>
    %892 = math.rsqrt %891 : vector<16x1xf32>
    %893 = vector.broadcast %892 : vector<16x1xf32> to vector<16x64xf32>
    %894 = arith.mulf %882, %893 : vector<16x64xf32>
    %895 = vector.broadcast %884 : vector<1x64xf32> to vector<16x64xf32>
    %896 = arith.mulf %894, %895 : vector<16x64xf32>
    %c1_487 = arith.constant 1 : index
    %c0_488 = arith.constant 0 : index
    %c0_489 = arith.constant 0 : index
    %897 = vector.load %arg20[%c1_487, %c0_488, %c0_489] : memref<2x64x128xbf16, #tpu.memory_space<vmem>>, vector<1x64x128xbf16>
    %898 = vector.shape_cast %897 : vector<1x64x128xbf16> to vector<64x128xbf16>
    %899 = arith.truncf %896 : vector<16x64xf32> to vector<16x64xbf16>
    %cst_490 = arith.constant dense<0.000000e+00> : vector<16x128xf32>
    %900 = tpu.matmul %899, %898, %cst_490 {dimension_numbers = #tpu.dot_dimension_numbers<[1], [0], [0], [1], [0, 0, 1, 1], [], []>} : vector<16x64xbf16>, vector<64x128xbf16>, vector<16x128xf32> -> vector<16x128xf32>
    %cst_491 = arith.constant 0.000000e+00 : f32
    %901 = vector.broadcast %cst_491 : f32 to vector<16x128xf32>
    %902 = arith.maximumf %900, %901 : vector<16x128xf32>
    %c1_492 = arith.constant 1 : index
    %c0_493 = arith.constant 0 : index
    %c0_494 = arith.constant 0 : index
    %903 = vector.load %arg21[%c1_492, %c0_493, %c0_494] : memref<2x128x64xbf16, #tpu.memory_space<vmem>>, vector<1x128x64xbf16>
    %904 = vector.shape_cast %903 : vector<1x128x64xbf16> to vector<128x64xbf16>
    %905 = arith.truncf %902 : vector<16x128xf32> to vector<16x128xbf16>
    %cst_495 = arith.constant dense<0.000000e+00> : vector<16x64xf32>
    %906 = tpu.matmul %905, %904, %cst_495 {dimension_numbers = #tpu.dot_dimension_numbers<[1], [0], [0], [1], [0, 0, 1, 1], [], []>} : vector<16x128xbf16>, vector<128x64xbf16>, vector<16x64xf32> -> vector<16x64xf32>
    %907 = arith.addf %882, %906 : vector<16x64xf32>
    %c0_496 = arith.constant 0 : index
    %c0_497 = arith.constant 0 : index
    %908 = vector.load %arg23[%c0_496, %c0_497] : memref<1x64xf32, #tpu.memory_space<vmem>>, vector<1x64xf32>
    %909 = arith.mulf %907, %907 : vector<16x64xf32>
    %cst_498 = arith.constant dense<0.000000e+00> : vector<16xf32>
    %910 = vector.multi_reduction <add>, %909, %cst_498 [1] : vector<16x64xf32> to vector<16xf32>
    %911 = vector.shape_cast %910 : vector<16xf32> to vector<16x1xf32>
    %cst_499 = arith.constant 6.400000e+01 : f32
    %912 = vector.broadcast %cst_499 : f32 to vector<16x1xf32>
    %913 = arith.divf %911, %912 : vector<16x1xf32>
    %cst_500 = arith.constant 9.99999997E-7 : f32
    %914 = vector.broadcast %cst_500 : f32 to vector<16x1xf32>
    %915 = arith.addf %913, %914 : vector<16x1xf32>
    %916 = math.rsqrt %915 : vector<16x1xf32>
    %917 = vector.broadcast %916 : vector<16x1xf32> to vector<16x64xf32>
    %918 = arith.mulf %907, %917 : vector<16x64xf32>
    %919 = vector.broadcast %908 : vector<1x64xf32> to vector<16x64xf32>
    %920 = arith.mulf %918, %919 : vector<16x64xf32>
    %c0_501 = arith.constant 0 : index
    %c0_502 = arith.constant 0 : index
    %921 = vector.load %arg29[%c0_501, %c0_502] : memref<16x64xf32, #tpu.memory_space<vmem>>, vector<16x64xf32>
    tpu.vector_store %arg29[%c0_501, %c0_502], %920 {strides = array<i32>} : memref<16x64xf32, #tpu.memory_space<vmem>>, vector<16x64xf32>,
    return
  }
}

</mosaic_0001>

<bundles_post_ra>
// kernel: t5_forward.1
= control target key start
LH: loop header
LB: loop body
LE: loop exit
PB: predicated region body
PF: predicated region fallthrough
CT: control target
= control target key end

     0   :  { %s10364_s6 = smov 1   ;;  %s10365_s10 = smov 2   ;;  %s12214_s0 = inlined_call_operand.smem [shape: u32[30], index: -1, kind: input, shape index: {}] }
   0x1   :  { %s10415_s5 = sld [smem:[%s12214_s0]]   ;;  %s10366_s14 = smov 3  }
   0x2   :  { %s10420_s9 = sld [smem:[%s12214_s0 + %s10364_s6]]   ;;  %s10367_s18 = smov 4  }
   0x3   :  { %s10425_s13 = sld [smem:[%s12214_s0 + %s10365_s10]]   ;;  %s10368_s22 = smov 5  }
   0x4   :  { %s10430_s17 = sld [smem:[%s12214_s0 + %s10366_s14]]   ;;  %s10369_s26 = smov 6  }
   0x5   :  { %s10435_s21 = sld [smem:[%s12214_s0 + %s10367_s18]]   ;;  %s10370_s30 = smov 7  }
   0x6   :  { %s10440_s25 = sld [smem:[%s12214_s0 + %s10368_s22]]   ;;  %s10371_s4 = smov 8  }
   0x7   :  { %s10445_s29 = sld [smem:[%s12214_s0 + %s10369_s26]]   ;;  %s10372_s10 = smov 9  }
   0x8   :  { %s10450_s3 = sld [smem:[%s12214_s0 + %s10370_s30]]   ;;  %s10373_s15 = smov 10  }
   0x9   :  { %s10455_s8 = sld [smem:[%s12214_s0 + %s10371_s4]]   ;;  %s10374_s20 = smov 11  }
   0xa   :  { %12225 = sst [smem:[#allocation10_spill]] %s10430_s17  ;;  %s10375_s26 = smov 12  }
   0xb   :  { %12226 = sst [smem:[#allocation11_spill]] %s10435_s21  ;;  %s10376_s1 = smov 13  }
   0xc   :  { %s10460_s14 = sld [smem:[%s12214_s0 + %s10372_s10]]   ;;  %s10377_s7 = smov 14  }
   0xd   :  { %s10465_s19 = sld [smem:[%s12214_s0 + %s10373_s15]]   ;;  %s10378_s15 = smov 15  }
   0xe   :  { %s10470_s24 = sld [smem:[%s12214_s0 + %s10374_s20]]   ;;  %s10379_s22 = smov 16  }
   0xf   :  { %s10475_s30 = sld [smem:[%s12214_s0 + %s10375_s26]]   ;;  %s10380_s28 = smov 17  }
  0x10   :  { %s10480_s6 = sld [smem:[%s12214_s0 + %s10376_s1]]  }
  0x11   :  { %s10485_s12 = sld [smem:[%s12214_s0 + %s10377_s7]]   ;;  %s10381_s7 = smov 18  }
  0x12   :  { %s10490_s20 = sld [smem:[%s12214_s0 + %s10378_s15]]   ;;  %s10382_s15 = smov 19  }
  0x13   :  { %s10495_s27 = sld [smem:[%s12214_s0 + %s10379_s22]]   ;;  %s10383_s22 = smov 20  }
  0x14   :  { %s10500_s4 = sld [smem:[%s12214_s0 + %s10380_s28]]   ;;  %s10384_s28 = smov 21  }
  0x15   :  { %s10505_s21 = sld [smem:[%s12214_s0 + %s10381_s7]]   ;;  %s10385_s7 = smov 22  }
  0x17   :  { %12227 = sst [smem:[#allocation12_spill]] %s10485_s12 }
  0x18   :  { %12228 = sst [smem:[#allocation13_spill]] %s10490_s20 }
  0x19   :  { %12229 = sst [smem:[#allocation14_spill]] %s10495_s27 }
  0x1a   :  { %12230 = sst [smem:[#allocation15_spill]] %s10500_s4 }
  0x1b   :  { %12231 = sst [smem:[#allocation16_spill]] %s10505_s21 }
  0x1c   :  { %s10510_s20 = sld [smem:[%s12214_s0 + %s10382_s15]]   ;;  %s10386_s15 = smov 23  }
  0x1d   :  { %s10515_s27 = sld [smem:[%s12214_s0 + %s10383_s22]]   ;;  %s10387_s22 = smov 24  }
  0x1e   :  { %s10520_s4 = sld [smem:[%s12214_s0 + %s10384_s28]]   ;;  %s10388_s28 = smov 25  }
  0x1f   :  { %s10525_s21 = sld [smem:[%s12214_s0 + %s10385_s7]]   ;;  %s10389_s7 = smov 26  }
  0x20   :  { %s10545_s12 = sld [smem:[%s12214_s0 + %s10389_s7]]  }
  0x22   :  { %12232 = sst [smem:[#allocation17_spill]] %s10510_s20 }
  0x23   :  { %12233 = sst [smem:[#allocation18_spill]] %s10515_s27 }
  0x24   :  { %12234 = sst [smem:[#allocation19_spill]] %s10520_s4 }
  0x25   :  { %s10530_s20 = sld [smem:[%s12214_s0 + %s10386_s15]]   ;;  %s10390_s15 = smov 27  }
  0x26   :  { %s10535_s27 = sld [smem:[%s12214_s0 + %s10387_s22]]   ;;  %s10391_s22 = smov 28  }
  0x27   :  { %s10540_s4 = sld [smem:[%s12214_s0 + %s10388_s28]]   ;;  %s10392_s28 = smov 29  }
  0x28   :  { %s10555_s17 = sld [smem:[%s12214_s0 + %s10391_s22]]  }
  0x2b   :  { %12235 = sst [smem:[#allocation20_spill]] %s10530_s20 }
  0x2c   :  { %s10550_s20 = sld [smem:[%s12214_s0 + %s10390_s15]]  }
  0x2d   :  { %12236 = sst [smem:[#allocation21_spill]] %s10540_s4 }
  0x2e   :  { %s10560_s4 = sld [smem:[%s12214_s0 + %s10392_s28]]  }
  0x2f   :  { %65 = vsyncpa [#allocation5], 0  ;;  %v124_v0 = vld [vmem:[%s10415_s5] sm:$0xff]  ;;  %vm137_vm0 = vcmask 523264   ;;  %v125_v1 = vld [vmem:[%s10415_s5 + $0x8] sm:$0xff]  ;;  %v10393_v11 = vmov 0  }
  0x30   :  { %v135_v2 = vmul.f32 %v124_v0, %v124_v0  ;;  %v136_v3 = vmul.f32 %v125_v1, %v125_v1  ;;  %v9914_v6 = vld [vmem:[%s10450_s3 + $0x34] ss:$8 sps:$4 sm:$0xff]   ;;  %v9916_v7 = vld [vmem:[%s10450_s3 + $0x30] ss:$8 sps:$4 sm:$0xff]   ;;  %v9917_v8 = vld [vmem:[%s10450_s3 + $0x24] ss:$8 sps:$4 sm:$0xff]   ;;  %245 = vmatprep.mubr.bf16.mxu0 %v10393_v11 }
  0x31   :  { %221 = vmatprep.subr.bf16.mxu0 %v9914_v6  ;;  %v9919_v9 = vld [vmem:[%s10450_s3 + $0x20] ss:$8 sps:$4 sm:$0xff]   ;;  %v9920_v10 = vld [vmem:[%s10450_s3 + $0x14] ss:$8 sps:$4 sm:$0xff]   ;;  %v9922_v12 = vld [vmem:[%s10450_s3 + $0x10] ss:$8 sps:$4 sm:$0xff]  }
  0x32   :  { %v138_v4 = vsel %vm137_vm0, %v135_v2, 0.0  ;;  %v141_v5 = vsel %vm137_vm0, %v136_v3, 0.0  ;;  %222 = vmatpush1.bf16.msra.mxu0 %v9916_v7  ;;  %v9923_v13 = vld [vmem:[%s10450_s3 + $0x4] ss:$8 sps:$4 sm:$0xff]   ;;  %v9925_v14 = vld [vmem:[%s10450_s3] ss:$8 sps:$4 sm:$0xff]  }
  0x33   :  { %139 = vadd.xlane.f32.xlu0 %v138_v4  ;;  %223 = vmatprep.subr.bf16.mxu0 %v9917_v8 }
  0x36   :  { %224 = vmatpush1.bf16.msra.mxu0 %v9919_v9 }
  0x37   :  { %142 = vadd.xlane.f32.xlu0 %v141_v5  ;;  %225 = vmatprep.subr.bf16.mxu0 %v9920_v10 }
  0x3a   :  { %226 = vmatpush1.bf16.msra.mxu0 %v9922_v12 }
  0x3b   :  { %227 = vmatprep.subr.bf16.mxu0 %v9923_v13 }
  0x3e   :  { %228 = vmatpush1.bf16.msra.mxu0 %v9925_v14 }
  0x3f   :  { %66 = vsyncpa [#allocation7], 0  ;;  %v8337_v24 = vld [vmem:[%s10445_s29] ss:$0 sm:$0xff]  ;;  %v10394_v29 = vmov 0.0   ;;  %vm10395_vm1 = vmmov 0  }
  0x40   :  { %9016 = vmatprep.subr.bf16.mxu0 %v10394_v29  ;;  %9022 = vmatprep.subr.bf16.mxu1 %v10394_v29  ;;  %s10396_s0 = smov 112   ;;  %s10397_s7 = smov 64   ;;  %vm260_vm2 = vcmask 130048   ;;  %vm778_vm3 = vcmask 1043456   ;;  %vm307_vm4 = vcmask 64512   ;;  %v10651_v2 = vld [vmem:[%s10425_s13] sm:$0xff] }
  0x41   :  { %9024 = vmatprep.mubr.msk.bf16.mxu1 %vm10395_vm1, %v10394_v29  ;;  %s10398_s10 = smov 48   ;;  %s10399_s11 = smov 32   ;;  %v10658_v9 = vld [vmem:[%s10425_s13 + $0x8] sm:$0xff]  ;;  %vm878_vm5 = vcmask 261248   ;;  %vm932_vm6 = vcmask 392448   ;;  %vm988_vm7 = vcmask 523648  }
  0x42   :  { %s10400_s15 = smov 16   ;;  %s10401_s16 = smov 80  }
  0x43   :  { %s10402_s18 = smov 96  }
  0xbc   :  { %v140_v15 = vpop.xlane.xlu0 %139 }
  0xbd   :  { %v145_v16 = vmul.f32 0.015625, %v140_v15 }
  0xbf   :  { %v147_v17 = vadd.f32 1e-06, %v145_v16 }
  0xc0   :  { %v143_v18 = vpop.xlane.xlu0 %142 }
  0xc1   :  { %10058 = vrsqrt.f32 %v147_v17  ;;  %v146_v19 = vmul.f32 0.015625, %v143_v18  ;;  %v10667_v18 = vld [vmem:[%s10425_s13 + $0x10] sm:$0xff] }
  0xc3   :  { %v148_v20 = vadd.f32 1e-06, %v146_v19 }
  0xc5   :  { %10060 = vrsqrt.f32 %v148_v20 }
  0xce   :  { %v10059_v21 = vpop.eup %10058 }
  0xcf   :  { %v151_v22 = vmul.f32 %v10059_v21, %v124_v0 }
  0xd1   :  { %v159_v26 = vmul.f32 %v8337_v24, %v151_v22 }
  0xd2   :  { %v10061_v23 = vpop.eup %10060 }
  0xd3   :  { %v152_v25 = vmul.f32 %v10061_v23, %v125_v1 }
  0xd5   :  { %v160_v27 = vmul.f32 %v8337_v24, %v152_v25  ;;  %v129_v24 = vld [vmem:[%s10425_s13 + $0x18] sm:$0xff] }
  0xd7   :  { %v169_v28 = vpack.c.bf16 %v160_v27, %v159_v26 }
  0xd9   :  { %8346 = vmatmul.mubr.msk.bf16.vlgmr.msra.gmra.mxu0 %vm137_vm0, %v169_v28 }
  0xda   :  { %9018 = vmatprep.mubr.msk.bf16.mxu0 %vm10395_vm1, %v10394_v29 }
 0x199   :  { %v247_v30 = vpop.f32.mrf.mxu0 }
 0x19a   :  { %v256_v31 = vpack.c.bf16 %v247_v30, %v247_v30 }
 0x19b   :  { %v10583_v32 = vpop.f32.mrf.mxu0 }
 0x19c   :  { %309 = vrot.lane.b32.xlu0 %v256_v31, %s10396_s0  ;;  %258 = vrot.lane.b32.xlu1 %v256_v31, %s10397_s7  ;;  %v10630_v54 = vpack.c.bf16 %v10583_v32, %v10583_v32 }
 0x19d   :  { %v251_v33 = vpop.f32.mrf.mxu0 }
 0x19e   :  { %v462_v34 = vpack.c.bf16 %v251_v33, %v251_v33  ;;  %v780_v57 = vsel %vm778_vm3, %v10630_v54, 0 }
 0x19f   :  { %v10646_v59 = vpop.f32.mrf.mxu0 }
 0x1a0   :  { %311 = vrot.lane.b32.xlu1 %v256_v31, %s10398_s10  ;;  %513 = vrot.lane.b32.xlu0 %v462_v34, %s10396_s0 }
 0x1a4   :  { %362 = vrot.lane.b32.xlu1 %v256_v31, %s10399_s11  ;;  %617 = vrot.lane.b32.xlu0 %v462_v34, %s10400_s15 }
 0x1a8   :  { %413 = vrot.lane.b32.xlu1 %v256_v31, %s10400_s15  ;;  %615 = vrot.lane.b32.xlu0 %v462_v34, %s10401_s16 }
 0x1ac   :  { %360 = vrot.lane.b32.xlu1 %v256_v31, %s10402_s18 }
 0x1b0   :  { %411 = vrot.lane.b32.xlu1 %v256_v31, %s10401_s16 }
 0x1b4   :  { %464 = vrot.lane.b32.xlu1 %v462_v34, %s10397_s7 }
 0x1b8   :  { %515 = vrot.lane.b32.xlu1 %v462_v34, %s10398_s10 }
 0x1bc   :  { %566 = vrot.lane.b32.xlu1 %v462_v34, %s10399_s11 }
 0x1c0   :  { %564 = vrot.lane.b32.xlu1 %v462_v34, %s10402_s18 }
 0x20e   :  { %v259_v35 = vpop.permute.xlu1 %258  ;;  %v310_v41 = vpop.permute.xlu0 %309 }
 0x20f   :  { %v265_v36 = vsel %vm260_vm2, %v259_v35, 0 }
 0x210   :  { %9017 = vmatpush3.bf16.xpose.msra.mxu0 %v265_v36  ;;  %v10681_v36 = vld [vmem:[%s10425_s13 + $0x20] sm:$0xff] }
 0x211   :  { %9028 = vmatprep.subr.bf16.mxu0 %v10394_v29 }
 0x212   :  { %v312_v37 = vpop.permute.xlu1 %311  ;;  %v514_v48 = vpop.permute.xlu0 %513 }
 0x213   :  { %v317_v38 = vsel %vm260_vm2, %v312_v37, 0 }
 0x214   :  { %9023 = vmatpush3.bf16.xpose.msra.mxu1 %v317_v38 }
 0x215   :  { %9034 = vmatprep.subr.bf16.mxu1 %v10394_v29 }
 0x216   :  { %v363_v39 = vpop.permute.xlu1 %362  ;;  %v618_v53 = vpop.permute.xlu0 %617 }
 0x217   :  { %v368_v40 = vsel %vm260_vm2, %v363_v39, 0  ;;  %9019 = vmatmul.mubr.msk.bf16.vlgmr.msra.gmra.mxu0 %vm260_vm2, %v256_v31  ;;  %v623_v55 = vsel %vm260_vm2, %v618_v53, 0 }
 0x218   :  { %9029 = vmatpush3.bf16.xpose.msra.mxu0 %v368_v40  ;;  %9030 = vmatprep.mubr.msk.bf16.mxu0 %vm10395_vm1, %v10394_v29 }
 0x219   :  { %9040 = vmatprep.subr.bf16.mxu0 %v10394_v29 }
 0x21a   :  { %v414_v42 = vpop.permute.xlu1 %413  ;;  %v616_v58 = vpop.permute.xlu0 %615 }
 0x21b   :  { %v419_v43 = vsel %vm260_vm2, %v414_v42, 0  ;;  %9025 = vmatmul.mubr.msk.bf16.vlgmr.msra.gmra.mxu1 %vm260_vm2, %v310_v41 }
 0x21c   :  { %9035 = vmatpush3.bf16.xpose.msra.mxu1 %v419_v43  ;;  %9036 = vmatprep.mubr.msk.bf16.mxu1 %vm10395_vm1, %v10394_v29  ;;  %v10686_v43 = vld [vmem:[%s10425_s13 + $0x28] sm:$0xff] }
 0x21d   :  { %9046 = vmatprep.subr.bf16.mxu1 %v10394_v29 }
 0x21e   :  { %v361_v44 = vpop.permute.xlu1 %360 }
 0x21f   :  { %9031 = vmatmul.mubr.msk.bf16.vlgmr.msra.gmra.mxu0 %vm260_vm2, %v361_v44 }
 0x220   :  { %9042 = vmatprep.mubr.msk.bf16.mxu0 %vm10395_vm1, %v10394_v29 }
 0x222   :  { %v412_v45 = vpop.permute.xlu1 %411 }
 0x223   :  { %9037 = vmatmul.mubr.msk.bf16.vlgmr.msra.gmra.mxu1 %vm260_vm2, %v412_v45 }
 0x224   :  { %9048 = vmatprep.mubr.msk.bf16.mxu1 %vm10395_vm1, %v10394_v29 }
 0x226   :  { %v465_v46 = vpop.permute.xlu1 %464 }
 0x227   :  { %v470_v47 = vsel %vm260_vm2, %v465_v46, 0 }
 0x228   :  { %9041 = vmatpush3.bf16.xpose.msra.mxu0 %v470_v47 }
 0x229   :  { %9052 = vmatprep.subr.bf16.mxu0 %v10394_v29 }
 0x22a   :  { %v516_v49 = vpop.permute.xlu1 %515 }
 0x22b   :  { %v521_v50 = vsel %vm260_vm2, %v516_v49, 0 }
 0x22c   :  { %9047 = vmatpush3.bf16.xpose.msra.mxu1 %v521_v50 }
 0x22d   :  { %9058 = vmatprep.subr.bf16.mxu1 %v10394_v29 }
 0x22e   :  { %v567_v51 = vpop.permute.xlu1 %566 }
 0x22f   :  { %v572_v52 = vsel %vm260_vm2, %v567_v51, 0  ;;  %9043 = vmatmul.mubr.msk.bf16.vlgmr.msra.gmra.mxu0 %vm260_vm2, %v462_v34  ;;  %v10692_v51 = vld [vmem:[%s10425_s13 + $0x30] sm:$0xff] }
 0x230   :  { %9053 = vmatpush3.bf16.xpose.msra.mxu0 %v572_v52  ;;  %9054 = vmatprep.mubr.msk.bf16.mxu0 %vm10395_vm1, %v10394_v29 }
 0x231   :  { %9064 = vmatprep.subr.bf16.mxu0 %v10394_v29 }
 0x232   :  { %v565_v56 = vpop.permute.xlu1 %564 }
 0x233   :  { %9049 = vmatmul.mubr.msk.bf16.vlgmr.msra.gmra.mxu1 %vm260_vm2, %v514_v48 }
 0x234   :  { %9059 = vmatpush3.bf16.xpose.msra.mxu1 %v623_v55  ;;  %9060 = vmatprep.mubr.msk.bf16.mxu1 %vm10395_vm1, %v10394_v29 }
 0x235   :  { %9070 = vmatprep.subr.bf16.mxu1 %v10394_v29 }
 0x237   :  { %9055 = vmatmul.mubr.msk.bf16.vlgmr.msra.gmra.mxu0 %vm260_vm2, %v565_v56 }
 0x238   :  { %9065 = vmatpush3.bf16.msra.mxu0 %v780_v57  ;;  %9066 = vmatprep.mubr.msk.bf16.mxu0 %vm10395_vm1, %v10394_v29 }
 0x239   :  { %9076 = vmatprep.subr.bf16.mxu0 %v10394_v29 }
 0x23b   :  { %9061 = vmatmul.mubr.msk.bf16.vlgmr.msra.gmra.mxu1 %vm260_vm2, %v616_v58  ;;  %v10697_v58 = vld [vmem:[%s10425_s13 + $0x38] sm:$0xff] }
 0x23c   :  { %9072 = vmatprep.mubr.msk.bf16.mxu1 %vm10395_vm1, %v10394_v29 }
 0x2d7   :  { %v301_v60 = vpop.f32.mrf.mxu0 }
 0x2d8   :  { %308 = vst.msk [vmem:[#allocation2] sm:$0xff] %vm307_vm4, %v301_v60 }
 0x2d9   :  { %v9020_v61 = vpop.f32.mrf.mxu0 }
 0x2db   :  { %v304_v62 = vpop.f32.mrf.mxu0  ;;  %v353_v63 = vpop.f32.mrf.mxu1 }
 0x2dc   :  { %359 = vst.msk [vmem:[#allocation2 + $0x8] sm:$0xff] %vm307_vm4, %v353_v63 }
 0x2dd   :  { %v9021_v0 = vpop.f32.mrf.mxu0  ;;  %v9026_v1 = vpop.f32.mrf.mxu1 }
 0x2df   :  { %v356_v3 = vpop.f32.mrf.mxu1  ;;  %v404_v4 = vpop.f32.mrf.mxu0  ;;  %v666_v5 = vld [vmem:[#allocation2] sm:$0xff] }
 0x2e0   :  { %410 = vst.msk [vmem:[#allocation2 + $0x10] sm:$0xff] %vm307_vm4, %v404_v4  ;;  %v10655_v6 = vadd.f32 %v666_v5, %v10651_v2 }
 0x2e1   :  { %v9027_v7 = vpop.f32.mrf.mxu1  ;;  %v9032_v8 = vpop.f32.mrf.mxu0 }
 0x2e2   :  { %v682_v10 = vsel %vm307_vm4, %v10655_v6, -inf }
 0x2e3   :  { %v455_v12 = vpop.f32.mrf.mxu1  ;;  %683 = vmax.xlane.f32.xlu1 %v682_v10  ;;  %v407_v13 = vpop.f32.mrf.mxu0  ;;  %v667_v14 = vld [vmem:[#allocation2 + $0x8] sm:$0xff] }
 0x2e4   :  { %461 = vst.msk [vmem:[#allocation2 + $0x18] sm:$0xff] %vm307_vm4, %v455_v12  ;;  %v10664_v15 = vadd.f32 %v667_v14, %v10658_v9 }
 0x2e5   :  { %v9033_v16 = vpop.f32.mrf.mxu0  ;;  %v9038_v17 = vpop.f32.mrf.mxu1 }
 0x2e6   :  { %v685_v19 = vsel %vm307_vm4, %v10664_v15, -inf }
 0x2e7   :  { %v458_v20 = vpop.f32.mrf.mxu1  ;;  %686 = vmax.xlane.f32.xlu0 %v685_v19  ;;  %v668_v21 = vld [vmem:[#allocation2 + $0x10] sm:$0xff] }
 0x2e8   :  { %v676_v22 = vadd.f32 %v668_v21, %v10667_v18 }
 0x2e9   :  { %v9039_v23 = vpop.f32.mrf.mxu1 }
 0x2ea   :  { %v688_v25 = vsel %vm307_vm4, %v676_v22, -inf }
 0x2eb   :  { %689 = vmax.xlane.f32.xlu0 %v688_v25  ;;  %v669_v26 = vld [vmem:[#allocation2 + $0x18] sm:$0xff] }
 0x2ec   :  { %v10674_v27 = vadd.f32 %v669_v26, %v129_v24 }
 0x2ee   :  { %v691_v28 = vsel %vm307_vm4, %v10674_v27, -inf }
 0x2ef   :  { %692 = vmax.xlane.f32.xlu1 %v691_v28  ;;  %v506_v30 = vpop.f32.mrf.mxu0 }
 0x2f0   :  { %512 = vst.msk [vmem:[#allocation2 + $0x20] sm:$0xff] %vm307_vm4, %v506_v30 }
 0x2f1   :  { %v9044_v31 = vpop.f32.mrf.mxu0 }
 0x2f3   :  { %v509_v32 = vpop.f32.mrf.mxu0  ;;  %v557_v33 = vpop.f32.mrf.mxu1 }
 0x2f4   :  { %563 = vst.msk [vmem:[#allocation2 + $0x28] sm:$0xff] %vm307_vm4, %v557_v33 }
 0x2f5   :  { %v9045_v34 = vpop.f32.mrf.mxu0  ;;  %v9050_v35 = vpop.f32.mrf.mxu1 }
 0x2f7   :  { %v560_v37 = vpop.f32.mrf.mxu1  ;;  %v608_v38 = vpop.f32.mrf.mxu0  ;;  %v670_v39 = vld [vmem:[#allocation2 + $0x20] sm:$0xff] }
 0x2f8   :  { %614 = vst.msk [vmem:[#allocation2 + $0x30] sm:$0xff] %vm307_vm4, %v608_v38  ;;  %v678_v40 = vadd.f32 %v670_v39, %v10681_v36  ;;  %v10725_v38 = vpack.c.bf16 %v10646_v59, %v10646_v59 }
 0x2f9   :  { %v9051_v41 = vpop.f32.mrf.mxu1  ;;  %v9056_v42 = vpop.f32.mrf.mxu0 }
 0x2fa   :  { %v694_v44 = vsel %vm307_vm4, %v678_v40, -inf }
 0x2fb   :  { %v659_v45 = vpop.f32.mrf.mxu1  ;;  %695 = vmax.xlane.f32.xlu0 %v694_v44  ;;  %v611_v46 = vpop.f32.mrf.mxu0  ;;  %v671_v47 = vld [vmem:[#allocation2 + $0x28] sm:$0xff] }
 0x2fc   :  { %665 = vst.msk [vmem:[#allocation2 + $0x38] sm:$0xff] %vm307_vm4, %v659_v45  ;;  %v679_v48 = vadd.f32 %v671_v47, %v10686_v43 }
 0x2fd   :  { %v9057_v49 = vpop.f32.mrf.mxu0  ;;  %v9062_v50 = vpop.f32.mrf.mxu1 }
 0x2fe   :  { %v697_v52 = vsel %vm307_vm4, %v679_v48, -inf }
 0x2ff   :  { %v662_v53 = vpop.f32.mrf.mxu1  ;;  %698 = vmax.xlane.f32.xlu1 %v697_v52  ;;  %v672_v55 = vld [vmem:[#allocation2 + $0x30] sm:$0xff] }
 0x300   :  { %v680_v56 = vadd.f32 %v672_v55, %v10692_v51 }
 0x301   :  { %v9063_v57 = vpop.f32.mrf.mxu1 }
 0x302   :  { %v700_v60 = vsel %vm307_vm4, %v680_v56, -inf }
 0x303   :  { %701 = vmax.xlane.f32.xlu0 %v700_v60  ;;  %v673_v61 = vld [vmem:[#allocation2 + $0x38] sm:$0xff] }
 0x304   :  { %v681_v62 = vadd.f32 %v673_v61, %v10697_v58 }
 0x306   :  { %v703_v63 = vsel %vm307_vm4, %v681_v62, -inf }
 0x307   :  { %704 = vmax.xlane.f32.xlu1 %v703_v63 }
 0x318   :  { %880 = vrot.lane.b32.xlu1 %v10630_v54, %s10402_s18 }
 0x319   :  { %826 = vrot.lane.b32.xlu0 %v10630_v54, %s10396_s0 }
 0x36c   :  { %v684_v0 = vpop.xlane.xlu1 %683 }
 0x36d   :  { %v706_v1 = vsub.f32 %v10655_v6, %v684_v0 }
 0x36f   :  { %v714_v3 = vmul.f32 1.442695, %v706_v1 }
 0x370   :  { %v687_v4 = vpop.xlane.xlu0 %686 }
 0x371   :  { %10062 = vpow2.f32 %v714_v3  ;;  %v707_v5 = vsub.f32 %v10664_v15, %v687_v4 }
 0x373   :  { %v716_v7 = vmul.f32 1.442695, %v707_v5 }
 0x374   :  { %v690_v8 = vpop.xlane.xlu0 %689 }
 0x375   :  { %10064 = vpow2.f32 %v716_v7  ;;  %v708_v10 = vsub.f32 %v676_v22, %v690_v8 }
 0x377   :  { %v718_v12 = vmul.f32 1.442695, %v708_v10 }
 0x378   :  { %v693_v28 = vpop.xlane.xlu1 %692 }
 0x379   :  { %10066 = vpow2.f32 %v718_v12  ;;  %v709_v30 = vsub.f32 %v10674_v27, %v693_v28 }
 0x37b   :  { %v720_v32 = vmul.f32 1.442695, %v709_v30 }
 0x37e   :  { %v10063_v13 = vpop.eup %10062 }
 0x37f   :  { %v730_v14 = vsel %vm307_vm4, %v10063_v13, 0.0 }
 0x380   :  { %731 = vadd.xlane.f32.xlu0 %v730_v14 }
 0x382   :  { %v10065_v16 = vpop.eup %10064 }
 0x383   :  { %v733_v17 = vsel %vm307_vm4, %v10065_v16, 0.0 }
 0x384   :  { %734 = vadd.xlane.f32.xlu1 %v733_v17  ;;  %v696_v6 = vpop.xlane.xlu0 %695 }
 0x385   :  { %v710_v19 = vsub.f32 %v678_v40, %v696_v6  ;;  %v995_v6 = vsel %vm778_vm3, %v10725_v38, 0 }
 0x386   :  { %v10710_v20 = vpop.eup %10066 }
 0x387   :  { %v722_v21 = vmul.f32 1.442695, %v710_v19  ;;  %v736_v15 = vsel %vm307_vm4, %v10710_v20, 0.0 }
 0x388   :  { %737 = vadd.xlane.f32.xlu0 %v736_v15  ;;  %v699_v31 = vpop.xlane.xlu1 %698 }
 0x389   :  { %10068 = vpow2.f32 %v722_v21  ;;  %v711_v33 = vsub.f32 %v679_v48, %v699_v31 }
 0x38a   :  { %10070 = vpow2.f32 %v720_v32 }
 0x38b   :  { %v724_v35 = vmul.f32 1.442695, %v711_v33 }
 0x38c   :  { %v702_v22 = vpop.xlane.xlu0 %701 }
 0x38d   :  { %10072 = vpow2.f32 %v724_v35  ;;  %v712_v39 = vsub.f32 %v680_v56, %v702_v22 }
 0x38f   :  { %v726_v27 = vmul.f32 1.442695, %v712_v39 }
 0x390   :  { %v827_v23 = vpop.permute.xlu0 %826  ;;  %v705_v34 = vpop.xlane.xlu1 %704 }
 0x391   :  { %v832_v24 = vsel %vm778_vm3, %v827_v23, 0  ;;  %v713_v37 = vsub.f32 %v681_v62, %v705_v34 }
 0x392   :  { %9071 = vmatpush3.bf16.msra.mxu1 %v832_v24 }
 0x393   :  { %9082 = vmatprep.subr.bf16.mxu1 %v10394_v29 }
 0x394   :  { %v881_v48 = vpop.permute.xlu1 %880 }
 0x395   :  { %936 = vrot.lane.b32.xlu1 %v10630_v54, %s10401_s16  ;;  %v728_v54 = vmul.f32 1.442695, %v713_v37  ;;  %v886_v61 = vsel %vm778_vm3, %v881_v48, 0 }
 0x396   :  { %v10718_v25 = vpop.eup %10068 }
 0x397   :  { %v742_v26 = vsel %vm307_vm4, %v10718_v25, 0.0  ;;  %10074 = vpow2.f32 %v728_v54  ;;  %v10071_v40 = vpop.eup %10070 }
 0x398   :  { %743 = vadd.xlane.f32.xlu0 %v742_v26  ;;  %v739_v41 = vsel %vm307_vm4, %v10071_v40, 0.0  ;;  %10076 = vpow2.f32 %v726_v27 }
 0x39a   :  { %v10073_v42 = vpop.eup %10072 }
 0x39b   :  { %v745_v44 = vsel %vm307_vm4, %v10073_v42, 0.0 }
 0x3a4   :  { %v10731_v45 = vpop.eup %10074 }
 0x3a5   :  { %v751_v59 = vsel %vm307_vm4, %v10731_v45, 0.0  ;;  %v10735_v46 = vpop.eup %10076 }
 0x3a6   :  { %v748_v47 = vsel %vm307_vm4, %v10735_v46, 0.0 }
 0x3ae   :  { %1041 = vrot.lane.b32.xlu0 %v10725_v38, %s10396_s0 }
 0x3b9   :  { %740 = vadd.xlane.f32.xlu1 %v739_v41 }
 0x3bd   :  { %746 = vadd.xlane.f32.xlu1 %v745_v44 }
 0x3c1   :  { %752 = vadd.xlane.f32.xlu1 %v751_v59 }
 0x3cd   :  { %749 = vadd.xlane.f32.xlu0 %v748_v47 }
 0x3d2   :  { %1094 = vrot.lane.b32.xlu1 %v10725_v38, %s10402_s18 }
 0x3e3   :  { %1149 = vrot.lane.b32.xlu0 %v10725_v38, %s10401_s16 }
 0x409   :  { %v732_v49 = vpop.xlane.xlu0 %731 }
 0x40a   :  { %10078 = vrcp.f32 %v732_v49 }
 0x40d   :  { %v735_v50 = vpop.xlane.xlu1 %734 }
 0x40e   :  { %10080 = vrcp.f32 %v735_v50 }
 0x411   :  { %v937_v60 = vpop.permute.xlu1 %936  ;;  %v738_v0 = vpop.xlane.xlu0 %737 }
 0x412   :  { %v942_v63 = vsel %vm778_vm3, %v937_v60, 0  ;;  %10082 = vrcp.f32 %v738_v0 }
 0x417   :  { %v10079_v52 = vpop.eup %10078 }
 0x418   :  { %v762_v55 = vmul.f32 %v10079_v52, %v10063_v13 }
 0x41b   :  { %v10081_v53 = vpop.eup %10080 }
 0x41c   :  { %v763_v56 = vmul.f32 %v10081_v53, %v10065_v16 }
 0x41e   :  { %v770_v57 = vpack.c.bf16 %v763_v56, %v762_v55  ;;  %v9927_v56 = vld [vmem:[%s10455_s8 + $0x10] sm:$0xff]  }
 0x41f   :  { %v10083_v5 = vpop.eup %10082 }
 0x420   :  { %9067 = vmatmul.mubr.msk.bf16.vlgmr.msra.gmra.mxu0 %vm307_vm4, %v770_v57  ;;  %v824_v62 = vrot.slane %v770_v57, 4  ;;  %v764_v8 = vmul.f32 %v10083_v5, %v10710_v20 }
 0x421   :  { %9077 = vmatpush3.bf16.msra.mxu0 %v886_v61  ;;  %9078 = vmatprep.mubr.msk.bf16.mxu0 %vm10395_vm1, %v10394_v29  ;;  %v744_v3 = vpop.xlane.xlu0 %743 }
 0x422   :  { %9073 = vmatmul.mubr.msk.bf16.vlgmr.msra.gmra.mxu1 %vm307_vm4, %v824_v62  ;;  %9088 = vmatprep.subr.bf16.mxu0 %v10394_v29 }
 0x423   :  { %9083 = vmatpush3.bf16.msra.mxu1 %v942_v63  ;;  %9084 = vmatprep.mubr.msk.bf16.mxu1 %vm10395_vm1, %v10394_v29  ;;  %v9928_v63 = vld [vmem:[%s10455_s8 + $0x8] sm:$0xff]  }
 0x424   :  { %9094 = vmatprep.subr.bf16.mxu1 %v10394_v29 }
 0x425   :  { %v1042_v12 = vpop.permute.xlu0 %1041 }
 0x426   :  { %v1047_v20 = vsel %vm778_vm3, %v1042_v12, 0 }
 0x442   :  { %v741_v1 = vpop.xlane.xlu1 %740 }
 0x443   :  { %10084 = vrcp.f32 %v741_v1 }
 0x444   :  { %10086 = vrcp.f32 %v744_v3  ;;  %v9929_v3 = vld [vmem:[%s10455_s8] sm:$0xff]  }
 0x446   :  { %v747_v4 = vpop.xlane.xlu1 %746 }
 0x447   :  { %10088 = vrcp.f32 %v747_v4 }
 0x44a   :  { %v753_v13 = vpop.xlane.xlu1 %752 }
 0x44b   :  { %10090 = vrcp.f32 %v753_v13 }
 0x44e   :  { %v1095_v24 = vpop.permute.xlu1 %1094 }
 0x44f   :  { %v1100_v28 = vsel %vm778_vm3, %v1095_v24, 0 }
 0x450   :  { %v10085_v7 = vpop.eup %10084 }
 0x451   :  { %v765_v10 = vmul.f32 %v10085_v7, %v10071_v40  ;;  %v10087_v14 = vpop.eup %10086 }
 0x452   :  { %v766_v22 = vmul.f32 %v10087_v14, %v10718_v25 }
 0x453   :  { %v771_v16 = vpack.c.bf16 %v765_v10, %v764_v8 }
 0x454   :  { %v10089_v17 = vpop.eup %10088 }
 0x455   :  { %9079 = vmatmul.mubr.msk.bf16.vlgmr.msra.gmra.mxu0 %vm307_vm4, %v771_v16  ;;  %v935_v19 = vrot.slane %v771_v16, 4  ;;  %v767_v21 = vmul.f32 %v10089_v17, %v10073_v42 }
 0x456   :  { %9089 = vmatpush3.bf16.msra.mxu0 %v995_v6  ;;  %v750_v15 = vpop.xlane.xlu0 %749  ;;  %9090 = vmatprep.mubr.msk.bf16.mxu0 %vm10395_vm1, %v10394_v29 }
 0x457   :  { %10092 = vrcp.f32 %v750_v15  ;;  %9085 = vmatmul.mubr.msk.bf16.vlgmr.msra.gmra.mxu1 %vm307_vm4, %v935_v19  ;;  %9100 = vmatprep.subr.bf16.mxu0 %v10394_v29  ;;  %v772_v23 = vpack.c.bf16 %v767_v21, %v766_v22 }
 0x458   :  { %9095 = vmatpush3.bf16.msra.mxu1 %v1047_v20  ;;  %9096 = vmatprep.mubr.msk.bf16.mxu1 %vm10395_vm1, %v10394_v29  ;;  %v10091_v31 = vpop.eup %10090 }
 0x459   :  { %9106 = vmatprep.subr.bf16.mxu1 %v10394_v29  ;;  %v1039_v30 = vrot.slane %v772_v23, 4  ;;  %v769_v34 = vmul.f32 %v10091_v31, %v10731_v45  ;;  %v9926_v45 = vld [vmem:[%s10455_s8 + $0x18] sm:$0xff]  }
 0x45a   :  { %v1150_v26 = vpop.permute.xlu0 %1149 }
 0x45b   :  { %v1155_v25 = vsel %vm778_vm3, %v1150_v26, 0 }
 0x45d   :  { %9091 = vmatmul.mubr.msk.bf16.vlgmr.msra.gmra.mxu0 %vm307_vm4, %v772_v23 }
 0x45e   :  { %9101 = vmatpush3.bf16.msra.mxu0 %v1100_v28  ;;  %9102 = vmatprep.mubr.msk.bf16.mxu0 %vm10395_vm1, %v10394_v29  ;;  %v10300_v28 = vld [vmem:[%s10415_s5] sm:$0xff] }
 0x45f   :  { %9097 = vmatmul.mubr.msk.bf16.vlgmr.msra.gmra.mxu1 %vm307_vm4, %v1039_v30  ;;  %9112 = vmatprep.subr.bf16.mxu0 %v10394_v29 }
 0x460   :  { %9107 = vmatpush3.bf16.msra.mxu1 %v1155_v25  ;;  %9108 = vmatprep.mubr.msk.bf16.mxu1 %vm10395_vm1, %v10394_v29 }
 0x461   :  { %9124 = vmatprep.subr.bf16.mxu1 %v10394_v29 }
 0x464   :  { %v10093_v32 = vpop.eup %10092 }
 0x465   :  { %v768_v33 = vmul.f32 %v10093_v32, %v10735_v46 }
 0x467   :  { %v773_v35 = vpack.c.bf16 %v769_v34, %v768_v33  ;;  %v10301_v33 = vld [vmem:[%s10415_s5 + $0x8] sm:$0xff]  ;;  %s12237_s5 = sld [smem:[#allocation21_spill]] }
 0x469   :  { %9103 = vmatmul.mubr.msk.bf16.vlgmr.msra.gmra.mxu0 %vm307_vm4, %v773_v35  ;;  %v1148_v37 = vrot.slane %v773_v35, 4 }
 0x46a   :  { %9120 = vmatprep.mubr.msk.bf16.mxu0 %vm10395_vm1, %v10394_v29  ;;  %9113 = vmatpush3.bf16.msra.mxu0 %v9926_v45  ;;  %v9936_v45 = vld [vmem:[%s10470_s24 + $0x28] sm:$0xff]  }
 0x46b   :  { %9109 = vmatmul.mubr.msk.bf16.vlgmr.msra.gmra.mxu1 %vm307_vm4, %v1148_v37  ;;  %9114 = vmatprep.subr.bf16.mxu0 %v10394_v29 }
 0x46c   :  { %9132 = vmatprep.mubr.msk.bf16.mxu1 %vm10395_vm1, %v10394_v29 }
 0x46e   :  { %9115 = vmatpush3.bf16.msra.mxu0 %v9927_v56 }
 0x46f   :  { %9116 = vmatprep.subr.bf16.mxu0 %v10394_v29 }
 0x472   :  { %9117 = vmatpush3.bf16.msra.mxu0 %v9928_v63 }
 0x473   :  { %9118 = vmatprep.subr.bf16.mxu0 %v10394_v29 }
 0x476   :  { %9119 = vmatpush3.bf16.msra.mxu0 %v9929_v3  ;;  %v9940_v3 = vld [vmem:[%s10470_s24 + $0x8] sm:$0xff]  }
 0x477   :  { %9136 = vmatprep.subr.bf16.mxu0 %v10394_v29 }
 0x4e0   :  { %v816_v38 = vpop.f32.mrf.mxu0 }
 0x4e1   :  { %822 = vst.msk [vmem:[#allocation3] sm:$0xff] %vm260_vm2, %v816_v38 }
 0x4e2   :  { %v9068_v54 = vpop.f32.mrf.mxu0  ;;  %v868_v39 = vpop.f32.mrf.mxu1 }
 0x4e3   :  { %875 = vrot.lane.b32.xlu1 %v868_v39, %s10400_s15  ;;  %v9930_v39 = vld [vmem:[%s10465_s19 + $0x18] sm:$0xff]  }
 0x4e4   :  { %v819_v40 = vpop.f32.mrf.mxu0  ;;  %v9074_v27 = vpop.f32.mrf.mxu1  ;;  %9125 = vmatpush3.bf16.msra.mxu1 %v9930_v39 }
 0x4e5   :  { %v9931_v40 = vld [vmem:[%s10465_s19 + $0x10] sm:$0xff]   ;;  %9126 = vmatprep.subr.bf16.mxu1 %v10394_v29  ;;  %v9932_v27 = vld [vmem:[%s10465_s19 + $0x8] sm:$0xff]  }
 0x4e6   :  { %v9069_v41 = vpop.f32.mrf.mxu0  ;;  %v871_v42 = vpop.f32.mrf.mxu1 }
 0x4e7   :  { %v9933_v41 = vld [vmem:[%s10465_s19] sm:$0xff]   ;;  %v9934_v42 = vld [vmem:[%s10470_s24 + $0x38] sm:$0xff]  }
 0x4e8   :  { %v9075_v44 = vpop.f32.mrf.mxu1  ;;  %9127 = vmatpush3.bf16.msra.mxu1 %v9931_v40 }
 0x4e9   :  { %9128 = vmatprep.subr.bf16.mxu1 %v10394_v29  ;;  %v9935_v44 = vld [vmem:[%s10470_s24 + $0x30] sm:$0xff]  }
 0x4ec   :  { %9129 = vmatpush3.bf16.msra.mxu1 %v9932_v27 }
 0x4ed   :  { %9130 = vmatprep.subr.bf16.mxu1 %v10394_v29 }
 0x4f0   :  { %9131 = vmatpush3.bf16.msra.mxu1 %v9933_v41 }
 0x515   :  { %v922_v59 = vpop.f32.mrf.mxu0 }
 0x516   :  { %929 = vrot.lane.b32.xlu1 %v922_v59, %s10399_s11  ;;  %v9937_v59 = vld [vmem:[%s10470_s24 + $0x20] sm:$0xff]  }
 0x517   :  { %v9080_v46 = vpop.f32.mrf.mxu0  ;;  %v978_v47 = vpop.f32.mrf.mxu1 }
 0x518   :  { %v9938_v46 = vld [vmem:[%s10470_s24 + $0x18] sm:$0xff]  }
 0x519   :  { %v925_v48 = vpop.f32.mrf.mxu0  ;;  %v9086_v49 = vpop.f32.mrf.mxu1 }
 0x51a   :  { %985 = vrot.lane.b32.xlu1 %v978_v47, %s10398_s10  ;;  %v9939_v47 = vld [vmem:[%s10470_s24 + $0x10] sm:$0xff]  }
 0x51b   :  { %v9081_v50 = vpop.f32.mrf.mxu0  ;;  %v981_v52 = vpop.f32.mrf.mxu1 }
 0x51d   :  { %v9087_v53 = vpop.f32.mrf.mxu1  ;;  %v1031_v55 = vpop.f32.mrf.mxu0 }
 0x51e   :  { %1037 = vst.msk [vmem:[#allocation3 + $0x8] sm:$0xff] %vm260_vm2, %v1031_v55 }
 0x51f   :  { %v9092_v57 = vpop.f32.mrf.mxu0  ;;  %v1083_v60 = vpop.f32.mrf.mxu1 }
 0x520   :  { %1090 = vrot.lane.b32.xlu0 %v1083_v60, %s10400_s15 }
 0x521   :  { %v1034_v61 = vpop.f32.mrf.mxu0  ;;  %v9098_v62 = vpop.f32.mrf.mxu1 }
 0x522   :  { %v8368_v61 = vld [vmem:[%s10460_s14] ss:$0 sm:$0xff] }
 0x523   :  { %v9093_v0 = vpop.f32.mrf.mxu0  ;;  %v1086_v1 = vpop.f32.mrf.mxu1 }
 0x525   :  { %v9099_v4 = vpop.f32.mrf.mxu1 }
 0x526   :  { %v9941_v4 = vld [vmem:[%s10470_s24] sm:$0xff]  }
 0x529   :  { %v1136_v5 = vpop.f32.mrf.mxu0 }
 0x52a   :  { %1143 = vrot.lane.b32.xlu0 %v1136_v5, %s10399_s11 }
 0x52b   :  { %v9104_v7 = vpop.f32.mrf.mxu0  ;;  %v1191_v8 = vpop.f32.mrf.mxu1 }
 0x52d   :  { %v1139_v10 = vpop.f32.mrf.mxu0  ;;  %v9110_v12 = vpop.f32.mrf.mxu1 }
 0x52e   :  { %1198 = vrot.lane.b32.xlu0 %v1191_v8, %s10398_s10 }
 0x52f   :  { %v9105_v13 = vpop.f32.mrf.mxu0  ;;  %v1194_v14 = vpop.f32.mrf.mxu1 }
 0x531   :  { %v9111_v16 = vpop.f32.mrf.mxu1 }
 0x555   :  { %v876_v17 = vpop.permute.xlu1 %875 }
 0x556   :  { %879 = vst.msk [vmem:[#allocation3] sm:$0xff] %vm878_vm5, %v876_v17 }
 0x588   :  { %v930_v6 = vpop.permute.xlu1 %929 }
 0x589   :  { %933 = vst.msk [vmem:[#allocation3] sm:$0xff] %vm932_vm6, %v930_v6 }
 0x58c   :  { %v986_v19 = vpop.permute.xlu1 %985 }
 0x58d   :  { %989 = vst.msk [vmem:[#allocation3] sm:$0xff] %vm988_vm7, %v986_v19 }
 0x592   :  { %v1091_v21 = vpop.permute.xlu0 %1090 }
 0x593   :  { %1093 = vst.msk [vmem:[#allocation3 + $0x8] sm:$0xff] %vm878_vm5, %v1091_v21 }
 0x594   :  { %v1202_v22 = vld [vmem:[#allocation3] sm:$0xff] }
 0x59c   :  { %v1144_v15 = vpop.permute.xlu0 %1143 }
 0x59d   :  { %1146 = vst.msk [vmem:[#allocation3 + $0x8] sm:$0xff] %vm932_vm6, %v1144_v15 }
 0x5a0   :  { %v1199_v20 = vpop.permute.xlu0 %1198 }
 0x5a1   :  { %1201 = vst.msk [vmem:[#allocation3 + $0x8] sm:$0xff] %vm988_vm7, %v1199_v20 }
 0x5a8   :  { %v1203_v23 = vld [vmem:[#allocation3 + $0x8] sm:$0xff] }
 0x5a9   :  { %v1212_v24 = vpack.c.bf16 %v1203_v23, %v1202_v22 }
 0x5ab   :  { %9121 = vmatmul.mubr.msk.bf16.vlgmr.msra.gmra.mxu0 %vm137_vm0, %v1212_v24 }
 0x5ac   :  { %9152 = vmatprep.mubr.msk.bf16.mxu0 %vm10395_vm1, %v10394_v29  ;;  %9137 = vmatpush3.bf16.msra.mxu0 %v9934_v42 }
 0x5ad   :  { %9138 = vmatprep.subr.bf16.mxu0 %v10394_v29 }
 0x5b0   :  { %9139 = vmatpush3.bf16.msra.mxu0 %v9935_v44  ;;  %v8383_v44 = vld [vmem:[%s10445_s29 + $0x1] ss:$0 sm:$0xff]  ;;  %s12241_s29 = sld [smem:[#allocation14_spill]] }
 0x5b1   :  { %9140 = vmatprep.subr.bf16.mxu0 %v10394_v29 }
 0x5b4   :  { %9141 = vmatpush3.bf16.msra.mxu0 %v9936_v45 }
 0x5b5   :  { %9142 = vmatprep.subr.bf16.mxu0 %v10394_v29 }
 0x5b8   :  { %9143 = vmatpush3.bf16.msra.mxu0 %v9937_v59 }
 0x5b9   :  { %9144 = vmatprep.subr.bf16.mxu0 %v10394_v29 }
 0x5bc   :  { %9145 = vmatpush3.bf16.msra.mxu0 %v9938_v46 }
 0x5bd   :  { %9146 = vmatprep.subr.bf16.mxu0 %v10394_v29 }
 0x5c0   :  { %9147 = vmatpush3.bf16.msra.mxu0 %v9939_v47 }
 0x5c1   :  { %9148 = vmatprep.subr.bf16.mxu0 %v10394_v29 }
 0x5c4   :  { %9149 = vmatpush3.bf16.msra.mxu0 %v9940_v3 }
 0x5c5   :  { %9150 = vmatprep.subr.bf16.mxu0 %v10394_v29 }
 0x5c8   :  { %9151 = vmatpush3.bf16.msra.mxu0 %v9941_v4 }
 0x5c9   :  { %9168 = vmatprep.subr.bf16.mxu0 %v10394_v29 }
 0x66b   :  { %v1274_v26 = vpop.f32.mrf.mxu0 }
 0x66c   :  { %v10810_v30 = vadd.f32 %v10300_v28, %v1274_v26  ;;  %v9942_v26 = vld [vmem:[%s10450_s3 + $0x70] ss:$8 sps:$4 sm:$0xff]   ;;  %v9944_v28 = vld [vmem:[%s10450_s3 + $0x74] ss:$8 sps:$4 sm:$0xff]  }
 0x66d   :  { %v9122_v25 = vpop.f32.mrf.mxu0  ;;  %1582 = vmatprep.subr.bf16.mxu1 %v9944_v28 }
 0x66e   :  { %v1284_v31 = vmul.f32 %v10810_v30, %v10810_v30  ;;  %v9945_v25 = vld [vmem:[%s10450_s3 + $0x60] ss:$8 sps:$4 sm:$0xff]  }
 0x66f   :  { %v1277_v32 = vpop.f32.mrf.mxu0 }
 0x670   :  { %v10815_v34 = vadd.f32 %v10301_v33, %v1277_v32  ;;  %v1286_v35 = vsel %vm137_vm0, %v1284_v31, 0.0  ;;  %v9950_v31 = vld [vmem:[%s10450_s3 + $0x54] ss:$8 sps:$4 sm:$0xff]   ;;  %v9948_v32 = vld [vmem:[%s10450_s3 + $0x50] ss:$8 sps:$4 sm:$0xff]  }
 0x671   :  { %1287 = vadd.xlane.f32.xlu1 %v1286_v35  ;;  %v9123_v37 = vpop.f32.mrf.mxu0  ;;  %v9953_v33 = vld [vmem:[%s10450_s3 + $0x44] ss:$8 sps:$4 sm:$0xff]  }
 0x672   :  { %v1285_v38 = vmul.f32 %v10815_v34, %v10815_v34 }
 0x674   :  { %v1289_v54 = vsel %vm137_vm0, %v1285_v38, 0.0 }
 0x675   :  { %1290 = vadd.xlane.f32.xlu0 %v1289_v54 }
 0x6fa   :  { %v1288_v48 = vpop.xlane.xlu1 %1287 }
 0x6fb   :  { %v1292_v49 = vmul.f32 0.015625, %v1288_v48 }
 0x6fd   :  { %v1294_v50 = vadd.f32 1e-06, %v1292_v49 }
 0x6fe   :  { %v1291_v52 = vpop.xlane.xlu0 %1290 }
 0x6ff   :  { %10094 = vrsqrt.f32 %v1294_v50  ;;  %v1293_v53 = vmul.f32 0.015625, %v1291_v52 }
 0x701   :  { %v1295_v55 = vadd.f32 1e-06, %v1293_v53 }
 0x703   :  { %10096 = vrsqrt.f32 %v1295_v55 }
 0x70c   :  { %v10095_v56 = vpop.eup %10094 }
 0x70d   :  { %v1298_v57 = vmul.f32 %v10095_v56, %v10810_v30 }
 0x70f   :  { %v1306_v63 = vmul.f32 %v8368_v61, %v1298_v57 }
 0x710   :  { %v10097_v60 = vpop.eup %10096 }
 0x711   :  { %v1299_v62 = vmul.f32 %v10097_v60, %v10815_v34 }
 0x713   :  { %v1307_v0 = vmul.f32 %v8368_v61, %v1299_v62 }
 0x715   :  { %v1316_v1 = vpack.c.bf16 %v1307_v0, %v1306_v63 }
 0x717   :  { %9133 = vmatmul.mubr.msk.bf16.vlgmr.msra.gmra.mxu1 %vm137_vm0, %v1316_v1 }
 0x718   :  { %1606 = vmatprep.mubr.bf16.mxu1 %v10393_v11  ;;  %1583 = vmatpush1.bf16.msra.mxu1 %v9942_v26 }
 0x7d7   :  { %v1378_v5 = vpop.f32.mrf.mxu1 }
 0x7d8   :  { %v1385_v10 = vmax.f32 %v1378_v5, 0.0 }
 0x7d9   :  { %v9134_v7 = vpop.f32.mrf.mxu1 }
 0x7db   :  { %v1381_v8 = vpop.f32.mrf.mxu1 }
 0x7dc   :  { %v1386_v12 = vmax.f32 %v1381_v8, 0.0 }
 0x7dd   :  { %v9135_v13 = vpop.f32.mrf.mxu1 }
 0x7de   :  { %v1403_v14 = vpack.c.bf16 %v1386_v12, %v1385_v10 }
 0x7e0   :  { %9153 = vmatmul.mubr.bf16.vlgmr.msra.gmra.mxu0 %v1403_v14 }
 0x7e1   :  { %9170 = vmatprep.mubr.msk.bf16.mxu0 %vm10395_vm1, %v10394_v29 }
 0x8a0   :  { %v1486_v16 = vpop.f32.mrf.mxu0 }
 0x8a1   :  { %v10852_v17 = vadd.f32 %v1486_v16, %v10810_v30  ;;  %v9947_v30 = vld [vmem:[%s10450_s3 + $0x64] ss:$8 sps:$4 sm:$0xff]  }
 0x8a2   :  { %v9154_v6 = vpop.f32.mrf.mxu0  ;;  %1584 = vmatprep.subr.bf16.mxu1 %v9947_v30 }
 0x8a3   :  { %v1497_v19 = vmul.f32 %v10852_v17, %v10852_v17  ;;  %1585 = vmatpush1.bf16.msra.mxu1 %v9945_v25 }
 0x8a4   :  { %v1489_v21 = vpop.f32.mrf.mxu0  ;;  %1586 = vmatprep.subr.bf16.mxu1 %v9950_v31 }
 0x8a5   :  { %v10857_v15 = vadd.f32 %v1489_v21, %v10815_v34  ;;  %v1499_v20 = vsel %vm137_vm0, %v1497_v19, 0.0  ;;  %v9951_v34 = vld [vmem:[%s10450_s3 + $0x40] ss:$8 sps:$4 sm:$0xff]   ;;  %s12243_s3 = sld [smem:[#allocation11_spill]] }
 0x8a6   :  { %1500 = vadd.xlane.f32.xlu0 %v1499_v20  ;;  %v9155_v22 = vpop.f32.mrf.mxu0 }
 0x8a7   :  { %v1498_v23 = vmul.f32 %v10857_v15, %v10857_v15  ;;  %1587 = vmatpush1.bf16.msra.mxu1 %v9948_v32 }
 0x8a8   :  { %1588 = vmatprep.subr.bf16.mxu1 %v9953_v33 }
 0x8a9   :  { %v1502_v24 = vsel %vm137_vm0, %v1498_v23, 0.0 }
 0x8aa   :  { %1503 = vadd.xlane.f32.xlu1 %v1502_v24 }
 0x8ab   :  { %1589 = vmatpush1.bf16.msra.mxu1 %v9951_v34 }
 0x8ac   :  { %9156 = vmatprep.subr.bf16.mxu1 %v10394_v29 }
 0x92f   :  { %v1501_v35 = vpop.xlane.xlu0 %1500 }
 0x930   :  { %v1505_v37 = vmul.f32 0.015625, %v1501_v35 }
 0x932   :  { %v1507_v38 = vadd.f32 1e-06, %v1505_v37 }
 0x933   :  { %v1504_v54 = vpop.xlane.xlu1 %1503 }
 0x934   :  { %10098 = vrsqrt.f32 %v1507_v38  ;;  %v1506_v39 = vmul.f32 0.015625, %v1504_v54 }
 0x936   :  { %v1508_v40 = vadd.f32 1e-06, %v1506_v39 }
 0x938   :  { %10100 = vrsqrt.f32 %v1508_v40 }
 0x941   :  { %v10099_v27 = vpop.eup %10098 }
 0x942   :  { %v1511_v41 = vmul.f32 %v10099_v27, %v10852_v17 }
 0x944   :  { %v1519_v59 = vmul.f32 %v8383_v44, %v1511_v41 }
 0x945   :  { %v10101_v42 = vpop.eup %10100 }
 0x946   :  { %v1512_v45 = vmul.f32 %v10101_v42, %v10857_v15 }
 0x948   :  { %v1520_v46 = vmul.f32 %v8383_v44, %v1512_v45 }
 0x94a   :  { %v1530_v47 = vpack.c.bf16 %v1520_v46, %v1519_v59 }
 0x94c   :  { %8400 = vmatmul.mubr.msk.bf16.vlgmr.msra.gmra.mxu1 %vm137_vm0, %v1530_v47 }
 0x94d   :  { %9158 = vmatprep.mubr.msk.bf16.mxu1 %vm10395_vm1, %v10394_v29 }
 0xa0c   :  { %v1608_v48 = vpop.f32.mrf.mxu1 }
 0xa0d   :  { %v1617_v49 = vpack.c.bf16 %v1608_v48, %v1608_v48 }
 0xa0e   :  { %v1610_v50 = vpop.f32.mrf.mxu1 }
 0xa0f   :  { %1670 = vrot.lane.b32.xlu1 %v1617_v49, %s10398_s10  ;;  %1619 = vrot.lane.b32.xlu0 %v1617_v49, %s10397_s7  ;;  %v10916_v14 = vpack.c.bf16 %v1610_v50, %v1610_v50 }
 0xa10   :  { %v1612_v52 = vpop.f32.mrf.mxu1 }
 0xa11   :  { %v1821_v53 = vpack.c.bf16 %v1612_v52, %v1612_v52  ;;  %v2138_v19 = vsel %vm778_vm3, %v10916_v14, 0 }
 0xa12   :  { %v10937_v23 = vpop.f32.mrf.mxu1 }
 0xa13   :  { %1668 = vrot.lane.b32.xlu1 %v1617_v49, %s10396_s0  ;;  %1721 = vrot.lane.b32.xlu0 %v1617_v49, %s10399_s11 }
 0xa17   :  { %1772 = vrot.lane.b32.xlu1 %v1617_v49, %s10400_s15  ;;  %1719 = vrot.lane.b32.xlu0 %v1617_v49, %s10402_s18 }
 0xa1b   :  { %1770 = vrot.lane.b32.xlu1 %v1617_v49, %s10401_s16  ;;  %1823 = vrot.lane.b32.xlu0 %v1821_v53, %s10397_s7 }
 0xa1f   :  { %1874 = vrot.lane.b32.xlu1 %v1821_v53, %s10398_s10  ;;  %1872 = vrot.lane.b32.xlu0 %v1821_v53, %s10396_s0 }
 0xa23   :  { %1925 = vrot.lane.b32.xlu1 %v1821_v53, %s10399_s11  ;;  %1976 = vrot.lane.b32.xlu0 %v1821_v53, %s10400_s15 }
 0xa27   :  { %1923 = vrot.lane.b32.xlu1 %v1821_v53, %s10402_s18  ;;  %1974 = vrot.lane.b32.xlu0 %v1821_v53, %s10401_s16 }
 0xa81   :  { %v1671_v55 = vpop.permute.xlu1 %1670  ;;  %v1620_v56 = vpop.permute.xlu0 %1619 }
 0xa82   :  { %v1625_v57 = vsel %vm260_vm2, %v1620_v56, 0  ;;  %v1676_v1 = vsel %vm260_vm2, %v1671_v55, 0 }
 0xa83   :  { %9157 = vmatpush3.bf16.xpose.msra.mxu1 %v1625_v57 }
 0xa84   :  { %9162 = vmatprep.subr.bf16.mxu1 %v10394_v29 }
 0xa85   :  { %v1669_v60 = vpop.permute.xlu1 %1668  ;;  %v1722_v61 = vpop.permute.xlu0 %1721 }
 0xa86   :  { %v1727_v62 = vsel %vm260_vm2, %v1722_v61, 0 }
 0xa87   :  { %9169 = vmatpush3.bf16.xpose.msra.mxu0 %v1727_v62 }
 0xa88   :  { %9180 = vmatprep.subr.bf16.mxu0 %v10394_v29 }
 0xa89   :  { %v1773_v63 = vpop.permute.xlu1 %1772  ;;  %v1720_v0 = vpop.permute.xlu0 %1719 }
 0xa8a   :  { %9159 = vmatmul.mubr.msk.bf16.vlgmr.msra.gmra.mxu1 %vm260_vm2, %v1617_v49  ;;  %v1778_v8 = vsel %vm260_vm2, %v1773_v63, 0  ;;  %v10302_v63 = vld [vmem:[%s10425_s13 + $0x18] sm:$0xff]  ;;  %s12238_s13 = sld [smem:[#allocation10_spill]] }
 0xa8b   :  { %9163 = vmatpush3.bf16.xpose.msra.mxu1 %v1676_v1  ;;  %9164 = vmatprep.mubr.msk.bf16.mxu1 %vm10395_vm1, %v10394_v29 }
 0xa8c   :  { %9174 = vmatprep.subr.bf16.mxu1 %v10394_v29 }
 0xa8d   :  { %v1771_v3 = vpop.permute.xlu1 %1770  ;;  %v1824_v4 = vpop.permute.xlu0 %1823 }
 0xa8e   :  { %v1829_v5 = vsel %vm260_vm2, %v1824_v4, 0  ;;  %9171 = vmatmul.mubr.msk.bf16.vlgmr.msra.gmra.mxu0 %vm260_vm2, %v1720_v0 }
 0xa8f   :  { %9181 = vmatpush3.bf16.xpose.msra.mxu0 %v1829_v5  ;;  %9182 = vmatprep.mubr.msk.bf16.mxu0 %vm10395_vm1, %v10394_v29 }
 0xa90   :  { %9192 = vmatprep.subr.bf16.mxu0 %v10394_v29 }
 0xa91   :  { %v1875_v7 = vpop.permute.xlu1 %1874  ;;  %v1873_v13 = vpop.permute.xlu0 %1872 }
 0xa92   :  { %9165 = vmatmul.mubr.msk.bf16.vlgmr.msra.gmra.mxu1 %vm260_vm2, %v1669_v60  ;;  %v1880_v16 = vsel %vm260_vm2, %v1875_v7, 0 }
 0xa93   :  { %9175 = vmatpush3.bf16.xpose.msra.mxu1 %v1778_v8  ;;  %9176 = vmatprep.mubr.msk.bf16.mxu1 %vm10395_vm1, %v10394_v29 }
 0xa94   :  { %9186 = vmatprep.subr.bf16.mxu1 %v10394_v29 }
 0xa95   :  { %v1926_v10 = vpop.permute.xlu1 %1925  ;;  %v1977_v21 = vpop.permute.xlu0 %1976 }
 0xa96   :  { %v1931_v12 = vsel %vm260_vm2, %v1926_v10, 0  ;;  %9183 = vmatmul.mubr.msk.bf16.vlgmr.msra.gmra.mxu0 %vm260_vm2, %v1821_v53  ;;  %v1982_v20 = vsel %vm260_vm2, %v1977_v21, 0 }
 0xa97   :  { %9193 = vmatpush3.bf16.xpose.msra.mxu0 %v1931_v12  ;;  %9194 = vmatprep.mubr.msk.bf16.mxu0 %vm10395_vm1, %v10394_v29 }
 0xa98   :  { %9204 = vmatprep.subr.bf16.mxu0 %v10394_v29 }
 0xa99   :  { %v1924_v6 = vpop.permute.xlu1 %1923  ;;  %v1975_v22 = vpop.permute.xlu0 %1974 }
 0xa9a   :  { %9177 = vmatmul.mubr.msk.bf16.vlgmr.msra.gmra.mxu1 %vm260_vm2, %v1771_v3 }
 0xa9b   :  { %9187 = vmatpush3.bf16.xpose.msra.mxu1 %v1880_v16  ;;  %9188 = vmatprep.mubr.msk.bf16.mxu1 %vm10395_vm1, %v10394_v29 }
 0xa9c   :  { %9198 = vmatprep.subr.bf16.mxu1 %v10394_v29 }
 0xa9e   :  { %9195 = vmatmul.mubr.msk.bf16.vlgmr.msra.gmra.mxu0 %vm260_vm2, %v1924_v6 }
 0xa9f   :  { %9205 = vmatpush3.bf16.msra.mxu0 %v2138_v19  ;;  %9206 = vmatprep.mubr.msk.bf16.mxu0 %vm10395_vm1, %v10394_v29 }
 0xaa0   :  { %9216 = vmatprep.subr.bf16.mxu0 %v10394_v29 }
 0xaa2   :  { %9189 = vmatmul.mubr.msk.bf16.vlgmr.msra.gmra.mxu1 %vm260_vm2, %v1873_v13 }
 0xaa3   :  { %9199 = vmatpush3.bf16.xpose.msra.mxu1 %v1982_v20  ;;  %9200 = vmatprep.mubr.msk.bf16.mxu1 %vm10395_vm1, %v10394_v29 }
 0xaa4   :  { %9210 = vmatprep.subr.bf16.mxu1 %v10394_v29 }
 0xaaa   :  { %9201 = vmatmul.mubr.msk.bf16.vlgmr.msra.gmra.mxu1 %vm260_vm2, %v1975_v22 }
 0xaab   :  { %9212 = vmatprep.mubr.msk.bf16.mxu1 %vm10395_vm1, %v10394_v29 }
 0xb4a   :  { %v1661_v24 = vpop.f32.mrf.mxu1 }
 0xb4b   :  { %1667 = vst.msk [vmem:[#allocation2] sm:$0xff] %vm307_vm4, %v1661_v24 }
 0xb4c   :  { %v9160_v26 = vpop.f32.mrf.mxu1 }
 0xb4e   :  { %v1664_v28 = vpop.f32.mrf.mxu1  ;;  %v1763_v30 = vpop.f32.mrf.mxu0 }
 0xb4f   :  { %1769 = vst.msk [vmem:[#allocation2 + $0x10] sm:$0xff] %vm307_vm4, %v1763_v30 }
 0xb50   :  { %v9161_v25 = vpop.f32.mrf.mxu1  ;;  %v9172_v31 = vpop.f32.mrf.mxu0 }
 0xb52   :  { %v1712_v32 = vpop.f32.mrf.mxu1  ;;  %v1766_v33 = vpop.f32.mrf.mxu0  ;;  %v2025_v34 = vld [vmem:[#allocation2] sm:$0xff] }
 0xb53   :  { %1718 = vst.msk [vmem:[#allocation2 + $0x8] sm:$0xff] %vm307_vm4, %v1712_v32  ;;  %v10943_v35 = vadd.f32 %v2025_v34, %v10651_v2 }
 0xb54   :  { %v9166_v37 = vpop.f32.mrf.mxu1  ;;  %v9173_v38 = vpop.f32.mrf.mxu0 }
 0xb55   :  { %v2041_v54 = vsel %vm307_vm4, %v10943_v35, -inf }
 0xb56   :  { %2042 = vmax.xlane.f32.xlu1 %v2041_v54  ;;  %v1715_v39 = vpop.f32.mrf.mxu1  ;;  %v1865_v40 = vpop.f32.mrf.mxu0  ;;  %v2027_v27 = vld [vmem:[#allocation2 + $0x10] sm:$0xff] }
 0xb57   :  { %1871 = vst.msk [vmem:[#allocation2 + $0x20] sm:$0xff] %vm307_vm4, %v1865_v40  ;;  %v2035_v41 = vadd.f32 %v2027_v27, %v10667_v18 }
 0xb58   :  { %v9167_v42 = vpop.f32.mrf.mxu1  ;;  %v9184_v44 = vpop.f32.mrf.mxu0 }
 0xb59   :  { %v2047_v45 = vsel %vm307_vm4, %v2035_v41, -inf }
 0xb5a   :  { %v1814_v59 = vpop.f32.mrf.mxu1  ;;  %2048 = vmax.xlane.f32.xlu0 %v2047_v45  ;;  %v1868_v2 = vpop.f32.mrf.mxu0  ;;  %v2026_v46 = vld [vmem:[#allocation2 + $0x8] sm:$0xff] }
 0xb5b   :  { %1820 = vst.msk [vmem:[#allocation2 + $0x18] sm:$0xff] %vm307_vm4, %v1814_v59  ;;  %v2034_v47 = vadd.f32 %v2026_v46, %v10658_v9  ;;  %v10990_v46 = vpack.c.bf16 %v10937_v23, %v10937_v23 }
 0xb5c   :  { %v9178_v48 = vpop.f32.mrf.mxu1  ;;  %v9185_v49 = vpop.f32.mrf.mxu0 }
 0xb5d   :  { %v2044_v50 = vsel %vm307_vm4, %v2034_v47, -inf }
 0xb5e   :  { %v1817_v52 = vpop.f32.mrf.mxu1  ;;  %2045 = vmax.xlane.f32.xlu0 %v2044_v50  ;;  %v1967_v18 = vpop.f32.mrf.mxu0  ;;  %v2029_v53 = vld [vmem:[#allocation2 + $0x20] sm:$0xff] }
 0xb5f   :  { %1973 = vst.msk [vmem:[#allocation2 + $0x30] sm:$0xff] %vm307_vm4, %v1967_v18  ;;  %v2037_v55 = vadd.f32 %v2029_v53, %v10681_v36 }
 0xb60   :  { %v9179_v56 = vpop.f32.mrf.mxu1  ;;  %v9196_v57 = vpop.f32.mrf.mxu0 }
 0xb61   :  { %v2053_v60 = vsel %vm307_vm4, %v2037_v55, -inf }
 0xb62   :  { %v1916_v61 = vpop.f32.mrf.mxu1  ;;  %2054 = vmax.xlane.f32.xlu0 %v2053_v60  ;;  %v1970_v9 = vpop.f32.mrf.mxu0  ;;  %v2028_v62 = vld [vmem:[#allocation2 + $0x18] sm:$0xff] }
 0xb63   :  { %1922 = vst.msk [vmem:[#allocation2 + $0x28] sm:$0xff] %vm307_vm4, %v1916_v61  ;;  %v10958_v0 = vadd.f32 %v10302_v63, %v2028_v62 }
 0xb64   :  { %v9190_v1 = vpop.f32.mrf.mxu1  ;;  %v9197_v3 = vpop.f32.mrf.mxu0 }
 0xb65   :  { %v2050_v4 = vsel %vm307_vm4, %v10958_v0, -inf }
 0xb66   :  { %2051 = vmax.xlane.f32.xlu1 %v2050_v4  ;;  %v1919_v36 = vpop.f32.mrf.mxu1  ;;  %v2031_v5 = vld [vmem:[#allocation2 + $0x30] sm:$0xff] }
 0xb67   :  { %v2039_v7 = vadd.f32 %v2031_v5, %v10692_v51 }
 0xb68   :  { %v9191_v8 = vpop.f32.mrf.mxu1 }
 0xb69   :  { %v2059_v10 = vsel %vm307_vm4, %v2039_v7, -inf }
 0xb6a   :  { %v2018_v12 = vpop.f32.mrf.mxu1  ;;  %2060 = vmax.xlane.f32.xlu0 %v2059_v10  ;;  %v2030_v13 = vld [vmem:[#allocation2 + $0x28] sm:$0xff] }
 0xb6b   :  { %2024 = vst.msk [vmem:[#allocation2 + $0x38] sm:$0xff] %vm307_vm4, %v2018_v12  ;;  %v2038_v16 = vadd.f32 %v2030_v13, %v10686_v43 }
 0xb6c   :  { %v9202_v6 = vpop.f32.mrf.mxu1 }
 0xb6d   :  { %v2056_v19 = vsel %vm307_vm4, %v2038_v16, -inf }
 0xb6e   :  { %2057 = vmax.xlane.f32.xlu1 %v2056_v19  ;;  %v2021_v21 = vpop.f32.mrf.mxu1 }
 0xb70   :  { %v9203_v20 = vpop.f32.mrf.mxu1 }
 0xb72   :  { %v2032_v22 = vld [vmem:[#allocation2 + $0x38] sm:$0xff] }
 0xb73   :  { %v2040_v24 = vadd.f32 %v2032_v22, %v10697_v58 }
 0xb75   :  { %v2062_v51 = vsel %vm307_vm4, %v2040_v24, -inf }
 0xb76   :  { %2063 = vmax.xlane.f32.xlu1 %v2062_v51 }
 0xb80   :  { %2184 = vrot.lane.b32.xlu0 %v10916_v14, %s10396_s0 }
 0xb87   :  { %2237 = vrot.lane.b32.xlu1 %v10916_v14, %s10402_s18 }
 0xbdf   :  { %v2043_v26 = vpop.xlane.xlu1 %2042 }
 0xbe0   :  { %v2065_v43 = vsub.f32 %v10943_v35, %v2043_v26 }
 0xbe2   :  { %v2073_v28 = vmul.f32 1.442695, %v2065_v43 }
 0xbe3   :  { %v2049_v30 = vpop.xlane.xlu0 %2048 }
 0xbe4   :  { %10102 = vpow2.f32 %v2073_v28  ;;  %v2067_v25 = vsub.f32 %v2035_v41, %v2049_v30 }
 0xbe6   :  { %v2077_v31 = vmul.f32 1.442695, %v2067_v25 }
 0xbe7   :  { %v2046_v32 = vpop.xlane.xlu0 %2045 }
 0xbe8   :  { %10104 = vpow2.f32 %v2077_v31  ;;  %v2066_v58 = vsub.f32 %v2034_v47, %v2046_v32 }
 0xbea   :  { %v2075_v33 = vmul.f32 1.442695, %v2066_v58 }
 0xbeb   :  { %v2055_v34 = vpop.xlane.xlu0 %2054 }
 0xbec   :  { %10106 = vpow2.f32 %v2075_v33  ;;  %v2069_v37 = vsub.f32 %v2037_v55, %v2055_v34  ;;  %v2350_v34 = vsel %vm778_vm3, %v10990_v46, 0 }
 0xbee   :  { %v2081_v38 = vmul.f32 1.442695, %v2069_v37 }
 0xbef   :  { %v2052_v47 = vpop.xlane.xlu1 %2051 }
 0xbf0   :  { %10108 = vpow2.f32 %v2081_v38  ;;  %v2068_v48 = vsub.f32 %v10958_v0, %v2052_v47 }
 0xbf1   :  { %v10103_v54 = vpop.eup %10102 }
 0xbf2   :  { %v2089_v39 = vsel %vm307_vm4, %v10103_v54, 0.0  ;;  %v2079_v52 = vmul.f32 1.442695, %v2068_v48 }
 0xbf3   :  { %2090 = vadd.xlane.f32.xlu0 %v2089_v39  ;;  %v2061_v40 = vpop.xlane.xlu0 %2060 }
 0xbf4   :  { %v2071_v50 = vsub.f32 %v2039_v7, %v2061_v40  ;;  %10110 = vpow2.f32 %v2079_v52 }
 0xbf5   :  { %v10975_v35 = vpop.eup %10104 }
 0xbf6   :  { %v2095_v27 = vsel %vm307_vm4, %v10975_v35, 0.0  ;;  %v2085_v55 = vmul.f32 1.442695, %v2071_v50 }
 0xbf7   :  { %2096 = vadd.xlane.f32.xlu0 %v2095_v27  ;;  %v2185_v41 = vpop.permute.xlu0 %2184  ;;  %v2058_v49 = vpop.xlane.xlu1 %2057 }
 0xbf8   :  { %v2190_v42 = vsel %vm778_vm3, %v2185_v41, 0  ;;  %v2070_v18 = vsub.f32 %v2038_v16, %v2058_v49  ;;  %10112 = vpow2.f32 %v2085_v55 }
 0xbf9   :  { %v10107_v44 = vpop.eup %10106  ;;  %9211 = vmatpush3.bf16.msra.mxu1 %v2190_v42 }
 0xbfa   :  { %v2092_v45 = vsel %vm307_vm4, %v10107_v44, 0.0  ;;  %9222 = vmatprep.subr.bf16.mxu1 %v10394_v29  ;;  %v2083_v56 = vmul.f32 1.442695, %v2070_v18 }
 0xbfb   :  { %2093 = vadd.xlane.f32.xlu1 %v2092_v45 }
 0xbfc   :  { %10114 = vpow2.f32 %v2083_v56 }
 0xbfd   :  { %v10982_v59 = vpop.eup %10108 }
 0xbfe   :  { %v2101_v2 = vsel %vm307_vm4, %v10982_v59, 0.0 }
 0xbff   :  { %2102 = vadd.xlane.f32.xlu0 %v2101_v2  ;;  %v2064_v53 = vpop.xlane.xlu1 %2063 }
 0xc00   :  { %v2072_v57 = vsub.f32 %v2040_v24, %v2064_v53 }
 0xc01   :  { %v10111_v23 = vpop.eup %10110 }
 0xc02   :  { %v2098_v61 = vsel %vm307_vm4, %v10111_v23, 0.0 }
 0xc03   :  { %v2238_v3 = vpop.permute.xlu1 %2237 }
 0xc04   :  { %v2243_v16 = vsel %vm778_vm3, %v2238_v3, 0 }
 0xc05   :  { %v10995_v60 = vpop.eup %10112 }
 0xc06   :  { %v2107_v63 = vsel %vm307_vm4, %v10995_v60, 0.0 }
 0xc09   :  { %v10115_v9 = vpop.eup %10114 }
 0xc0a   :  { %v2104_v62 = vsel %vm307_vm4, %v10115_v9, 0.0 }
 0xc0c   :  { %2292 = vrot.lane.b32.xlu1 %v10916_v14, %s10401_s16  ;;  %v2087_v14 = vmul.f32 1.442695, %v2072_v57 }
 0xc0e   :  { %10116 = vpow2.f32 %v2087_v14  ;;  %v9954_v14 = vld [vmem:[%s10455_s8 + $0x38] sm:$0xff]  }
 0xc15   :  { %2396 = vrot.lane.b32.xlu0 %v10990_v46, %s10396_s0 }
 0xc1b   :  { %v11001_v0 = vpop.eup %10116 }
 0xc1c   :  { %v2110_v1 = vsel %vm307_vm4, %v11001_v0, 0.0 }
 0xc30   :  { %2099 = vadd.xlane.f32.xlu1 %v2098_v61 }
 0xc34   :  { %2105 = vadd.xlane.f32.xlu1 %v2104_v62  ;;  %2108 = vadd.xlane.f32.xlu0 %v2107_v63  ;;  %v9955_v63 = vld [vmem:[%s10455_s8 + $0x30] sm:$0xff]  }
 0xc38   :  { %2111 = vadd.xlane.f32.xlu1 %v2110_v1 }
 0xc49   :  { %2449 = vrot.lane.b32.xlu1 %v10990_v46, %s10402_s18 }
 0xc4a   :  { %2504 = vrot.lane.b32.xlu0 %v10990_v46, %s10401_s16 }
 0xc7c   :  { %v2091_v4 = vpop.xlane.xlu0 %2090 }
 0xc7d   :  { %10118 = vrcp.f32 %v2091_v4 }
 0xc80   :  { %v2097_v21 = vpop.xlane.xlu0 %2096 }
 0xc84   :  { %v2094_v36 = vpop.xlane.xlu1 %2093 }
 0xc85   :  { %10120 = vrcp.f32 %v2094_v36  ;;  %v9956_v36 = vld [vmem:[%s10455_s8 + $0x28] sm:$0xff]  }
 0xc86   :  { %10122 = vrcp.f32 %v2097_v21 }
 0xc88   :  { %v2293_v13 = vpop.permute.xlu1 %2292  ;;  %v2103_v20 = vpop.xlane.xlu0 %2102 }
 0xc89   :  { %v2298_v19 = vsel %vm778_vm3, %v2293_v13, 0 }
 0xc8a   :  { %v10119_v5 = vpop.eup %10118 }
 0xc8b   :  { %v2121_v8 = vmul.f32 %v10119_v5, %v10103_v54 }
 0xc8c   :  { %v2397_v51 = vpop.permute.xlu0 %2396 }
 0xc8d   :  { %v2402_v54 = vsel %vm778_vm3, %v2397_v51, 0 }
 0xc92   :  { %v10121_v7 = vpop.eup %10120 }
 0xc93   :  { %v2122_v10 = vmul.f32 %v10121_v7, %v10107_v44  ;;  %v10123_v28 = vpop.eup %10122 }
 0xc94   :  { %v2123_v25 = vmul.f32 %v10123_v28, %v10975_v35 }
 0xc95   :  { %v2129_v12 = vpack.c.bf16 %v2122_v10, %v2121_v8  ;;  %v9957_v8 = vld [vmem:[%s10455_s8 + $0x20] sm:$0xff]   ;;  %s12244_s8 = sld [smem:[#allocation16_spill]] }
 0xc97   :  { %9207 = vmatmul.mubr.msk.bf16.vlgmr.msra.gmra.mxu0 %vm307_vm4, %v2129_v12  ;;  %v2182_v6 = vrot.slane %v2129_v12, 4 }
 0xc98   :  { %9217 = vmatpush3.bf16.msra.mxu0 %v2243_v16  ;;  %9218 = vmatprep.mubr.msk.bf16.mxu0 %vm10395_vm1, %v10394_v29 }
 0xc99   :  { %9213 = vmatmul.mubr.msk.bf16.vlgmr.msra.gmra.mxu1 %vm307_vm4, %v2182_v6  ;;  %9228 = vmatprep.subr.bf16.mxu0 %v10394_v29 }
 0xc9a   :  { %9223 = vmatpush3.bf16.msra.mxu1 %v2298_v19  ;;  %9224 = vmatprep.mubr.msk.bf16.mxu1 %vm10395_vm1, %v10394_v29 }
 0xc9b   :  { %9234 = vmatprep.subr.bf16.mxu1 %v10394_v29 }
 0xcb9   :  { %v2100_v22 = vpop.xlane.xlu1 %2099 }
 0xcba   :  { %10124 = vrcp.f32 %v2100_v22 }
 0xcbb   :  { %10126 = vrcp.f32 %v2103_v20 }
 0xcbd   :  { %v2106_v24 = vpop.xlane.xlu1 %2105  ;;  %v2109_v43 = vpop.xlane.xlu0 %2108 }
 0xcbe   :  { %10128 = vrcp.f32 %v2106_v24 }
 0xcc1   :  { %v2112_v26 = vpop.xlane.xlu1 %2111  ;;  %v2505_v42 = vpop.permute.xlu0 %2504 }
 0xcc2   :  { %10130 = vrcp.f32 %v2112_v26 }
 0xcc3   :  { %10132 = vrcp.f32 %v2109_v43 }
 0xcc5   :  { %v2450_v27 = vpop.permute.xlu1 %2449 }
 0xcc6   :  { %v2455_v44 = vsel %vm778_vm3, %v2450_v27, 0 }
 0xcc7   :  { %v10125_v30 = vpop.eup %10124 }
 0xcc8   :  { %v2124_v31 = vmul.f32 %v10125_v30, %v10111_v23  ;;  %v10127_v32 = vpop.eup %10126 }
 0xcc9   :  { %v2125_v39 = vmul.f32 %v10127_v32, %v10982_v59  ;;  %v2510_v59 = vsel %vm778_vm3, %v2505_v42, 0 }
 0xcca   :  { %v2130_v58 = vpack.c.bf16 %v2124_v31, %v2123_v25 }
 0xccb   :  { %v10129_v33 = vpop.eup %10128 }
 0xccc   :  { %9219 = vmatmul.mubr.msk.bf16.vlgmr.msra.gmra.mxu0 %vm307_vm4, %v2130_v58  ;;  %v2291_v37 = vrot.slane %v2130_v58, 4  ;;  %v2126_v38 = vmul.f32 %v10129_v33, %v10115_v9 }
 0xccd   :  { %9229 = vmatpush3.bf16.msra.mxu0 %v2350_v34  ;;  %9230 = vmatprep.mubr.msk.bf16.mxu0 %vm10395_vm1, %v10394_v29 }
 0xcce   :  { %9225 = vmatmul.mubr.msk.bf16.vlgmr.msra.gmra.mxu1 %vm307_vm4, %v2291_v37  ;;  %9240 = vmatprep.subr.bf16.mxu0 %v10394_v29  ;;  %v2131_v40 = vpack.c.bf16 %v2126_v38, %v2125_v39 }
 0xccf   :  { %9235 = vmatpush3.bf16.msra.mxu1 %v2402_v54  ;;  %9236 = vmatprep.mubr.msk.bf16.mxu1 %vm10395_vm1, %v10394_v29  ;;  %v10131_v35 = vpop.eup %10130 }
 0xcd0   :  { %9246 = vmatprep.subr.bf16.mxu1 %v10394_v29  ;;  %v10133_v41 = vpop.eup %10132  ;;  %v2394_v45 = vrot.slane %v2131_v40, 4  ;;  %v2128_v2 = vmul.f32 %v10131_v35, %v11001_v0 }
 0xcd1   :  { %v2127_v46 = vmul.f32 %v10133_v41, %v10995_v60 }
 0xcd3   :  { %v2132_v47 = vpack.c.bf16 %v2128_v2, %v2127_v46  ;;  %v9959_v2 = vld [vmem:[%s10465_s19 + $0x30] sm:$0xff]   ;;  %v9962_v46 = vld [vmem:[%s10470_s24 + $0x78] sm:$0xff]  }
 0xcd4   :  { %9231 = vmatmul.mubr.msk.bf16.vlgmr.msra.gmra.mxu0 %vm307_vm4, %v2131_v40 }
 0xcd5   :  { %9241 = vmatpush3.bf16.msra.mxu0 %v2455_v44  ;;  %9242 = vmatprep.mubr.msk.bf16.mxu0 %vm10395_vm1, %v10394_v29  ;;  %v2503_v48 = vrot.slane %v2132_v47, 4 }
 0xcd6   :  { %9237 = vmatmul.mubr.msk.bf16.vlgmr.msra.gmra.mxu1 %vm307_vm4, %v2394_v45  ;;  %9252 = vmatprep.subr.bf16.mxu0 %v10394_v29  ;;  %v9958_v45 = vld [vmem:[%s10465_s19 + $0x38] sm:$0xff]  }
 0xcd7   :  { %9247 = vmatpush3.bf16.msra.mxu1 %v2510_v59  ;;  %9248 = vmatprep.mubr.msk.bf16.mxu1 %vm10395_vm1, %v10394_v29  ;;  %v9961_v59 = vld [vmem:[%s10465_s19 + $0x20] sm:$0xff]  }
 0xcd8   :  { %9264 = vmatprep.subr.bf16.mxu1 %v10394_v29 }
 0xcdc   :  { %9243 = vmatmul.mubr.msk.bf16.vlgmr.msra.gmra.mxu0 %vm307_vm4, %v2132_v47  ;;  %v9963_v47 = vld [vmem:[%s10470_s24 + $0x70] sm:$0xff]  }
 0xcdd   :  { %9260 = vmatprep.mubr.msk.bf16.mxu0 %vm10395_vm1, %v10394_v29  ;;  %9253 = vmatpush3.bf16.msra.mxu0 %v9954_v14 }
 0xcde   :  { %9249 = vmatmul.mubr.msk.bf16.vlgmr.msra.gmra.mxu1 %vm307_vm4, %v2503_v48  ;;  %9254 = vmatprep.subr.bf16.mxu0 %v10394_v29  ;;  %v9964_v48 = vld [vmem:[%s10470_s24 + $0x68] sm:$0xff]  }
 0xcdf   :  { %9272 = vmatprep.mubr.msk.bf16.mxu1 %vm10395_vm1, %v10394_v29  ;;  %9265 = vmatpush3.bf16.msra.mxu1 %v9958_v45 }
 0xce0   :  { %9266 = vmatprep.subr.bf16.mxu1 %v10394_v29 }
 0xce1   :  { %9255 = vmatpush3.bf16.msra.mxu0 %v9955_v63 }
 0xce2   :  { %9256 = vmatprep.subr.bf16.mxu0 %v10394_v29 }
 0xce3   :  { %9267 = vmatpush3.bf16.msra.mxu1 %v9959_v2 }
 0xce4   :  { %9268 = vmatprep.subr.bf16.mxu1 %v10394_v29 }
 0xce5   :  { %9257 = vmatpush3.bf16.msra.mxu0 %v9956_v36 }
 0xce6   :  { %9258 = vmatprep.subr.bf16.mxu0 %v10394_v29 }
 0xce9   :  { %9259 = vmatpush3.bf16.msra.mxu0 %v9957_v8 }
 0xcea   :  { %9276 = vmatprep.subr.bf16.mxu0 %v10394_v29 }
 0xd57   :  { %v2174_v49 = vpop.f32.mrf.mxu0 }
 0xd58   :  { %2180 = vst.msk [vmem:[#allocation3] sm:$0xff] %vm260_vm2, %v2174_v49  ;;  %v9965_v49 = vld [vmem:[%s10470_s24 + $0x60] sm:$0xff]  }
 0xd59   :  { %v9208_v50 = vpop.f32.mrf.mxu0  ;;  %v2226_v52 = vpop.f32.mrf.mxu1 }
 0xd5a   :  { %2233 = vrot.lane.b32.xlu1 %v2226_v52, %s10400_s15  ;;  %v9966_v50 = vld [vmem:[%s10470_s24 + $0x58] sm:$0xff]   ;;  %v9967_v52 = vld [vmem:[%s10470_s24 + $0x50] sm:$0xff]  }
 0xd5b   :  { %v2177_v18 = vpop.f32.mrf.mxu0  ;;  %v9214_v53 = vpop.f32.mrf.mxu1 }
 0xd5d   :  { %v9209_v55 = vpop.f32.mrf.mxu0  ;;  %v2229_v56 = vpop.f32.mrf.mxu1 }
 0xd5f   :  { %v9215_v57 = vpop.f32.mrf.mxu1 }
 0xd8c   :  { %v2279_v23 = vpop.f32.mrf.mxu0 }
 0xd8d   :  { %2286 = vrot.lane.b32.xlu1 %v2279_v23, %s10399_s11 }
 0xd8e   :  { %v9220_v60 = vpop.f32.mrf.mxu0  ;;  %v2334_v61 = vpop.f32.mrf.mxu1 }
 0xd90   :  { %v2282_v9 = vpop.f32.mrf.mxu0  ;;  %v9226_v62 = vpop.f32.mrf.mxu1 }
 0xd91   :  { %2341 = vrot.lane.b32.xlu1 %v2334_v61, %s10398_s10  ;;  %v8431_v9 = vld [vmem:[%s10460_s14 + $0x1] ss:$0 sm:$0xff]  ;;  %s12245_s14 = sld [smem:[#allocation18_spill]] }
 0xd92   :  { %v9221_v0 = vpop.f32.mrf.mxu0  ;;  %v2337_v1 = vpop.f32.mrf.mxu1 }
 0xd94   :  { %v9227_v3 = vpop.f32.mrf.mxu1  ;;  %v2386_v4 = vpop.f32.mrf.mxu0 }
 0xd95   :  { %2392 = vst.msk [vmem:[#allocation3 + $0x8] sm:$0xff] %vm260_vm2, %v2386_v4  ;;  %v9968_v3 = vld [vmem:[%s10470_s24 + $0x48] sm:$0xff]   ;;  %v9969_v4 = vld [vmem:[%s10470_s24 + $0x40] sm:$0xff]   ;;  %s12247_s24 = sld [smem:[#allocation17_spill]] }
 0xd96   :  { %v9232_v5 = vpop.f32.mrf.mxu0  ;;  %v2438_v7 = vpop.f32.mrf.mxu1 }
 0xd97   :  { %2445 = vrot.lane.b32.xlu0 %v2438_v7, %s10400_s15 }
 0xd98   :  { %v2389_v10 = vpop.f32.mrf.mxu0  ;;  %v9238_v12 = vpop.f32.mrf.mxu1 }
 0xd9a   :  { %v9233_v13 = vpop.f32.mrf.mxu0  ;;  %v2441_v16 = vpop.f32.mrf.mxu1 }
 0xd9c   :  { %v9239_v6 = vpop.f32.mrf.mxu1  ;;  %v2491_v19 = vpop.f32.mrf.mxu0 }
 0xd9d   :  { %2498 = vrot.lane.b32.xlu0 %v2491_v19, %s10399_s11  ;;  %v3138_v6 = vld [vmem:[%s10420_s9 + $0x8] sm:$0xff] }
 0xd9e   :  { %v9244_v21 = vpop.f32.mrf.mxu0  ;;  %v2546_v20 = vpop.f32.mrf.mxu1 }
 0xda0   :  { %v2494_v22 = vpop.f32.mrf.mxu0  ;;  %v9250_v24 = vpop.f32.mrf.mxu1 }
 0xda1   :  { %2553 = vrot.lane.b32.xlu0 %v2546_v20, %s10398_s10  ;;  %v3141_v22 = vmul.f32 %v3138_v6, %v3138_v6 }
 0xda2   :  { %v9245_v51 = vpop.f32.mrf.mxu0  ;;  %v2549_v26 = vpop.f32.mrf.mxu1 }
 0xda3   :  { %v11120_v51 = vld [vmem:[%s10420_s9] sm:$0xff] }
 0xda4   :  { %v9251_v43 = vpop.f32.mrf.mxu1 }
 0xdcc   :  { %v2234_v28 = vpop.permute.xlu1 %2233 }
 0xdcd   :  { %2236 = vst.msk [vmem:[#allocation3] sm:$0xff] %vm878_vm5, %v2234_v28 }
 0xdff   :  { %v2287_v30 = vpop.permute.xlu1 %2286 }
 0xe00   :  { %2289 = vst.msk [vmem:[#allocation3] sm:$0xff] %vm932_vm6, %v2287_v30 }
 0xe03   :  { %v2342_v25 = vpop.permute.xlu1 %2341 }
 0xe04   :  { %2344 = vst.msk [vmem:[#allocation3] sm:$0xff] %vm988_vm7, %v2342_v25  ;;  %v3145_v25 = vsel %vm137_vm0, %v3141_v22, 0.0  ;;  %v9988_v22 = vld [vmem:[%s10545_s12 + $0x8] sm:$0xff]  }
 0xe09   :  { %v2446_v31 = vpop.permute.xlu0 %2445 }
 0xe0a   :  { %2448 = vst.msk [vmem:[#allocation3 + $0x8] sm:$0xff] %vm878_vm5, %v2446_v31  ;;  %v3140_v31 = vmul.f32 %v11120_v51, %v11120_v51 }
 0xe0b   :  { %v2557_v33 = vld [vmem:[#allocation3] sm:$0xff] }
 0xe0f   :  { %v2499_v32 = vpop.permute.xlu0 %2498 }
 0xe10   :  { %2501 = vst.msk [vmem:[#allocation3 + $0x8] sm:$0xff] %vm932_vm6, %v2499_v32 }
 0xe13   :  { %v2554_v58 = vpop.permute.xlu0 %2553 }
 0xe14   :  { %2556 = vst.msk [vmem:[#allocation3 + $0x8] sm:$0xff] %vm988_vm7, %v2554_v58  ;;  %v3142_v58 = vsel %vm137_vm0, %v3140_v31, 0.0 }
 0xe1b   :  { %v2558_v34 = vld [vmem:[#allocation3 + $0x8] sm:$0xff] }
 0xe1c   :  { %v2568_v37 = vpack.c.bf16 %v2558_v34, %v2557_v33  ;;  %v9970_v33 = vld [vmem:[%s10480_s6 + $0x30] ss:$8 sps:$4 sm:$0xff]   ;;  %v9972_v34 = vld [vmem:[%s10480_s6 + $0x34] ss:$8 sps:$4 sm:$0xff]  }
 0xe1e   :  { %9261 = vmatmul.mubr.msk.bf16.vlgmr.msra.gmra.mxu0 %vm137_vm0, %v2568_v37  ;;  %v9975_v37 = vld [vmem:[%s10480_s6 + $0x24] ss:$8 sps:$4 sm:$0xff]  }
 0xe1f   :  { %9292 = vmatprep.mubr.msk.bf16.mxu0 %vm10395_vm1, %v10394_v29  ;;  %9277 = vmatpush3.bf16.msra.mxu0 %v9962_v46 }
 0xe20   :  { %9278 = vmatprep.subr.bf16.mxu0 %v10394_v29 }
 0xe23   :  { %9279 = vmatpush3.bf16.msra.mxu0 %v9963_v47 }
 0xe24   :  { %9280 = vmatprep.subr.bf16.mxu0 %v10394_v29 }
 0xe27   :  { %9281 = vmatpush3.bf16.msra.mxu0 %v9964_v48 }
 0xe28   :  { %9282 = vmatprep.subr.bf16.mxu0 %v10394_v29 }
 0xe2b   :  { %9283 = vmatpush3.bf16.msra.mxu0 %v9965_v49 }
 0xe2c   :  { %9284 = vmatprep.subr.bf16.mxu0 %v10394_v29 }
 0xe2f   :  { %9285 = vmatpush3.bf16.msra.mxu0 %v9966_v50 }
 0xe30   :  { %9286 = vmatprep.subr.bf16.mxu0 %v10394_v29 }
 0xe33   :  { %9287 = vmatpush3.bf16.msra.mxu0 %v9967_v52 }
 0xe34   :  { %9288 = vmatprep.subr.bf16.mxu0 %v10394_v29 }
 0xe37   :  { %9289 = vmatpush3.bf16.msra.mxu0 %v9968_v3 }
 0xe38   :  { %9290 = vmatprep.subr.bf16.mxu0 %v10394_v29 }
 0xe3b   :  { %9291 = vmatpush3.bf16.msra.mxu0 %v9969_v4  ;;  %v9983_v4 = vld [vmem:[%s10535_s27 + $0x10] sm:$0xff]  }
 0xe3c   :  { %3224 = vmatprep.subr.bf16.mxu0 %v9972_v34 }
 0xede   :  { %v2630_v38 = vpop.f32.mrf.mxu0 }
 0xedf   :  { %v11076_v54 = vadd.f32 %v2630_v38, %v10852_v17  ;;  %v9973_v38 = vld [vmem:[%s10480_s6 + $0x20] ss:$8 sps:$4 sm:$0xff]  }
 0xee0   :  { %v9262_v39 = vpop.f32.mrf.mxu0 }
 0xee1   :  { %v2641_v40 = vmul.f32 %v11076_v54, %v11076_v54  ;;  %v9976_v39 = vld [vmem:[%s10480_s6 + $0x10] ss:$8 sps:$4 sm:$0xff]  }
 0xee2   :  { %v2633_v35 = vpop.f32.mrf.mxu0 }
 0xee3   :  { %v11081_v27 = vadd.f32 %v2633_v35, %v10857_v15  ;;  %v2643_v41 = vsel %vm137_vm0, %v2641_v40, 0.0  ;;  %v9960_v15 = vld [vmem:[%s10465_s19 + $0x28] sm:$0xff]   ;;  %s12246_s19 = sld [smem:[#allocation19_spill]] }
 0xee4   :  { %2644 = vadd.xlane.f32.xlu1 %v2643_v41  ;;  %v9263_v42 = vpop.f32.mrf.mxu0  ;;  %9269 = vmatpush3.bf16.msra.mxu1 %v9960_v15  ;;  %v9981_v40 = vld [vmem:[%s10480_s6 + $0x4] ss:$8 sps:$4 sm:$0xff]   ;;  %v9979_v35 = vld [vmem:[%s10480_s6] ss:$8 sps:$4 sm:$0xff]  }
 0xee5   :  { %v2642_v44 = vmul.f32 %v11081_v27, %v11081_v27  ;;  %9270 = vmatprep.subr.bf16.mxu1 %v10394_v29 }
 0xee7   :  { %v2646_v17 = vsel %vm137_vm0, %v2642_v44, 0.0 }
 0xee8   :  { %2647 = vadd.xlane.f32.xlu0 %v2646_v17  ;;  %9271 = vmatpush3.bf16.msra.mxu1 %v9961_v59 }
 0xee9   :  { %9296 = vmatprep.subr.mxu1 %v10394_v29 }
 0xf6d   :  { %v2645_v18 = vpop.xlane.xlu1 %2644 }
 0xf6e   :  { %v2649_v53 = vmul.f32 0.015625, %v2645_v18  ;;  %v8469_v18 = vld [vmem:[%s10525_s21] ss:$0 sm:$0xff]  ;;  %s12239_s21 = sld [smem:[#allocation12_spill]] }
 0xf70   :  { %v2651_v55 = vadd.f32 1e-06, %v2649_v53 }
 0xf71   :  { %v2648_v56 = vpop.xlane.xlu0 %2647 }
 0xf72   :  { %10134 = vrsqrt.f32 %v2651_v55  ;;  %v2650_v57 = vmul.f32 0.015625, %v2648_v56  ;;  %v8483_v56 = vld [vmem:[%s10475_s30] ss:$0 sm:$0xff] }
 0xf74   :  { %v2652_v14 = vadd.f32 1e-06, %v2650_v57 }
 0xf76   :  { %10136 = vrsqrt.f32 %v2652_v14 }
 0xf7f   :  { %v10135_v23 = vpop.eup %10134 }
 0xf80   :  { %v2655_v60 = vmul.f32 %v10135_v23, %v11076_v54 }
 0xf82   :  { %v2663_v63 = vmul.f32 %v8431_v9, %v2655_v60 }
 0xf83   :  { %v10137_v61 = vpop.eup %10136 }
 0xf84   :  { %v2656_v62 = vmul.f32 %v10137_v61, %v11081_v27 }
 0xf86   :  { %v2664_v0 = vmul.f32 %v8431_v9, %v2656_v62  ;;  %v2879_v9 = vld [vmem:[%s10440_s25] sm:$0x3]  ;;  %s12240_s25 = sld [smem:[#allocation15_spill]] }
 0xf88   :  { %v2674_v1 = vpack.c.bf16 %v2664_v0, %v2663_v63  ;;  %v9982_v0 = vld [vmem:[%s10535_s27 + $0x18] sm:$0xff]  }
 0xf8a   :  { %9273 = vmatmul.mubr.msk.bf16.vlgmr.msra.gmra.mxu1 %vm137_vm0, %v2674_v1 }
 0xf8b   :  { %9300 = vmatprep.mubr.msk.f32.mxu1 %vm10395_vm1, %v10394_v29 }
0x104a   :  { %v2736_v36 = vpop.f32.mrf.mxu1 }
0x104b   :  { %v2743_v8 = vmax.f32 %v2736_v36, 0.0  ;;  %v9984_v36 = vld [vmem:[%s10535_s27 + $0x8] sm:$0xff]  }
0x104c   :  { %v9274_v5 = vpop.f32.mrf.mxu1 }
0x104d   :  { %v9985_v5 = vld [vmem:[%s10535_s27] sm:$0xff]  }
0x104e   :  { %v2739_v7 = vpop.f32.mrf.mxu1 }
0x104f   :  { %v2744_v10 = vmax.f32 %v2739_v7, 0.0 }
0x1050   :  { %v9275_v12 = vpop.f32.mrf.mxu1 }
0x1051   :  { %v2762_v13 = vpack.c.bf16 %v2744_v10, %v2743_v8 }
0x1053   :  { %9293 = vmatmul.mubr.bf16.vlgmr.msra.gmra.mxu0 %v2762_v13 }
0x1054   :  { %3248 = vmatprep.mubr.bf16.mxu0 %v10393_v11  ;;  %3225 = vmatpush1.bf16.msra.mxu0 %v9970_v33 }
0x1055   :  { %3226 = vmatprep.subr.bf16.mxu0 %v9975_v37 }
0x1058   :  { %3227 = vmatpush1.bf16.msra.mxu0 %v9973_v38 }
0x1113   :  { %v2845_v16 = vpop.f32.mrf.mxu0 }
0x1114   :  { %v2852_v19 = vadd.f32 %v2845_v16, %v11076_v54  ;;  %v9978_v54 = vld [vmem:[%s10480_s6 + $0x14] ss:$8 sps:$4 sm:$0xff]  }
0x1115   :  { %v9294_v21 = vpop.f32.mrf.mxu0  ;;  %3228 = vmatprep.subr.bf16.mxu0 %v9978_v54 }
0x1116   :  { %v2855_v20 = vmul.f32 %v2852_v19, %v2852_v19  ;;  %3229 = vmatpush1.bf16.msra.mxu0 %v9976_v39  ;;  %v9986_v21 = vld [vmem:[%s10545_s12 + $0x18] sm:$0xff]  }
0x1117   :  { %v2848_v24 = vpop.f32.mrf.mxu0  ;;  %3230 = vmatprep.subr.bf16.mxu0 %v9981_v40 }
0x1118   :  { %v2853_v26 = vadd.f32 %v2848_v24, %v11081_v27  ;;  %v2857_v43 = vsel %vm137_vm0, %v2855_v20, 0.0  ;;  %v9987_v20 = vld [vmem:[%s10545_s12 + $0x10] sm:$0xff]   ;;  %v9989_v24 = vld [vmem:[%s10545_s12] sm:$0xff]  }
0x1119   :  { %2858 = vadd.xlane.f32.xlu1 %v2857_v43  ;;  %v9295_v28 = vpop.f32.mrf.mxu0 }
0x111a   :  { %v2856_v30 = vmul.f32 %v2853_v26, %v2853_v26  ;;  %3231 = vmatpush1.bf16.msra.mxu0 %v9979_v35 }
0x111b   :  { %9333 = vmatprep.subr.bf16.mxu0 %v10394_v29 }
0x111c   :  { %v2860_v32 = vsel %vm137_vm0, %v2856_v30, 0.0 }
0x111d   :  { %2861 = vadd.xlane.f32.xlu0 %v2860_v32  ;;  %3146 = vadd.xlane.f32.xlu1 %v3145_v25 }
0x1121   :  { %3143 = vadd.xlane.f32.xlu0 %v3142_v58 }
0x11a2   :  { %v2859_v27 = vpop.xlane.xlu1 %2858 }
0x11a3   :  { %v2863_v41 = vmul.f32 0.015625, %v2859_v27  ;;  %v8471_v27 = vld [vmem:[%s12237_s5] ss:$0 sm:$0xff] }
0x11a5   :  { %v2865_v42 = vadd.f32 1e-06, %v2863_v41 }
0x11a6   :  { %v2862_v44 = vpop.xlane.xlu0 %2861  ;;  %v3147_v17 = vpop.xlane.xlu1 %3146 }
0x11a7   :  { %10138 = vrsqrt.f32 %v2865_v42  ;;  %v2864_v45 = vmul.f32 0.015625, %v2862_v44  ;;  %v3149_v2 = vmul.f32 0.015625, %v3147_v17 }
0x11a9   :  { %v2866_v15 = vadd.f32 1e-06, %v2864_v45  ;;  %v3151_v59 = vadd.f32 1e-06, %v3149_v2 }
0x11aa   :  { %v3144_v46 = vpop.xlane.xlu0 %3143 }
0x11ab   :  { %10140 = vrsqrt.f32 %v2866_v15  ;;  %v3148_v47 = vmul.f32 0.015625, %v3144_v46 }
0x11ac   :  { %10142 = vrsqrt.f32 %v3151_v59 }
0x11ad   :  { %v3150_v48 = vadd.f32 1e-06, %v3148_v47 }
0x11af   :  { %10144 = vrsqrt.f32 %v3150_v48 }
0x11b4   :  { %v10139_v49 = vpop.eup %10138 }
0x11b5   :  { %v2869_v50 = vmul.f32 %v10139_v49, %v2852_v19 }
0x11b7   :  { %v2877_v23 = vmul.f32 %v8469_v18, %v2869_v50 }
0x11b8   :  { %v10141_v52 = vpop.eup %10140 }
0x11b9   :  { %v10143_v53 = vpop.eup %10142  ;;  %v2870_v55 = vmul.f32 %v10141_v52, %v2853_v26 }
0x11ba   :  { %v3155_v57 = vmul.f32 %v10143_v53, %v3138_v6 }
0x11bb   :  { %v2878_v14 = vmul.f32 %v8469_v18, %v2870_v55 }
0x11bc   :  { %v10145_v60 = vpop.eup %10144  ;;  %v3163_v63 = vmul.f32 %v8483_v56, %v3155_v57 }
0x11bd   :  { %9297 = vmatpush3.msra.mxu1 %v2878_v14  ;;  %v11140_v61 = vpack.c.bf16 %v2878_v14, %v2877_v23  ;;  %v3154_v62 = vmul.f32 %v10145_v60, %v11120_v51  ;;  %v3122_v14 = vld [vmem:[%s12238_s13 + $0x8] sm:$0xff] }
0x11be   :  { %9298 = vmatprep.subr.mxu1 %v10394_v29 }
0x11bf   :  { %9299 = vmatpush3.msra.mxu1 %v2877_v23  ;;  %v3162_v1 = vmul.f32 %v8483_v56, %v3154_v62 }
0x11c0   :  { %9301 = vmatmul.mubr.msk.f32.vlgmr.msra.gmra.mxu1 %vm260_vm2, %v2879_v9  ;;  %9303 = vmatprep.subr.bf16.mxu1 %v10394_v29 }
0x11c1   :  { %v3172_v3 = vpack.c.bf16 %v3163_v63, %v3162_v1  ;;  %9304 = vmatpush3.bf16.msra.mxu1 %v9982_v0  ;;  %9311 = vmatprep.mubr.msk.bf16.mxu1 %vm10395_vm1, %v10394_v29 }
0x11c2   :  { %9305 = vmatprep.subr.bf16.mxu1 %v10394_v29 }
0x11c3   :  { %8492 = vmatmul.mubr.msk.bf16.vlgmr.msra.gmra.mxu0 %vm137_vm0, %v3172_v3 }
0x11c4   :  { %9335 = vmatprep.mubr.msk.bf16.mxu0 %vm10395_vm1, %v10394_v29 }
0x11c5   :  { %9306 = vmatpush3.bf16.msra.mxu1 %v9983_v4 }
0x11c6   :  { %9307 = vmatprep.subr.bf16.mxu1 %v10394_v29 }
0x11c9   :  { %9308 = vmatpush3.bf16.msra.mxu1 %v9984_v36 }
0x11ca   :  { %9309 = vmatprep.subr.bf16.mxu1 %v10394_v29 }
0x11cd   :  { %9310 = vmatpush3.bf16.msra.mxu1 %v9985_v5 }
0x11ce   :  { %9315 = vmatprep.subr.bf16.mxu1 %v10394_v29 }
0x1280   :  { %v2949_v7 = vpop.f32.mrf.mxu1 }
0x1281   :  { %v2961_v8 = vpack.c.bf16 %v2949_v7, %v2949_v7 }
0x1282   :  { %v9302_v10 = vpop.f32.mrf.mxu1 }
0x1283   :  { %9312 = vmatmul.mubr.msk.bf16.vlgmr.msra.gmra.mxu1 %vm137_vm0, %v2961_v8  ;;  %v3250_v12 = vpop.f32.mrf.mxu0 }
0x1284   :  { %v11161_v13 = vpack.c.bf16 %v3250_v12, %v3250_v12  ;;  %9323 = vmatprep.mubr.msk.bf16.mxu1 %vm10395_vm1, %v10394_v29  ;;  %9316 = vmatpush3.bf16.msra.mxu1 %v9986_v21 }
0x1285   :  { %v11169_v16 = vpop.f32.mrf.mxu0  ;;  %9317 = vmatprep.subr.bf16.mxu1 %v10394_v29 }
0x1286   :  { %3312 = vrot.lane.b32.xlu1 %v11161_v13, %s10398_s10  ;;  %3261 = vrot.lane.b32.xlu0 %v11161_v13, %s10397_s7  ;;  %v11250_v50 = vpack.c.bf16 %v11169_v16, %v11169_v16  ;;  %v8477_v16 = vld [vmem:[%s10550_s20] ss:$0 sm:$0xff] }
0x1287   :  { %v3254_v6 = vpop.f32.mrf.mxu0 }
0x1288   :  { %v11179_v19 = vpack.c.bf16 %v3254_v6, %v3254_v6  ;;  %9318 = vmatpush3.bf16.msra.mxu1 %v9987_v20  ;;  %v3780_v18 = vsel %vm778_vm3, %v11250_v50, 0 }
0x1289   :  { %9319 = vmatprep.subr.bf16.mxu1 %v10394_v29  ;;  %v11258_v53 = vpop.f32.mrf.mxu0 }
0x128a   :  { %3310 = vrot.lane.b32.xlu1 %v11161_v13, %s10396_s0  ;;  %3363 = vrot.lane.b32.xlu0 %v11161_v13, %s10399_s11 }
0x128c   :  { %9320 = vmatpush3.bf16.msra.mxu1 %v9988_v22 }
0x128d   :  { %9321 = vmatprep.subr.bf16.mxu1 %v10394_v29 }
0x128e   :  { %3414 = vrot.lane.b32.xlu1 %v11161_v13, %s10400_s15  ;;  %3361 = vrot.lane.b32.xlu0 %v11161_v13, %s10402_s18 }
0x1290   :  { %9322 = vmatpush3.bf16.msra.mxu1 %v9989_v24 }
0x1291   :  { %9327 = vmatprep.subr.bf16.mxu1 %v10394_v29 }
0x1292   :  { %3412 = vrot.lane.b32.xlu1 %v11161_v13, %s10401_s16  ;;  %3465 = vrot.lane.b32.xlu0 %v11179_v19, %s10397_s7 }
0x1296   :  { %3516 = vrot.lane.b32.xlu1 %v11179_v19, %s10398_s10  ;;  %3514 = vrot.lane.b32.xlu0 %v11179_v19, %s10396_s0 }
0x129a   :  { %3618 = vrot.lane.b32.xlu0 %v11179_v19, %s10400_s15  ;;  %3567 = vrot.lane.b32.xlu1 %v11179_v19, %s10399_s11 }
0x129e   :  { %3616 = vrot.lane.b32.xlu0 %v11179_v19, %s10401_s16  ;;  %3565 = vrot.lane.b32.xlu1 %v11179_v19, %s10402_s18 }
0x12f8   :  { %v3313_v26 = vpop.permute.xlu1 %3312  ;;  %v3262_v43 = vpop.permute.xlu0 %3261 }
0x12f9   :  { %v3318_v28 = vsel %vm260_vm2, %v3313_v26, 0  ;;  %v3267_v15 = vsel %vm260_vm2, %v3262_v43, 0 }
0x12fa   :  { %9334 = vmatpush3.bf16.xpose.msra.mxu0 %v3318_v28 }
0x12fb   :  { %9345 = vmatprep.subr.bf16.mxu0 %v10394_v29 }
0x12fc   :  { %v3311_v30 = vpop.permute.xlu1 %3310  ;;  %v3364_v25 = vpop.permute.xlu0 %3363 }
0x12fd   :  { %v3369_v46 = vsel %vm260_vm2, %v3364_v25, 0 }
0x1300   :  { %v3415_v31 = vpop.permute.xlu1 %3414  ;;  %v3362_v32 = vpop.permute.xlu0 %3361 }
0x1301   :  { %9336 = vmatmul.mubr.msk.bf16.vlgmr.msra.gmra.mxu0 %vm260_vm2, %v3311_v30  ;;  %v3420_v58 = vsel %vm260_vm2, %v3415_v31, 0  ;;  %v3121_v30 = vld [vmem:[%s12238_s13] sm:$0xff] }
0x1302   :  { %9346 = vmatpush3.bf16.xpose.msra.mxu0 %v3420_v58  ;;  %9347 = vmatprep.mubr.msk.bf16.mxu0 %vm10395_vm1, %v10394_v29 }
0x1303   :  { %9357 = vmatprep.subr.bf16.mxu0 %v10394_v29 }
0x1304   :  { %v3413_v33 = vpop.permute.xlu1 %3412  ;;  %v3466_v34 = vpop.permute.xlu0 %3465 }
0x1305   :  { %v3471_v47 = vsel %vm260_vm2, %v3466_v34, 0 }
0x1308   :  { %v3517_v37 = vpop.permute.xlu1 %3516  ;;  %v3515_v38 = vpop.permute.xlu0 %3514 }
0x1309   :  { %v3522_v54 = vsel %vm260_vm2, %v3517_v37, 0  ;;  %9348 = vmatmul.mubr.msk.bf16.vlgmr.msra.gmra.mxu0 %vm260_vm2, %v3413_v33 }
0x130a   :  { %9358 = vmatpush3.bf16.xpose.msra.mxu0 %v3522_v54  ;;  %9359 = vmatprep.mubr.msk.bf16.mxu0 %vm10395_vm1, %v10394_v29 }
0x130b   :  { %9369 = vmatprep.subr.bf16.mxu0 %v10394_v29 }
0x130c   :  { %v3619_v39 = vpop.permute.xlu0 %3618  ;;  %v3568_v48 = vpop.permute.xlu1 %3567 }
0x130d   :  { %v3624_v40 = vsel %vm260_vm2, %v3619_v39, 0  ;;  %v3573_v49 = vsel %vm260_vm2, %v3568_v48, 0  ;;  %v3126_v39 = vld [vmem:[%s12238_s13 + $0x28] sm:$0xff] }
0x1310   :  { %v3617_v35 = vpop.permute.xlu0 %3616  ;;  %v3566_v52 = vpop.permute.xlu1 %3565 }
0x1311   :  { %9360 = vmatmul.mubr.msk.bf16.vlgmr.msra.gmra.mxu0 %vm260_vm2, %v3515_v38 }
0x1312   :  { %9370 = vmatpush3.bf16.xpose.msra.mxu0 %v3624_v40  ;;  %9371 = vmatprep.mubr.msk.bf16.mxu0 %vm10395_vm1, %v10394_v29 }
0x1313   :  { %9381 = vmatprep.subr.bf16.mxu0 %v10394_v29 }
0x1319   :  { %9372 = vmatmul.mubr.msk.bf16.vlgmr.msra.gmra.mxu0 %vm260_vm2, %v3617_v35 }
0x131a   :  { %9383 = vmatprep.mubr.msk.bf16.mxu0 %vm10395_vm1, %v10394_v29 }
0x1343   :  { %v3030_v41 = vpop.f32.mrf.mxu1 }
0x1344   :  { %v3031_v42 = vadd.f32 %v8471_v27, %v3030_v41  ;;  %v3123_v27 = vld [vmem:[%s12238_s13 + $0x10] sm:$0xff] }
0x1345   :  { %v9313_v44 = vpop.f32.mrf.mxu1 }
0x1346   :  { %10146 = vtanh.f32 %v3031_v42 }
0x1347   :  { %v3033_v17 = vpop.f32.mrf.mxu1 }
0x1349   :  { %v9314_v45 = vpop.f32.mrf.mxu1 }
0x134a   :  { %v3128_v45 = vld [vmem:[%s12238_s13 + $0x38] sm:$0xff] }
0x1353   :  { %v10147_v2 = vpop.eup %10146 }
0x1354   :  { %v3045_v59 = vpack.c.bf16 %v10147_v2, %v10147_v2 }
0x1356   :  { %9324 = vmatmul.mubr.msk.bf16.vlgmr.msra.gmra.mxu1 %vm137_vm0, %v3045_v59 }
0x1357   :  { %9328 = vmatpush3.bf16.xpose.msra.mxu1 %v3267_v15  ;;  %9329 = vmatprep.mubr.msk.bf16.mxu1 %vm10395_vm1, %v10394_v29 }
0x1358   :  { %9339 = vmatprep.subr.bf16.mxu1 %v10394_v29 }
0x135e   :  { %9330 = vmatmul.mubr.msk.bf16.vlgmr.msra.gmra.mxu1 %vm260_vm2, %v11161_v13 }
0x135f   :  { %9340 = vmatpush3.bf16.xpose.msra.mxu1 %v3369_v46  ;;  %9341 = vmatprep.mubr.msk.bf16.mxu1 %vm10395_vm1, %v10394_v29 }
0x1360   :  { %9351 = vmatprep.subr.bf16.mxu1 %v10394_v29 }
0x1366   :  { %9342 = vmatmul.mubr.msk.bf16.vlgmr.msra.gmra.mxu1 %vm260_vm2, %v3362_v32  ;;  %v3124_v32 = vld [vmem:[%s12238_s13 + $0x18] sm:$0xff] }
0x1367   :  { %9352 = vmatpush3.bf16.xpose.msra.mxu1 %v3471_v47  ;;  %9353 = vmatprep.mubr.msk.bf16.mxu1 %vm10395_vm1, %v10394_v29 }
0x1368   :  { %9363 = vmatprep.subr.bf16.mxu1 %v10394_v29 }
0x136e   :  { %9354 = vmatmul.mubr.msk.bf16.vlgmr.msra.gmra.mxu1 %vm260_vm2, %v11179_v19 }
0x136f   :  { %9364 = vmatpush3.bf16.xpose.msra.mxu1 %v3573_v49  ;;  %9365 = vmatprep.mubr.msk.bf16.mxu1 %vm10395_vm1, %v10394_v29 }
0x1370   :  { %9375 = vmatprep.subr.bf16.mxu1 %v10394_v29 }
0x1376   :  { %9366 = vmatmul.mubr.msk.bf16.vlgmr.msra.gmra.mxu1 %vm260_vm2, %v3566_v52 }
0x1377   :  { %9376 = vmatpush3.bf16.msra.mxu1 %v3780_v18  ;;  %9377 = vmatprep.mubr.msk.bf16.mxu1 %vm10395_vm1, %v10394_v29  ;;  %v3125_v18 = vld [vmem:[%s12238_s13 + $0x20] sm:$0xff] }
0x1378   :  { %9387 = vmatprep.subr.bf16.mxu1 %v10394_v29 }
0x13c1   :  { %v3354_v55 = vpop.f32.mrf.mxu0 }
0x13c2   :  { %3360 = vst.msk [vmem:[#allocation2 + $0x8] sm:$0xff] %vm307_vm4, %v3354_v55 }
0x13c3   :  { %v9337_v56 = vpop.f32.mrf.mxu0 }
0x13c5   :  { %v3357_v57 = vpop.f32.mrf.mxu0 }
0x13c7   :  { %v9338_v23 = vpop.f32.mrf.mxu0 }
0x13c9   :  { %v3668_v60 = vld [vmem:[#allocation2 + $0x8] sm:$0xff]  ;;  %v3456_v9 = vpop.f32.mrf.mxu0 }
0x13ca   :  { %v11262_v62 = vadd.f32 %v3668_v60, %v3122_v14  ;;  %3462 = vst.msk [vmem:[#allocation2 + $0x18] sm:$0xff] %vm307_vm4, %v3456_v9 }
0x13cb   :  { %v9349_v63 = vpop.f32.mrf.mxu0 }
0x13cc   :  { %v3686_v0 = vsel %vm307_vm4, %v11262_v62, -inf }
0x13cd   :  { %3687 = vmax.xlane.f32.xlu0 %v3686_v0  ;;  %v3459_v1 = vpop.f32.mrf.mxu0  ;;  %v3127_v0 = vld [vmem:[%s12238_s13 + $0x30] sm:$0xff] }
0x13cf   :  { %v9350_v3 = vpop.f32.mrf.mxu0 }
0x13d1   :  { %v3558_v4 = vpop.f32.mrf.mxu0  ;;  %v3670_v58 = vld [vmem:[#allocation2 + $0x18] sm:$0xff] }
0x13d2   :  { %3564 = vst.msk [vmem:[#allocation2 + $0x28] sm:$0xff] %vm307_vm4, %v3558_v4  ;;  %v3678_v38 = vadd.f32 %v3670_v58, %v3124_v32 }
0x13d3   :  { %v9361_v36 = vpop.f32.mrf.mxu0 }
0x13d4   :  { %v3692_v41 = vsel %vm307_vm4, %v3678_v38, -inf }
0x13d5   :  { %v3561_v5 = vpop.f32.mrf.mxu0 }
0x13d7   :  { %v9362_v7 = vpop.f32.mrf.mxu0 }
0x13d9   :  { %v3660_v8 = vpop.f32.mrf.mxu0  ;;  %v3672_v40 = vld [vmem:[#allocation2 + $0x28] sm:$0xff] }
0x13da   :  { %3666 = vst.msk [vmem:[#allocation2 + $0x38] sm:$0xff] %vm307_vm4, %v3660_v8  ;;  %v3680_v42 = vadd.f32 %v3672_v40, %v3126_v39 }
0x13db   :  { %v9373_v10 = vpop.f32.mrf.mxu0 }
0x13dc   :  { %v3698_v47 = vsel %vm307_vm4, %v3680_v42, -inf }
0x13dd   :  { %v3663_v12 = vpop.f32.mrf.mxu0 }
0x13df   :  { %v9374_v13 = vpop.f32.mrf.mxu0 }
0x13e1   :  { %v3674_v2 = vld [vmem:[#allocation2 + $0x38] sm:$0xff] }
0x13e2   :  { %v3682_v48 = vadd.f32 %v3674_v2, %v3128_v45 }
0x13e4   :  { %v3704_v55 = vsel %vm307_vm4, %v3682_v48, -inf }
0x1416   :  { %v3114_v6 = vpop.f32.mrf.mxu1 }
0x1417   :  { %v3115_v19 = vadd.f32 %v8477_v16, %v3114_v6 }
0x1418   :  { %v9325_v21 = vpop.f32.mrf.mxu1 }
0x1419   :  { %3120 = vst [vmem:[#allocation4] sm:$0x3] %v3115_v19 }
0x141a   :  { %v3117_v20 = vpop.f32.mrf.mxu1 }
0x141c   :  { %v9326_v22 = vpop.f32.mrf.mxu1 }
0x141e   :  { %v3303_v24 = vpop.f32.mrf.mxu1 }
0x141f   :  { %3309 = vst.msk [vmem:[#allocation2] sm:$0xff] %vm307_vm4, %v3303_v24 }
0x1420   :  { %v9331_v26 = vpop.f32.mrf.mxu1 }
0x1422   :  { %v3306_v43 = vpop.f32.mrf.mxu1 }
0x1424   :  { %v9332_v28 = vpop.f32.mrf.mxu1 }
0x1426   :  { %v3405_v25 = vpop.f32.mrf.mxu1  ;;  %v3667_v31 = vld [vmem:[#allocation2] sm:$0xff] }
0x1427   :  { %3411 = vst.msk [vmem:[#allocation2 + $0x10] sm:$0xff] %vm307_vm4, %v3405_v25  ;;  %v3675_v33 = vadd.f32 %v3667_v31, %v3121_v30 }
0x1428   :  { %v9343_v34 = vpop.f32.mrf.mxu1 }
0x1429   :  { %v3683_v37 = vsel %vm307_vm4, %v3675_v33, -inf }
0x142a   :  { %v3408_v54 = vpop.f32.mrf.mxu1  ;;  %3684 = vmax.xlane.f32.xlu1 %v3683_v37 }
0x142c   :  { %v9344_v35 = vpop.f32.mrf.mxu1 }
0x142e   :  { %v3507_v44 = vpop.f32.mrf.mxu1  ;;  %3693 = vmax.xlane.f32.xlu1 %v3692_v41  ;;  %v3669_v17 = vld [vmem:[#allocation2 + $0x10] sm:$0xff] }
0x142f   :  { %3513 = vst.msk [vmem:[#allocation2 + $0x20] sm:$0xff] %vm307_vm4, %v3507_v44  ;;  %v3677_v15 = vadd.f32 %v3669_v17, %v3123_v27 }
0x1430   :  { %v9355_v59 = vpop.f32.mrf.mxu1 }
0x1431   :  { %v3689_v46 = vsel %vm307_vm4, %v3677_v15, -inf }
0x1432   :  { %v3510_v49 = vpop.f32.mrf.mxu1  ;;  %3690 = vmax.xlane.f32.xlu0 %v3689_v46  ;;  %3699 = vmax.xlane.f32.xlu1 %v3698_v47 }
0x1434   :  { %v9356_v52 = vpop.f32.mrf.mxu1 }
0x1436   :  { %v3609_v56 = vpop.f32.mrf.mxu1  ;;  %3705 = vmax.xlane.f32.xlu1 %v3704_v55  ;;  %v3671_v57 = vld [vmem:[#allocation2 + $0x20] sm:$0xff] }
0x1437   :  { %3615 = vst.msk [vmem:[#allocation2 + $0x30] sm:$0xff] %vm307_vm4, %v3609_v56  ;;  %v3679_v14 = vadd.f32 %v3671_v57, %v3125_v18 }
0x1438   :  { %v9367_v23 = vpop.f32.mrf.mxu1 }
0x1439   :  { %v3695_v60 = vsel %vm307_vm4, %v3679_v14, -inf }
0x143a   :  { %v3612_v9 = vpop.f32.mrf.mxu1  ;;  %3696 = vmax.xlane.f32.xlu0 %v3695_v60 }
0x143c   :  { %v9368_v63 = vpop.f32.mrf.mxu1 }
0x143e   :  { %v3673_v1 = vld [vmem:[#allocation2 + $0x30] sm:$0xff] }
0x143f   :  { %v11287_v3 = vadd.f32 %v3673_v1, %v3127_v0 }
0x1441   :  { %v3701_v4 = vsel %vm307_vm4, %v11287_v3, -inf }
0x1442   :  { %3702 = vmax.xlane.f32.xlu0 %v3701_v4 }
0x1456   :  { %v3688_v36 = vpop.xlane.xlu0 %3687 }
0x1457   :  { %v3708_v5 = vsub.f32 %v11262_v62, %v3688_v36 }
0x1458   :  { %3826 = vrot.lane.b32.xlu0 %v11250_v50, %s10396_s0 }
0x1459   :  { %v3717_v7 = vmul.f32 1.442695, %v3708_v5 }
0x145b   :  { %10148 = vpow2.f32 %v3717_v7 }
0x1468   :  { %v11294_v8 = vpop.eup %10148 }
0x1469   :  { %v3734_v10 = vsel %vm307_vm4, %v11294_v8, 0.0 }
0x146a   :  { %3735 = vadd.xlane.f32.xlu1 %v3734_v10 }
0x14b3   :  { %v3685_v12 = vpop.xlane.xlu1 %3684 }
0x14b4   :  { %v3707_v13 = vsub.f32 %v3675_v33, %v3685_v12 }
0x14b6   :  { %v3715_v16 = vmul.f32 1.442695, %v3707_v13 }
0x14b7   :  { %v3694_v6 = vpop.xlane.xlu1 %3693 }
0x14b8   :  { %10150 = vpow2.f32 %v3715_v16  ;;  %v3710_v19 = vsub.f32 %v3678_v38, %v3694_v6 }
0x14ba   :  { %v3721_v21 = vmul.f32 1.442695, %v3710_v19 }
0x14bb   :  { %v3691_v20 = vpop.xlane.xlu0 %3690  ;;  %v3700_v62 = vpop.xlane.xlu1 %3699 }
0x14bc   :  { %10152 = vpow2.f32 %v3721_v21  ;;  %v3709_v22 = vsub.f32 %v3677_v15, %v3691_v20  ;;  %v3712_v24 = vsub.f32 %v3680_v42, %v3700_v62  ;;  %v3987_v15 = vpack.c.bf16 %v11258_v53, %v11258_v53 }
0x14be   :  { %v3719_v26 = vmul.f32 1.442695, %v3709_v22  ;;  %v3725_v43 = vmul.f32 1.442695, %v3712_v24  ;;  %v3992_v13 = vsel %vm778_vm3, %v3987_v15, 0 }
0x14bf   :  { %v3706_v28 = vpop.xlane.xlu1 %3705 }
0x14c0   :  { %10154 = vpow2.f32 %v3719_v26  ;;  %v3714_v30 = vsub.f32 %v3682_v48, %v3706_v28 }
0x14c1   :  { %10156 = vpow2.f32 %v3725_v43 }
0x14c2   :  { %v3729_v25 = vmul.f32 1.442695, %v3714_v30 }
0x14c3   :  { %v3697_v31 = vpop.xlane.xlu0 %3696 }
0x14c4   :  { %10158 = vpow2.f32 %v3729_v25  ;;  %v3711_v32 = vsub.f32 %v3679_v14, %v3697_v31 }
0x14c5   :  { %v10151_v58 = vpop.eup %10150 }
0x14c6   :  { %v3723_v33 = vmul.f32 1.442695, %v3711_v32  ;;  %v3731_v34 = vsel %vm307_vm4, %v10151_v58, 0.0 }
0x14c7   :  { %3732 = vadd.xlane.f32.xlu0 %v3731_v34 }
0x14c8   :  { %10160 = vpow2.f32 %v3723_v33 }
0x14c9   :  { %v11299_v37 = vpop.eup %10152 }
0x14ca   :  { %v3740_v38 = vsel %vm307_vm4, %v11299_v37, 0.0 }
0x14cb   :  { %v3703_v54 = vpop.xlane.xlu0 %3702  ;;  %3741 = vadd.xlane.f32.xlu1 %v3740_v38 }
0x14cc   :  { %v3713_v59 = vsub.f32 %v11287_v3, %v3703_v54 }
0x14cd   :  { %v10155_v39 = vpop.eup %10154 }
0x14ce   :  { %v11303_v40 = vpop.eup %10156  ;;  %v3737_v35 = vsel %vm307_vm4, %v10155_v39, 0.0  ;;  %v3727_v46 = vmul.f32 1.442695, %v3713_v59 }
0x14cf   :  { %3738 = vadd.xlane.f32.xlu0 %v3737_v35  ;;  %v3827_v27 = vpop.permute.xlu0 %3826  ;;  %v3746_v41 = vsel %vm307_vm4, %v11303_v40, 0.0 }
0x14d0   :  { %v3832_v42 = vsel %vm778_vm3, %v3827_v27, 0  ;;  %3747 = vadd.xlane.f32.xlu1 %v3746_v41  ;;  %10162 = vpow2.f32 %v3727_v46 }
0x14d1   :  { %v11309_v44 = vpop.eup %10158  ;;  %9382 = vmatpush3.bf16.msra.mxu0 %v3832_v42  ;;  %v9990_v42 = vld [vmem:[%s12239_s21 + $0x18] sm:$0xff]  }
0x14d2   :  { %v3752_v17 = vsel %vm307_vm4, %v11309_v44, 0.0  ;;  %9393 = vmatprep.subr.bf16.mxu0 %v10394_v29 }
0x14d4   :  { %3753 = vadd.xlane.f32.xlu1 %v3752_v17 }
0x14d5   :  { %v11314_v45 = vpop.eup %10160 }
0x14d6   :  { %v3743_v2 = vsel %vm307_vm4, %v11314_v45, 0.0 }
0x14d7   :  { %3744 = vadd.xlane.f32.xlu0 %v3743_v2 }
0x14dd   :  { %v11327_v47 = vpop.eup %10162 }
0x14de   :  { %v3749_v48 = vsel %vm307_vm4, %v11327_v47, 0.0 }
0x14e5   :  { %3879 = vrot.lane.b32.xlu1 %v11250_v50, %s10402_s18 }
0x14e9   :  { %3934 = vrot.lane.b32.xlu1 %v11250_v50, %s10401_s16 }
0x14ed   :  { %4091 = vrot.lane.b32.xlu1 %v3987_v15, %s10402_s18  ;;  %4038 = vrot.lane.b32.xlu0 %v3987_v15, %s10396_s0 }
0x14f3   :  { %v3736_v50 = vpop.xlane.xlu1 %3735 }
0x14f4   :  { %10164 = vrcp.f32 %v3736_v50 }
0x1501   :  { %v10165_v55 = vpop.eup %10164 }
0x1502   :  { %v3764_v23 = vmul.f32 %v10165_v55, %v11294_v8 }
0x150c   :  { %3750 = vadd.xlane.f32.xlu0 %v3749_v48 }
0x1522   :  { %4146 = vrot.lane.b32.xlu0 %v3987_v15, %s10401_s16 }
0x1550   :  { %v3733_v49 = vpop.xlane.xlu0 %3732 }
0x1551   :  { %10166 = vrcp.f32 %v3733_v49 }
0x1554   :  { %v3742_v53 = vpop.xlane.xlu1 %3741 }
0x1555   :  { %10168 = vrcp.f32 %v3742_v53 }
0x1558   :  { %v3739_v52 = vpop.xlane.xlu0 %3738 }
0x1559   :  { %10170 = vrcp.f32 %v3739_v52  ;;  %v3748_v18 = vpop.xlane.xlu1 %3747 }
0x155a   :  { %10172 = vrcp.f32 %v3748_v18 }
0x155d   :  { %v3754_v56 = vpop.xlane.xlu1 %3753 }
0x155e   :  { %v10167_v57 = vpop.eup %10166 }
0x155f   :  { %v3763_v14 = vmul.f32 %v10167_v57, %v10151_v58 }
0x1560   :  { %v3745_v60 = vpop.xlane.xlu0 %3744 }
0x1561   :  { %10174 = vrcp.f32 %v3745_v60  ;;  %v3880_v9 = vpop.permute.xlu1 %3879  ;;  %v3771_v63 = vpack.c.bf16 %v3764_v23, %v3763_v14  ;;  %v9991_v14 = vld [vmem:[%s12239_s21 + $0x10] sm:$0xff]   ;;  %v9992_v23 = vld [vmem:[%s12239_s21 + $0x8] sm:$0xff]   ;;  %v9993_v60 = vld [vmem:[%s12239_s21] sm:$0xff]  }
0x1562   :  { %v3885_v0 = vsel %vm778_vm3, %v3880_v9, 0  ;;  %v10169_v3 = vpop.eup %10168  ;;  %10176 = vrcp.f32 %v3754_v56 }
0x1563   :  { %9378 = vmatmul.mubr.msk.bf16.vlgmr.msra.gmra.mxu1 %vm307_vm4, %v3771_v63  ;;  %v3824_v1 = vrot.slane %v3771_v63, 4  ;;  %v3766_v7 = vmul.f32 %v10169_v3, %v11299_v37 }
0x1564   :  { %9388 = vmatpush3.bf16.msra.mxu1 %v3885_v0  ;;  %9389 = vmatprep.mubr.msk.bf16.mxu1 %vm10395_vm1, %v10394_v29  ;;  %v4039_v12 = vpop.permute.xlu0 %4038 }
0x1565   :  { %v3935_v4 = vpop.permute.xlu1 %3934  ;;  %9384 = vmatmul.mubr.msk.bf16.vlgmr.msra.gmra.mxu0 %vm307_vm4, %v3824_v1  ;;  %9399 = vmatprep.subr.bf16.mxu1 %v10394_v29  ;;  %v4044_v19 = vsel %vm778_vm3, %v4039_v12, 0 }
0x1566   :  { %v10171_v36 = vpop.eup %10170  ;;  %v3940_v5 = vsel %vm778_vm3, %v3935_v4, 0  ;;  %9395 = vmatprep.mubr.msk.bf16.mxu0 %vm10395_vm1, %v10394_v29 }
0x1567   :  { %v3765_v8 = vmul.f32 %v10171_v36, %v10155_v39  ;;  %9394 = vmatpush3.bf16.msra.mxu0 %v3940_v5  ;;  %v10173_v6 = vpop.eup %10172 }
0x1568   :  { %9405 = vmatprep.subr.bf16.mxu0 %v10394_v29  ;;  %v3768_v20 = vmul.f32 %v10173_v6, %v11303_v40 }
0x1569   :  { %v3772_v10 = vpack.c.bf16 %v3766_v7, %v3765_v8  ;;  %v4092_v22 = vpop.permute.xlu1 %4091 }
0x156a   :  { %v4097_v26 = vsel %vm778_vm3, %v4092_v22, 0  ;;  %v9996_v22 = vld [vmem:[%s12240_s25 + $0x8] sm:$0xff]  }
0x156b   :  { %9390 = vmatmul.mubr.msk.bf16.vlgmr.msra.gmra.mxu1 %vm307_vm4, %v3772_v10  ;;  %v3933_v16 = vrot.slane %v3772_v10, 4 }
0x156c   :  { %9400 = vmatpush3.bf16.msra.mxu1 %v3992_v13  ;;  %9401 = vmatprep.mubr.msk.bf16.mxu1 %vm10395_vm1, %v10394_v29 }
0x156d   :  { %9396 = vmatmul.mubr.msk.bf16.vlgmr.msra.gmra.mxu0 %vm307_vm4, %v3933_v16  ;;  %9411 = vmatprep.subr.bf16.mxu1 %v10394_v29 }
0x156e   :  { %v10175_v21 = vpop.eup %10174  ;;  %9406 = vmatpush3.bf16.msra.mxu0 %v4044_v19  ;;  %9407 = vmatprep.mubr.msk.bf16.mxu0 %vm10395_vm1, %v10394_v29 }
0x156f   :  { %v3767_v62 = vmul.f32 %v10175_v21, %v11314_v45  ;;  %9417 = vmatprep.subr.bf16.mxu0 %v10394_v29  ;;  %v10177_v31 = vpop.eup %10176  ;;  %v9994_v21 = vld [vmem:[%s12240_s25 + $0x18] sm:$0xff]  }
0x1570   :  { %v3770_v58 = vmul.f32 %v10177_v31, %v11309_v44  ;;  %v10303_v31 = vld [vmem:[%s10420_s9 + $0x8] sm:$0xff]  ;;  %s12242_s9 = sld [smem:[#allocation13_spill]] }
0x1571   :  { %v3773_v24 = vpack.c.bf16 %v3768_v20, %v3767_v62  ;;  %v9995_v62 = vld [vmem:[%s12240_s25 + $0x10] sm:$0xff]  }
0x1573   :  { %9402 = vmatmul.mubr.msk.bf16.vlgmr.msra.gmra.mxu1 %vm307_vm4, %v3773_v24  ;;  %v4036_v43 = vrot.slane %v3773_v24, 4  ;;  %v9997_v24 = vld [vmem:[%s12240_s25] sm:$0xff]  }
0x1574   :  { %9412 = vmatpush3.bf16.msra.mxu1 %v4097_v26  ;;  %9413 = vmatprep.mubr.msk.bf16.mxu1 %vm10395_vm1, %v10394_v29 }
0x1575   :  { %9408 = vmatmul.mubr.msk.bf16.vlgmr.msra.gmra.mxu0 %vm307_vm4, %v4036_v43  ;;  %9423 = vmatprep.subr.bf16.mxu1 %v10394_v29 }
0x1576   :  { %9419 = vmatprep.mubr.msk.bf16.mxu0 %vm10395_vm1, %v10394_v29 }
0x1595   :  { %v3751_v28 = vpop.xlane.xlu0 %3750 }
0x1596   :  { %10178 = vrcp.f32 %v3751_v28 }
0x1599   :  { %v4147_v30 = vpop.permute.xlu0 %4146 }
0x159a   :  { %v4152_v25 = vsel %vm778_vm3, %v4147_v30, 0 }
0x159b   :  { %9418 = vmatpush3.bf16.msra.mxu0 %v4152_v25 }
0x159c   :  { %9435 = vmatprep.subr.bf16.mxu0 %v10394_v29 }
0x15a3   :  { %v10179_v32 = vpop.eup %10178 }
0x15a4   :  { %v3769_v33 = vmul.f32 %v10179_v32, %v11327_v47 }
0x15a6   :  { %v3774_v34 = vpack.c.bf16 %v3770_v58, %v3769_v33 }
0x15a8   :  { %9414 = vmatmul.mubr.msk.bf16.vlgmr.msra.gmra.mxu1 %vm307_vm4, %v3774_v34  ;;  %v4145_v37 = vrot.slane %v3774_v34, 4 }
0x15a9   :  { %9431 = vmatprep.mubr.msk.bf16.mxu1 %vm10395_vm1, %v10394_v29  ;;  %9424 = vmatpush3.bf16.msra.mxu1 %v9990_v42  ;;  %v10001_v42 = vld [vmem:[%s12241_s29] sm:$0xff]  }
0x15aa   :  { %9420 = vmatmul.mubr.msk.bf16.vlgmr.msra.gmra.mxu0 %vm307_vm4, %v4145_v37  ;;  %9425 = vmatprep.subr.bf16.mxu1 %v10394_v29 }
0x15ab   :  { %9443 = vmatprep.mubr.msk.bf16.mxu0 %vm10395_vm1, %v10394_v29 }
0x15ad   :  { %9426 = vmatpush3.bf16.msra.mxu1 %v9991_v14 }
0x15ae   :  { %9427 = vmatprep.subr.bf16.mxu1 %v10394_v29 }
0x15b1   :  { %9428 = vmatpush3.bf16.msra.mxu1 %v9992_v23 }
0x15b2   :  { %9429 = vmatprep.subr.bf16.mxu1 %v10394_v29 }
0x15b5   :  { %9430 = vmatpush3.bf16.msra.mxu1 %v9993_v60 }
0x15b6   :  { %9447 = vmatprep.subr.bf16.mxu1 %v10394_v29 }
0x1623   :  { %v3816_v38 = vpop.f32.mrf.mxu1 }
0x1624   :  { %3822 = vst.msk [vmem:[#allocation3] sm:$0xff] %vm260_vm2, %v3816_v38 }
0x1625   :  { %v9379_v54 = vpop.f32.mrf.mxu1  ;;  %v3868_v39 = vpop.f32.mrf.mxu0 }
0x1626   :  { %3875 = vrot.lane.b32.xlu1 %v3868_v39, %s10400_s15 }
0x1627   :  { %v3819_v40 = vpop.f32.mrf.mxu1  ;;  %v9385_v35 = vpop.f32.mrf.mxu0 }
0x1628   :  { %v9998_v35 = vld [vmem:[%s12241_s29 + $0x18] sm:$0xff]  }
0x1629   :  { %v9380_v27 = vpop.f32.mrf.mxu1  ;;  %v3871_v41 = vpop.f32.mrf.mxu0  ;;  %9436 = vmatpush3.bf16.msra.mxu0 %v9998_v35 }
0x162a   :  { %9437 = vmatprep.subr.bf16.mxu0 %v10394_v29  ;;  %v9999_v27 = vld [vmem:[%s12241_s29 + $0x10] sm:$0xff]   ;;  %v10000_v41 = vld [vmem:[%s12241_s29 + $0x8] sm:$0xff]  }
0x162b   :  { %v9386_v44 = vpop.f32.mrf.mxu0  ;;  %v3921_v17 = vpop.f32.mrf.mxu1 }
0x162c   :  { %3928 = vrot.lane.b32.xlu1 %v3921_v17, %s10399_s11 }
0x162d   :  { %v9391_v45 = vpop.f32.mrf.mxu1  ;;  %v3976_v2 = vpop.f32.mrf.mxu0  ;;  %9438 = vmatpush3.bf16.msra.mxu0 %v9999_v27 }
0x162e   :  { %9439 = vmatprep.subr.bf16.mxu0 %v10394_v29 }
0x162f   :  { %v3924_v15 = vpop.f32.mrf.mxu1  ;;  %v9397_v59 = vpop.f32.mrf.mxu0 }
0x1630   :  { %3983 = vrot.lane.b32.xlu1 %v3976_v2, %s10398_s10 }
0x1631   :  { %v9392_v46 = vpop.f32.mrf.mxu1  ;;  %v3979_v47 = vpop.f32.mrf.mxu0  ;;  %9440 = vmatpush3.bf16.msra.mxu0 %v10000_v41 }
0x1632   :  { %9441 = vmatprep.subr.bf16.mxu0 %v10394_v29 }
0x1633   :  { %v9398_v48 = vpop.f32.mrf.mxu0  ;;  %v4028_v50 = vpop.f32.mrf.mxu1 }
0x1634   :  { %4034 = vst.msk [vmem:[#allocation3 + $0x8] sm:$0xff] %vm260_vm2, %v4028_v50 }
0x1635   :  { %v9403_v49 = vpop.f32.mrf.mxu1  ;;  %v4080_v53 = vpop.f32.mrf.mxu0  ;;  %9442 = vmatpush3.bf16.msra.mxu0 %v10001_v42 }
0x1636   :  { %4087 = vrot.lane.b32.xlu0 %v4080_v53, %s10400_s15  ;;  %9459 = vmatprep.subr.bf16.mxu0 %v10394_v29  ;;  %v8514_v53 = vld [vmem:[%s12242_s9] ss:$0 sm:$0xff] }
0x1637   :  { %v4031_v52 = vpop.f32.mrf.mxu1  ;;  %v9409_v18 = vpop.f32.mrf.mxu0 }
0x1639   :  { %v9404_v55 = vpop.f32.mrf.mxu1  ;;  %v4083_v56 = vpop.f32.mrf.mxu0 }
0x163b   :  { %v9410_v57 = vpop.f32.mrf.mxu0 }
0x1668   :  { %v4133_v9 = vpop.f32.mrf.mxu1 }
0x1669   :  { %4140 = vrot.lane.b32.xlu0 %v4133_v9, %s10399_s11 }
0x166a   :  { %v9415_v63 = vpop.f32.mrf.mxu1  ;;  %v4188_v0 = vpop.f32.mrf.mxu0 }
0x166c   :  { %v4136_v1 = vpop.f32.mrf.mxu1  ;;  %v9421_v3 = vpop.f32.mrf.mxu0 }
0x166d   :  { %4195 = vrot.lane.b32.xlu0 %v4188_v0, %s10398_s10 }
0x166e   :  { %v9416_v4 = vpop.f32.mrf.mxu1  ;;  %v4191_v36 = vpop.f32.mrf.mxu0 }
0x1670   :  { %v9422_v5 = vpop.f32.mrf.mxu0 }
0x1698   :  { %v3876_v7 = vpop.permute.xlu1 %3875 }
0x1699   :  { %3878 = vst.msk [vmem:[#allocation3] sm:$0xff] %vm878_vm5, %v3876_v7 }
0x169e   :  { %v3929_v8 = vpop.permute.xlu1 %3928 }
0x169f   :  { %3931 = vst.msk [vmem:[#allocation3] sm:$0xff] %vm932_vm6, %v3929_v8 }
0x16a2   :  { %v3984_v10 = vpop.permute.xlu1 %3983 }
0x16a3   :  { %3986 = vst.msk [vmem:[#allocation3] sm:$0xff] %vm988_vm7, %v3984_v10 }
0x16a8   :  { %v4088_v12 = vpop.permute.xlu0 %4087 }
0x16a9   :  { %4090 = vst.msk [vmem:[#allocation3 + $0x8] sm:$0xff] %vm878_vm5, %v4088_v12 }
0x16aa   :  { %v4199_v6 = vld [vmem:[#allocation3] sm:$0xff] }
0x16db   :  { %v4141_v13 = vpop.permute.xlu0 %4140 }
0x16dc   :  { %4143 = vst.msk [vmem:[#allocation3 + $0x8] sm:$0xff] %vm932_vm6, %v4141_v13 }
0x16df   :  { %v4196_v16 = vpop.permute.xlu0 %4195 }
0x16e0   :  { %4198 = vst.msk [vmem:[#allocation3 + $0x8] sm:$0xff] %vm988_vm7, %v4196_v16 }
0x16e7   :  { %v4200_v19 = vld [vmem:[#allocation3 + $0x8] sm:$0xff] }
0x16e8   :  { %v4209_v20 = vpack.c.bf16 %v4200_v19, %v4199_v6 }
0x16ea   :  { %9432 = vmatmul.mubr.msk.bf16.vlgmr.msra.gmra.mxu1 %vm137_vm0, %v4209_v20 }
0x16eb   :  { %9448 = vmatpush3.bf16.msra.mxu1 %v9994_v21  ;;  %9455 = vmatprep.mubr.msk.bf16.mxu1 %vm10395_vm1, %v10394_v29 }
0x16ec   :  { %9449 = vmatprep.subr.bf16.mxu1 %v10394_v29 }
0x16ef   :  { %9450 = vmatpush3.bf16.msra.mxu1 %v9995_v62 }
0x16f0   :  { %9451 = vmatprep.subr.bf16.mxu1 %v10394_v29 }
0x16f3   :  { %9452 = vmatpush3.bf16.msra.mxu1 %v9996_v22 }
0x16f4   :  { %9453 = vmatprep.subr.bf16.mxu1 %v10394_v29 }
0x16f7   :  { %9454 = vmatpush3.bf16.msra.mxu1 %v9997_v24 }
0x16f8   :  { %9471 = vmatprep.subr.bf16.mxu1 %v10394_v29 }
0x16fa   :  { %9456 = vmatmul.mubr.msk.bf16.vlgmr.msra.gmra.mxu1 %vm137_vm0, %v11140_v61 }
0x16fb   :  { %9473 = vmatprep.mubr.msk.bf16.mxu1 %vm10395_vm1, %v10394_v29 }
0x17aa   :  { %v4271_v26 = vpop.f32.mrf.mxu1 }
0x17ab   :  { %v11412_v43 = vadd.f32 %v4271_v26, %v11120_v51 }
0x17ac   :  { %v9433_v28 = vpop.f32.mrf.mxu1 }
0x17ad   :  { %v4281_v30 = vmul.f32 %v11412_v43, %v11412_v43 }
0x17ae   :  { %v4274_v25 = vpop.f32.mrf.mxu1 }
0x17af   :  { %v11417_v32 = vadd.f32 %v10303_v31, %v4274_v25  ;;  %v4283_v58 = vsel %vm137_vm0, %v4281_v30, 0.0 }
0x17b0   :  { %4284 = vadd.xlane.f32.xlu1 %v4283_v58  ;;  %v9434_v33 = vpop.f32.mrf.mxu1 }
0x17b1   :  { %v4282_v34 = vmul.f32 %v11417_v32, %v11417_v32 }
0x17b3   :  { %v4286_v51 = vsel %vm137_vm0, %v4282_v34, 0.0 }
0x17b4   :  { %4287 = vadd.xlane.f32.xlu0 %v4286_v51  ;;  %v3129_v51 = vld [vmem:[%s12243_s3] sm:$0xff] }
0x17ba   :  { %v4452_v37 = vpop.f32.mrf.mxu1 }
0x17bb   :  { %v11423_v39 = vpack.c.bf16 %v4452_v37, %v4452_v37 }
0x17bc   :  { %v9457_v38 = vpop.f32.mrf.mxu1 }
0x17bd   :  { %v4465_v57 = vsel %vm260_vm2, %v11423_v39, 0 }
0x17be   :  { %v4455_v54 = vpop.f32.mrf.mxu1 }
0x17bf   :  { %v11459_v4 = vpack.c.bf16 %v4455_v54, %v4455_v54 }
0x17c0   :  { %v9458_v40 = vpop.f32.mrf.mxu1 }
0x17c1   :  { %4563 = vrot.lane.b32.xlu1 %v11423_v39, %s10402_s18  ;;  %v4669_v13 = vsel %vm260_vm2, %v11459_v4, 0 }
0x17ca   :  { %4512 = vrot.lane.b32.xlu0 %v11423_v39, %s10396_s0 }
0x17ce   :  { %4614 = vrot.lane.b32.xlu0 %v11423_v39, %s10401_s16 }
0x1839   :  { %v4285_v44 = vpop.xlane.xlu1 %4284 }
0x183a   :  { %v4289_v17 = vmul.f32 0.015625, %v4285_v44 }
0x183c   :  { %v4291_v45 = vadd.f32 1e-06, %v4289_v17  ;;  %v3130_v17 = vld [vmem:[%s12243_s3 + $0x8] sm:$0xff] }
0x183d   :  { %v4288_v2 = vpop.xlane.xlu0 %4287  ;;  %v4564_v15 = vpop.permute.xlu1 %4563 }
0x183e   :  { %10180 = vrsqrt.f32 %v4291_v45  ;;  %v4290_v59 = vmul.f32 0.015625, %v4288_v2  ;;  %v4569_v46 = vsel %vm260_vm2, %v4564_v15, 0 }
0x183f   :  { %9472 = vmatpush3.bf16.xpose.msra.mxu1 %v4569_v46 }
0x1840   :  { %v4292_v47 = vadd.f32 1e-06, %v4290_v59  ;;  %9483 = vmatprep.subr.bf16.mxu1 %v10394_v29 }
0x1841   :  { %v4513_v23 = vpop.permute.xlu0 %4512 }
0x1842   :  { %10182 = vrsqrt.f32 %v4292_v47  ;;  %v4518_v63 = vsel %vm260_vm2, %v4513_v23, 0 }
0x1845   :  { %v4615_v36 = vpop.permute.xlu0 %4614 }
0x1846   :  { %v4620_v8 = vsel %vm260_vm2, %v4615_v36, 0 }
0x184b   :  { %v10181_v48 = vpop.eup %10180 }
0x184c   :  { %v4295_v50 = vmul.f32 %v10181_v48, %v11412_v43  ;;  %v3131_v48 = vld [vmem:[%s12243_s3 + $0x10] sm:$0xff] }
0x184e   :  { %v4303_v18 = vmul.f32 %v8514_v53, %v4295_v50 }
0x184f   :  { %v10183_v49 = vpop.eup %10182 }
0x1850   :  { %v4296_v52 = vmul.f32 %v10183_v49, %v11417_v32 }
0x1852   :  { %v4304_v55 = vmul.f32 %v8514_v53, %v4296_v52 }
0x1854   :  { %v4313_v56 = vpack.c.bf16 %v4304_v55, %v4303_v18 }
0x1856   :  { %9444 = vmatmul.mubr.msk.bf16.vlgmr.msra.gmra.mxu0 %vm137_vm0, %v4313_v56 }
0x1857   :  { %9460 = vmatpush3.bf16.xpose.msra.mxu0 %v4465_v57  ;;  %9461 = vmatprep.mubr.msk.bf16.mxu0 %vm10395_vm1, %v10394_v29  ;;  %v3132_v57 = vld [vmem:[%s12243_s3 + $0x18] sm:$0xff] }
0x1858   :  { %9465 = vmatprep.subr.bf16.mxu0 %v10394_v29 }
0x1916   :  { %v4375_v14 = vpop.f32.mrf.mxu0 }
0x1917   :  { %v4459_v60 = vpack.c.bf16 %v4375_v14, %v4375_v14 }
0x1918   :  { %v9445_v9 = vpop.f32.mrf.mxu0 }
0x1919   :  { %4612 = vrot.lane.b32.xlu0 %v4459_v60, %s10401_s16  ;;  %4509 = vrot.lane.b32.xlu1 %v4459_v60, %s10396_s0 }
0x191a   :  { %9462 = vmatmul.mubr.msk.bf16.vlgmr.msra.gmra.mxu0 %vm260_vm2, %v4459_v60  ;;  %v4378_v0 = vpop.f32.mrf.mxu0 }
0x191b   :  { %9466 = vmatpush3.bf16.xpose.msra.mxu0 %v4518_v63  ;;  %v4663_v1 = vpack.c.bf16 %v4378_v0, %v4378_v0  ;;  %9467 = vmatprep.mubr.msk.bf16.mxu0 %vm10395_vm1, %v10394_v29 }
0x191c   :  { %v9446_v3 = vpop.f32.mrf.mxu0  ;;  %9477 = vmatprep.subr.bf16.mxu0 %v10394_v29 }
0x191d   :  { %4561 = vrot.lane.b32.xlu1 %v4459_v60, %s10402_s18  ;;  %4713 = vrot.lane.b32.xlu0 %v4663_v1, %s10396_s0  ;;  %v3133_v3 = vld [vmem:[%s12243_s3 + $0x20] sm:$0xff] }
0x1921   :  { %4716 = vrot.lane.b32.xlu1 %v11459_v4, %s10396_s0  ;;  %4818 = vrot.lane.b32.xlu0 %v11459_v4, %s10401_s16 }
0x1925   :  { %4767 = vrot.lane.b32.xlu1 %v11459_v4, %s10402_s18  ;;  %4816 = vrot.lane.b32.xlu0 %v4663_v1, %s10401_s16 }
0x1929   :  { %4765 = vrot.lane.b32.xlu1 %v4663_v1, %s10402_s18  ;;  %4975 = vrot.lane.b32.xlu0 %v11423_v39, %s10397_s7 }
0x192d   :  { %5026 = vrot.lane.b32.xlu1 %v11423_v39, %s10398_s10 }
0x198b   :  { %v4613_v5 = vpop.permute.xlu0 %4612  ;;  %v4510_v7 = vpop.permute.xlu1 %4509 }
0x198c   :  { %9468 = vmatmul.mubr.msk.bf16.vlgmr.msra.gmra.mxu0 %vm260_vm2, %v4510_v7 }
0x198d   :  { %9478 = vmatpush3.bf16.xpose.msra.mxu0 %v4620_v8  ;;  %9479 = vmatprep.mubr.msk.bf16.mxu0 %vm10395_vm1, %v10394_v29 }
0x198e   :  { %9489 = vmatprep.subr.bf16.mxu0 %v10394_v29 }
0x198f   :  { %v4562_v10 = vpop.permute.xlu1 %4561  ;;  %v4714_v12 = vpop.permute.xlu0 %4713 }
0x1990   :  { %9474 = vmatmul.mubr.msk.bf16.vlgmr.msra.gmra.mxu1 %vm260_vm2, %v4562_v10 }
0x1991   :  { %9484 = vmatpush3.bf16.xpose.msra.mxu1 %v4669_v13  ;;  %9485 = vmatprep.mubr.msk.bf16.mxu1 %vm10395_vm1, %v10394_v29 }
0x1992   :  { %9495 = vmatprep.subr.bf16.mxu1 %v10394_v29 }
0x1993   :  { %v4717_v16 = vpop.permute.xlu1 %4716  ;;  %v4819_v6 = vpop.permute.xlu0 %4818 }
0x1994   :  { %v4722_v19 = vsel %vm260_vm2, %v4717_v16, 0  ;;  %9480 = vmatmul.mubr.msk.bf16.vlgmr.msra.gmra.mxu0 %vm260_vm2, %v4613_v5  ;;  %v4824_v24 = vsel %vm260_vm2, %v4819_v6, 0  ;;  %v3134_v16 = vld [vmem:[%s12243_s3 + $0x28] sm:$0xff] }
0x1995   :  { %9490 = vmatpush3.bf16.xpose.msra.mxu0 %v4722_v19  ;;  %9491 = vmatprep.mubr.msk.bf16.mxu0 %vm10395_vm1, %v10394_v29 }
0x1996   :  { %9501 = vmatprep.subr.bf16.mxu0 %v10394_v29 }
0x1997   :  { %v4768_v21 = vpop.permute.xlu1 %4767  ;;  %v4817_v20 = vpop.permute.xlu0 %4816 }
0x1998   :  { %v4773_v62 = vsel %vm260_vm2, %v4768_v21, 0  ;;  %9486 = vmatmul.mubr.msk.bf16.vlgmr.msra.gmra.mxu1 %vm260_vm2, %v4663_v1 }
0x1999   :  { %9496 = vmatpush3.bf16.xpose.msra.mxu1 %v4773_v62  ;;  %9497 = vmatprep.mubr.msk.bf16.mxu1 %vm10395_vm1, %v10394_v29 }
0x199a   :  { %9507 = vmatprep.subr.bf16.mxu1 %v10394_v29 }
0x199b   :  { %v4766_v22 = vpop.permute.xlu1 %4765  ;;  %v4976_v26 = vpop.permute.xlu0 %4975 }
0x199c   :  { %9492 = vmatmul.mubr.msk.bf16.vlgmr.msra.gmra.mxu0 %vm260_vm2, %v4714_v12  ;;  %v4981_v28 = vsel %vm778_vm3, %v4976_v26, 0  ;;  %v3135_v26 = vld [vmem:[%s12243_s3 + $0x30] sm:$0xff] }
0x199d   :  { %9502 = vmatpush3.bf16.xpose.msra.mxu0 %v4824_v24  ;;  %9503 = vmatprep.mubr.msk.bf16.mxu0 %vm10395_vm1, %v10394_v29 }
0x199e   :  { %9513 = vmatprep.subr.bf16.mxu0 %v10394_v29 }
0x199f   :  { %v5027_v30 = vpop.permute.xlu1 %5026 }
0x19a0   :  { %9498 = vmatmul.mubr.msk.bf16.vlgmr.msra.gmra.mxu1 %vm260_vm2, %v4766_v22  ;;  %v5032_v25 = vsel %vm778_vm3, %v5027_v30, 0 }
0x19a1   :  { %9508 = vmatpush3.bf16.msra.mxu1 %v4981_v28  ;;  %9509 = vmatprep.mubr.msk.bf16.mxu1 %vm10395_vm1, %v10394_v29 }
0x19a2   :  { %9519 = vmatprep.subr.bf16.mxu1 %v10394_v29 }
0x19a4   :  { %9504 = vmatmul.mubr.msk.bf16.vlgmr.msra.gmra.mxu0 %vm260_vm2, %v4817_v20 }
0x19a5   :  { %9514 = vmatpush3.bf16.msra.mxu0 %v5032_v25  ;;  %9515 = vmatprep.mubr.msk.bf16.mxu0 %vm10395_vm1, %v10394_v29 }
0x19a6   :  { %9525 = vmatprep.subr.bf16.mxu0 %v10394_v29 }
0x19da   :  { %v4501_v31 = vpop.f32.mrf.mxu0 }
0x19db   :  { %4507 = vst.msk [vmem:[#allocation2] sm:$0xff] %vm307_vm4, %v4501_v31 }
0x19dc   :  { %v9463_v58 = vpop.f32.mrf.mxu0 }
0x19de   :  { %v4504_v33 = vpop.f32.mrf.mxu0 }
0x19df   :  { %v3136_v33 = vld [vmem:[%s12243_s3 + $0x38] sm:$0xff] }
0x19e0   :  { %v9464_v34 = vpop.f32.mrf.mxu0 }
0x19e2   :  { %v4867_v37 = vld [vmem:[#allocation2] sm:$0xff] }
0x19e3   :  { %v11511_v38 = vadd.f32 %v4867_v37, %v3129_v51 }
0x19e5   :  { %v4883_v54 = vsel %vm307_vm4, %v11511_v38, -inf }
0x19e6   :  { %4884 = vmax.xlane.f32.xlu1 %v4883_v54 }
0x1a4c   :  { %v4554_v40 = vpop.f32.mrf.mxu0 }
0x1a4d   :  { %4560 = vst.msk [vmem:[#allocation2 + $0x8] sm:$0xff] %vm307_vm4, %v4554_v40 }
0x1a4e   :  { %v9469_v35 = vpop.f32.mrf.mxu0 }
0x1a50   :  { %v4557_v27 = vpop.f32.mrf.mxu0  ;;  %v4605_v41 = vpop.f32.mrf.mxu1 }
0x1a51   :  { %4611 = vst.msk [vmem:[#allocation2 + $0x10] sm:$0xff] %vm307_vm4, %v4605_v41 }
0x1a52   :  { %v9470_v42 = vpop.f32.mrf.mxu0  ;;  %v9475_v44 = vpop.f32.mrf.mxu1 }
0x1a54   :  { %v4608_v45 = vpop.f32.mrf.mxu1  ;;  %v4656_v2 = vpop.f32.mrf.mxu0  ;;  %v4868_v15 = vld [vmem:[#allocation2 + $0x8] sm:$0xff] }
0x1a55   :  { %4662 = vst.msk [vmem:[#allocation2 + $0x18] sm:$0xff] %vm307_vm4, %v4656_v2  ;;  %v11519_v59 = vadd.f32 %v4868_v15, %v3130_v17 }
0x1a56   :  { %v9476_v46 = vpop.f32.mrf.mxu1  ;;  %v9481_v47 = vpop.f32.mrf.mxu0 }
0x1a57   :  { %v4886_v50 = vsel %vm307_vm4, %v11519_v59, -inf }
0x1a58   :  { %v4705_v49 = vpop.f32.mrf.mxu1  ;;  %4887 = vmax.xlane.f32.xlu0 %v4886_v50  ;;  %v4659_v53 = vpop.f32.mrf.mxu0  ;;  %v4869_v52 = vld [vmem:[#allocation2 + $0x10] sm:$0xff] }
0x1a59   :  { %4711 = vst.msk [vmem:[#allocation2 + $0x20] sm:$0xff] %vm307_vm4, %v4705_v49  ;;  %v4877_v18 = vadd.f32 %v4869_v52, %v3131_v48 }
0x1a5a   :  { %v9482_v55 = vpop.f32.mrf.mxu0  ;;  %v9487_v56 = vpop.f32.mrf.mxu1 }
0x1a5b   :  { %v4889_v14 = vsel %vm307_vm4, %v4877_v18, -inf }
0x1a5c   :  { %v4708_v23 = vpop.f32.mrf.mxu1  ;;  %4890 = vmax.xlane.f32.xlu0 %v4889_v14  ;;  %v4758_v60 = vpop.f32.mrf.mxu0  ;;  %v4870_v9 = vld [vmem:[#allocation2 + $0x18] sm:$0xff] }
0x1a5d   :  { %4764 = vst.msk [vmem:[#allocation2 + $0x28] sm:$0xff] %vm307_vm4, %v4758_v60  ;;  %v11528_v63 = vadd.f32 %v4870_v9, %v3132_v57 }
0x1a5e   :  { %v9488_v0 = vpop.f32.mrf.mxu1  ;;  %v9493_v1 = vpop.f32.mrf.mxu0 }
0x1a5f   :  { %v4892_v36 = vsel %vm307_vm4, %v11528_v63, -inf }
0x1a60   :  { %v4809_v5 = vpop.f32.mrf.mxu1  ;;  %4893 = vmax.xlane.f32.xlu1 %v4892_v36  ;;  %v4761_v7 = vpop.f32.mrf.mxu0  ;;  %v4871_v8 = vld [vmem:[#allocation2 + $0x20] sm:$0xff] }
0x1a61   :  { %4815 = vst.msk [vmem:[#allocation2 + $0x30] sm:$0xff] %vm307_vm4, %v4809_v5  ;;  %v4879_v10 = vadd.f32 %v4871_v8, %v3133_v3 }
0x1a62   :  { %v9494_v12 = vpop.f32.mrf.mxu0  ;;  %v9499_v13 = vpop.f32.mrf.mxu1 }
0x1a63   :  { %v4895_v6 = vsel %vm307_vm4, %v4879_v10, -inf }
0x1a64   :  { %v4812_v19 = vpop.f32.mrf.mxu1  ;;  %4896 = vmax.xlane.f32.xlu0 %v4895_v6  ;;  %v4860_v21 = vpop.f32.mrf.mxu0  ;;  %v4872_v20 = vld [vmem:[#allocation2 + $0x28] sm:$0xff] }
0x1a65   :  { %4866 = vst.msk [vmem:[#allocation2 + $0x38] sm:$0xff] %vm307_vm4, %v4860_v21  ;;  %v4880_v62 = vadd.f32 %v4872_v20, %v3134_v16 }
0x1a66   :  { %v9500_v22 = vpop.f32.mrf.mxu1  ;;  %v9505_v24 = vpop.f32.mrf.mxu0 }
0x1a67   :  { %v4898_v28 = vsel %vm307_vm4, %v4880_v62, -inf }
0x1a68   :  { %4899 = vmax.xlane.f32.xlu1 %v4898_v28  ;;  %v4863_v30 = vpop.f32.mrf.mxu0  ;;  %v4873_v25 = vld [vmem:[#allocation2 + $0x30] sm:$0xff] }
0x1a69   :  { %v4881_v31 = vadd.f32 %v4873_v25, %v3135_v26 }
0x1a6a   :  { %v9506_v58 = vpop.f32.mrf.mxu0 }
0x1a6b   :  { %v4901_v34 = vsel %vm307_vm4, %v4881_v31, -inf }
0x1a6c   :  { %4902 = vmax.xlane.f32.xlu0 %v4901_v34  ;;  %v4874_v51 = vld [vmem:[#allocation2 + $0x38] sm:$0xff] }
0x1a6d   :  { %v4882_v37 = vadd.f32 %v4874_v51, %v3136_v33 }
0x1a6f   :  { %v4904_v54 = vsel %vm307_vm4, %v4882_v37, -inf  ;;  %v4885_v40 = vpop.xlane.xlu1 %4884 }
0x1a70   :  { %4905 = vmax.xlane.f32.xlu1 %v4904_v54  ;;  %v4907_v35 = vsub.f32 %v11511_v38, %v4885_v40 }
0x1a72   :  { %v4915_v27 = vmul.f32 1.442695, %v4907_v35 }
0x1a74   :  { %10184 = vpow2.f32 %v4915_v27 }
0x1a81   :  { %5079 = vrot.lane.b32.xlu1 %v11423_v39, %s10399_s11  ;;  %v11547_v41 = vpop.eup %10184 }
0x1a82   :  { %5134 = vrot.lane.b32.xlu0 %v11423_v39, %s10400_s15  ;;  %v4931_v42 = vsel %vm307_vm4, %v11547_v41, 0.0 }
0x1aa1   :  { %4932 = vadd.xlane.f32.xlu0 %v4931_v42 }
0x1ae1   :  { %v4888_v44 = vpop.xlane.xlu0 %4887 }
0x1ae2   :  { %v4908_v17 = vsub.f32 %v11519_v59, %v4888_v44 }
0x1ae4   :  { %v4917_v45 = vmul.f32 1.442695, %v4908_v17 }
0x1ae5   :  { %v4891_v2 = vpop.xlane.xlu0 %4890 }
0x1ae6   :  { %10186 = vpow2.f32 %v4917_v45  ;;  %v4909_v15 = vsub.f32 %v4877_v18, %v4891_v2 }
0x1ae8   :  { %v4919_v46 = vmul.f32 1.442695, %v4909_v15 }
0x1ae9   :  { %v4894_v18 = vpop.xlane.xlu1 %4893 }
0x1aea   :  { %10188 = vpow2.f32 %v4919_v46  ;;  %v4910_v55 = vsub.f32 %v11528_v63, %v4894_v18 }
0x1aec   :  { %v4921_v57 = vmul.f32 1.442695, %v4910_v55 }
0x1aed   :  { %v4897_v39 = vpop.xlane.xlu0 %4896 }
0x1aee   :  { %v4911_v47 = vsub.f32 %v4879_v10, %v4897_v39 }
0x1af0   :  { %v4923_v38 = vmul.f32 1.442695, %v4911_v47 }
0x1af1   :  { %v4900_v56 = vpop.xlane.xlu1 %4899 }
0x1af2   :  { %10190 = vpow2.f32 %v4923_v38  ;;  %v4912_v14 = vsub.f32 %v4880_v62, %v4900_v56 }
0x1af3   :  { %v10187_v48 = vpop.eup %10186  ;;  %10192 = vpow2.f32 %v4921_v57 }
0x1af4   :  { %v4934_v50 = vsel %vm307_vm4, %v10187_v48, 0.0  ;;  %v4925_v60 = vmul.f32 1.442695, %v4912_v14 }
0x1af5   :  { %4935 = vadd.xlane.f32.xlu1 %v4934_v50  ;;  %v4903_v0 = vpop.xlane.xlu0 %4902 }
0x1af6   :  { %10194 = vpow2.f32 %v4925_v60  ;;  %v4913_v1 = vsub.f32 %v4881_v31, %v4903_v0 }
0x1af7   :  { %v11553_v49 = vpop.eup %10188 }
0x1af8   :  { %v4937_v53 = vsel %vm307_vm4, %v11553_v49, 0.0  ;;  %v4927_v36 = vmul.f32 1.442695, %v4913_v1 }
0x1af9   :  { %4938 = vadd.xlane.f32.xlu0 %v4937_v53  ;;  %v4906_v23 = vpop.xlane.xlu1 %4905  ;;  %v5135_v6 = vpop.permute.xlu0 %5134 }
0x1afa   :  { %v4914_v9 = vsub.f32 %v4882_v37, %v4906_v23 }
0x1afc   :  { %v4929_v3 = vmul.f32 1.442695, %v4914_v9 }
0x1afd   :  { %v5080_v19 = vpop.permute.xlu1 %5079 }
0x1afe   :  { %10196 = vpow2.f32 %v4929_v3  ;;  %v5085_v30 = vsel %vm778_vm3, %v5080_v19, 0 }
0x1aff   :  { %v11557_v59 = vpop.eup %10190  ;;  %10198 = vpow2.f32 %v4927_v36 }
0x1b00   :  { %v4943_v52 = vsel %vm307_vm4, %v11557_v59, 0.0  ;;  %v10193_v5 = vpop.eup %10192 }
0x1b01   :  { %4944 = vadd.xlane.f32.xlu0 %v4943_v52  ;;  %v4940_v63 = vsel %vm307_vm4, %v10193_v5, 0.0 }
0x1b03   :  { %v10195_v7 = vpop.eup %10194 }
0x1b04   :  { %v4946_v8 = vsel %vm307_vm4, %v10195_v7, 0.0 }
0x1b06   :  { %5187 = vrot.lane.b32.xlu1 %v11459_v4, %s10397_s7 }
0x1b0b   :  { %v11568_v10 = vpop.eup %10196 }
0x1b0c   :  { %v4952_v12 = vsel %vm307_vm4, %v11568_v10, 0.0  ;;  %v11572_v13 = vpop.eup %10198 }
0x1b0d   :  { %v4949_v16 = vsel %vm307_vm4, %v11572_v13, 0.0 }
0x1b17   :  { %5238 = vrot.lane.b32.xlu0 %v11459_v4, %s10398_s10 }
0x1b2a   :  { %4941 = vadd.xlane.f32.xlu1 %v4940_v63  ;;  %v4933_v21 = vpop.xlane.xlu0 %4932  ;;  %v10002_v63 = vld [vmem:[%s12244_s8 + $0x18] sm:$0xff]  }
0x1b2b   :  { %10200 = vrcp.f32 %v4933_v21 }
0x1b2e   :  { %4947 = vadd.xlane.f32.xlu1 %v4946_v8 }
0x1b32   :  { %4953 = vadd.xlane.f32.xlu1 %v4952_v12 }
0x1b36   :  { %4950 = vadd.xlane.f32.xlu0 %v4949_v16  ;;  %v10003_v16 = vld [vmem:[%s12244_s8 + $0x10] sm:$0xff]  }
0x1b38   :  { %v10201_v62 = vpop.eup %10200 }
0x1b39   :  { %v4963_v24 = vmul.f32 %v10201_v62, %v11547_v41  ;;  %v10004_v62 = vld [vmem:[%s12244_s8 + $0x8] sm:$0xff]  }
0x1b43   :  { %5291 = vrot.lane.b32.xlu1 %v11459_v4, %s10399_s11 }
0x1b4c   :  { %5346 = vrot.lane.b32.xlu0 %v11459_v4, %s10400_s15  ;;  %v5140_v4 = vsel %vm778_vm3, %v5135_v6, 0 }
0x1b7e   :  { %v4936_v20 = vpop.xlane.xlu1 %4935 }
0x1b7f   :  { %10202 = vrcp.f32 %v4936_v20 }
0x1b82   :  { %v4939_v31 = vpop.xlane.xlu0 %4938  ;;  %v5188_v58 = vpop.permute.xlu1 %5187 }
0x1b83   :  { %10204 = vrcp.f32 %v4939_v31  ;;  %v5193_v2 = vsel %vm778_vm3, %v5188_v58, 0 }
0x1b8a   :  { %v4945_v34 = vpop.xlane.xlu0 %4944 }
0x1b8c   :  { %v10203_v22 = vpop.eup %10202 }
0x1b8d   :  { %v4964_v26 = vmul.f32 %v10203_v22, %v10187_v48 }
0x1b8e   :  { %v5239_v37 = vpop.permute.xlu0 %5238 }
0x1b8f   :  { %v4971_v28 = vpack.c.bf16 %v4964_v26, %v4963_v24  ;;  %v5244_v47 = vsel %vm778_vm3, %v5239_v37, 0  ;;  %v10005_v26 = vld [vmem:[%s12244_s8] sm:$0xff]  }
0x1b90   :  { %v10205_v40 = vpop.eup %10204 }
0x1b91   :  { %9510 = vmatmul.mubr.msk.bf16.vlgmr.msra.gmra.mxu1 %vm307_vm4, %v4971_v28  ;;  %v5025_v25 = vrot.slane %v4971_v28, 4  ;;  %v4965_v41 = vmul.f32 %v10205_v40, %v11553_v49 }
0x1b92   :  { %9520 = vmatpush3.bf16.msra.mxu1 %v5085_v30  ;;  %9521 = vmatprep.mubr.msk.bf16.mxu1 %vm10395_vm1, %v10394_v29 }
0x1b93   :  { %9516 = vmatmul.mubr.msk.bf16.vlgmr.msra.gmra.mxu0 %vm307_vm4, %v5025_v25  ;;  %9531 = vmatprep.subr.bf16.mxu1 %v10394_v29 }
0x1b94   :  { %9526 = vmatpush3.bf16.msra.mxu0 %v5140_v4  ;;  %9527 = vmatprep.mubr.msk.bf16.mxu0 %vm10395_vm1, %v10394_v29 }
0x1b95   :  { %9537 = vmatprep.subr.bf16.mxu0 %v10394_v29 }
0x1bb3   :  { %v4942_v33 = vpop.xlane.xlu1 %4941 }
0x1bb4   :  { %10206 = vrcp.f32 %v4942_v33 }
0x1bb5   :  { %10208 = vrcp.f32 %v4945_v34 }
0x1bb7   :  { %v4948_v51 = vpop.xlane.xlu1 %4947 }
0x1bb8   :  { %10210 = vrcp.f32 %v4948_v51 }
0x1bbb   :  { %v4954_v54 = vpop.xlane.xlu1 %4953 }
0x1bbc   :  { %10212 = vrcp.f32 %v4954_v54 }
0x1bbf   :  { %v4951_v35 = vpop.xlane.xlu0 %4950  ;;  %v5292_v48 = vpop.permute.xlu1 %5291 }
0x1bc0   :  { %10214 = vrcp.f32 %v4951_v35 }
0x1bc1   :  { %v10207_v27 = vpop.eup %10206 }
0x1bc2   :  { %v4966_v42 = vmul.f32 %v10207_v27, %v10193_v5  ;;  %v10209_v44 = vpop.eup %10208 }
0x1bc3   :  { %v4967_v39 = vmul.f32 %v10209_v44, %v11557_v59  ;;  %v5347_v53 = vpop.permute.xlu0 %5346  ;;  %v5297_v59 = vsel %vm778_vm3, %v5292_v48, 0 }
0x1bc4   :  { %v4972_v17 = vpack.c.bf16 %v4966_v42, %v4965_v41  ;;  %v5352_v56 = vsel %vm778_vm3, %v5347_v53, 0 }
0x1bc5   :  { %v10211_v45 = vpop.eup %10210 }
0x1bc6   :  { %v4968_v15 = vmul.f32 %v10211_v45, %v10195_v7  ;;  %9522 = vmatmul.mubr.msk.bf16.vlgmr.msra.gmra.mxu1 %vm307_vm4, %v4972_v17  ;;  %v5133_v46 = vrot.slane %v4972_v17, 4 }
0x1bc7   :  { %9532 = vmatpush3.bf16.msra.mxu1 %v5193_v2  ;;  %9533 = vmatprep.mubr.msk.bf16.mxu1 %vm10395_vm1, %v10394_v29 }
0x1bc8   :  { %9528 = vmatmul.mubr.msk.bf16.vlgmr.msra.gmra.mxu0 %vm307_vm4, %v5133_v46  ;;  %9543 = vmatprep.subr.bf16.mxu1 %v10394_v29  ;;  %v4973_v38 = vpack.c.bf16 %v4968_v15, %v4967_v39 }
0x1bc9   :  { %9538 = vmatpush3.bf16.msra.mxu0 %v5244_v47  ;;  %9539 = vmatprep.mubr.msk.bf16.mxu0 %vm10395_vm1, %v10394_v29  ;;  %v10213_v50 = vpop.eup %10212 }
0x1bca   :  { %9549 = vmatprep.subr.bf16.mxu0 %v10394_v29  ;;  %v5237_v18 = vrot.slane %v4973_v38, 4  ;;  %v4970_v55 = vmul.f32 %v10213_v50, %v11568_v10 }
0x1bcd   :  { %v10215_v49 = vpop.eup %10214 }
0x1bce   :  { %v4969_v52 = vmul.f32 %v10215_v49, %v11572_v13  ;;  %9534 = vmatmul.mubr.msk.bf16.vlgmr.msra.gmra.mxu1 %vm307_vm4, %v4973_v38 }
0x1bcf   :  { %9544 = vmatpush3.bf16.msra.mxu1 %v5297_v59  ;;  %9545 = vmatprep.mubr.msk.bf16.mxu1 %vm10395_vm1, %v10394_v29 }
0x1bd0   :  { %9540 = vmatmul.mubr.msk.bf16.vlgmr.msra.gmra.mxu0 %vm307_vm4, %v5237_v18  ;;  %9555 = vmatprep.subr.bf16.mxu1 %v10394_v29  ;;  %v4974_v57 = vpack.c.bf16 %v4970_v55, %v4969_v52  ;;  %v10006_v18 = vld [vmem:[%s12245_s14 + $0x18] sm:$0xff]   ;;  %v10008_v55 = vld [vmem:[%s12245_s14 + $0x8] sm:$0xff]  }
0x1bd1   :  { %9550 = vmatpush3.bf16.msra.mxu0 %v5352_v56  ;;  %9551 = vmatprep.mubr.msk.bf16.mxu0 %vm10395_vm1, %v10394_v29  ;;  %v10009_v56 = vld [vmem:[%s12245_s14] sm:$0xff]  }
0x1bd2   :  { %9567 = vmatprep.subr.bf16.mxu0 %v10394_v29  ;;  %v5345_v14 = vrot.slane %v4974_v57, 4 }
0x1bd6   :  { %9546 = vmatmul.mubr.msk.bf16.vlgmr.msra.gmra.mxu1 %vm307_vm4, %v4974_v57  ;;  %v10010_v57 = vld [vmem:[%s12246_s19 + $0x38] sm:$0xff]  }
0x1bd7   :  { %9563 = vmatprep.mubr.msk.bf16.mxu1 %vm10395_vm1, %v10394_v29  ;;  %9556 = vmatpush3.bf16.msra.mxu1 %v10002_v63 }
0x1bd8   :  { %9552 = vmatmul.mubr.msk.bf16.vlgmr.msra.gmra.mxu0 %vm307_vm4, %v5345_v14  ;;  %9557 = vmatprep.subr.bf16.mxu1 %v10394_v29  ;;  %v10011_v14 = vld [vmem:[%s12246_s19 + $0x30] sm:$0xff]  }
0x1bd9   :  { %9575 = vmatprep.mubr.msk.bf16.mxu0 %vm10395_vm1, %v10394_v29  ;;  %9568 = vmatpush3.bf16.msra.mxu0 %v10006_v18 }
0x1bda   :  { %9569 = vmatprep.subr.bf16.mxu0 %v10394_v29 }
0x1bdb   :  { %9558 = vmatpush3.bf16.msra.mxu1 %v10003_v16 }
0x1bdc   :  { %9559 = vmatprep.subr.bf16.mxu1 %v10394_v29 }
0x1bdf   :  { %9560 = vmatpush3.bf16.msra.mxu1 %v10004_v62  ;;  %v10017_v62 = vld [vmem:[%s12246_s19] sm:$0xff]  }
0x1be0   :  { %9561 = vmatprep.subr.bf16.mxu1 %v10394_v29 }
0x1be3   :  { %9562 = vmatpush3.bf16.msra.mxu1 %v10005_v26 }
0x1be4   :  { %9579 = vmatprep.subr.bf16.mxu1 %v10394_v29 }
0x1c51   :  { %v5017_v23 = vpop.f32.mrf.mxu1 }
0x1c52   :  { %5023 = vst.msk [vmem:[#allocation3] sm:$0xff] %vm260_vm2, %v5017_v23  ;;  %v10012_v23 = vld [vmem:[%s12246_s19 + $0x28] sm:$0xff]  }
0x1c53   :  { %v9511_v60 = vpop.f32.mrf.mxu1  ;;  %v5068_v9 = vpop.f32.mrf.mxu0 }
0x1c54   :  { %5075 = vrot.lane.b32.xlu1 %v5068_v9, %s10400_s15  ;;  %v10013_v60 = vld [vmem:[%s12246_s19 + $0x20] sm:$0xff]   ;;  %v10014_v9 = vld [vmem:[%s12246_s19 + $0x18] sm:$0xff]  }
0x1c55   :  { %v5020_v0 = vpop.f32.mrf.mxu1  ;;  %v9517_v1 = vpop.f32.mrf.mxu0 }
0x1c56   :  { %v10015_v0 = vld [vmem:[%s12246_s19 + $0x10] sm:$0xff]  }
0x1c57   :  { %v9512_v3 = vpop.f32.mrf.mxu1  ;;  %v5071_v36 = vpop.f32.mrf.mxu0 }
0x1c59   :  { %v9518_v5 = vpop.f32.mrf.mxu0 }
0x1c86   :  { %v5121_v7 = vpop.f32.mrf.mxu1 }
0x1c87   :  { %5128 = vrot.lane.b32.xlu1 %v5121_v7, %s10399_s11 }
0x1c88   :  { %v9523_v8 = vpop.f32.mrf.mxu1  ;;  %v5176_v10 = vpop.f32.mrf.mxu0 }
0x1c8a   :  { %v5124_v12 = vpop.f32.mrf.mxu1  ;;  %v9529_v13 = vpop.f32.mrf.mxu0 }
0x1c8b   :  { %5183 = vrot.lane.b32.xlu1 %v5176_v10, %s10398_s10  ;;  %v8546_v13 = vld [vmem:[%s12247_s24] ss:$0 sm:$0xff] }
0x1c8c   :  { %v9524_v6 = vpop.f32.mrf.mxu1  ;;  %v5179_v19 = vpop.f32.mrf.mxu0 }
0x1c8e   :  { %v9530_v21 = vpop.f32.mrf.mxu0  ;;  %v5229_v20 = vpop.f32.mrf.mxu1 }
0x1c8f   :  { %5235 = vst.msk [vmem:[#allocation3 + $0x8] sm:$0xff] %vm260_vm2, %v5229_v20  ;;  %v10016_v20 = vld [vmem:[%s12246_s19 + $0x8] sm:$0xff]  }
0x1c90   :  { %v9535_v22 = vpop.f32.mrf.mxu1  ;;  %v5280_v24 = vpop.f32.mrf.mxu0 }
0x1c91   :  { %5287 = vrot.lane.b32.xlu0 %v5280_v24, %s10400_s15 }
0x1c92   :  { %v5232_v28 = vpop.f32.mrf.mxu1  ;;  %v9541_v30 = vpop.f32.mrf.mxu0 }
0x1c94   :  { %v9536_v25 = vpop.f32.mrf.mxu1  ;;  %v5283_v4 = vpop.f32.mrf.mxu0 }
0x1c96   :  { %v9542_v31 = vpop.f32.mrf.mxu0  ;;  %v5333_v58 = vpop.f32.mrf.mxu1 }
0x1c97   :  { %5340 = vrot.lane.b32.xlu0 %v5333_v58, %s10399_s11 }
0x1c98   :  { %v9547_v33 = vpop.f32.mrf.mxu1  ;;  %v5388_v34 = vpop.f32.mrf.mxu0 }
0x1c9a   :  { %v5336_v51 = vpop.f32.mrf.mxu1  ;;  %v9553_v37 = vpop.f32.mrf.mxu0 }
0x1c9b   :  { %5395 = vrot.lane.b32.xlu0 %v5388_v34, %s10398_s10 }
0x1c9c   :  { %v9548_v54 = vpop.f32.mrf.mxu1  ;;  %v5391_v40 = vpop.f32.mrf.mxu0 }
0x1c9e   :  { %v9554_v35 = vpop.f32.mrf.mxu0 }
0x1cc6   :  { %v5076_v27 = vpop.permute.xlu1 %5075 }
0x1cc7   :  { %5078 = vst.msk [vmem:[#allocation3] sm:$0xff] %vm878_vm5, %v5076_v27  ;;  %v10020_v27 = vld [vmem:[%s10480_s6 + $0x74] ss:$8 sps:$4 sm:$0xff]  }
0x1cf9   :  { %v5129_v41 = vpop.permute.xlu1 %5128 }
0x1cfa   :  { %5131 = vst.msk [vmem:[#allocation3] sm:$0xff] %vm932_vm6, %v5129_v41  ;;  %v10018_v41 = vld [vmem:[%s10480_s6 + $0x70] ss:$8 sps:$4 sm:$0xff]  }
0x1cfd   :  { %v5184_v42 = vpop.permute.xlu1 %5183 }
0x1cfe   :  { %5186 = vst.msk [vmem:[#allocation3] sm:$0xff] %vm988_vm7, %v5184_v42  ;;  %v10023_v42 = vld [vmem:[%s10480_s6 + $0x64] ss:$8 sps:$4 sm:$0xff]  }
0x1d03   :  { %v5288_v44 = vpop.permute.xlu0 %5287 }
0x1d04   :  { %5290 = vst.msk [vmem:[#allocation3 + $0x8] sm:$0xff] %vm878_vm5, %v5288_v44  ;;  %v10021_v44 = vld [vmem:[%s10480_s6 + $0x60] ss:$8 sps:$4 sm:$0xff]  }
0x1d05   :  { %v5399_v2 = vld [vmem:[#allocation3] sm:$0xff] }
0x1d09   :  { %v5341_v17 = vpop.permute.xlu0 %5340 }
0x1d0a   :  { %5343 = vst.msk [vmem:[#allocation3 + $0x8] sm:$0xff] %vm932_vm6, %v5341_v17  ;;  %v10026_v17 = vld [vmem:[%s10480_s6 + $0x54] ss:$8 sps:$4 sm:$0xff]  }
0x1d0d   :  { %v5396_v45 = vpop.permute.xlu0 %5395 }
0x1d0e   :  { %5398 = vst.msk [vmem:[#allocation3 + $0x8] sm:$0xff] %vm988_vm7, %v5396_v45  ;;  %v10024_v45 = vld [vmem:[%s10480_s6 + $0x50] ss:$8 sps:$4 sm:$0xff]  }
0x1d15   :  { %v5400_v15 = vld [vmem:[#allocation3 + $0x8] sm:$0xff] }
0x1d16   :  { %v5409_v46 = vpack.c.bf16 %v5400_v15, %v5399_v2  ;;  %v10027_v2 = vld [vmem:[%s10480_s6 + $0x40] ss:$8 sps:$4 sm:$0xff]   ;;  %v10029_v15 = vld [vmem:[%s10480_s6 + $0x44] ss:$8 sps:$4 sm:$0xff]  }
0x1d18   :  { %9564 = vmatmul.mubr.msk.bf16.vlgmr.msra.gmra.mxu1 %vm137_vm0, %v5409_v46 }
0x1d19   :  { %9595 = vmatprep.mubr.msk.bf16.mxu1 %vm10395_vm1, %v10394_v29  ;;  %9580 = vmatpush3.bf16.msra.mxu1 %v10010_v57 }
0x1d1a   :  { %9581 = vmatprep.subr.bf16.mxu1 %v10394_v29 }
0x1d1d   :  { %9582 = vmatpush3.bf16.msra.mxu1 %v10011_v14 }
0x1d1e   :  { %9583 = vmatprep.subr.bf16.mxu1 %v10394_v29 }
0x1d21   :  { %9584 = vmatpush3.bf16.msra.mxu1 %v10012_v23 }
0x1d22   :  { %9585 = vmatprep.subr.bf16.mxu1 %v10394_v29 }
0x1d25   :  { %9586 = vmatpush3.bf16.msra.mxu1 %v10013_v60 }
0x1d26   :  { %9587 = vmatprep.subr.bf16.mxu1 %v10394_v29 }
0x1d29   :  { %9588 = vmatpush3.bf16.msra.mxu1 %v10014_v9 }
0x1d2a   :  { %9589 = vmatprep.subr.bf16.mxu1 %v10394_v29 }
0x1d2d   :  { %9590 = vmatpush3.bf16.msra.mxu1 %v10015_v0 }
0x1d2e   :  { %9591 = vmatprep.subr.bf16.mxu1 %v10394_v29 }
0x1d31   :  { %9592 = vmatpush3.bf16.msra.mxu1 %v10016_v20 }
0x1d32   :  { %9593 = vmatprep.subr.bf16.mxu1 %v10394_v29 }
0x1d35   :  { %9594 = vmatpush3.bf16.msra.mxu1 %v10017_v62 }
0x1d36   :  { %9611 = vmatprep.subr.bf16.mxu1 %v10394_v29 }
0x1dd8   :  { %v5471_v39 = vpop.f32.mrf.mxu1 }
0x1dd9   :  { %v11647_v47 = vadd.f32 %v5471_v39, %v11412_v43 }
0x1dda   :  { %v9565_v38 = vpop.f32.mrf.mxu1 }
0x1ddb   :  { %v5481_v48 = vmul.f32 %v11647_v47, %v11647_v47 }
0x1ddc   :  { %v5474_v50 = vpop.f32.mrf.mxu1 }
0x1ddd   :  { %v11652_v49 = vadd.f32 %v5474_v50, %v11417_v32  ;;  %v5483_v53 = vsel %vm137_vm0, %v5481_v48, 0.0  ;;  %v10007_v32 = vld [vmem:[%s12245_s14 + $0x10] sm:$0xff]  }
0x1dde   :  { %5484 = vadd.xlane.f32.xlu1 %v5483_v53  ;;  %v9566_v52 = vpop.f32.mrf.mxu1  ;;  %9570 = vmatpush3.bf16.msra.mxu0 %v10007_v32 }
0x1ddf   :  { %v5482_v59 = vmul.f32 %v11652_v49, %v11652_v49  ;;  %9571 = vmatprep.subr.bf16.mxu0 %v10394_v29 }
0x1de1   :  { %v5486_v43 = vsel %vm137_vm0, %v5482_v59, 0.0  ;;  %v8561_v59 = vld [vmem:[%s10475_s30 + $0x1] ss:$0 sm:$0xff]  ;;  %s10403_s30 = smov [#allocation4]  }
0x1de2   :  { %5487 = vadd.xlane.f32.xlu0 %v5486_v43  ;;  %9572 = vmatpush3.bf16.msra.mxu0 %v10008_v55  ;;  %s8284_s6 = sshll.u32 %s10403_s30, 4  ;;  %s8285_s6 = int_to_ptr.vmem [resolvable:$true] %s8284_s6 }
0x1de3   :  { %9573 = vmatprep.subr.bf16.mxu0 %v10394_v29  ;;  %s10320_s12 = scalar_lea.vmem %s8285_s6, 32  ;;  %p10325_p1 = scmp.lt.s32.totalorder %s8285_s6, %s8285_s6 }
0x1de4   :  { %p10321_p0 = scmp.ne.s32.totalorder %s8285_s6, %s10320_s12  ;;  %p10326_p2 = scmp.lt.s32.totalorder %s10320_s12, %s10320_s12 }
0x1de6   :  { %9574 = vmatpush3.bf16.msra.mxu0 %v10009_v56  ;;  %p10327_p3 = por %p10326_p2, %p10325_p1 }
0x1de7   :  { %5779 = vmatprep.subr.bf16.mxu0 %v10020_v27 }
0x1de8   :  { %p10328_p4 = pnand %p10327_p3, %p10321_p0 }
0x1e67   :  { %v5485_v1 = vpop.xlane.xlu1 %5484 }
0x1e68   :  { %v5489_v3 = vmul.f32 0.015625, %v5485_v1 }
0x1e6a   :  { %v5491_v36 = vadd.f32 1e-06, %v5489_v3 }
0x1e6b   :  { %v5488_v5 = vpop.xlane.xlu0 %5487 }
0x1e6c   :  { %10216 = vrsqrt.f32 %v5491_v36  ;;  %v5490_v63 = vmul.f32 0.015625, %v5488_v5 }
0x1e6e   :  { %v5492_v7 = vadd.f32 1e-06, %v5490_v63 }
0x1e70   :  { %10218 = vrsqrt.f32 %v5492_v7 }
0x1e79   :  { %v10217_v8 = vpop.eup %10216 }
0x1e7a   :  { %v5495_v10 = vmul.f32 %v10217_v8, %v11647_v47 }
0x1e7c   :  { %v5503_v6 = vmul.f32 %v8546_v13, %v5495_v10 }
0x1e7d   :  { %v10219_v12 = vpop.eup %10218 }
0x1e7e   :  { %v5496_v16 = vmul.f32 %v10219_v12, %v11652_v49 }
0x1e80   :  { %v5504_v19 = vmul.f32 %v8546_v13, %v5496_v16 }
0x1e82   :  { %v5513_v21 = vpack.c.bf16 %v5504_v19, %v5503_v6 }
0x1e84   :  { %9576 = vmatmul.mubr.msk.bf16.vlgmr.msra.gmra.mxu0 %vm137_vm0, %v5513_v21 }
0x1e85   :  { %5803 = vmatprep.mubr.bf16.mxu0 %v10393_v11  ;;  %5780 = vmatpush1.bf16.msra.mxu0 %v10018_v41  ;;  %v10304_v41 = vld [vmem:[%s12238_s13] sm:$0xff] }
0x1e86   :  { %5781 = vmatprep.subr.bf16.mxu0 %v10023_v42 }
0x1e89   :  { %5782 = vmatpush1.bf16.msra.mxu0 %v10021_v44 }
0x1e8a   :  { %5783 = vmatprep.subr.bf16.mxu0 %v10026_v17 }
0x1e8d   :  { %5784 = vmatpush1.bf16.msra.mxu0 %v10024_v45 }
0x1e8e   :  { %5785 = vmatprep.subr.bf16.mxu0 %v10029_v15 }
0x1e91   :  { %5786 = vmatpush1.bf16.msra.mxu0 %v10027_v2 }
0x1e92   :  { %9599 = vmatprep.subr.bf16.mxu0 %v10394_v29 }
0x1f44   :  { %v5575_v22 = vpop.f32.mrf.mxu0 }
0x1f45   :  { %v5582_v28 = vmax.f32 %v5575_v22, 0.0 }
0x1f46   :  { %v9577_v24 = vpop.f32.mrf.mxu0 }
0x1f48   :  { %v5578_v26 = vpop.f32.mrf.mxu0 }
0x1f49   :  { %v5583_v30 = vmax.f32 %v5578_v26, 0.0 }
0x1f4a   :  { %v9578_v25 = vpop.f32.mrf.mxu0 }
0x1f4b   :  { %v5600_v4 = vpack.c.bf16 %v5583_v30, %v5582_v28 }
0x1f4d   :  { %9596 = vmatmul.mubr.bf16.vlgmr.msra.gmra.mxu1 %v5600_v4 }
0x1f4e   :  { %9613 = vmatprep.mubr.msk.bf16.mxu1 %vm10395_vm1, %v10394_v29 }
0x200d   :  { %v5683_v11 = vpop.f32.mrf.mxu1 }
0x200e   :  { %v11689_v31 = vadd.f32 %v5683_v11, %v11647_v47 }
0x200f   :  { %v9597_v58 = vpop.f32.mrf.mxu1 }
0x2010   :  { %v5694_v33 = vmul.f32 %v11689_v31, %v11689_v31 }
0x2011   :  { %v5686_v34 = vpop.f32.mrf.mxu1 }
0x2012   :  { %v11694_v51 = vadd.f32 %v5686_v34, %v11652_v49  ;;  %v5696_v37 = vsel %vm137_vm0, %v5694_v33, 0.0 }
0x2013   :  { %5697 = vadd.xlane.f32.xlu0 %v5696_v37  ;;  %v9598_v54 = vpop.f32.mrf.mxu1 }
0x2014   :  { %v5695_v40 = vmul.f32 %v11694_v51, %v11694_v51 }
0x2016   :  { %v5699_v35 = vsel %vm137_vm0, %v5695_v40, 0.0 }
0x2017   :  { %5700 = vadd.xlane.f32.xlu1 %v5699_v35 }
0x209c   :  { %v5698_v46 = vpop.xlane.xlu0 %5697 }
0x209d   :  { %v5702_v39 = vmul.f32 0.015625, %v5698_v46 }
0x209f   :  { %v5704_v47 = vadd.f32 1e-06, %v5702_v39  ;;  %v10305_v39 = vld [vmem:[%s12238_s13 + $0x10] sm:$0xff] }
0x20a0   :  { %v5701_v38 = vpop.xlane.xlu1 %5700 }
0x20a1   :  { %10220 = vrsqrt.f32 %v5704_v47  ;;  %v5703_v48 = vmul.f32 0.015625, %v5701_v38 }
0x20a3   :  { %v5705_v50 = vadd.f32 1e-06, %v5703_v48 }
0x20a5   :  { %10222 = vrsqrt.f32 %v5705_v50 }
0x20ae   :  { %v10221_v49 = vpop.eup %10220 }
0x20af   :  { %v5708_v53 = vmul.f32 %v10221_v49, %v11689_v31 }
0x20b1   :  { %v5716_v18 = vmul.f32 %v8561_v59, %v5708_v53 }
0x20b2   :  { %v10223_v52 = vpop.eup %10222 }
0x20b3   :  { %v5709_v43 = vmul.f32 %v10223_v52, %v11694_v51 }
0x20b5   :  { %v5717_v32 = vmul.f32 %v8561_v59, %v5709_v43  ;;  %v10306_v59 = vld [vmem:[%s12238_s13 + $0x8] sm:$0xff] }
0x20b7   :  { %v5727_v55 = vpack.c.bf16 %v5717_v32, %v5716_v18 }
0x20b9   :  { %8578 = vmatmul.mubr.msk.bf16.vlgmr.msra.gmra.mxu0 %vm137_vm0, %v5727_v55 }
0x20ba   :  { %9601 = vmatprep.mubr.msk.bf16.mxu0 %vm10395_vm1, %v10394_v29 }
0x2179   :  { %v5805_v56 = vpop.f32.mrf.mxu0 }
0x217a   :  { %v5814_v57 = vpack.c.bf16 %v5805_v56, %v5805_v56 }
0x217b   :  { %v5807_v14 = vpop.f32.mrf.mxu0 }
0x217c   :  { %5867 = vrot.lane.b32.xlu1 %v5814_v57, %s10398_s10  ;;  %5816 = vrot.lane.b32.xlu0 %v5814_v57, %s10397_s7  ;;  %v11753_v62 = vpack.c.bf16 %v5807_v14, %v5807_v14 }
0x217d   :  { %v5809_v23 = vpop.f32.mrf.mxu0 }
0x217e   :  { %v6018_v60 = vpack.c.bf16 %v5809_v23, %v5809_v23  ;;  %v6335_v26 = vsel %vm778_vm3, %v11753_v62, 0  ;;  %v10307_v23 = vld [vmem:[%s12238_s13 + $0x20] sm:$0xff] }
0x217f   :  { %v11774_v4 = vpop.f32.mrf.mxu0 }
0x2180   :  { %5865 = vrot.lane.b32.xlu1 %v5814_v57, %s10396_s0  ;;  %5918 = vrot.lane.b32.xlu0 %v5814_v57, %s10399_s11 }
0x2184   :  { %5969 = vrot.lane.b32.xlu1 %v5814_v57, %s10400_s15  ;;  %5916 = vrot.lane.b32.xlu0 %v5814_v57, %s10402_s18 }
0x2188   :  { %5967 = vrot.lane.b32.xlu1 %v5814_v57, %s10401_s16  ;;  %6020 = vrot.lane.b32.xlu0 %v6018_v60, %s10397_s7 }
0x218c   :  { %6071 = vrot.lane.b32.xlu1 %v6018_v60, %s10398_s10  ;;  %6069 = vrot.lane.b32.xlu0 %v6018_v60, %s10396_s0 }
0x2190   :  { %6122 = vrot.lane.b32.xlu1 %v6018_v60, %s10399_s11  ;;  %6173 = vrot.lane.b32.xlu0 %v6018_v60, %s10400_s15 }
0x2194   :  { %6120 = vrot.lane.b32.xlu1 %v6018_v60, %s10402_s18  ;;  %6171 = vrot.lane.b32.xlu0 %v6018_v60, %s10401_s16 }
0x21ee   :  { %v5868_v9 = vpop.permute.xlu1 %5867  ;;  %v5817_v0 = vpop.permute.xlu0 %5816 }
0x21ef   :  { %v5822_v1 = vsel %vm260_vm2, %v5817_v0, 0  ;;  %v5873_v8 = vsel %vm260_vm2, %v5868_v9, 0 }
0x21f0   :  { %9600 = vmatpush3.bf16.xpose.msra.mxu0 %v5822_v1 }
0x21f1   :  { %9605 = vmatprep.subr.bf16.mxu0 %v10394_v29 }
0x21f2   :  { %v5866_v3 = vpop.permute.xlu1 %5865  ;;  %v5919_v36 = vpop.permute.xlu0 %5918 }
0x21f3   :  { %v5924_v5 = vsel %vm260_vm2, %v5919_v36, 0 }
0x21f4   :  { %9612 = vmatpush3.bf16.xpose.msra.mxu1 %v5924_v5 }
0x21f5   :  { %9623 = vmatprep.subr.bf16.mxu1 %v10394_v29 }
0x21f6   :  { %v5970_v63 = vpop.permute.xlu1 %5969  ;;  %v5917_v7 = vpop.permute.xlu0 %5916 }
0x21f7   :  { %9602 = vmatmul.mubr.msk.bf16.vlgmr.msra.gmra.mxu0 %vm260_vm2, %v5814_v57  ;;  %v5975_v6 = vsel %vm260_vm2, %v5970_v63, 0  ;;  %v10308_v63 = vld [vmem:[%s12238_s13 + $0x18] sm:$0xff] }
0x21f8   :  { %9606 = vmatpush3.bf16.xpose.msra.mxu0 %v5873_v8  ;;  %9607 = vmatprep.mubr.msk.bf16.mxu0 %vm10395_vm1, %v10394_v29 }
0x21f9   :  { %9617 = vmatprep.subr.bf16.mxu0 %v10394_v29 }
0x21fa   :  { %v5968_v10 = vpop.permute.xlu1 %5967  ;;  %v6021_v12 = vpop.permute.xlu0 %6020 }
0x21fb   :  { %v6026_v13 = vsel %vm260_vm2, %v6021_v12, 0  ;;  %9614 = vmatmul.mubr.msk.bf16.vlgmr.msra.gmra.mxu1 %vm260_vm2, %v5917_v7 }
0x21fc   :  { %9624 = vmatpush3.bf16.xpose.msra.mxu1 %v6026_v13  ;;  %9625 = vmatprep.mubr.msk.bf16.mxu1 %vm10395_vm1, %v10394_v29 }
0x21fd   :  { %9635 = vmatprep.subr.bf16.mxu1 %v10394_v29 }
0x21fe   :  { %v6072_v16 = vpop.permute.xlu1 %6071  ;;  %v6070_v20 = vpop.permute.xlu0 %6069 }
0x21ff   :  { %9608 = vmatmul.mubr.msk.bf16.vlgmr.msra.gmra.mxu0 %vm260_vm2, %v5866_v3  ;;  %v6077_v22 = vsel %vm260_vm2, %v6072_v16, 0 }
0x2200   :  { %9618 = vmatpush3.bf16.xpose.msra.mxu0 %v5975_v6  ;;  %9619 = vmatprep.mubr.msk.bf16.mxu0 %vm10395_vm1, %v10394_v29  ;;  %v10309_v6 = vld [vmem:[%s12238_s13 + $0x30] sm:$0xff] }
0x2201   :  { %9629 = vmatprep.subr.bf16.mxu0 %v10394_v29 }
0x2202   :  { %v6123_v19 = vpop.permute.xlu1 %6122  ;;  %v6174_v28 = vpop.permute.xlu0 %6173 }
0x2203   :  { %v6128_v21 = vsel %vm260_vm2, %v6123_v19, 0  ;;  %9626 = vmatmul.mubr.msk.bf16.vlgmr.msra.gmra.mxu1 %vm260_vm2, %v6018_v60  ;;  %v6179_v30 = vsel %vm260_vm2, %v6174_v28, 0 }
0x2204   :  { %9636 = vmatpush3.bf16.xpose.msra.mxu1 %v6128_v21  ;;  %9637 = vmatprep.mubr.msk.bf16.mxu1 %vm10395_vm1, %v10394_v29 }
0x2205   :  { %9647 = vmatprep.subr.bf16.mxu1 %v10394_v29 }
0x2206   :  { %v6121_v24 = vpop.permute.xlu1 %6120  ;;  %v6172_v25 = vpop.permute.xlu0 %6171 }
0x2207   :  { %9620 = vmatmul.mubr.msk.bf16.vlgmr.msra.gmra.mxu0 %vm260_vm2, %v5968_v10 }
0x2208   :  { %9630 = vmatpush3.bf16.xpose.msra.mxu0 %v6077_v22  ;;  %9631 = vmatprep.mubr.msk.bf16.mxu0 %vm10395_vm1, %v10394_v29 }
0x2209   :  { %9641 = vmatprep.subr.bf16.mxu0 %v10394_v29 }
0x220b   :  { %9638 = vmatmul.mubr.msk.bf16.vlgmr.msra.gmra.mxu1 %vm260_vm2, %v6121_v24 }
0x220c   :  { %9648 = vmatpush3.bf16.msra.mxu1 %v6335_v26  ;;  %9649 = vmatprep.mubr.msk.bf16.mxu1 %vm10395_vm1, %v10394_v29  ;;  %v10310_v26 = vld [vmem:[%s12238_s13 + $0x28] sm:$0xff] }
0x220d   :  { %9659 = vmatprep.subr.bf16.mxu1 %v10394_v29 }
0x220f   :  { %9632 = vmatmul.mubr.msk.bf16.vlgmr.msra.gmra.mxu0 %vm260_vm2, %v6070_v20 }
0x2210   :  { %9642 = vmatpush3.bf16.xpose.msra.mxu0 %v6179_v30  ;;  %9643 = vmatprep.mubr.msk.bf16.mxu0 %vm10395_vm1, %v10394_v29 }
0x2211   :  { %9653 = vmatprep.subr.bf16.mxu0 %v10394_v29 }
0x2217   :  { %9644 = vmatmul.mubr.msk.bf16.vlgmr.msra.gmra.mxu0 %vm260_vm2, %v6172_v25 }
0x2218   :  { %9655 = vmatprep.mubr.msk.bf16.mxu0 %vm10395_vm1, %v10394_v29 }
0x22b7   :  { %v5858_v11 = vpop.f32.mrf.mxu0 }
0x22b8   :  { %5864 = vst.msk [vmem:[#allocation2] sm:$0xff] %vm307_vm4, %v5858_v11 }
0x22b9   :  { %v9603_v58 = vpop.f32.mrf.mxu0 }
0x22bb   :  { %v5861_v33 = vpop.f32.mrf.mxu0  ;;  %v5960_v34 = vpop.f32.mrf.mxu1 }
0x22bc   :  { %5966 = vst.msk [vmem:[#allocation2 + $0x10] sm:$0xff] %vm307_vm4, %v5960_v34  ;;  %v10311_v34 = vld [vmem:[%s12238_s13 + $0x38] sm:$0xff] }
0x22bd   :  { %v9604_v37 = vpop.f32.mrf.mxu0  ;;  %v9615_v54 = vpop.f32.mrf.mxu1 }
0x22bf   :  { %v5909_v40 = vpop.f32.mrf.mxu0  ;;  %v5963_v35 = vpop.f32.mrf.mxu1  ;;  %v6222_v27 = vld [vmem:[#allocation2] sm:$0xff] }
0x22c0   :  { %5915 = vst.msk [vmem:[#allocation2 + $0x8] sm:$0xff] %vm307_vm4, %v5909_v40  ;;  %v11780_v42 = vadd.f32 %v10304_v41, %v6222_v27 }
0x22c1   :  { %v9609_v44 = vpop.f32.mrf.mxu0  ;;  %v9616_v17 = vpop.f32.mrf.mxu1 }
0x22c2   :  { %v6238_v45 = vsel %vm307_vm4, %v11780_v42, -inf }
0x22c3   :  { %v6062_v2 = vpop.f32.mrf.mxu1  ;;  %6239 = vmax.xlane.f32.xlu1 %v6238_v45  ;;  %v5912_v15 = vpop.f32.mrf.mxu0  ;;  %v6224_v46 = vld [vmem:[#allocation2 + $0x10] sm:$0xff] }
0x22c4   :  { %6068 = vst.msk [vmem:[#allocation2 + $0x20] sm:$0xff] %vm307_vm4, %v6062_v2  ;;  %v11786_v47 = vadd.f32 %v10305_v39, %v6224_v46 }
0x22c5   :  { %v9610_v38 = vpop.f32.mrf.mxu0  ;;  %v9627_v48 = vpop.f32.mrf.mxu1 }
0x22c6   :  { %v6244_v50 = vsel %vm307_vm4, %v11786_v47, -inf }
0x22c7   :  { %6245 = vmax.xlane.f32.xlu0 %v6244_v50  ;;  %v6011_v49 = vpop.f32.mrf.mxu0  ;;  %v6065_v53 = vpop.f32.mrf.mxu1  ;;  %v6223_v52 = vld [vmem:[#allocation2 + $0x8] sm:$0xff] }
0x22c8   :  { %6017 = vst.msk [vmem:[#allocation2 + $0x18] sm:$0xff] %vm307_vm4, %v6011_v49  ;;  %v6231_v43 = vadd.f32 %v10306_v59, %v6223_v52 }
0x22c9   :  { %v9621_v18 = vpop.f32.mrf.mxu0  ;;  %v9628_v32 = vpop.f32.mrf.mxu1 }
0x22ca   :  { %v6241_v55 = vsel %vm307_vm4, %v6231_v43, -inf }
0x22cb   :  { %v6164_v56 = vpop.f32.mrf.mxu1  ;;  %6242 = vmax.xlane.f32.xlu0 %v6241_v55  ;;  %v6014_v57 = vpop.f32.mrf.mxu0  ;;  %v6226_v14 = vld [vmem:[#allocation2 + $0x20] sm:$0xff]  ;;  %v11834_v55 = vpack.c.bf16 %v11774_v4, %v11774_v4 }
0x22cc   :  { %6170 = vst.msk [vmem:[#allocation2 + $0x30] sm:$0xff] %vm307_vm4, %v6164_v56  ;;  %v6234_v60 = vadd.f32 %v10307_v23, %v6226_v14 }
0x22cd   :  { %v9622_v9 = vpop.f32.mrf.mxu0  ;;  %v9639_v0 = vpop.f32.mrf.mxu1 }
0x22ce   :  { %v6250_v1 = vsel %vm307_vm4, %v6234_v60, -inf }
0x22cf   :  { %v6167_v3 = vpop.f32.mrf.mxu1  ;;  %6251 = vmax.xlane.f32.xlu0 %v6250_v1  ;;  %v6113_v36 = vpop.f32.mrf.mxu0  ;;  %v6225_v5 = vld [vmem:[#allocation2 + $0x18] sm:$0xff] }
0x22d0   :  { %6119 = vst.msk [vmem:[#allocation2 + $0x28] sm:$0xff] %vm307_vm4, %v6113_v36  ;;  %v11798_v7 = vadd.f32 %v10308_v63, %v6225_v5 }
0x22d1   :  { %v9633_v8 = vpop.f32.mrf.mxu0  ;;  %v9640_v10 = vpop.f32.mrf.mxu1 }
0x22d2   :  { %v6247_v12 = vsel %vm307_vm4, %v11798_v7, -inf }
0x22d3   :  { %6248 = vmax.xlane.f32.xlu1 %v6247_v12  ;;  %v6116_v13 = vpop.f32.mrf.mxu0  ;;  %v6228_v16 = vld [vmem:[#allocation2 + $0x30] sm:$0xff] }
0x22d4   :  { %v11803_v19 = vadd.f32 %v10309_v6, %v6228_v16 }
0x22d5   :  { %v9634_v21 = vpop.f32.mrf.mxu0 }
0x22d6   :  { %v6256_v20 = vsel %vm307_vm4, %v11803_v19, -inf }
0x22d7   :  { %6257 = vmax.xlane.f32.xlu0 %v6256_v20  ;;  %v6215_v22 = vpop.f32.mrf.mxu0  ;;  %v6227_v24 = vld [vmem:[#allocation2 + $0x28] sm:$0xff] }
0x22d8   :  { %6221 = vst.msk [vmem:[#allocation2 + $0x38] sm:$0xff] %vm307_vm4, %v6215_v22  ;;  %v6235_v28 = vadd.f32 %v10310_v26, %v6227_v24 }
0x22d9   :  { %v9645_v30 = vpop.f32.mrf.mxu0 }
0x22da   :  { %v6253_v25 = vsel %vm307_vm4, %v6235_v28, -inf }
0x22db   :  { %6254 = vmax.xlane.f32.xlu1 %v6253_v25  ;;  %v6218_v11 = vpop.f32.mrf.mxu0 }
0x22dd   :  { %v9646_v58 = vpop.f32.mrf.mxu0 }
0x22df   :  { %v6229_v33 = vld [vmem:[#allocation2 + $0x38] sm:$0xff] }
0x22e0   :  { %v6237_v37 = vadd.f32 %v10311_v34, %v6229_v33 }
0x22e2   :  { %v6259_v54 = vsel %vm307_vm4, %v6237_v37, -inf }
0x22e3   :  { %6260 = vmax.xlane.f32.xlu1 %v6259_v54 }
0x22ed   :  { %6381 = vrot.lane.b32.xlu0 %v11753_v62, %s10396_s0 }
0x22f4   :  { %6434 = vrot.lane.b32.xlu1 %v11753_v62, %s10402_s18 }
0x234c   :  { %v6240_v40 = vpop.xlane.xlu1 %6239 }
0x234d   :  { %v6262_v35 = vsub.f32 %v11780_v42, %v6240_v40 }
0x234f   :  { %v6270_v27 = vmul.f32 1.442695, %v6262_v35 }
0x2350   :  { %v6246_v41 = vpop.xlane.xlu0 %6245 }
0x2351   :  { %10224 = vpow2.f32 %v6270_v27  ;;  %v6264_v44 = vsub.f32 %v11786_v47, %v6246_v41 }
0x2353   :  { %v6274_v17 = vmul.f32 1.442695, %v6264_v44 }
0x2354   :  { %v6243_v45 = vpop.xlane.xlu0 %6242 }
0x2355   :  { %10226 = vpow2.f32 %v6274_v17  ;;  %v6263_v2 = vsub.f32 %v6231_v43, %v6243_v45 }
0x2357   :  { %v6272_v15 = vmul.f32 1.442695, %v6263_v2 }
0x2358   :  { %v6252_v46 = vpop.xlane.xlu0 %6251 }
0x2359   :  { %10228 = vpow2.f32 %v6272_v15  ;;  %v6266_v39 = vsub.f32 %v6234_v60, %v6252_v46  ;;  %v6547_v46 = vsel %vm778_vm3, %v11834_v55, 0 }
0x235b   :  { %v6278_v38 = vmul.f32 1.442695, %v6266_v39 }
0x235c   :  { %v6249_v56 = vpop.xlane.xlu1 %6248 }
0x235d   :  { %10230 = vpow2.f32 %v6278_v38  ;;  %v6265_v57 = vsub.f32 %v11798_v7, %v6249_v56 }
0x235e   :  { %v10225_v48 = vpop.eup %10224 }
0x235f   :  { %v6286_v50 = vsel %vm307_vm4, %v10225_v48, 0.0  ;;  %v6276_v60 = vmul.f32 1.442695, %v6265_v57 }
0x2360   :  { %6287 = vadd.xlane.f32.xlu0 %v6286_v50  ;;  %v6258_v42 = vpop.xlane.xlu0 %6257 }
0x2361   :  { %v6268_v23 = vsub.f32 %v11803_v19, %v6258_v42  ;;  %10232 = vpow2.f32 %v6276_v60 }
0x2362   :  { %v11819_v49 = vpop.eup %10226 }
0x2363   :  { %v6292_v47 = vsel %vm307_vm4, %v11819_v49, 0.0  ;;  %v6282_v1 = vmul.f32 1.442695, %v6268_v23 }
0x2364   :  { %6293 = vadd.xlane.f32.xlu0 %v6292_v47  ;;  %v6382_v53 = vpop.permute.xlu0 %6381  ;;  %v6255_v14 = vpop.xlane.xlu1 %6254 }
0x2365   :  { %v6387_v52 = vsel %vm778_vm3, %v6382_v53, 0  ;;  %v6267_v9 = vsub.f32 %v6235_v28, %v6255_v14  ;;  %10234 = vpow2.f32 %v6282_v1 }
0x2366   :  { %v10229_v59 = vpop.eup %10228  ;;  %9654 = vmatpush3.bf16.msra.mxu0 %v6387_v52 }
0x2367   :  { %v6289_v43 = vsel %vm307_vm4, %v10229_v59, 0.0  ;;  %9665 = vmatprep.subr.bf16.mxu0 %v10394_v29  ;;  %v6280_v3 = vmul.f32 1.442695, %v6267_v9 }
0x2368   :  { %6290 = vadd.xlane.f32.xlu1 %v6289_v43 }
0x2369   :  { %10236 = vpow2.f32 %v6280_v3 }
0x236a   :  { %v11826_v18 = vpop.eup %10230 }
0x236b   :  { %v6298_v32 = vsel %vm307_vm4, %v11826_v18, 0.0 }
0x236c   :  { %6299 = vadd.xlane.f32.xlu0 %v6298_v32  ;;  %v6261_v0 = vpop.xlane.xlu1 %6260 }
0x236e   :  { %v10233_v36 = vpop.eup %10232 }
0x236f   :  { %v6295_v63 = vsel %vm307_vm4, %v10233_v36, 0.0 }
0x2370   :  { %v6435_v16 = vpop.permute.xlu1 %6434 }
0x2371   :  { %v6440_v30 = vsel %vm778_vm3, %v6435_v16, 0 }
0x2372   :  { %v11840_v5 = vpop.eup %10234 }
0x2373   :  { %v6304_v8 = vsel %vm307_vm4, %v11840_v5, 0.0 }
0x2376   :  { %v10237_v7 = vpop.eup %10236 }
0x2377   :  { %v6301_v10 = vsel %vm307_vm4, %v10237_v7, 0.0 }
0x2379   :  { %6489 = vrot.lane.b32.xlu1 %v11753_v62, %s10401_s16  ;;  %v6269_v62 = vsub.f32 %v6237_v37, %v6261_v0 }
0x237b   :  { %v6284_v4 = vmul.f32 1.442695, %v6269_v62 }
0x237d   :  { %10238 = vpow2.f32 %v6284_v4  ;;  %v10030_v4 = vld [vmem:[%s12239_s21 + $0x38] sm:$0xff]  }
0x2382   :  { %6593 = vrot.lane.b32.xlu0 %v11834_v55, %s10396_s0 }
0x238a   :  { %v11846_v12 = vpop.eup %10238 }
0x238b   :  { %v6307_v13 = vsel %vm307_vm4, %v11846_v12, 0.0 }
0x239d   :  { %6296 = vadd.xlane.f32.xlu1 %v6295_v63 }
0x23a1   :  { %6305 = vadd.xlane.f32.xlu0 %v6304_v8  ;;  %6302 = vadd.xlane.f32.xlu1 %v6301_v10  ;;  %v10031_v10 = vld [vmem:[%s12239_s21 + $0x30] sm:$0xff]  }
0x23a5   :  { %6308 = vadd.xlane.f32.xlu1 %v6307_v13 }
0x23b6   :  { %6646 = vrot.lane.b32.xlu1 %v11834_v55, %s10402_s18 }
0x23b7   :  { %6701 = vrot.lane.b32.xlu0 %v11834_v55, %s10401_s16 }
0x23e9   :  { %v6288_v6 = vpop.xlane.xlu0 %6287 }
0x23ea   :  { %10240 = vrcp.f32 %v6288_v6 }
0x23ed   :  { %v6294_v58 = vpop.xlane.xlu0 %6293 }
0x23f1   :  { %v6291_v19 = vpop.xlane.xlu1 %6290 }
0x23f2   :  { %10242 = vrcp.f32 %v6291_v19  ;;  %v10032_v19 = vld [vmem:[%s12239_s21 + $0x28] sm:$0xff]  }
0x23f3   :  { %10244 = vrcp.f32 %v6294_v58 }
0x23f5   :  { %v6490_v28 = vpop.permute.xlu1 %6489  ;;  %v6300_v33 = vpop.xlane.xlu0 %6299 }
0x23f6   :  { %v6495_v11 = vsel %vm778_vm3, %v6490_v28, 0 }
0x23f7   :  { %v10241_v21 = vpop.eup %10240 }
0x23f8   :  { %v6318_v22 = vmul.f32 %v10241_v21, %v10225_v48 }
0x23f9   :  { %v6594_v54 = vpop.permute.xlu0 %6593 }
0x23fa   :  { %v6599_v50 = vsel %vm778_vm3, %v6594_v54, 0 }
0x23ff   :  { %v10243_v20 = vpop.eup %10242 }
0x2400   :  { %v6319_v24 = vmul.f32 %v10243_v20, %v10229_v59  ;;  %v10245_v27 = vpop.eup %10244 }
0x2401   :  { %v6320_v44 = vmul.f32 %v10245_v27, %v11819_v49 }
0x2402   :  { %v6326_v26 = vpack.c.bf16 %v6319_v24, %v6318_v22  ;;  %v10033_v22 = vld [vmem:[%s12239_s21 + $0x20] sm:$0xff]  }
0x2404   :  { %9650 = vmatmul.mubr.msk.bf16.vlgmr.msra.gmra.mxu1 %vm307_vm4, %v6326_v26  ;;  %v6379_v25 = vrot.slane %v6326_v26, 4 }
0x2405   :  { %9660 = vmatpush3.bf16.msra.mxu1 %v6440_v30  ;;  %9661 = vmatprep.mubr.msk.bf16.mxu1 %vm10395_vm1, %v10394_v29 }
0x2406   :  { %9656 = vmatmul.mubr.msk.bf16.vlgmr.msra.gmra.mxu0 %vm307_vm4, %v6379_v25  ;;  %9671 = vmatprep.subr.bf16.mxu1 %v10394_v29 }
0x2407   :  { %9666 = vmatpush3.bf16.msra.mxu0 %v6495_v11  ;;  %9667 = vmatprep.mubr.msk.bf16.mxu0 %vm10395_vm1, %v10394_v29 }
0x2408   :  { %9677 = vmatprep.subr.bf16.mxu0 %v10394_v29 }
0x2426   :  { %v6297_v34 = vpop.xlane.xlu1 %6296 }
0x2427   :  { %10246 = vrcp.f32 %v6297_v34 }
0x2428   :  { %10248 = vrcp.f32 %v6300_v33 }
0x242a   :  { %v6303_v37 = vpop.xlane.xlu1 %6302  ;;  %v6306_v35 = vpop.xlane.xlu0 %6305 }
0x242b   :  { %10250 = vrcp.f32 %v6303_v37 }
0x242e   :  { %v6309_v40 = vpop.xlane.xlu1 %6308  ;;  %v6702_v52 = vpop.permute.xlu0 %6701 }
0x242f   :  { %10252 = vrcp.f32 %v6309_v40  ;;  %v6707_v55 = vsel %vm778_vm3, %v6702_v52, 0 }
0x2430   :  { %10254 = vrcp.f32 %v6306_v35 }
0x2432   :  { %v6647_v47 = vpop.permute.xlu1 %6646 }
0x2433   :  { %v6652_v43 = vsel %vm778_vm3, %v6647_v47, 0 }
0x2434   :  { %v10247_v41 = vpop.eup %10246 }
0x2435   :  { %v6321_v17 = vmul.f32 %v10247_v41, %v10233_v36  ;;  %v10249_v2 = vpop.eup %10248 }
0x2436   :  { %v6322_v48 = vmul.f32 %v10249_v2, %v11826_v18 }
0x2437   :  { %v6327_v45 = vpack.c.bf16 %v6321_v17, %v6320_v44 }
0x2438   :  { %v10251_v15 = vpop.eup %10250 }
0x2439   :  { %9662 = vmatmul.mubr.msk.bf16.vlgmr.msra.gmra.mxu1 %vm307_vm4, %v6327_v45  ;;  %v6488_v39 = vrot.slane %v6327_v45, 4  ;;  %v6323_v38 = vmul.f32 %v10251_v15, %v10237_v7 }
0x243a   :  { %9672 = vmatpush3.bf16.msra.mxu1 %v6547_v46  ;;  %9673 = vmatprep.mubr.msk.bf16.mxu1 %vm10395_vm1, %v10394_v29 }
0x243b   :  { %9668 = vmatmul.mubr.msk.bf16.vlgmr.msra.gmra.mxu0 %vm307_vm4, %v6488_v39  ;;  %9683 = vmatprep.subr.bf16.mxu1 %v10394_v29  ;;  %v6328_v42 = vpack.c.bf16 %v6323_v38, %v6322_v48  ;;  %v10034_v39 = vld [vmem:[%s12240_s25 + $0x38] sm:$0xff]   ;;  %v10035_v48 = vld [vmem:[%s12240_s25 + $0x30] sm:$0xff]  }
0x243c   :  { %9678 = vmatpush3.bf16.msra.mxu0 %v6599_v50  ;;  %9679 = vmatprep.mubr.msk.bf16.mxu0 %vm10395_vm1, %v10394_v29  ;;  %v10253_v49 = vpop.eup %10252  ;;  %v10036_v50 = vld [vmem:[%s12240_s25 + $0x28] sm:$0xff]  }
0x243d   :  { %9689 = vmatprep.subr.bf16.mxu0 %v10394_v29  ;;  %v10255_v53 = vpop.eup %10254  ;;  %v6325_v59 = vmul.f32 %v10253_v49, %v11846_v12  ;;  %v6591_v18 = vrot.slane %v6328_v42, 4 }
0x243e   :  { %v6324_v32 = vmul.f32 %v10255_v53, %v11840_v5 }
0x2440   :  { %v6329_v56 = vpack.c.bf16 %v6325_v59, %v6324_v32 }
0x2441   :  { %9674 = vmatmul.mubr.msk.bf16.vlgmr.msra.gmra.mxu1 %vm307_vm4, %v6328_v42  ;;  %v10037_v42 = vld [vmem:[%s12240_s25 + $0x20] sm:$0xff]  }
0x2442   :  { %9684 = vmatpush3.bf16.msra.mxu1 %v6652_v43  ;;  %9685 = vmatprep.mubr.msk.bf16.mxu1 %vm10395_vm1, %v10394_v29  ;;  %v6700_v57 = vrot.slane %v6329_v56, 4 }
0x2443   :  { %9680 = vmatmul.mubr.msk.bf16.vlgmr.msra.gmra.mxu0 %vm307_vm4, %v6591_v18  ;;  %9695 = vmatprep.subr.bf16.mxu1 %v10394_v29 }
0x2444   :  { %9690 = vmatpush3.bf16.msra.mxu0 %v6707_v55  ;;  %9691 = vmatprep.mubr.msk.bf16.mxu0 %vm10395_vm1, %v10394_v29 }
0x2445   :  { %9707 = vmatprep.subr.bf16.mxu0 %v10394_v29 }
0x2449   :  { %9686 = vmatmul.mubr.msk.bf16.vlgmr.msra.gmra.mxu1 %vm307_vm4, %v6329_v56 }
0x244a   :  { %9703 = vmatprep.mubr.msk.bf16.mxu1 %vm10395_vm1, %v10394_v29  ;;  %9696 = vmatpush3.bf16.msra.mxu1 %v10030_v4 }
0x244b   :  { %9692 = vmatmul.mubr.msk.bf16.vlgmr.msra.gmra.mxu0 %vm307_vm4, %v6700_v57  ;;  %9697 = vmatprep.subr.bf16.mxu1 %v10394_v29 }
0x244c   :  { %9715 = vmatprep.mubr.msk.bf16.mxu0 %vm10395_vm1, %v10394_v29 }
0x244e   :  { %9698 = vmatpush3.bf16.msra.mxu1 %v10031_v10 }
0x244f   :  { %9699 = vmatprep.subr.bf16.mxu1 %v10394_v29 }
0x2452   :  { %9700 = vmatpush3.bf16.msra.mxu1 %v10032_v19 }
0x2453   :  { %9701 = vmatprep.subr.bf16.mxu1 %v10394_v29 }
0x2456   :  { %9702 = vmatpush3.bf16.msra.mxu1 %v10033_v22 }
0x2457   :  { %9719 = vmatprep.subr.bf16.mxu1 %v10394_v29 }
0x24c4   :  { %v6371_v14 = vpop.f32.mrf.mxu1 }
0x24c5   :  { %6377 = vst.msk [vmem:[#allocation3] sm:$0xff] %vm260_vm2, %v6371_v14 }
0x24c6   :  { %v9651_v23 = vpop.f32.mrf.mxu1  ;;  %v6423_v60 = vpop.f32.mrf.mxu0 }
0x24c7   :  { %6430 = vrot.lane.b32.xlu1 %v6423_v60, %s10400_s15  ;;  %v10038_v23 = vld [vmem:[%s12241_s29 + $0x38] sm:$0xff]   ;;  %v10039_v60 = vld [vmem:[%s12241_s29 + $0x30] sm:$0xff]  }
0x24c8   :  { %v6374_v9 = vpop.f32.mrf.mxu1  ;;  %v9657_v0 = vpop.f32.mrf.mxu0  ;;  %9708 = vmatpush3.bf16.msra.mxu0 %v10038_v23 }
0x24c9   :  { %9709 = vmatprep.subr.bf16.mxu0 %v10394_v29  ;;  %v10040_v9 = vld [vmem:[%s12241_s29 + $0x28] sm:$0xff]   ;;  %v10041_v0 = vld [vmem:[%s12241_s29 + $0x20] sm:$0xff]  }
0x24ca   :  { %v9652_v1 = vpop.f32.mrf.mxu1  ;;  %v6426_v3 = vpop.f32.mrf.mxu0 }
0x24cc   :  { %v9658_v62 = vpop.f32.mrf.mxu0  ;;  %9710 = vmatpush3.bf16.msra.mxu0 %v10039_v60 }
0x24cd   :  { %9711 = vmatprep.subr.bf16.mxu0 %v10394_v29 }
0x24d0   :  { %9712 = vmatpush3.bf16.msra.mxu0 %v10040_v9 }
0x24d1   :  { %9713 = vmatprep.subr.bf16.mxu0 %v10394_v29 }
0x24d4   :  { %9714 = vmatpush3.bf16.msra.mxu0 %v10041_v0 }
0x24d5   :  { %9731 = vmatprep.subr.bf16.mxu0 %v10394_v29 }
0x24f9   :  { %v6476_v36 = vpop.f32.mrf.mxu1 }
0x24fa   :  { %6483 = vrot.lane.b32.xlu1 %v6476_v36, %s10399_s11 }
0x24fb   :  { %v9663_v5 = vpop.f32.mrf.mxu1  ;;  %v6531_v63 = vpop.f32.mrf.mxu0 }
0x24fd   :  { %v6479_v7 = vpop.f32.mrf.mxu1  ;;  %v9669_v8 = vpop.f32.mrf.mxu0 }
0x24fe   :  { %6538 = vrot.lane.b32.xlu1 %v6531_v63, %s10398_s10 }
0x24ff   :  { %v9664_v12 = vpop.f32.mrf.mxu1  ;;  %v6534_v13 = vpop.f32.mrf.mxu0 }
0x2500   :  { %v8609_v13 = vld [vmem:[%s12242_s9 + $0x1] ss:$0 sm:$0xff] }
0x2501   :  { %v9670_v16 = vpop.f32.mrf.mxu0  ;;  %v6583_v6 = vpop.f32.mrf.mxu1 }
0x2502   :  { %6589 = vst.msk [vmem:[#allocation3 + $0x8] sm:$0xff] %vm260_vm2, %v6583_v6 }
0x2503   :  { %v9675_v21 = vpop.f32.mrf.mxu1  ;;  %v6635_v20 = vpop.f32.mrf.mxu0 }
0x2504   :  { %6642 = vrot.lane.b32.xlu0 %v6635_v20, %s10400_s15 }
0x2505   :  { %v6586_v24 = vpop.f32.mrf.mxu1  ;;  %v9681_v26 = vpop.f32.mrf.mxu0 }
0x2507   :  { %v9676_v28 = vpop.f32.mrf.mxu1  ;;  %v6638_v30 = vpop.f32.mrf.mxu0 }
0x2509   :  { %v9682_v25 = vpop.f32.mrf.mxu0  ;;  %v6688_v11 = vpop.f32.mrf.mxu1 }
0x250a   :  { %6695 = vrot.lane.b32.xlu0 %v6688_v11, %s10399_s11 }
0x250b   :  { %v9687_v58 = vpop.f32.mrf.mxu1  ;;  %v6743_v33 = vpop.f32.mrf.mxu0 }
0x250d   :  { %v6691_v34 = vpop.f32.mrf.mxu1  ;;  %v9693_v37 = vpop.f32.mrf.mxu0 }
0x250e   :  { %6750 = vrot.lane.b32.xlu0 %v6743_v33, %s10398_s10 }
0x250f   :  { %v9688_v54 = vpop.f32.mrf.mxu1  ;;  %v6746_v40 = vpop.f32.mrf.mxu0 }
0x2511   :  { %v9694_v35 = vpop.f32.mrf.mxu0 }
0x2539   :  { %v6431_v27 = vpop.permute.xlu1 %6430 }
0x253a   :  { %6433 = vst.msk [vmem:[#allocation3] sm:$0xff] %vm878_vm5, %v6431_v27 }
0x256c   :  { %v6484_v41 = vpop.permute.xlu1 %6483 }
0x256d   :  { %6486 = vst.msk [vmem:[#allocation3] sm:$0xff] %vm932_vm6, %v6484_v41 }
0x2570   :  { %v6539_v44 = vpop.permute.xlu1 %6538 }
0x2571   :  { %6541 = vst.msk [vmem:[#allocation3] sm:$0xff] %vm988_vm7, %v6539_v44 }
0x2576   :  { %v6643_v17 = vpop.permute.xlu0 %6642 }
0x2577   :  { %6645 = vst.msk [vmem:[#allocation3 + $0x8] sm:$0xff] %vm878_vm5, %v6643_v17 }
0x2578   :  { %v6754_v15 = vld [vmem:[#allocation3] sm:$0xff] }
0x257c   :  { %v6696_v45 = vpop.permute.xlu0 %6695 }
0x257d   :  { %6698 = vst.msk [vmem:[#allocation3 + $0x8] sm:$0xff] %vm932_vm6, %v6696_v45 }
0x2580   :  { %v6751_v2 = vpop.permute.xlu0 %6750 }
0x2581   :  { %6753 = vst.msk [vmem:[#allocation3 + $0x8] sm:$0xff] %vm988_vm7, %v6751_v2 }
0x2588   :  { %v6755_v46 = vld [vmem:[#allocation3 + $0x8] sm:$0xff] }
0x2589   :  { %v6765_v38 = vpack.c.bf16 %v6755_v46, %v6754_v15 }
0x258b   :  { %9704 = vmatmul.mubr.msk.bf16.vlgmr.msra.gmra.mxu1 %vm137_vm0, %v6765_v38 }
0x258c   :  { %9720 = vmatpush3.bf16.msra.mxu1 %v10034_v39  ;;  %9727 = vmatprep.mubr.msk.bf16.mxu1 %vm10395_vm1, %v10394_v29 }
0x258d   :  { %9721 = vmatprep.subr.bf16.mxu1 %v10394_v29 }
0x2590   :  { %9722 = vmatpush3.bf16.msra.mxu1 %v10035_v48 }
0x2591   :  { %9723 = vmatprep.subr.bf16.mxu1 %v10394_v29 }
0x2594   :  { %9724 = vmatpush3.bf16.msra.mxu1 %v10036_v50 }
0x2595   :  { %9725 = vmatprep.subr.bf16.mxu1 %v10394_v29 }
0x2598   :  { %9726 = vmatpush3.bf16.msra.mxu1 %v10037_v42 }
0x2599   :  { %9743 = vmatprep.subr.bf16.mxu1 %v10394_v29 }
0x259b   :  { %9728 = vmatmul.mubr.msk.bf16.vlgmr.msra.gmra.mxu1 %vm137_vm0, %v11140_v61 }
0x259c   :  { %9745 = vmatprep.mubr.msk.bf16.mxu1 %vm10395_vm1, %v10394_v29 }
0x264b   :  { %v6827_v49 = vpop.f32.mrf.mxu1 }
0x264c   :  { %v11933_v47 = vadd.f32 %v6827_v49, %v11689_v31 }
0x264d   :  { %v9705_v53 = vpop.f32.mrf.mxu1 }
0x264e   :  { %v6838_v52 = vmul.f32 %v11933_v47, %v11933_v47 }
0x264f   :  { %v6830_v59 = vpop.f32.mrf.mxu1 }
0x2650   :  { %v11938_v43 = vadd.f32 %v6830_v59, %v11694_v51  ;;  %v6840_v18 = vsel %vm137_vm0, %v6838_v52, 0.0 }
0x2651   :  { %6841 = vadd.xlane.f32.xlu1 %v6840_v18  ;;  %v9706_v61 = vpop.f32.mrf.mxu1 }
0x2652   :  { %v6839_v32 = vmul.f32 %v11938_v43, %v11938_v43 }
0x2654   :  { %v6843_v31 = vsel %vm137_vm0, %v6839_v32, 0.0  ;;  %v10312_v32 = vld [vmem:[%s12243_s3] sm:$0xff] }
0x2655   :  { %6844 = vadd.xlane.f32.xlu0 %v6843_v31 }
0x265b   :  { %v7007_v55 = vpop.f32.mrf.mxu1 }
0x265c   :  { %v11944_v14 = vpack.c.bf16 %v7007_v55, %v7007_v55 }
0x265d   :  { %v9729_v56 = vpop.f32.mrf.mxu1 }
0x265e   :  { %v7020_v20 = vsel %vm260_vm2, %v11944_v14, 0 }
0x265f   :  { %v7010_v57 = vpop.f32.mrf.mxu1 }
0x2660   :  { %v11980_v33 = vpack.c.bf16 %v7010_v57, %v7010_v57 }
0x2661   :  { %v9730_v51 = vpop.f32.mrf.mxu1 }
0x2662   :  { %7118 = vrot.lane.b32.xlu1 %v11944_v14, %s10402_s18  ;;  %v7224_v41 = vsel %vm260_vm2, %v11980_v33, 0 }
0x266b   :  { %7067 = vrot.lane.b32.xlu0 %v11944_v14, %s10396_s0 }
0x266f   :  { %7169 = vrot.lane.b32.xlu0 %v11944_v14, %s10401_s16 }
0x26da   :  { %v6842_v1 = vpop.xlane.xlu1 %6841 }
0x26db   :  { %v6846_v3 = vmul.f32 0.015625, %v6842_v1 }
0x26dd   :  { %v6848_v62 = vadd.f32 1e-06, %v6846_v3 }
0x26de   :  { %v6845_v4 = vpop.xlane.xlu0 %6844  ;;  %v7119_v36 = vpop.permute.xlu1 %7118 }
0x26df   :  { %10256 = vrsqrt.f32 %v6848_v62  ;;  %v6847_v5 = vmul.f32 0.015625, %v6845_v4  ;;  %v7124_v63 = vsel %vm260_vm2, %v7119_v36, 0  ;;  %v10313_v62 = vld [vmem:[%s12243_s3 + $0x8] sm:$0xff] }
0x26e0   :  { %9744 = vmatpush3.bf16.xpose.msra.mxu1 %v7124_v63 }
0x26e1   :  { %v6849_v7 = vadd.f32 1e-06, %v6847_v5  ;;  %9755 = vmatprep.subr.bf16.mxu1 %v10394_v29 }
0x26e2   :  { %v7068_v24 = vpop.permute.xlu0 %7067 }
0x26e3   :  { %10258 = vrsqrt.f32 %v6849_v7  ;;  %v7073_v30 = vsel %vm260_vm2, %v7068_v24, 0  ;;  %v10315_v24 = vld [vmem:[%s12243_s3 + $0x18] sm:$0xff] }
0x26e6   :  { %v7170_v34 = vpop.permute.xlu0 %7169 }
0x26e7   :  { %v7175_v40 = vsel %vm260_vm2, %v7170_v34, 0 }
0x26ec   :  { %v10257_v8 = vpop.eup %10256 }
0x26ed   :  { %v6852_v10 = vmul.f32 %v10257_v8, %v11933_v47 }
0x26ef   :  { %v6860_v6 = vmul.f32 %v8609_v13, %v6852_v10 }
0x26f0   :  { %v10259_v12 = vpop.eup %10258 }
0x26f1   :  { %v6853_v16 = vmul.f32 %v10259_v12, %v11938_v43  ;;  %v10314_v12 = vld [vmem:[%s12243_s3 + $0x10] sm:$0xff] }
0x26f3   :  { %v6861_v19 = vmul.f32 %v8609_v13, %v6853_v16 }
0x26f5   :  { %v6871_v21 = vpack.c.bf16 %v6861_v19, %v6860_v6 }
0x26f7   :  { %9716 = vmatmul.mubr.msk.bf16.vlgmr.msra.gmra.mxu0 %vm137_vm0, %v6871_v21 }
0x26f8   :  { %9732 = vmatpush3.bf16.xpose.msra.mxu0 %v7020_v20  ;;  %9733 = vmatprep.mubr.msk.bf16.mxu0 %vm10395_vm1, %v10394_v29 }
0x26f9   :  { %9737 = vmatprep.subr.bf16.mxu0 %v10394_v29 }
0x27b7   :  { %v6933_v22 = vpop.f32.mrf.mxu0 }
0x27b8   :  { %v7014_v26 = vpack.c.bf16 %v6933_v22, %v6933_v22 }
0x27b9   :  { %v9717_v28 = vpop.f32.mrf.mxu0 }
0x27ba   :  { %7167 = vrot.lane.b32.xlu0 %v7014_v26, %s10401_s16  ;;  %7064 = vrot.lane.b32.xlu1 %v7014_v26, %s10396_s0 }
0x27bb   :  { %9734 = vmatmul.mubr.msk.bf16.vlgmr.msra.gmra.mxu0 %vm260_vm2, %v7014_v26  ;;  %v6936_v25 = vpop.f32.mrf.mxu0 }
0x27bc   :  { %9738 = vmatpush3.bf16.xpose.msra.mxu0 %v7073_v30  ;;  %v7218_v11 = vpack.c.bf16 %v6936_v25, %v6936_v25  ;;  %9739 = vmatprep.mubr.msk.bf16.mxu0 %vm10395_vm1, %v10394_v29 }
0x27bd   :  { %v9718_v58 = vpop.f32.mrf.mxu0  ;;  %9749 = vmatprep.subr.bf16.mxu0 %v10394_v29 }
0x27be   :  { %7116 = vrot.lane.b32.xlu1 %v7014_v26, %s10402_s18  ;;  %7268 = vrot.lane.b32.xlu0 %v7218_v11, %s10396_s0 }
0x27c2   :  { %7271 = vrot.lane.b32.xlu1 %v11980_v33, %s10396_s0  ;;  %7373 = vrot.lane.b32.xlu0 %v11980_v33, %s10401_s16 }
0x27c6   :  { %7322 = vrot.lane.b32.xlu1 %v11980_v33, %s10402_s18  ;;  %7371 = vrot.lane.b32.xlu0 %v7218_v11, %s10401_s16 }
0x27ca   :  { %7320 = vrot.lane.b32.xlu1 %v7218_v11, %s10402_s18  ;;  %7530 = vrot.lane.b32.xlu0 %v11944_v14, %s10397_s7 }
0x27ce   :  { %7581 = vrot.lane.b32.xlu1 %v11944_v14, %s10398_s10 }
0x282c   :  { %v7168_v37 = vpop.permute.xlu0 %7167  ;;  %v7065_v54 = vpop.permute.xlu1 %7064 }
0x282d   :  { %9740 = vmatmul.mubr.msk.bf16.vlgmr.msra.gmra.mxu0 %vm260_vm2, %v7065_v54 }
0x282e   :  { %9750 = vmatpush3.bf16.xpose.msra.mxu0 %v7175_v40  ;;  %9751 = vmatprep.mubr.msk.bf16.mxu0 %vm10395_vm1, %v10394_v29 }
0x282f   :  { %9761 = vmatprep.subr.bf16.mxu0 %v10394_v29 }
0x2830   :  { %v7117_v35 = vpop.permute.xlu1 %7116  ;;  %v7269_v27 = vpop.permute.xlu0 %7268 }
0x2831   :  { %9746 = vmatmul.mubr.msk.bf16.vlgmr.msra.gmra.mxu1 %vm260_vm2, %v7117_v35 }
0x2832   :  { %9756 = vmatpush3.bf16.xpose.msra.mxu1 %v7224_v41  ;;  %9757 = vmatprep.mubr.msk.bf16.mxu1 %vm10395_vm1, %v10394_v29 }
0x2833   :  { %9767 = vmatprep.subr.bf16.mxu1 %v10394_v29 }
0x2834   :  { %v7272_v44 = vpop.permute.xlu1 %7271  ;;  %v7374_v17 = vpop.permute.xlu0 %7373 }
0x2835   :  { %v7277_v45 = vsel %vm260_vm2, %v7272_v44, 0  ;;  %9752 = vmatmul.mubr.msk.bf16.vlgmr.msra.gmra.mxu0 %vm260_vm2, %v7168_v37  ;;  %v7379_v38 = vsel %vm260_vm2, %v7374_v17, 0  ;;  %v10316_v37 = vld [vmem:[%s12243_s3 + $0x20] sm:$0xff] }
0x2836   :  { %9762 = vmatpush3.bf16.xpose.msra.mxu0 %v7277_v45  ;;  %9763 = vmatprep.mubr.msk.bf16.mxu0 %vm10395_vm1, %v10394_v29  ;;  %v10317_v45 = vld [vmem:[%s12243_s3 + $0x28] sm:$0xff] }
0x2837   :  { %9773 = vmatprep.subr.bf16.mxu0 %v10394_v29 }
0x2838   :  { %v7323_v2 = vpop.permute.xlu1 %7322  ;;  %v7372_v15 = vpop.permute.xlu0 %7371 }
0x2839   :  { %v7328_v46 = vsel %vm260_vm2, %v7323_v2, 0  ;;  %9758 = vmatmul.mubr.msk.bf16.vlgmr.msra.gmra.mxu1 %vm260_vm2, %v7218_v11 }
0x283a   :  { %9768 = vmatpush3.bf16.xpose.msra.mxu1 %v7328_v46  ;;  %9769 = vmatprep.mubr.msk.bf16.mxu1 %vm10395_vm1, %v10394_v29 }
0x283b   :  { %9779 = vmatprep.subr.bf16.mxu1 %v10394_v29 }
0x283c   :  { %v7321_v39 = vpop.permute.xlu1 %7320  ;;  %v7531_v48 = vpop.permute.xlu0 %7530 }
0x283d   :  { %9764 = vmatmul.mubr.msk.bf16.vlgmr.msra.gmra.mxu0 %vm260_vm2, %v7269_v27  ;;  %v7536_v50 = vsel %vm778_vm3, %v7531_v48, 0 }
0x283e   :  { %9774 = vmatpush3.bf16.xpose.msra.mxu0 %v7379_v38  ;;  %9775 = vmatprep.mubr.msk.bf16.mxu0 %vm10395_vm1, %v10394_v29 }
0x283f   :  { %9785 = vmatprep.subr.bf16.mxu0 %v10394_v29 }
0x2840   :  { %v7582_v42 = vpop.permute.xlu1 %7581 }
0x2841   :  { %9770 = vmatmul.mubr.msk.bf16.vlgmr.msra.gmra.mxu1 %vm260_vm2, %v7321_v39  ;;  %v7587_v49 = vsel %vm778_vm3, %v7582_v42, 0 }
0x2842   :  { %9780 = vmatpush3.bf16.msra.mxu1 %v7536_v50  ;;  %9781 = vmatprep.mubr.msk.bf16.mxu1 %vm10395_vm1, %v10394_v29  ;;  %v10318_v50 = vld [vmem:[%s12243_s3 + $0x30] sm:$0xff] }
0x2843   :  { %9791 = vmatprep.subr.bf16.mxu1 %v10394_v29 }
0x2845   :  { %9776 = vmatmul.mubr.msk.bf16.vlgmr.msra.gmra.mxu0 %vm260_vm2, %v7372_v15 }
0x2846   :  { %9786 = vmatpush3.bf16.msra.mxu0 %v7587_v49  ;;  %9787 = vmatprep.mubr.msk.bf16.mxu0 %vm10395_vm1, %v10394_v29 }
0x2847   :  { %9797 = vmatprep.subr.bf16.mxu0 %v10394_v29 }
0x287b   :  { %v7056_v53 = vpop.f32.mrf.mxu0 }
0x287c   :  { %7062 = vst.msk [vmem:[#allocation2] sm:$0xff] %vm307_vm4, %v7056_v53 }
0x287d   :  { %v9735_v52 = vpop.f32.mrf.mxu0 }
0x287f   :  { %v7059_v59 = vpop.f32.mrf.mxu0 }
0x2880   :  { %v10319_v59 = vld [vmem:[%s12243_s3 + $0x38] sm:$0xff] }
0x2881   :  { %v9736_v18 = vpop.f32.mrf.mxu0 }
0x2883   :  { %v7422_v61 = vld [vmem:[#allocation2] sm:$0xff] }
0x2884   :  { %v12032_v31 = vadd.f32 %v10312_v32, %v7422_v61 }
0x2886   :  { %v7438_v55 = vsel %vm307_vm4, %v12032_v31, -inf }
0x2887   :  { %7439 = vmax.xlane.f32.xlu1 %v7438_v55 }
0x28ed   :  { %v7109_v56 = vpop.f32.mrf.mxu0 }
0x28ee   :  { %7115 = vst.msk [vmem:[#allocation2 + $0x8] sm:$0xff] %vm307_vm4, %v7109_v56 }
0x28ef   :  { %v9741_v57 = vpop.f32.mrf.mxu0 }
0x28f1   :  { %v7112_v51 = vpop.f32.mrf.mxu0  ;;  %v7160_v23 = vpop.f32.mrf.mxu1 }
0x28f2   :  { %7166 = vst.msk [vmem:[#allocation2 + $0x10] sm:$0xff] %vm307_vm4, %v7160_v23 }
0x28f3   :  { %v9742_v60 = vpop.f32.mrf.mxu0  ;;  %v9747_v9 = vpop.f32.mrf.mxu1 }
0x28f5   :  { %v7163_v0 = vpop.f32.mrf.mxu1  ;;  %v7211_v1 = vpop.f32.mrf.mxu0  ;;  %v7423_v3 = vld [vmem:[#allocation2 + $0x8] sm:$0xff] }
0x28f6   :  { %7217 = vst.msk [vmem:[#allocation2 + $0x18] sm:$0xff] %vm307_vm4, %v7211_v1  ;;  %v12040_v4 = vadd.f32 %v10313_v62, %v7423_v3 }
0x28f7   :  { %v9748_v36 = vpop.f32.mrf.mxu1  ;;  %v9753_v5 = vpop.f32.mrf.mxu0 }
0x28f8   :  { %v7441_v63 = vsel %vm307_vm4, %v12040_v4, -inf }
0x28f9   :  { %v7260_v7 = vpop.f32.mrf.mxu1  ;;  %7442 = vmax.xlane.f32.xlu0 %v7441_v63  ;;  %v7214_v8 = vpop.f32.mrf.mxu0  ;;  %v7424_v10 = vld [vmem:[#allocation2 + $0x10] sm:$0xff] }
0x28fa   :  { %7266 = vst.msk [vmem:[#allocation2 + $0x20] sm:$0xff] %vm307_vm4, %v7260_v7  ;;  %v7432_v13 = vadd.f32 %v10314_v12, %v7424_v10 }
0x28fb   :  { %v9754_v16 = vpop.f32.mrf.mxu0  ;;  %v9759_v6 = vpop.f32.mrf.mxu1 }
0x28fc   :  { %v7444_v19 = vsel %vm307_vm4, %v7432_v13, -inf }
0x28fd   :  { %v7263_v21 = vpop.f32.mrf.mxu1  ;;  %7445 = vmax.xlane.f32.xlu0 %v7444_v19  ;;  %v7313_v20 = vpop.f32.mrf.mxu0  ;;  %v7425_v22 = vld [vmem:[#allocation2 + $0x18] sm:$0xff] }
0x28fe   :  { %7319 = vst.msk [vmem:[#allocation2 + $0x28] sm:$0xff] %vm307_vm4, %v7313_v20  ;;  %v12049_v26 = vadd.f32 %v10315_v24, %v7425_v22 }
0x28ff   :  { %v9760_v28 = vpop.f32.mrf.mxu1  ;;  %v9765_v30 = vpop.f32.mrf.mxu0 }
0x2900   :  { %v7447_v25 = vsel %vm307_vm4, %v12049_v26, -inf }
0x2901   :  { %v7364_v11 = vpop.f32.mrf.mxu1  ;;  %7448 = vmax.xlane.f32.xlu1 %v7447_v25  ;;  %v7316_v58 = vpop.f32.mrf.mxu0  ;;  %v7426_v34 = vld [vmem:[#allocation2 + $0x20] sm:$0xff] }
0x2902   :  { %7370 = vst.msk [vmem:[#allocation2 + $0x30] sm:$0xff] %vm307_vm4, %v7364_v11  ;;  %v7434_v54 = vadd.f32 %v10316_v37, %v7426_v34 }
0x2903   :  { %v9766_v40 = vpop.f32.mrf.mxu0  ;;  %v9771_v35 = vpop.f32.mrf.mxu1 }
0x2904   :  { %v7450_v27 = vsel %vm307_vm4, %v7434_v54, -inf }
0x2905   :  { %v7367_v41 = vpop.f32.mrf.mxu1  ;;  %7451 = vmax.xlane.f32.xlu0 %v7450_v27  ;;  %v7415_v44 = vpop.f32.mrf.mxu0  ;;  %v7427_v17 = vld [vmem:[#allocation2 + $0x28] sm:$0xff] }
0x2906   :  { %7421 = vst.msk [vmem:[#allocation2 + $0x38] sm:$0xff] %vm307_vm4, %v7415_v44  ;;  %v7435_v2 = vadd.f32 %v10317_v45, %v7427_v17 }
0x2907   :  { %v9772_v15 = vpop.f32.mrf.mxu1  ;;  %v9777_v46 = vpop.f32.mrf.mxu0 }
0x2908   :  { %v7453_v39 = vsel %vm307_vm4, %v7435_v2, -inf }
0x2909   :  { %7454 = vmax.xlane.f32.xlu1 %v7453_v39  ;;  %v7418_v38 = vpop.f32.mrf.mxu0  ;;  %v7428_v48 = vld [vmem:[#allocation2 + $0x30] sm:$0xff] }
0x290a   :  { %v7436_v42 = vadd.f32 %v10318_v50, %v7428_v48 }
0x290b   :  { %v9778_v49 = vpop.f32.mrf.mxu0 }
0x290c   :  { %v7456_v53 = vsel %vm307_vm4, %v7436_v42, -inf }
0x290d   :  { %7457 = vmax.xlane.f32.xlu0 %v7456_v53  ;;  %v7429_v52 = vld [vmem:[#allocation2 + $0x38] sm:$0xff] }
0x290e   :  { %v7437_v18 = vadd.f32 %v10319_v59, %v7429_v52 }
0x2910   :  { %v7459_v61 = vsel %vm307_vm4, %v7437_v18, -inf  ;;  %v7440_v32 = vpop.xlane.xlu1 %7439 }
0x2911   :  { %7460 = vmax.xlane.f32.xlu1 %v7459_v61  ;;  %v7462_v55 = vsub.f32 %v12032_v31, %v7440_v32 }
0x2913   :  { %v7470_v56 = vmul.f32 1.442695, %v7462_v55 }
0x2915   :  { %10260 = vpow2.f32 %v7470_v56 }
0x2922   :  { %7634 = vrot.lane.b32.xlu1 %v11944_v14, %s10399_s11  ;;  %v12068_v57 = vpop.eup %10260 }
0x2923   :  { %7689 = vrot.lane.b32.xlu0 %v11944_v14, %s10400_s15  ;;  %v7486_v51 = vsel %vm307_vm4, %v12068_v57, 0.0 }
0x2942   :  { %7487 = vadd.xlane.f32.xlu0 %v7486_v51 }
0x2982   :  { %v7443_v23 = vpop.xlane.xlu0 %7442 }
0x2983   :  { %v7463_v60 = vsub.f32 %v12040_v4, %v7443_v23 }
0x2985   :  { %v7472_v9 = vmul.f32 1.442695, %v7463_v60 }
0x2986   :  { %v7446_v0 = vpop.xlane.xlu0 %7445 }
0x2987   :  { %10262 = vpow2.f32 %v7472_v9  ;;  %v7464_v1 = vsub.f32 %v7432_v13, %v7446_v0 }
0x2989   :  { %v7474_v3 = vmul.f32 1.442695, %v7464_v1 }
0x298a   :  { %v7449_v10 = vpop.xlane.xlu1 %7448 }
0x298b   :  { %10264 = vpow2.f32 %v7474_v3  ;;  %v7465_v12 = vsub.f32 %v12049_v26, %v7449_v10 }
0x298d   :  { %v7476_v16 = vmul.f32 1.442695, %v7465_v12 }
0x298e   :  { %v7452_v14 = vpop.xlane.xlu0 %7451 }
0x298f   :  { %v7466_v62 = vsub.f32 %v7434_v54, %v7452_v14 }
0x2991   :  { %v7478_v31 = vmul.f32 1.442695, %v7466_v62 }
0x2992   :  { %v7455_v13 = vpop.xlane.xlu1 %7454 }
0x2993   :  { %10266 = vpow2.f32 %v7478_v31  ;;  %v7467_v6 = vsub.f32 %v7435_v2, %v7455_v13 }
0x2994   :  { %v10263_v36 = vpop.eup %10262  ;;  %10268 = vpow2.f32 %v7476_v16 }
0x2995   :  { %v7489_v5 = vsel %vm307_vm4, %v10263_v36, 0.0  ;;  %v7480_v21 = vmul.f32 1.442695, %v7467_v6 }
0x2996   :  { %7490 = vadd.xlane.f32.xlu1 %v7489_v5  ;;  %v7458_v22 = vpop.xlane.xlu0 %7457 }
0x2997   :  { %10270 = vpow2.f32 %v7480_v21  ;;  %v7468_v24 = vsub.f32 %v7436_v42, %v7458_v22 }
0x2998   :  { %v12074_v63 = vpop.eup %10264 }
0x2999   :  { %v7492_v7 = vsel %vm307_vm4, %v12074_v63, 0.0  ;;  %v7482_v30 = vmul.f32 1.442695, %v7468_v24 }
0x299a   :  { %7493 = vadd.xlane.f32.xlu0 %v7492_v7  ;;  %v7461_v19 = vpop.xlane.xlu1 %7460  ;;  %v7690_v35 = vpop.permute.xlu0 %7689 }
0x299b   :  { %v7469_v20 = vsub.f32 %v7437_v18, %v7461_v19 }
0x299d   :  { %v7484_v28 = vmul.f32 1.442695, %v7469_v20 }
0x299e   :  { %v7635_v27 = vpop.permute.xlu1 %7634 }
0x299f   :  { %10272 = vpow2.f32 %v7484_v28  ;;  %v7640_v39 = vsel %vm778_vm3, %v7635_v27, 0 }
0x29a0   :  { %v12078_v4 = vpop.eup %10266  ;;  %10274 = vpow2.f32 %v7482_v30  ;;  %v10042_v30 = vld [vmem:[%s12244_s8 + $0x38] sm:$0xff]  }
0x29a1   :  { %v7498_v8 = vsel %vm307_vm4, %v12078_v4, 0.0  ;;  %v10269_v25 = vpop.eup %10268 }
0x29a2   :  { %7499 = vadd.xlane.f32.xlu0 %v7498_v8  ;;  %v7495_v26 = vsel %vm307_vm4, %v10269_v25, 0.0 }
0x29a4   :  { %v10271_v11 = vpop.eup %10270 }
0x29a5   :  { %v7501_v58 = vsel %vm307_vm4, %v10271_v11, 0.0 }
0x29a7   :  { %7742 = vrot.lane.b32.xlu1 %v11980_v33, %s10397_s7 }
0x29ac   :  { %v12089_v34 = vpop.eup %10272 }
0x29ad   :  { %v7507_v37 = vsel %vm307_vm4, %v12089_v34, 0.0  ;;  %v12093_v54 = vpop.eup %10274 }
0x29ae   :  { %v7504_v40 = vsel %vm307_vm4, %v12093_v54, 0.0 }
0x29b8   :  { %7793 = vrot.lane.b32.xlu0 %v11980_v33, %s10398_s10 }
0x29cb   :  { %7496 = vadd.xlane.f32.xlu1 %v7495_v26  ;;  %v7488_v41 = vpop.xlane.xlu0 %7487 }
0x29cc   :  { %10276 = vrcp.f32 %v7488_v41  ;;  %v10044_v41 = vld [vmem:[%s12244_s8 + $0x28] sm:$0xff]  }
0x29cf   :  { %7502 = vadd.xlane.f32.xlu1 %v7501_v58 }
0x29d3   :  { %7508 = vadd.xlane.f32.xlu1 %v7507_v37  ;;  %v10043_v37 = vld [vmem:[%s12244_s8 + $0x30] sm:$0xff]  }
0x29d7   :  { %7505 = vadd.xlane.f32.xlu0 %v7504_v40 }
0x29d9   :  { %v10277_v17 = vpop.eup %10276 }
0x29da   :  { %v7518_v2 = vmul.f32 %v10277_v17, %v12068_v57 }
0x29e4   :  { %7846 = vrot.lane.b32.xlu1 %v11980_v33, %s10399_s11 }
0x29ed   :  { %7901 = vrot.lane.b32.xlu0 %v11980_v33, %s10400_s15  ;;  %v7695_v33 = vsel %vm778_vm3, %v7690_v35, 0 }
0x2a1f   :  { %v7491_v44 = vpop.xlane.xlu1 %7490 }
0x2a20   :  { %10278 = vrcp.f32 %v7491_v44 }
0x2a23   :  { %v7494_v48 = vpop.xlane.xlu0 %7493  ;;  %v7743_v50 = vpop.permute.xlu1 %7742 }
0x2a24   :  { %10280 = vrcp.f32 %v7494_v48  ;;  %v7748_v60 = vsel %vm778_vm3, %v7743_v50, 0 }
0x2a2b   :  { %v7500_v49 = vpop.xlane.xlu0 %7499 }
0x2a2d   :  { %v10279_v45 = vpop.eup %10278 }
0x2a2e   :  { %v7519_v15 = vmul.f32 %v10279_v45, %v10263_v36  ;;  %v10045_v45 = vld [vmem:[%s12244_s8 + $0x20] sm:$0xff]  }
0x2a2f   :  { %v7794_v52 = vpop.permute.xlu0 %7793 }
0x2a30   :  { %v7526_v46 = vpack.c.bf16 %v7519_v15, %v7518_v2  ;;  %v7799_v3 = vsel %vm778_vm3, %v7794_v52, 0 }
0x2a31   :  { %v10281_v18 = vpop.eup %10280 }
0x2a32   :  { %9782 = vmatmul.mubr.msk.bf16.vlgmr.msra.gmra.mxu1 %vm307_vm4, %v7526_v46  ;;  %v7580_v38 = vrot.slane %v7526_v46, 4  ;;  %v7520_v55 = vmul.f32 %v10281_v18, %v12074_v63 }
0x2a33   :  { %9792 = vmatpush3.bf16.msra.mxu1 %v7640_v39  ;;  %9793 = vmatprep.mubr.msk.bf16.mxu1 %vm10395_vm1, %v10394_v29 }
0x2a34   :  { %9788 = vmatmul.mubr.msk.bf16.vlgmr.msra.gmra.mxu0 %vm307_vm4, %v7580_v38  ;;  %9803 = vmatprep.subr.bf16.mxu1 %v10394_v29 }
0x2a35   :  { %9798 = vmatpush3.bf16.msra.mxu0 %v7695_v33  ;;  %9799 = vmatprep.mubr.msk.bf16.mxu0 %vm10395_vm1, %v10394_v29 }
0x2a36   :  { %9809 = vmatprep.subr.bf16.mxu0 %v10394_v29 }
0x2a54   :  { %v7497_v42 = vpop.xlane.xlu1 %7496 }
0x2a55   :  { %10282 = vrcp.f32 %v7497_v42 }
0x2a56   :  { %10284 = vrcp.f32 %v7500_v49 }
0x2a58   :  { %v7503_v53 = vpop.xlane.xlu1 %7502 }
0x2a59   :  { %10286 = vrcp.f32 %v7503_v53 }
0x2a5c   :  { %v7509_v59 = vpop.xlane.xlu1 %7508 }
0x2a5d   :  { %10288 = vrcp.f32 %v7509_v59 }
0x2a60   :  { %v7506_v61 = vpop.xlane.xlu0 %7505  ;;  %v7847_v62 = vpop.permute.xlu1 %7846 }
0x2a61   :  { %10290 = vrcp.f32 %v7506_v61  ;;  %v7852_v7 = vsel %vm778_vm3, %v7847_v62, 0 }
0x2a62   :  { %v10283_v32 = vpop.eup %10282 }
0x2a63   :  { %v7521_v56 = vmul.f32 %v10283_v32, %v10269_v25  ;;  %v10285_v57 = vpop.eup %10284 }
0x2a64   :  { %v7522_v1 = vmul.f32 %v10285_v57, %v12078_v4  ;;  %v7902_v5 = vpop.permute.xlu0 %7901 }
0x2a65   :  { %v7527_v51 = vpack.c.bf16 %v7521_v56, %v7520_v55  ;;  %v7907_v10 = vsel %vm778_vm3, %v7902_v5, 0 }
0x2a66   :  { %v10287_v23 = vpop.eup %10286 }
0x2a67   :  { %v7523_v9 = vmul.f32 %v10287_v23, %v10271_v11  ;;  %9794 = vmatmul.mubr.msk.bf16.vlgmr.msra.gmra.mxu1 %vm307_vm4, %v7527_v51  ;;  %v7688_v0 = vrot.slane %v7527_v51, 4 }
0x2a68   :  { %9804 = vmatpush3.bf16.msra.mxu1 %v7748_v60  ;;  %9805 = vmatprep.mubr.msk.bf16.mxu1 %vm10395_vm1, %v10394_v29 }
0x2a69   :  { %9800 = vmatmul.mubr.msk.bf16.vlgmr.msra.gmra.mxu0 %vm307_vm4, %v7688_v0  ;;  %9815 = vmatprep.subr.bf16.mxu1 %v10394_v29  ;;  %v7528_v14 = vpack.c.bf16 %v7523_v9, %v7522_v1 }
0x2a6a   :  { %9810 = vmatpush3.bf16.msra.mxu0 %v7799_v3  ;;  %9811 = vmatprep.mubr.msk.bf16.mxu0 %vm10395_vm1, %v10394_v29  ;;  %v10289_v31 = vpop.eup %10288 }
0x2a6b   :  { %9821 = vmatprep.subr.bf16.mxu0 %v10394_v29  ;;  %v7792_v4 = vrot.slane %v7528_v14, 4  ;;  %v7525_v8 = vmul.f32 %v10289_v31, %v12089_v34 }
0x2a6e   :  { %v10291_v36 = vpop.eup %10290 }
0x2a6f   :  { %v7524_v63 = vmul.f32 %v10291_v36, %v12093_v54  ;;  %9806 = vmatmul.mubr.msk.bf16.vlgmr.msra.gmra.mxu1 %vm307_vm4, %v7528_v14 }
0x2a70   :  { %9816 = vmatpush3.bf16.msra.mxu1 %v7852_v7  ;;  %9817 = vmatprep.mubr.msk.bf16.mxu1 %vm10395_vm1, %v10394_v29  ;;  %v10048_v7 = vld [vmem:[%s12245_s14 + $0x28] sm:$0xff]  }
0x2a71   :  { %9812 = vmatmul.mubr.msk.bf16.vlgmr.msra.gmra.mxu0 %vm307_vm4, %v7792_v4  ;;  %9827 = vmatprep.subr.bf16.mxu1 %v10394_v29  ;;  %v7529_v12 = vpack.c.bf16 %v7525_v8, %v7524_v63  ;;  %v10046_v63 = vld [vmem:[%s12245_s14 + $0x38] sm:$0xff]   ;;  %v10049_v4 = vld [vmem:[%s12245_s14 + $0x20] sm:$0xff]  }
0x2a72   :  { %9822 = vmatpush3.bf16.msra.mxu0 %v7907_v10  ;;  %9823 = vmatprep.mubr.msk.bf16.mxu0 %vm10395_vm1, %v10394_v29  ;;  %v10050_v8 = vld [vmem:[%s12246_s19 + $0x78] sm:$0xff]   ;;  %v10051_v10 = vld [vmem:[%s12246_s19 + $0x70] sm:$0xff]  }
0x2a73   :  { %9839 = vmatprep.subr.bf16.mxu0 %v10394_v29  ;;  %v7900_v13 = vrot.slane %v7529_v12, 4 }
0x2a77   :  { %9818 = vmatmul.mubr.msk.bf16.vlgmr.msra.gmra.mxu1 %vm307_vm4, %v7529_v12  ;;  %v10052_v12 = vld [vmem:[%s12246_s19 + $0x68] sm:$0xff]  }
0x2a78   :  { %9835 = vmatprep.mubr.msk.bf16.mxu1 %vm10395_vm1, %v10394_v29  ;;  %9828 = vmatpush3.bf16.msra.mxu1 %v10042_v30 }
0x2a79   :  { %9824 = vmatmul.mubr.msk.bf16.vlgmr.msra.gmra.mxu0 %vm307_vm4, %v7900_v13  ;;  %9829 = vmatprep.subr.bf16.mxu1 %v10394_v29  ;;  %v10053_v13 = vld [vmem:[%s12246_s19 + $0x60] sm:$0xff]  }
0x2a7a   :  { %9847 = vmatprep.mubr.msk.bf16.mxu0 %vm10395_vm1, %v10394_v29  ;;  %9840 = vmatpush3.bf16.msra.mxu0 %v10046_v63 }
0x2a7b   :  { %9841 = vmatprep.subr.bf16.mxu0 %v10394_v29 }
0x2a7c   :  { %9830 = vmatpush3.bf16.msra.mxu1 %v10043_v37 }
0x2a7d   :  { %9831 = vmatprep.subr.bf16.mxu1 %v10394_v29 }
0x2a80   :  { %9832 = vmatpush3.bf16.msra.mxu1 %v10044_v41 }
0x2a81   :  { %9833 = vmatprep.subr.bf16.mxu1 %v10394_v29 }
0x2a84   :  { %9834 = vmatpush3.bf16.msra.mxu1 %v10045_v45 }
0x2a85   :  { %9851 = vmatprep.subr.bf16.mxu1 %v10394_v29 }
0x2af2   :  { %v7572_v16 = vpop.f32.mrf.mxu1 }
0x2af3   :  { %7578 = vst.msk [vmem:[#allocation3] sm:$0xff] %vm260_vm2, %v7572_v16  ;;  %v10054_v16 = vld [vmem:[%s12246_s19 + $0x58] sm:$0xff]  }
0x2af4   :  { %v9783_v6 = vpop.f32.mrf.mxu1  ;;  %v7623_v19 = vpop.f32.mrf.mxu0 }
0x2af5   :  { %7630 = vrot.lane.b32.xlu1 %v7623_v19, %s10400_s15  ;;  %v10055_v6 = vld [vmem:[%s12246_s19 + $0x50] sm:$0xff]  }
0x2af6   :  { %v7575_v21 = vpop.f32.mrf.mxu1  ;;  %v9789_v20 = vpop.f32.mrf.mxu0 }
0x2af8   :  { %v9784_v22 = vpop.f32.mrf.mxu1  ;;  %v7626_v24 = vpop.f32.mrf.mxu0 }
0x2afa   :  { %v9790_v28 = vpop.f32.mrf.mxu0 }
0x2b27   :  { %v7676_v25 = vpop.f32.mrf.mxu1 }
0x2b28   :  { %7683 = vrot.lane.b32.xlu1 %v7676_v25, %s10399_s11 }
0x2b29   :  { %v9795_v26 = vpop.f32.mrf.mxu1  ;;  %v7731_v11 = vpop.f32.mrf.mxu0 }
0x2b2b   :  { %v7679_v58 = vpop.f32.mrf.mxu1  ;;  %v9801_v34 = vpop.f32.mrf.mxu0 }
0x2b2c   :  { %7738 = vrot.lane.b32.xlu1 %v7731_v11, %s10398_s10  ;;  %v8666_v11 = vld [vmem:[%s12247_s24 + $0x1] ss:$0 sm:$0xff] }
0x2b2d   :  { %v9796_v54 = vpop.f32.mrf.mxu1  ;;  %v7734_v40 = vpop.f32.mrf.mxu0 }
0x2b2e   :  { %v10056_v40 = vld [vmem:[%s12246_s19 + $0x48] sm:$0xff]  }
0x2b2f   :  { %v9802_v35 = vpop.f32.mrf.mxu0  ;;  %v7784_v27 = vpop.f32.mrf.mxu1 }
0x2b30   :  { %7790 = vst.msk [vmem:[#allocation3 + $0x8] sm:$0xff] %vm260_vm2, %v7784_v27  ;;  %v10057_v35 = vld [vmem:[%s12246_s19 + $0x40] sm:$0xff]  }
0x2b31   :  { %v9807_v44 = vpop.f32.mrf.mxu1  ;;  %v7835_v17 = vpop.f32.mrf.mxu0 }
0x2b32   :  { %7842 = vrot.lane.b32.xlu0 %v7835_v17, %s10400_s15 }
0x2b33   :  { %v7787_v2 = vpop.f32.mrf.mxu1  ;;  %v9813_v15 = vpop.f32.mrf.mxu0 }
0x2b35   :  { %v9808_v46 = vpop.f32.mrf.mxu1  ;;  %v7838_v39 = vpop.f32.mrf.mxu0 }
0x2b37   :  { %v9814_v38 = vpop.f32.mrf.mxu0  ;;  %v7888_v33 = vpop.f32.mrf.mxu1 }
0x2b38   :  { %7895 = vrot.lane.b32.xlu0 %v7888_v33, %s10399_s11 }
0x2b39   :  { %v9819_v48 = vpop.f32.mrf.mxu1  ;;  %v7943_v50 = vpop.f32.mrf.mxu0 }
0x2b3b   :  { %v7891_v42 = vpop.f32.mrf.mxu1  ;;  %v9825_v49 = vpop.f32.mrf.mxu0 }
0x2b3c   :  { %7950 = vrot.lane.b32.xlu0 %v7943_v50, %s10398_s10 }
0x2b3d   :  { %v9820_v53 = vpop.f32.mrf.mxu1  ;;  %v7946_v52 = vpop.f32.mrf.mxu0 }
0x2b3f   :  { %v9826_v59 = vpop.f32.mrf.mxu0 }
0x2b67   :  { %v7631_v18 = vpop.permute.xlu1 %7630 }
0x2b68   :  { %7633 = vst.msk [vmem:[#allocation3] sm:$0xff] %vm878_vm5, %v7631_v18 }
0x2b9a   :  { %v7684_v61 = vpop.permute.xlu1 %7683 }
0x2b9b   :  { %7686 = vst.msk [vmem:[#allocation3] sm:$0xff] %vm932_vm6, %v7684_v61 }
0x2b9e   :  { %v7739_v32 = vpop.permute.xlu1 %7738 }
0x2b9f   :  { %7741 = vst.msk [vmem:[#allocation3] sm:$0xff] %vm988_vm7, %v7739_v32 }
0x2ba4   :  { %v7843_v55 = vpop.permute.xlu0 %7842 }
0x2ba5   :  { %7845 = vst.msk [vmem:[#allocation3 + $0x8] sm:$0xff] %vm878_vm5, %v7843_v55 }
0x2ba6   :  { %v7954_v51 = vld [vmem:[#allocation3] sm:$0xff] }
0x2baa   :  { %v7896_v56 = vpop.permute.xlu0 %7895 }
0x2bab   :  { %7898 = vst.msk [vmem:[#allocation3 + $0x8] sm:$0xff] %vm932_vm6, %v7896_v56 }
0x2bae   :  { %v7951_v57 = vpop.permute.xlu0 %7950 }
0x2baf   :  { %7953 = vst.msk [vmem:[#allocation3 + $0x8] sm:$0xff] %vm988_vm7, %v7951_v57 }
0x2bb6   :  { %v7955_v23 = vld [vmem:[#allocation3 + $0x8] sm:$0xff] }
0x2bb7   :  { %v7965_v60 = vpack.c.bf16 %v7955_v23, %v7954_v51 }
0x2bb9   :  { %9836 = vmatmul.mubr.msk.bf16.vlgmr.msra.gmra.mxu1 %vm137_vm0, %v7965_v60 }
0x2bba   :  { %9867 = vmatprep.mubr.msk.bf16.mxu1 %vm10395_vm1, %v10394_v29  ;;  %9852 = vmatpush3.bf16.msra.mxu1 %v10050_v8 }
0x2bbb   :  { %9853 = vmatprep.subr.bf16.mxu1 %v10394_v29 }
0x2bbe   :  { %9854 = vmatpush3.bf16.msra.mxu1 %v10051_v10 }
0x2bbf   :  { %9855 = vmatprep.subr.bf16.mxu1 %v10394_v29 }
0x2bc2   :  { %9856 = vmatpush3.bf16.msra.mxu1 %v10052_v12 }
0x2bc3   :  { %9857 = vmatprep.subr.bf16.mxu1 %v10394_v29 }
0x2bc6   :  { %9858 = vmatpush3.bf16.msra.mxu1 %v10053_v13 }
0x2bc7   :  { %9859 = vmatprep.subr.bf16.mxu1 %v10394_v29 }
0x2bca   :  { %9860 = vmatpush3.bf16.msra.mxu1 %v10054_v16 }
0x2bcb   :  { %9861 = vmatprep.subr.bf16.mxu1 %v10394_v29 }
0x2bce   :  { %9862 = vmatpush3.bf16.msra.mxu1 %v10055_v6 }
0x2bcf   :  { %9863 = vmatprep.subr.bf16.mxu1 %v10394_v29 }
0x2bd2   :  { %9864 = vmatpush3.bf16.msra.mxu1 %v10056_v40 }
0x2bd3   :  { %9865 = vmatprep.subr.bf16.mxu1 %v10394_v29 }
0x2bd6   :  { %9866 = vmatpush3.bf16.msra.mxu1 %v10057_v35 }
0x2c79   :  { %v8027_v9 = vpop.f32.mrf.mxu1 }
0x2c7a   :  { %v12168_v0 = vadd.f32 %v8027_v9, %v11933_v47 }
0x2c7b   :  { %v9837_v1 = vpop.f32.mrf.mxu1 }
0x2c7c   :  { %v8038_v3 = vmul.f32 %v12168_v0, %v12168_v0 }
0x2c7d   :  { %v8030_v14 = vpop.f32.mrf.mxu1 }
0x2c7e   :  { %v12173_v62 = vadd.f32 %v8030_v14, %v11938_v43  ;;  %v8040_v31 = vsel %vm137_vm0, %v8038_v3, 0.0  ;;  %v10047_v43 = vld [vmem:[%s12245_s14 + $0x30] sm:$0xff]  }
0x2c7f   :  { %8041 = vadd.xlane.f32.xlu1 %v8040_v31  ;;  %v9838_v36 = vpop.f32.mrf.mxu1  ;;  %9842 = vmatpush3.bf16.msra.mxu0 %v10047_v43 }
0x2c80   :  { %v8039_v5 = vmul.f32 %v12173_v62, %v12173_v62  ;;  %9843 = vmatprep.subr.bf16.mxu0 %v10394_v29 }
0x2c82   :  { %v8043_v47 = vsel %vm137_vm0, %v8039_v5, 0.0 }
0x2c83   :  { %8044 = vadd.xlane.f32.xlu0 %v8043_v47  ;;  %9844 = vmatpush3.bf16.msra.mxu0 %v10048_v7 }
0x2c84   :  { %9845 = vmatprep.subr.bf16.mxu0 %v10394_v29 }
0x2c87   :  { %9846 = vmatpush3.bf16.msra.mxu0 %v10049_v4 }
0x2d08   :  { %v8042_v19 = vpop.xlane.xlu1 %8041 }
0x2d09   :  { %v8046_v21 = vmul.f32 0.015625, %v8042_v19 }
0x2d0b   :  { %v8048_v20 = vadd.f32 1e-06, %v8046_v21 }
0x2d0c   :  { %v8045_v22 = vpop.xlane.xlu0 %8044 }
0x2d0d   :  { %10292 = vrsqrt.f32 %v8048_v20  ;;  %v8047_v24 = vmul.f32 0.015625, %v8045_v22 }
0x2d0f   :  { %v8049_v28 = vadd.f32 1e-06, %v8047_v24 }
0x2d11   :  { %10294 = vrsqrt.f32 %v8049_v28 }
0x2d1a   :  { %v10293_v30 = vpop.eup %10292 }
0x2d1b   :  { %v8052_v25 = vmul.f32 %v10293_v30, %v12168_v0 }
0x2d1d   :  { %v8060_v34 = vmul.f32 %v8666_v11, %v8052_v25 }
0x2d1e   :  { %v10295_v26 = vpop.eup %10294 }
0x2d1f   :  { %v8053_v58 = vmul.f32 %v10295_v26, %v12173_v62 }
0x2d21   :  { %v8061_v37 = vmul.f32 %v8666_v11, %v8053_v58 }
0x2d23   :  { %v8071_v54 = vpack.c.bf16 %v8061_v37, %v8060_v34 }
0x2d25   :  { %9848 = vmatmul.mubr.msk.bf16.vlgmr.msra.gmra.mxu0 %vm137_vm0, %v8071_v54 }
0x2de5   :  { %v8133_v27 = vpop.f32.mrf.mxu0 }
0x2de6   :  { %v8140_v17 = vmax.f32 %v8133_v27, 0.0 }
0x2de7   :  { %v9849_v41 = vpop.f32.mrf.mxu0 }
0x2de9   :  { %v8136_v44 = vpop.f32.mrf.mxu0 }
0x2dea   :  { %v8141_v45 = vmax.f32 %v8136_v44, 0.0 }
0x2deb   :  { %v9850_v2 = vpop.f32.mrf.mxu0 }
0x2dec   :  { %v8159_v15 = vpack.c.bf16 %v8141_v45, %v8140_v17 }
0x2dee   :  { %9868 = vmatmul.mubr.bf16.vlgmr.msra.gmra.mxu1 %v8159_v15 }
0x2eae   :  { %v8242_v46 = vpop.f32.mrf.mxu1 }
0x2eaf   :  { %v8249_v39 = vadd.f32 %v8242_v46, %v12168_v0 }
0x2eb0   :  { %v9869_v38 = vpop.f32.mrf.mxu1 }
0x2eb1   :  { %v8252_v33 = vmul.f32 %v8249_v39, %v8249_v39 }
0x2eb2   :  { %v8245_v48 = vpop.f32.mrf.mxu1 }
0x2eb3   :  { %v8250_v50 = vadd.f32 %v8245_v48, %v12173_v62  ;;  %v8254_v29 = vsel %vm137_vm0, %v8252_v33, 0.0 }
0x2eb4   :  { %8255 = vadd.xlane.f32.xlu0 %v8254_v29  ;;  %v9870_v42 = vpop.f32.mrf.mxu1 }
0x2eb5   :  { %v8253_v49 = vmul.f32 %v8250_v50, %v8250_v50 }
0x2eb7   :  { %v8257_v53 = vsel %vm137_vm0, %v8253_v49, 0.0 }
0x2eb8   :  { %8258 = vadd.xlane.f32.xlu1 %v8257_v53 }
0x2eb9   :  { %10331 = shalt.err (!%p10328_p4)
}
0x2eba   :  { %s12248_s20 = sld [smem:[#allocation20_spill]]  ;;  %s10404_s27 = smov [#allocation6]  }
0x2ebb   :  { %8287 = dma.vmem_to_hbm [thread:$0]  %s8285_s6, 32, %s10555_s17, [#allocation5]  }
0x2ebc   :  { %s8293_s22 = sshll.u32 %s10404_s27, 4  ;;  %s8294_s22 = int_to_ptr.vmem [resolvable:$true] %s8293_s22 }
0x2ebd   :  { %s10340_s17 = scalar_lea.vmem %s8294_s22, 256  ;;  %p10345_p6 = scmp.lt.s32.totalorder %s8294_s22, %s8294_s22 }
0x2ebe   :  { %p10341_p5 = scmp.ne.s32.totalorder %s8294_s22, %s10340_s17  ;;  %p10346_p7 = scmp.lt.s32.totalorder %s10340_s17, %s10340_s17 }
0x2ec0   :  { %v8704_v57 = vld [vmem:[%s12248_s20] ss:$0 sm:$0xff]  ;;  %p10347_p8 = por %p10346_p7, %p10345_p6 }
0x2ec2   :  { %p10348_p9 = pnand %p10347_p8, %p10341_p5 }
0x2f3d   :  { %v8256_v52 = vpop.xlane.xlu0 %8255 }
0x2f3e   :  { %v8260_v59 = vmul.f32 0.015625, %v8256_v52 }
0x2f40   :  { %v8262_v18 = vadd.f32 1e-06, %v8260_v59 }
0x2f41   :  { %v8259_v61 = vpop.xlane.xlu1 %8258 }
0x2f42   :  { %10296 = vrsqrt.f32 %v8262_v18  ;;  %v8261_v32 = vmul.f32 0.015625, %v8259_v61 }
0x2f44   :  { %v8263_v55 = vadd.f32 1e-06, %v8261_v32 }
0x2f46   :  { %10298 = vrsqrt.f32 %v8263_v55 }
0x2f4f   :  { %v10297_v56 = vpop.eup %10296 }
0x2f50   :  { %v8266_v51 = vmul.f32 %v10297_v56, %v8249_v39 }
0x2f52   :  { %v8274_v23 = vmul.f32 %v8704_v57, %v8266_v51 }
0x2f53   :  { %v10299_v60 = vpop.eup %10298 }
0x2f54   :  { %v8267_v9 = vmul.f32 %v10299_v60, %v8250_v50  ;;  %8276 = vst.msk [vmem:[#allocation6] sm:$0xff] %vm137_vm0, %v8274_v23 }
0x2f56   :  { %v8275_v0 = vmul.f32 %v8704_v57, %v8267_v9 }
0x2f58   :  { %8277 = vst.msk [vmem:[#allocation6 + $0x8] sm:$0xff] %vm137_vm0, %v8275_v0 }
0x2f59   :  { %10351 = shalt.err (!%p10348_p9)
}
0x2f5a   :  { %s10405_s23 = smov 128   ;;  %s10406_s26 = smov 8  }
0x2f5b   :  { %8299 = dma.vmem_to_hbm [thread:$0]  %s8294_s22, 256, %s10560_s4, [#allocation7], %s10405_s23, %s10405_s23, %s10406_s26  }
0x2f5c   :  { %10360 = dma.done.wait [#allocation5], 32  }
0x2f5d   :  { %10361 = vsyncadd [#allocation5], 4294967264 }
0x2f5e   :  { %10362 = dma.done.wait [#allocation7], 256  }
0x2f5f   :  { %10363 = vsyncadd [#allocation7], 4294967040 }
0x2f60   :  { %8306 = vsyncpa [#allocation5], 1 }
0x2f61   :  { %8307 = vsyncpa [#allocation7], 1 }

</bundles_post_ra>
